<compile_context>
chip_gen: v7x
topology: tpu7x:2x2x1
jax: 0.10.0
libtpu: 0.0.40
codegen_flags: <defaults>
</compile_context>

<pallas_src>
import math
import functools

import jax
import jax.numpy as jnp
from jax.experimental import pallas as pl
from jax.experimental.pallas import tpu as pltpu


# ---------------------------------------------------------------------------
# shared math helpers (used inside the kernel and by the pure-JAX reference)
# ---------------------------------------------------------------------------

def _layernorm(v, gamma, beta, eps=1e-5):
    mu = jnp.mean(v, axis=-1, keepdims=True)
    var = jnp.mean((v - mu) ** 2, axis=-1, keepdims=True)
    return (v - mu) * jax.lax.rsqrt(var + eps) * gamma + beta


def _gelu_exact(x):
    # PyTorch nn.GELU() default = exact erf formulation.
    return 0.5 * x * (1.0 + jax.lax.erf(x * (1.0 / math.sqrt(2.0))))


def _attend(q, k, v, batch, lq, lk, nheads, head_dim):
    """Batched multi-head attention core (SSA values only, no scratch).

    q: (B*Lq, H*hd) -- W_Q already carries the 1/sqrt(hd) scale
    k, v: (B*Lk, H*hd)
    returns (B*Lq, H*hd)
    """
    B, H, hd = batch, nheads, head_dim
    # Fold batch and heads into ONE dot_general batch dim (n = B*H); this is
    # the proven rank-3 batched-matmul pattern on the MXU.
    qh = q.reshape(B, lq, H, hd).transpose(0, 2, 1, 3).reshape(B * H, lq, hd)
    kh = k.reshape(B, lk, H, hd).transpose(0, 2, 1, 3).reshape(B * H, lk, hd)
    vh = v.reshape(B, lk, H, hd).transpose(0, 2, 1, 3).reshape(B * H, lk, hd)
    s = jnp.einsum("nqd,nkd->nqk", qh, kh,
                   preferred_element_type=jnp.float32)          # (B*H, Lq, Lk)
    p = jnp.exp(s - jnp.max(s, axis=-1, keepdims=True))
    denom = jnp.sum(p, axis=-1, keepdims=True)
    attn = p * pl.reciprocal(denom, approx=True)                # EUP slot
    ctx = jnp.einsum("nqk,nkd->nqd", attn, vh,
                     preferred_element_type=jnp.float32)        # (B*H, Lq, hd)
    return ctx.reshape(B, H, lq, hd).transpose(0, 2, 1, 3).reshape(B * lq, H * hd)


# ---------------------------------------------------------------------------
# fused whole-network kernel
# ---------------------------------------------------------------------------

def perceiver_kernel(
    # activations
    x_ref,                                   # (B, Sx, Dx)  input ++ pos-emb
    lat_ref,                                 # (Sl, Dl)     latent table
    # cross-attention block stacks (leading dim = nblocks)
    xgl_ref, xbl_ref,                        # ln_latent  (nb, 1, Dl)
    xgi_ref, xbi_ref,                        # ln_input   (nb, 1, Dx)
    xwq_ref, xwk_ref, xwv_ref, xwo_ref,      # (nb, Dl, Dl) / (nb, Dx, Dl) x2 / (nb, Dl, Dl)
    xgm_ref, xbm_ref,                        # ln_mlp     (nb, 1, Dl)
    xw1_ref, xfb1_ref, xw2_ref, xfb2_ref,    # MLP        (nb, Dl, 4Dl)/(nb,1,4Dl)/(nb,4Dl,Dl)/(nb,1,Dl)
    # transformer block stacks (leading dim = nblocks * nlayers)
    tg1_ref, tb1_ref,                        # ln_1       (L, 1, Dl)
    twq_ref, twk_ref, twv_ref, two_ref,      # (L, Dl, Dl) x4
    tg2_ref, tb2_ref,                        # ln_2       (L, 1, Dl)
    tw1_ref, tfb1_ref, tw2_ref, tfb2_ref,    # MLP        (L, Dl, 4Dl)/(L,1,4Dl)/(L,4Dl,Dl)/(L,1,Dl)
    # output
    o_ref,                                   # (B, Sl, Dl)
    *, batch, in_seq, lat_seq, nheads, nxheads, nblocks, nlayers,
):
    B, Sx, Sl = batch, in_seq, lat_seq
    Dl = lat_ref.shape[-1]
    Dx = x_ref.shape[-1]
    hd_x = Dl // nxheads
    hd_s = Dl // nheads

    # fold batch into rows (free leading-dim reshapes)
    x = x_ref[...].reshape(B * Sx, Dx)
    lat = jnp.broadcast_to(lat_ref[...][None], (B, Sl, Dl)).reshape(B * Sl, Dl)

    for blk in range(nblocks):                        # static loop: layers unrolled
        # ---- CrossAttentionBlock -----------------------------------------
        ln_lat = _layernorm(lat, xgl_ref[blk], xbl_ref[blk])
        ln_in = _layernorm(x, xgi_ref[blk], xbi_ref[blk])
        q = jnp.dot(ln_lat, xwq_ref[blk], preferred_element_type=jnp.float32)
        k = jnp.dot(ln_in, xwk_ref[blk], preferred_element_type=jnp.float32)
        v = jnp.dot(ln_in, xwv_ref[blk], preferred_element_type=jnp.float32)
        ctx = _attend(q, k, v, B, Sl, Sx, nxheads, hd_x)
        lat = lat + jnp.dot(ctx, xwo_ref[blk], preferred_element_type=jnp.float32)

        ln_m = _layernorm(lat, xgm_ref[blk], xbm_ref[blk])
        h1 = _gelu_exact(jnp.dot(ln_m, xw1_ref[blk],
                                 preferred_element_type=jnp.float32) + xfb1_ref[blk])
        lat = lat + jnp.dot(h1, xw2_ref[blk],
                            preferred_element_type=jnp.float32) + xfb2_ref[blk]

        # ---- TransformerBlocks ---------------------------------------------
        for ly in range(nlayers):
            l = blk * nlayers + ly
            ln1 = _layernorm(lat, tg1_ref[l], tb1_ref[l])
            q = jnp.dot(ln1, twq_ref[l], preferred_element_type=jnp.float32)
            k = jnp.dot(ln1, twk_ref[l], preferred_element_type=jnp.float32)
            v = jnp.dot(ln1, twv_ref[l], preferred_element_type=jnp.float32)
            ctx = _attend(q, k, v, B, Sl, Sl, nheads, hd_s)
            lat = lat + jnp.dot(ctx, two_ref[l], preferred_element_type=jnp.float32)

            ln2 = _layernorm(lat, tg2_ref[l], tb2_ref[l])
            h1 = _gelu_exact(jnp.dot(ln2, tw1_ref[l],
                                     preferred_element_type=jnp.float32) + tfb1_ref[l])
            lat = lat + jnp.dot(h1, tw2_ref[l],
                                preferred_element_type=jnp.float32) + tfb2_ref[l]

    o_ref[...] = lat.reshape(B, Sl, Dl)


# ---------------------------------------------------------------------------
# wrapper: ONE pallas_call for the whole network
# ---------------------------------------------------------------------------

_XA_KEYS = ("ln_lat_g", "ln_lat_b", "ln_in_g", "ln_in_b",
            "wq", "wk", "wv", "wo",
            "ln_mlp_g", "ln_mlp_b", "fc1_w", "fc1_b", "fc2_w", "fc2_b")
_TB_KEYS = ("ln1_g", "ln1_b", "wq", "wk", "wv", "wo",
            "ln2_g", "ln2_b", "fc1_w", "fc1_b", "fc2_w", "fc2_b")


def perceiver_forward(inp, packed, *, nheads, nxheads):
    """Full PerceiverBase forward. inp: (B, S, Cin)."""
    B, S, _ = inp.shape
    pos_tab = packed["pos_emb"]                                   # (S, P)
    # pos-emb lookup of arange(S) == a contiguous slice of the table; the
    # concat is pure data movement, done once in plain JAX.
    pos = jnp.broadcast_to(pos_tab[None, :S, :], (B, S, pos_tab.shape[1]))
    x = jnp.concatenate([inp, pos], axis=-1)                      # (B, S, Dx)

    lat_tab = packed["latents"]                                   # (Sl, Dl)
    Sl, Dl = lat_tab.shape
    nblocks = packed["xa"]["wq"].shape[0]
    nlayers = packed["tb"]["wq"].shape[0] // nblocks

    args = (x, lat_tab,
            *[packed["xa"][k] for k in _XA_KEYS],
            *[packed["tb"][k] for k in _TB_KEYS])

    kern = functools.partial(perceiver_kernel, batch=B, in_seq=S, lat_seq=Sl,
                             nheads=nheads, nxheads=nxheads,
                             nblocks=nblocks, nlayers=nlayers)

    # Gridless call, everything resident in VMEM (no weight double-buffering,
    # no per-layer dispatch).  Output kept in the natural (B, Sl, Dl) shape;
    # this 2 KB store is irrelevant, at production dims present a lane-dense
    # slab instead.
    return pl.pallas_call(
        kern,
        out_shape=jax.ShapeDtypeStruct((B, Sl, Dl), jnp.float32),
        in_specs=[pl.BlockSpec(memory_space=pltpu.MemorySpace.VMEM)] * len(args),
        out_specs=pl.BlockSpec(memory_space=pltpu.MemorySpace.VMEM),
        compiler_params=pltpu.CompilerParams(vmem_limit_bytes=32 * 1024 * 1024),
    )(*args)


# ---------------------------------------------------------------------------
# parameters (deterministic; Linear weights stored pre-transposed as (in, out)
# so y = x @ W_t + b == nn.Linear) and the one-time packing step
# ---------------------------------------------------------------------------

def init_params(key, *, in_channels, pos_channels, input_seq_len,
                latent_channels, latent_seq_len, nblocks, nlayers):
    Dx = in_channels + pos_channels
    Dl = latent_channels
    Dh = 4 * Dl
    s = 0.05

    keys = iter(jax.random.split(key, 2048))
    nk = lambda: next(keys)

    def dense(shape):
        return (s * jax.random.normal(nk(), shape)).astype(jnp.float32)

    def ln(d):
        g = (1.0 + 0.1 * jax.random.normal(nk(), (1, d))).astype(jnp.float32)
        b = (0.1 * jax.random.normal(nk(), (1, d))).astype(jnp.float32)
        return g, b

    def make_xattn():
        gl, bl = ln(Dl)
        gi, bi = ln(Dx)
        gm, bm = ln(Dl)
        return {
            "ln_lat_g": gl, "ln_lat_b": bl,
            "ln_in_g": gi, "ln_in_b": bi,
            "wq_t": dense((Dl, Dl)),
            "wk_t": dense((Dx, Dl)),
            "wv_t": dense((Dx, Dl)),
            "wo_t": dense((Dl, Dl)),
            "ln_mlp_g": gm, "ln_mlp_b": bm,
            "fc1_w_t": dense((Dl, Dh)), "fc1_b": dense((1, Dh)),
            "fc2_w_t": dense((Dh, Dl)), "fc2_b": dense((1, Dl)),
        }

    def make_tblock():
        g1, b1 = ln(Dl)
        g2, b2 = ln(Dl)
        return {
            "ln1_g": g1, "ln1_b": b1,
            "wq_t": dense((Dl, Dl)),
            "wk_t": dense((Dl, Dl)),
            "wv_t": dense((Dl, Dl)),
            "wo_t": dense((Dl, Dl)),
            "ln2_g": g2, "ln2_b": b2,
            "fc1_w_t": dense((Dl, Dh)), "fc1_b": dense((1, Dh)),
            "fc2_w_t": dense((Dh, Dl)), "fc2_b": dense((1, Dl)),
        }

    return {
        "pos_emb": jax.random.normal(nk(), (input_seq_len, pos_channels)).astype(jnp.float32),
        "latents": jax.random.normal(nk(), (latent_seq_len, Dl)).astype(jnp.float32),
        "blocks": [
            {"xattn": make_xattn(),
             "tblocks": [make_tblock() for _ in range(nlayers)]}
            for _ in range(nblocks)
        ],
    }


def pack_params(params, *, nheads, nxheads):
    """One-time (outside jit) stacking of per-layer weights + scale folding."""
    blocks = params["blocks"]
    Dl = params["latents"].shape[1]
    x_scale = 1.0 / math.sqrt(Dl // nxheads)     # folded into cross-attn W_Q
    s_scale = 1.0 / math.sqrt(Dl // nheads)      # folded into self-attn  W_Q

    xa_list = [b["xattn"] for b in blocks]
    tb_list = [tp for b in blocks for tp in b["tblocks"]]

    def stack(items, key, scale=None):
        arrs = [it[key] if scale is None else it[key] * scale for it in items]
        return jnp.stack(arrs, axis=0)

    xa = {
        "ln_lat_g": stack(xa_list, "ln_lat_g"), "ln_lat_b": stack(xa_list, "ln_lat_b"),
        "ln_in_g": stack(xa_list, "ln_in_g"), "ln_in_b": stack(xa_list, "ln_in_b"),
        "wq": stack(xa_list, "wq_t", x_scale),
        "wk": stack(xa_list, "wk_t"),
        "wv": stack(xa_list, "wv_t"),
        "wo": stack(xa_list, "wo_t"),
        "ln_mlp_g": stack(xa_list, "ln_mlp_g"), "ln_mlp_b": stack(xa_list, "ln_mlp_b"),
        "fc1_w": stack(xa_list, "fc1_w_t"), "fc1_b": stack(xa_list, "fc1_b"),
        "fc2_w": stack(xa_list, "fc2_w_t"), "fc2_b": stack(xa_list, "fc2_b"),
    }
    tb = {
        "ln1_g": stack(tb_list, "ln1_g"), "ln1_b": stack(tb_list, "ln1_b"),
        "wq": stack(tb_list, "wq_t", s_scale),
        "wk": stack(tb_list, "wk_t"),
        "wv": stack(tb_list, "wv_t"),
        "wo": stack(tb_list, "wo_t"),
        "ln2_g": stack(tb_list, "ln2_g"), "ln2_b": stack(tb_list, "ln2_b"),
        "fc1_w": stack(tb_list, "fc1_w_t"), "fc1_b": stack(tb_list, "fc1_b"),
        "fc2_w": stack(tb_list, "fc2_w_t"), "fc2_b": stack(tb_list, "fc2_b"),
    }
    return {"pos_emb": params["pos_emb"], "latents": params["latents"],
            "xa": xa, "tb": tb}


# ---------------------------------------------------------------------------
# pure-JAX reference mirroring the PyTorch forward pass
# ---------------------------------------------------------------------------

def _mm(a, b):
    return jnp.matmul(a, b, precision=jax.lax.Precision.HIGHEST)


def _ref_softmax(x):
    m = jnp.max(x, axis=-1, keepdims=True)
    e = jnp.exp(x - m)
    return e / jnp.sum(e, axis=-1, keepdims=True)


def _ref_mlp(x, p):
    h = _gelu_exact(_mm(x, p["fc1_w_t"]) + p["fc1_b"][0])
    return _mm(h, p["fc2_w_t"]) + p["fc2_b"][0]


def _ref_self_attention(x, p, nheads):
    B, S, D = x.shape
    hd = D // nheads
    def proj(w):
        return _mm(x, w).reshape(B, S, nheads, hd).transpose(0, 2, 1, 3)
    q, k, v = proj(p["wq_t"]), proj(p["wk_t"]), proj(p["wv_t"])
    attn = _ref_softmax(_mm(q, k.transpose(0, 1, 3, 2)) / math.sqrt(hd))
    out = _mm(attn, v).transpose(0, 2, 1, 3).reshape(B, S, D)
    return _mm(out, p["wo_t"])


def _ref_transformer_block(x, p, nheads):
    h = x + _ref_self_attention(
        _layernorm(x, p["ln1_g"][0], p["ln1_b"][0]), p, nheads)
    return h + _ref_mlp(_layernorm(h, p["ln2_g"][0], p["ln2_b"][0]), p)


def _ref_cross_attention(lat, x, p, nxheads):
    B, Sl, Dl = lat.shape
    _, Sx, _ = x.shape
    hd = Dl // nxheads
    q = _mm(lat, p["wq_t"]).reshape(B, Sl, nxheads, hd).transpose(0, 2, 1, 3)
    k = _mm(x, p["wk_t"]).reshape(B, Sx, nxheads, hd).transpose(0, 2, 1, 3)
    v = _mm(x, p["wv_t"]).reshape(B, Sx, nxheads, hd).transpose(0, 2, 1, 3)
    attn = _ref_softmax(_mm(q, k.transpose(0, 1, 3, 2)) / math.sqrt(hd))
    out = _mm(attn, v).transpose(0, 2, 1, 3).reshape(B, Sl, Dl)
    return _mm(out, p["wo_t"])


def _ref_cross_attn_block(lat, x, p, nxheads):
    h = lat + _ref_cross_attention(
        _layernorm(lat, p["ln_lat_g"][0], p["ln_lat_b"][0]),
        _layernorm(x, p["ln_in_g"][0], p["ln_in_b"][0]), p, nxheads)
    return h + _ref_mlp(_layernorm(h, p["ln_mlp_g"][0], p["ln_mlp_b"][0]), p)


def reference_perceiver(inp, params, *, nheads, nxheads):
    B, S, _ = inp.shape
    pos_tab = params["pos_emb"]
    pos = jnp.broadcast_to(pos_tab[None, :S, :], (B, S, pos_tab.shape[1]))
    x = jnp.concatenate([inp, pos], axis=-1)
    lat = jnp.broadcast_to(params["latents"][None], (B,) + params["latents"].shape)
    for blk in params["blocks"]:
        lat = _ref_cross_attn_block(lat, x, blk["xattn"], nxheads)
        for tp in blk["tblocks"]:
            lat = _ref_transformer_block(lat, tp, nheads)
    return lat


# ---------------------------------------------------------------------------

if __name__ == "__main__":
    B = 2            # batch
    IN_SEQ = 16      # input_seq_len
    IN_CH = 8        # in_channels
    POS_CH = 8       # pos_emb_channels  -> concat channels Dx = 16
    LAT_SEQ = 8      # latent_seq_len
    LAT_CH = 32      # latent_channels
    NHEADS = 4       # self-attention heads (head_dim 8)
    NXHEADS = 2      # cross-attention heads (head_dim 16)
    NLAYERS = 2      # TransformerBlocks per PerceiverBlock
    NBLOCKS = 2      # PerceiverBlocks

    key = jax.random.PRNGKey(0)
    kx, kp = jax.random.split(key)
    inp = jax.random.normal(kx, (B, IN_SEQ, IN_CH), dtype=jnp.float32)
    params = init_params(kp, in_channels=IN_CH, pos_channels=POS_CH,
                         input_seq_len=IN_SEQ, latent_channels=LAT_CH,
                         latent_seq_len=LAT_SEQ, nblocks=NBLOCKS, nlayers=NLAYERS)

    packed = pack_params(params, nheads=NHEADS, nxheads=NXHEADS)   # one-time, outside jit

    fwd = jax.jit(functools.partial(perceiver_forward,
                                    nheads=NHEADS, nxheads=NXHEADS))
    out = jax.block_until_ready(fwd(inp, packed))

    ref = reference_perceiver(inp, params, nheads=NHEADS, nxheads=NXHEADS)
    assert out.shape == (B, LAT_SEQ, LAT_CH)
    err = float(jnp.max(jnp.abs(out - ref)))
    # tolerance accounts for the EUP approximate reciprocal in the softmax
    assert err < 2e-3, f"max abs err {err}"

    print("KERNEL_OK")
</pallas_src>

<mosaic_0001>
module attributes {stable_mosaic.version = 11 : i64} {
  func.func @perceiver_kernel(%arg0: memref<2x16x16xf32, #tpu.memory_space<vmem>>, %arg1: memref<8x32xf32, #tpu.memory_space<vmem>>, %arg2: memref<2x1x32xf32, #tpu.memory_space<vmem>>, %arg3: memref<2x1x32xf32, #tpu.memory_space<vmem>>, %arg4: memref<2x1x16xf32, #tpu.memory_space<vmem>>, %arg5: memref<2x1x16xf32, #tpu.memory_space<vmem>>, %arg6: memref<2x32x32xf32, #tpu.memory_space<vmem>>, %arg7: memref<2x16x32xf32, #tpu.memory_space<vmem>>, %arg8: memref<2x16x32xf32, #tpu.memory_space<vmem>>, %arg9: memref<2x32x32xf32, #tpu.memory_space<vmem>>, %arg10: memref<2x1x32xf32, #tpu.memory_space<vmem>>, %arg11: memref<2x1x32xf32, #tpu.memory_space<vmem>>, %arg12: memref<2x32x128xf32, #tpu.memory_space<vmem>>, %arg13: memref<2x1x128xf32, #tpu.memory_space<vmem>>, %arg14: memref<2x128x32xf32, #tpu.memory_space<vmem>>, %arg15: memref<2x1x32xf32, #tpu.memory_space<vmem>>, %arg16: memref<4x1x32xf32, #tpu.memory_space<vmem>>, %arg17: memref<4x1x32xf32, #tpu.memory_space<vmem>>, %arg18: memref<4x32x32xf32, #tpu.memory_space<vmem>>, %arg19: memref<4x32x32xf32, #tpu.memory_space<vmem>>, %arg20: memref<4x32x32xf32, #tpu.memory_space<vmem>>, %arg21: memref<4x32x32xf32, #tpu.memory_space<vmem>>, %arg22: memref<4x1x32xf32, #tpu.memory_space<vmem>>, %arg23: memref<4x1x32xf32, #tpu.memory_space<vmem>>, %arg24: memref<4x32x128xf32, #tpu.memory_space<vmem>>, %arg25: memref<4x1x128xf32, #tpu.memory_space<vmem>>, %arg26: memref<4x128x32xf32, #tpu.memory_space<vmem>>, %arg27: memref<4x1x32xf32, #tpu.memory_space<vmem>>, %arg28: memref<2x8x32xf32, #tpu.memory_space<vmem>>) attributes {dimension_semantics = [], scalar_prefetch = 0 : i64, scratch_operands = 0 : i64, tpu.core_type = #tpu.core_type<tc>} {
    %c0 = arith.constant 0 : index
    %c0_0 = arith.constant 0 : index
    %c0_1 = arith.constant 0 : index
    %0 = vector.load %arg0[%c0, %c0_0, %c0_1] : memref<2x16x16xf32, #tpu.memory_space<vmem>>, vector<2x16x16xf32>
    %1 = vector.shape_cast %0 : vector<2x16x16xf32> to vector<32x16xf32>
    %c0_2 = arith.constant 0 : index
    %c0_3 = arith.constant 0 : index
    %2 = vector.load %arg1[%c0_2, %c0_3] : memref<8x32xf32, #tpu.memory_space<vmem>>, vector<8x32xf32>
    %3 = vector.shape_cast %2 : vector<8x32xf32> to vector<1x8x32xf32>
    %4 = vector.shape_cast %3 : vector<1x8x32xf32> to vector<1x8x32xf32>
    %5 = vector.broadcast %4 : vector<1x8x32xf32> to vector<2x8x32xf32>
    %6 = vector.shape_cast %5 : vector<2x8x32xf32> to vector<16x32xf32>
    %c0_4 = arith.constant 0 : index
    %c0_5 = arith.constant 0 : index
    %c0_6 = arith.constant 0 : index
    %7 = vector.load %arg2[%c0_4, %c0_5, %c0_6] : memref<2x1x32xf32, #tpu.memory_space<vmem>>, vector<1x1x32xf32>
    %8 = vector.shape_cast %7 : vector<1x1x32xf32> to vector<1x32xf32>
    %c0_7 = arith.constant 0 : index
    %c0_8 = arith.constant 0 : index
    %c0_9 = arith.constant 0 : index
    %9 = vector.load %arg3[%c0_7, %c0_8, %c0_9] : memref<2x1x32xf32, #tpu.memory_space<vmem>>, vector<1x1x32xf32>
    %10 = vector.shape_cast %9 : vector<1x1x32xf32> to vector<1x32xf32>
    %cst = arith.constant dense<0.000000e+00> : vector<16xf32>
    %11 = vector.multi_reduction <add>, %6, %cst [1] : vector<16x32xf32> to vector<16xf32>
    %12 = vector.shape_cast %11 : vector<16xf32> to vector<16x1xf32>
    %cst_10 = arith.constant 3.200000e+01 : f32
    %13 = vector.broadcast %cst_10 : f32 to vector<16x1xf32>
    %14 = arith.divf %12, %13 : vector<16x1xf32>
    %15 = vector.broadcast %14 : vector<16x1xf32> to vector<16x32xf32>
    %16 = arith.subf %6, %15 : vector<16x32xf32>
    %17 = arith.mulf %16, %16 : vector<16x32xf32>
    %cst_11 = arith.constant dense<0.000000e+00> : vector<16xf32>
    %18 = vector.multi_reduction <add>, %17, %cst_11 [1] : vector<16x32xf32> to vector<16xf32>
    %19 = vector.shape_cast %18 : vector<16xf32> to vector<16x1xf32>
    %cst_12 = arith.constant 3.200000e+01 : f32
    %20 = vector.broadcast %cst_12 : f32 to vector<16x1xf32>
    %21 = arith.divf %19, %20 : vector<16x1xf32>
    %22 = vector.broadcast %14 : vector<16x1xf32> to vector<16x32xf32>
    %23 = arith.subf %6, %22 : vector<16x32xf32>
    %cst_13 = arith.constant 9.99999974E-6 : f32
    %24 = vector.broadcast %cst_13 : f32 to vector<16x1xf32>
    %25 = arith.addf %21, %24 : vector<16x1xf32>
    %26 = math.rsqrt %25 : vector<16x1xf32>
    %27 = vector.broadcast %26 : vector<16x1xf32> to vector<16x32xf32>
    %28 = arith.mulf %23, %27 : vector<16x32xf32>
    %29 = vector.broadcast %8 : vector<1x32xf32> to vector<16x32xf32>
    %30 = arith.mulf %28, %29 : vector<16x32xf32>
    %31 = vector.broadcast %10 : vector<1x32xf32> to vector<16x32xf32>
    %32 = arith.addf %30, %31 : vector<16x32xf32>
    %c0_14 = arith.constant 0 : index
    %c0_15 = arith.constant 0 : index
    %c0_16 = arith.constant 0 : index
    %33 = vector.load %arg4[%c0_14, %c0_15, %c0_16] : memref<2x1x16xf32, #tpu.memory_space<vmem>>, vector<1x1x16xf32>
    %34 = vector.shape_cast %33 : vector<1x1x16xf32> to vector<1x16xf32>
    %c0_17 = arith.constant 0 : index
    %c0_18 = arith.constant 0 : index
    %c0_19 = arith.constant 0 : index
    %35 = vector.load %arg5[%c0_17, %c0_18, %c0_19] : memref<2x1x16xf32, #tpu.memory_space<vmem>>, vector<1x1x16xf32>
    %36 = vector.shape_cast %35 : vector<1x1x16xf32> to vector<1x16xf32>
    %cst_20 = arith.constant dense<0.000000e+00> : vector<32xf32>
    %37 = vector.multi_reduction <add>, %1, %cst_20 [1] : vector<32x16xf32> to vector<32xf32>
    %38 = vector.shape_cast %37 : vector<32xf32> to vector<32x1xf32>
    %cst_21 = arith.constant 1.600000e+01 : f32
    %39 = vector.broadcast %cst_21 : f32 to vector<32x1xf32>
    %40 = arith.divf %38, %39 : vector<32x1xf32>
    %41 = vector.broadcast %40 : vector<32x1xf32> to vector<32x16xf32>
    %42 = arith.subf %1, %41 : vector<32x16xf32>
    %43 = arith.mulf %42, %42 : vector<32x16xf32>
    %cst_22 = arith.constant dense<0.000000e+00> : vector<32xf32>
    %44 = vector.multi_reduction <add>, %43, %cst_22 [1] : vector<32x16xf32> to vector<32xf32>
    %45 = vector.shape_cast %44 : vector<32xf32> to vector<32x1xf32>
    %cst_23 = arith.constant 1.600000e+01 : f32
    %46 = vector.broadcast %cst_23 : f32 to vector<32x1xf32>
    %47 = arith.divf %45, %46 : vector<32x1xf32>
    %48 = vector.broadcast %40 : vector<32x1xf32> to vector<32x16xf32>
    %49 = arith.subf %1, %48 : vector<32x16xf32>
    %cst_24 = arith.constant 9.99999974E-6 : f32
    %50 = vector.broadcast %cst_24 : f32 to vector<32x1xf32>
    %51 = arith.addf %47, %50 : vector<32x1xf32>
    %52 = math.rsqrt %51 : vector<32x1xf32>
    %53 = vector.broadcast %52 : vector<32x1xf32> to vector<32x16xf32>
    %54 = arith.mulf %49, %53 : vector<32x16xf32>
    %55 = vector.broadcast %34 : vector<1x16xf32> to vector<32x16xf32>
    %56 = arith.mulf %54, %55 : vector<32x16xf32>
    %57 = vector.broadcast %36 : vector<1x16xf32> to vector<32x16xf32>
    %58 = arith.addf %56, %57 : vector<32x16xf32>
    %c0_25 = arith.constant 0 : index
    %c0_26 = arith.constant 0 : index
    %c0_27 = arith.constant 0 : index
    %59 = vector.load %arg6[%c0_25, %c0_26, %c0_27] : memref<2x32x32xf32, #tpu.memory_space<vmem>>, vector<1x32x32xf32>
    %60 = vector.shape_cast %59 : vector<1x32x32xf32> to vector<32x32xf32>
    %cst_28 = arith.constant dense<0.000000e+00> : vector<16x32xf32>
    %61 = tpu.matmul %32, %60, %cst_28 {dimension_numbers = #tpu.dot_dimension_numbers<[1], [0], [0], [1], [0, 0, 1, 1], [], []>} : vector<16x32xf32>, vector<32x32xf32>, vector<16x32xf32> -> vector<16x32xf32>
    %c0_29 = arith.constant 0 : index
    %c0_30 = arith.constant 0 : index
    %c0_31 = arith.constant 0 : index
    %62 = vector.load %arg7[%c0_29, %c0_30, %c0_31] : memref<2x16x32xf32, #tpu.memory_space<vmem>>, vector<1x16x32xf32>
    %63 = vector.shape_cast %62 : vector<1x16x32xf32> to vector<16x32xf32>
    %cst_32 = arith.constant dense<0.000000e+00> : vector<32x32xf32>
    %64 = tpu.matmul %58, %63, %cst_32 {dimension_numbers = #tpu.dot_dimension_numbers<[1], [0], [0], [1], [0, 0, 1, 1], [], []>} : vector<32x16xf32>, vector<16x32xf32>, vector<32x32xf32> -> vector<32x32xf32>
    %c0_33 = arith.constant 0 : index
    %c0_34 = arith.constant 0 : index
    %c0_35 = arith.constant 0 : index
    %65 = vector.load %arg8[%c0_33, %c0_34, %c0_35] : memref<2x16x32xf32, #tpu.memory_space<vmem>>, vector<1x16x32xf32>
    %66 = vector.shape_cast %65 : vector<1x16x32xf32> to vector<16x32xf32>
    %cst_36 = arith.constant dense<0.000000e+00> : vector<32x32xf32>
    %67 = tpu.matmul %58, %66, %cst_36 {dimension_numbers = #tpu.dot_dimension_numbers<[1], [0], [0], [1], [0, 0, 1, 1], [], []>} : vector<32x16xf32>, vector<16x32xf32>, vector<32x32xf32> -> vector<32x32xf32>
    %68 = vector.shape_cast %61 : vector<16x32xf32> to vector<2x8x2x16xf32>
    %69 = tpu.transpose %68, [0, 2, 1, 3] : vector<2x8x2x16xf32> -> vector<2x2x8x16xf32>
    %70 = vector.shape_cast %69 : vector<2x2x8x16xf32> to vector<4x8x16xf32>
    %71 = vector.shape_cast %64 : vector<32x32xf32> to vector<2x16x2x16xf32>
    %72 = tpu.transpose %71, [0, 2, 1, 3] : vector<2x16x2x16xf32> -> vector<2x2x16x16xf32>
    %73 = vector.shape_cast %72 : vector<2x2x16x16xf32> to vector<4x16x16xf32>
    %74 = vector.shape_cast %67 : vector<32x32xf32> to vector<2x16x2x16xf32>
    %75 = tpu.transpose %74, [0, 2, 1, 3] : vector<2x16x2x16xf32> -> vector<2x2x16x16xf32>
    %76 = vector.shape_cast %75 : vector<2x2x16x16xf32> to vector<4x16x16xf32>
    "tpu.trace_start"() <{level = 10 : i32, message = "nqd,nkd->nqk"}> : () -> ()
    %cst_37 = arith.constant dense<0.000000e+00> : vector<4x8x16xf32>
    %77 = tpu.matmul %70, %73, %cst_37 {dimension_numbers = #tpu.dot_dimension_numbers<[2], [2], [1], [1], [0, 0, 0, 1, 1, 1], [0], [0]>} : vector<4x8x16xf32>, vector<4x16x16xf32>, vector<4x8x16xf32> -> vector<4x8x16xf32>
    "tpu.trace_stop"() : () -> ()
    %cst_38 = arith.constant dense<0xFF800000> : vector<4x8xf32>
    %78 = vector.multi_reduction <maximumf>, %77, %cst_38 [2] : vector<4x8x16xf32> to vector<4x8xf32>
    %79 = vector.shape_cast %78 : vector<4x8xf32> to vector<4x8x1xf32>
    %80 = vector.broadcast %79 : vector<4x8x1xf32> to vector<4x8x16xf32>
    %81 = arith.subf %77, %80 : vector<4x8x16xf32>
    %82 = math.exp %81 : vector<4x8x16xf32>
    %cst_39 = arith.constant dense<0.000000e+00> : vector<4x8xf32>
    %83 = vector.multi_reduction <add>, %82, %cst_39 [2] : vector<4x8x16xf32> to vector<4x8xf32>
    %84 = vector.shape_cast %83 : vector<4x8xf32> to vector<4x8x1xf32>
    %85 = tpu.reciprocal %84 {approx = true} : vector<4x8x1xf32> -> vector<4x8x1xf32>
    %86 = vector.broadcast %85 : vector<4x8x1xf32> to vector<4x8x16xf32>
    %87 = arith.mulf %82, %86 : vector<4x8x16xf32>
    "tpu.trace_start"() <{level = 10 : i32, message = "nqk,nkd->nqd"}> : () -> ()
    %cst_40 = arith.constant dense<0.000000e+00> : vector<4x8x16xf32>
    %88 = tpu.matmul %87, %76, %cst_40 {dimension_numbers = #tpu.dot_dimension_numbers<[2], [1], [1], [2], [0, 0, 0, 1, 1, 2], [0], [0]>} : vector<4x8x16xf32>, vector<4x16x16xf32>, vector<4x8x16xf32> -> vector<4x8x16xf32>
    "tpu.trace_stop"() : () -> ()
    %89 = vector.shape_cast %88 : vector<4x8x16xf32> to vector<2x2x8x16xf32>
    %90 = tpu.transpose %89, [0, 2, 1, 3] : vector<2x2x8x16xf32> -> vector<2x8x2x16xf32>
    %91 = vector.shape_cast %90 : vector<2x8x2x16xf32> to vector<16x32xf32>
    %c0_41 = arith.constant 0 : index
    %c0_42 = arith.constant 0 : index
    %c0_43 = arith.constant 0 : index
    %92 = vector.load %arg9[%c0_41, %c0_42, %c0_43] : memref<2x32x32xf32, #tpu.memory_space<vmem>>, vector<1x32x32xf32>
    %93 = vector.shape_cast %92 : vector<1x32x32xf32> to vector<32x32xf32>
    %cst_44 = arith.constant dense<0.000000e+00> : vector<16x32xf32>
    %94 = tpu.matmul %91, %93, %cst_44 {dimension_numbers = #tpu.dot_dimension_numbers<[1], [0], [0], [1], [0, 0, 1, 1], [], []>} : vector<16x32xf32>, vector<32x32xf32>, vector<16x32xf32> -> vector<16x32xf32>
    %95 = arith.addf %6, %94 : vector<16x32xf32>
    %c0_45 = arith.constant 0 : index
    %c0_46 = arith.constant 0 : index
    %c0_47 = arith.constant 0 : index
    %96 = vector.load %arg10[%c0_45, %c0_46, %c0_47] : memref<2x1x32xf32, #tpu.memory_space<vmem>>, vector<1x1x32xf32>
    %97 = vector.shape_cast %96 : vector<1x1x32xf32> to vector<1x32xf32>
    %c0_48 = arith.constant 0 : index
    %c0_49 = arith.constant 0 : index
    %c0_50 = arith.constant 0 : index
    %98 = vector.load %arg11[%c0_48, %c0_49, %c0_50] : memref<2x1x32xf32, #tpu.memory_space<vmem>>, vector<1x1x32xf32>
    %99 = vector.shape_cast %98 : vector<1x1x32xf32> to vector<1x32xf32>
    %cst_51 = arith.constant dense<0.000000e+00> : vector<16xf32>
    %100 = vector.multi_reduction <add>, %95, %cst_51 [1] : vector<16x32xf32> to vector<16xf32>
    %101 = vector.shape_cast %100 : vector<16xf32> to vector<16x1xf32>
    %cst_52 = arith.constant 3.200000e+01 : f32
    %102 = vector.broadcast %cst_52 : f32 to vector<16x1xf32>
    %103 = arith.divf %101, %102 : vector<16x1xf32>
    %104 = vector.broadcast %103 : vector<16x1xf32> to vector<16x32xf32>
    %105 = arith.subf %95, %104 : vector<16x32xf32>
    %106 = arith.mulf %105, %105 : vector<16x32xf32>
    %cst_53 = arith.constant dense<0.000000e+00> : vector<16xf32>
    %107 = vector.multi_reduction <add>, %106, %cst_53 [1] : vector<16x32xf32> to vector<16xf32>
    %108 = vector.shape_cast %107 : vector<16xf32> to vector<16x1xf32>
    %cst_54 = arith.constant 3.200000e+01 : f32
    %109 = vector.broadcast %cst_54 : f32 to vector<16x1xf32>
    %110 = arith.divf %108, %109 : vector<16x1xf32>
    %111 = vector.broadcast %103 : vector<16x1xf32> to vector<16x32xf32>
    %112 = arith.subf %95, %111 : vector<16x32xf32>
    %cst_55 = arith.constant 9.99999974E-6 : f32
    %113 = vector.broadcast %cst_55 : f32 to vector<16x1xf32>
    %114 = arith.addf %110, %113 : vector<16x1xf32>
    %115 = math.rsqrt %114 : vector<16x1xf32>
    %116 = vector.broadcast %115 : vector<16x1xf32> to vector<16x32xf32>
    %117 = arith.mulf %112, %116 : vector<16x32xf32>
    %118 = vector.broadcast %97 : vector<1x32xf32> to vector<16x32xf32>
    %119 = arith.mulf %117, %118 : vector<16x32xf32>
    %120 = vector.broadcast %99 : vector<1x32xf32> to vector<16x32xf32>
    %121 = arith.addf %119, %120 : vector<16x32xf32>
    %c0_56 = arith.constant 0 : index
    %c0_57 = arith.constant 0 : index
    %c0_58 = arith.constant 0 : index
    %122 = vector.load %arg12[%c0_56, %c0_57, %c0_58] : memref<2x32x128xf32, #tpu.memory_space<vmem>>, vector<1x32x128xf32>
    %123 = vector.shape_cast %122 : vector<1x32x128xf32> to vector<32x128xf32>
    %cst_59 = arith.constant dense<0.000000e+00> : vector<16x128xf32>
    %124 = tpu.matmul %121, %123, %cst_59 {dimension_numbers = #tpu.dot_dimension_numbers<[1], [0], [0], [1], [0, 0, 1, 1], [], []>} : vector<16x32xf32>, vector<32x128xf32>, vector<16x128xf32> -> vector<16x128xf32>
    %c0_60 = arith.constant 0 : index
    %c0_61 = arith.constant 0 : index
    %c0_62 = arith.constant 0 : index
    %125 = vector.load %arg13[%c0_60, %c0_61, %c0_62] : memref<2x1x128xf32, #tpu.memory_space<vmem>>, vector<1x1x128xf32>
    %126 = vector.shape_cast %125 : vector<1x1x128xf32> to vector<1x128xf32>
    %127 = vector.broadcast %126 : vector<1x128xf32> to vector<16x128xf32>
    %128 = arith.addf %124, %127 : vector<16x128xf32>
    %cst_63 = arith.constant 5.000000e-01 : f32
    %129 = vector.broadcast %cst_63 : f32 to vector<16x128xf32>
    %130 = arith.mulf %129, %128 : vector<16x128xf32>
    %cst_64 = arith.constant 0.707106769 : f32
    %131 = vector.broadcast %cst_64 : f32 to vector<16x128xf32>
    %132 = arith.mulf %128, %131 : vector<16x128xf32>
    %133 = math.erf %132 : vector<16x128xf32>
    %cst_65 = arith.constant 1.000000e+00 : f32
    %134 = vector.broadcast %cst_65 : f32 to vector<16x128xf32>
    %135 = arith.addf %134, %133 : vector<16x128xf32>
    %136 = arith.mulf %130, %135 : vector<16x128xf32>
    %c0_66 = arith.constant 0 : index
    %c0_67 = arith.constant 0 : index
    %c0_68 = arith.constant 0 : index
    %137 = vector.load %arg14[%c0_66, %c0_67, %c0_68] : memref<2x128x32xf32, #tpu.memory_space<vmem>>, vector<1x128x32xf32>
    %138 = vector.shape_cast %137 : vector<1x128x32xf32> to vector<128x32xf32>
    %cst_69 = arith.constant dense<0.000000e+00> : vector<16x32xf32>
    %139 = tpu.matmul %136, %138, %cst_69 {dimension_numbers = #tpu.dot_dimension_numbers<[1], [0], [0], [1], [0, 0, 1, 1], [], []>} : vector<16x128xf32>, vector<128x32xf32>, vector<16x32xf32> -> vector<16x32xf32>
    %140 = arith.addf %95, %139 : vector<16x32xf32>
    %c0_70 = arith.constant 0 : index
    %c0_71 = arith.constant 0 : index
    %c0_72 = arith.constant 0 : index
    %141 = vector.load %arg15[%c0_70, %c0_71, %c0_72] : memref<2x1x32xf32, #tpu.memory_space<vmem>>, vector<1x1x32xf32>
    %142 = vector.shape_cast %141 : vector<1x1x32xf32> to vector<1x32xf32>
    %143 = vector.broadcast %142 : vector<1x32xf32> to vector<16x32xf32>
    %144 = arith.addf %140, %143 : vector<16x32xf32>
    %c0_73 = arith.constant 0 : index
    %c0_74 = arith.constant 0 : index
    %c0_75 = arith.constant 0 : index
    %145 = vector.load %arg16[%c0_73, %c0_74, %c0_75] : memref<4x1x32xf32, #tpu.memory_space<vmem>>, vector<1x1x32xf32>
    %146 = vector.shape_cast %145 : vector<1x1x32xf32> to vector<1x32xf32>
    %c0_76 = arith.constant 0 : index
    %c0_77 = arith.constant 0 : index
    %c0_78 = arith.constant 0 : index
    %147 = vector.load %arg17[%c0_76, %c0_77, %c0_78] : memref<4x1x32xf32, #tpu.memory_space<vmem>>, vector<1x1x32xf32>
    %148 = vector.shape_cast %147 : vector<1x1x32xf32> to vector<1x32xf32>
    %cst_79 = arith.constant dense<0.000000e+00> : vector<16xf32>
    %149 = vector.multi_reduction <add>, %144, %cst_79 [1] : vector<16x32xf32> to vector<16xf32>
    %150 = vector.shape_cast %149 : vector<16xf32> to vector<16x1xf32>
    %cst_80 = arith.constant 3.200000e+01 : f32
    %151 = vector.broadcast %cst_80 : f32 to vector<16x1xf32>
    %152 = arith.divf %150, %151 : vector<16x1xf32>
    %153 = vector.broadcast %152 : vector<16x1xf32> to vector<16x32xf32>
    %154 = arith.subf %144, %153 : vector<16x32xf32>
    %155 = arith.mulf %154, %154 : vector<16x32xf32>
    %cst_81 = arith.constant dense<0.000000e+00> : vector<16xf32>
    %156 = vector.multi_reduction <add>, %155, %cst_81 [1] : vector<16x32xf32> to vector<16xf32>
    %157 = vector.shape_cast %156 : vector<16xf32> to vector<16x1xf32>
    %cst_82 = arith.constant 3.200000e+01 : f32
    %158 = vector.broadcast %cst_82 : f32 to vector<16x1xf32>
    %159 = arith.divf %157, %158 : vector<16x1xf32>
    %160 = vector.broadcast %152 : vector<16x1xf32> to vector<16x32xf32>
    %161 = arith.subf %144, %160 : vector<16x32xf32>
    %cst_83 = arith.constant 9.99999974E-6 : f32
    %162 = vector.broadcast %cst_83 : f32 to vector<16x1xf32>
    %163 = arith.addf %159, %162 : vector<16x1xf32>
    %164 = math.rsqrt %163 : vector<16x1xf32>
    %165 = vector.broadcast %164 : vector<16x1xf32> to vector<16x32xf32>
    %166 = arith.mulf %161, %165 : vector<16x32xf32>
    %167 = vector.broadcast %146 : vector<1x32xf32> to vector<16x32xf32>
    %168 = arith.mulf %166, %167 : vector<16x32xf32>
    %169 = vector.broadcast %148 : vector<1x32xf32> to vector<16x32xf32>
    %170 = arith.addf %168, %169 : vector<16x32xf32>
    %c0_84 = arith.constant 0 : index
    %c0_85 = arith.constant 0 : index
    %c0_86 = arith.constant 0 : index
    %171 = vector.load %arg18[%c0_84, %c0_85, %c0_86] : memref<4x32x32xf32, #tpu.memory_space<vmem>>, vector<1x32x32xf32>
    %172 = vector.shape_cast %171 : vector<1x32x32xf32> to vector<32x32xf32>
    %cst_87 = arith.constant dense<0.000000e+00> : vector<16x32xf32>
    %173 = tpu.matmul %170, %172, %cst_87 {dimension_numbers = #tpu.dot_dimension_numbers<[1], [0], [0], [1], [0, 0, 1, 1], [], []>} : vector<16x32xf32>, vector<32x32xf32>, vector<16x32xf32> -> vector<16x32xf32>
    %c0_88 = arith.constant 0 : index
    %c0_89 = arith.constant 0 : index
    %c0_90 = arith.constant 0 : index
    %174 = vector.load %arg19[%c0_88, %c0_89, %c0_90] : memref<4x32x32xf32, #tpu.memory_space<vmem>>, vector<1x32x32xf32>
    %175 = vector.shape_cast %174 : vector<1x32x32xf32> to vector<32x32xf32>
    %cst_91 = arith.constant dense<0.000000e+00> : vector<16x32xf32>
    %176 = tpu.matmul %170, %175, %cst_91 {dimension_numbers = #tpu.dot_dimension_numbers<[1], [0], [0], [1], [0, 0, 1, 1], [], []>} : vector<16x32xf32>, vector<32x32xf32>, vector<16x32xf32> -> vector<16x32xf32>
    %c0_92 = arith.constant 0 : index
    %c0_93 = arith.constant 0 : index
    %c0_94 = arith.constant 0 : index
    %177 = vector.load %arg20[%c0_92, %c0_93, %c0_94] : memref<4x32x32xf32, #tpu.memory_space<vmem>>, vector<1x32x32xf32>
    %178 = vector.shape_cast %177 : vector<1x32x32xf32> to vector<32x32xf32>
    %cst_95 = arith.constant dense<0.000000e+00> : vector<16x32xf32>
    %179 = tpu.matmul %170, %178, %cst_95 {dimension_numbers = #tpu.dot_dimension_numbers<[1], [0], [0], [1], [0, 0, 1, 1], [], []>} : vector<16x32xf32>, vector<32x32xf32>, vector<16x32xf32> -> vector<16x32xf32>
    %180 = vector.shape_cast %173 : vector<16x32xf32> to vector<2x8x4x8xf32>
    %181 = tpu.transpose %180, [0, 2, 1, 3] : vector<2x8x4x8xf32> -> vector<2x4x8x8xf32>
    %182 = vector.shape_cast %181 : vector<2x4x8x8xf32> to vector<8x8x8xf32>
    %183 = vector.shape_cast %176 : vector<16x32xf32> to vector<2x8x4x8xf32>
    %184 = tpu.transpose %183, [0, 2, 1, 3] : vector<2x8x4x8xf32> -> vector<2x4x8x8xf32>
    %185 = vector.shape_cast %184 : vector<2x4x8x8xf32> to vector<8x8x8xf32>
    %186 = vector.shape_cast %179 : vector<16x32xf32> to vector<2x8x4x8xf32>
    %187 = tpu.transpose %186, [0, 2, 1, 3] : vector<2x8x4x8xf32> -> vector<2x4x8x8xf32>
    %188 = vector.shape_cast %187 : vector<2x4x8x8xf32> to vector<8x8x8xf32>
    "tpu.trace_start"() <{level = 10 : i32, message = "nqd,nkd->nqk"}> : () -> ()
    %cst_96 = arith.constant dense<0.000000e+00> : vector<8x8x8xf32>
    %189 = tpu.matmul %182, %185, %cst_96 {dimension_numbers = #tpu.dot_dimension_numbers<[2], [2], [1], [1], [0, 0, 0, 1, 1, 1], [0], [0]>} : vector<8x8x8xf32>, vector<8x8x8xf32>, vector<8x8x8xf32> -> vector<8x8x8xf32>
    "tpu.trace_stop"() : () -> ()
    %cst_97 = arith.constant dense<0xFF800000> : vector<8x8xf32>
    %190 = vector.multi_reduction <maximumf>, %189, %cst_97 [2] : vector<8x8x8xf32> to vector<8x8xf32>
    %191 = vector.shape_cast %190 : vector<8x8xf32> to vector<8x8x1xf32>
    %192 = vector.broadcast %191 : vector<8x8x1xf32> to vector<8x8x8xf32>
    %193 = arith.subf %189, %192 : vector<8x8x8xf32>
    %194 = math.exp %193 : vector<8x8x8xf32>
    %cst_98 = arith.constant dense<0.000000e+00> : vector<8x8xf32>
    %195 = vector.multi_reduction <add>, %194, %cst_98 [2] : vector<8x8x8xf32> to vector<8x8xf32>
    %196 = vector.shape_cast %195 : vector<8x8xf32> to vector<8x8x1xf32>
    %197 = tpu.reciprocal %196 {approx = true} : vector<8x8x1xf32> -> vector<8x8x1xf32>
    %198 = vector.broadcast %197 : vector<8x8x1xf32> to vector<8x8x8xf32>
    %199 = arith.mulf %194, %198 : vector<8x8x8xf32>
    "tpu.trace_start"() <{level = 10 : i32, message = "nqk,nkd->nqd"}> : () -> ()
    %cst_99 = arith.constant dense<0.000000e+00> : vector<8x8x8xf32>
    %200 = tpu.matmul %199, %188, %cst_99 {dimension_numbers = #tpu.dot_dimension_numbers<[2], [1], [1], [2], [0, 0, 0, 1, 1, 2], [0], [0]>} : vector<8x8x8xf32>, vector<8x8x8xf32>, vector<8x8x8xf32> -> vector<8x8x8xf32>
    "tpu.trace_stop"() : () -> ()
    %201 = vector.shape_cast %200 : vector<8x8x8xf32> to vector<2x4x8x8xf32>
    %202 = tpu.transpose %201, [0, 2, 1, 3] : vector<2x4x8x8xf32> -> vector<2x8x4x8xf32>
    %203 = vector.shape_cast %202 : vector<2x8x4x8xf32> to vector<16x32xf32>
    %c0_100 = arith.constant 0 : index
    %c0_101 = arith.constant 0 : index
    %c0_102 = arith.constant 0 : index
    %204 = vector.load %arg21[%c0_100, %c0_101, %c0_102] : memref<4x32x32xf32, #tpu.memory_space<vmem>>, vector<1x32x32xf32>
    %205 = vector.shape_cast %204 : vector<1x32x32xf32> to vector<32x32xf32>
    %cst_103 = arith.constant dense<0.000000e+00> : vector<16x32xf32>
    %206 = tpu.matmul %203, %205, %cst_103 {dimension_numbers = #tpu.dot_dimension_numbers<[1], [0], [0], [1], [0, 0, 1, 1], [], []>} : vector<16x32xf32>, vector<32x32xf32>, vector<16x32xf32> -> vector<16x32xf32>
    %207 = arith.addf %144, %206 : vector<16x32xf32>
    %c0_104 = arith.constant 0 : index
    %c0_105 = arith.constant 0 : index
    %c0_106 = arith.constant 0 : index
    %208 = vector.load %arg22[%c0_104, %c0_105, %c0_106] : memref<4x1x32xf32, #tpu.memory_space<vmem>>, vector<1x1x32xf32>
    %209 = vector.shape_cast %208 : vector<1x1x32xf32> to vector<1x32xf32>
    %c0_107 = arith.constant 0 : index
    %c0_108 = arith.constant 0 : index
    %c0_109 = arith.constant 0 : index
    %210 = vector.load %arg23[%c0_107, %c0_108, %c0_109] : memref<4x1x32xf32, #tpu.memory_space<vmem>>, vector<1x1x32xf32>
    %211 = vector.shape_cast %210 : vector<1x1x32xf32> to vector<1x32xf32>
    %cst_110 = arith.constant dense<0.000000e+00> : vector<16xf32>
    %212 = vector.multi_reduction <add>, %207, %cst_110 [1] : vector<16x32xf32> to vector<16xf32>
    %213 = vector.shape_cast %212 : vector<16xf32> to vector<16x1xf32>
    %cst_111 = arith.constant 3.200000e+01 : f32
    %214 = vector.broadcast %cst_111 : f32 to vector<16x1xf32>
    %215 = arith.divf %213, %214 : vector<16x1xf32>
    %216 = vector.broadcast %215 : vector<16x1xf32> to vector<16x32xf32>
    %217 = arith.subf %207, %216 : vector<16x32xf32>
    %218 = arith.mulf %217, %217 : vector<16x32xf32>
    %cst_112 = arith.constant dense<0.000000e+00> : vector<16xf32>
    %219 = vector.multi_reduction <add>, %218, %cst_112 [1] : vector<16x32xf32> to vector<16xf32>
    %220 = vector.shape_cast %219 : vector<16xf32> to vector<16x1xf32>
    %cst_113 = arith.constant 3.200000e+01 : f32
    %221 = vector.broadcast %cst_113 : f32 to vector<16x1xf32>
    %222 = arith.divf %220, %221 : vector<16x1xf32>
    %223 = vector.broadcast %215 : vector<16x1xf32> to vector<16x32xf32>
    %224 = arith.subf %207, %223 : vector<16x32xf32>
    %cst_114 = arith.constant 9.99999974E-6 : f32
    %225 = vector.broadcast %cst_114 : f32 to vector<16x1xf32>
    %226 = arith.addf %222, %225 : vector<16x1xf32>
    %227 = math.rsqrt %226 : vector<16x1xf32>
    %228 = vector.broadcast %227 : vector<16x1xf32> to vector<16x32xf32>
    %229 = arith.mulf %224, %228 : vector<16x32xf32>
    %230 = vector.broadcast %209 : vector<1x32xf32> to vector<16x32xf32>
    %231 = arith.mulf %229, %230 : vector<16x32xf32>
    %232 = vector.broadcast %211 : vector<1x32xf32> to vector<16x32xf32>
    %233 = arith.addf %231, %232 : vector<16x32xf32>
    %c0_115 = arith.constant 0 : index
    %c0_116 = arith.constant 0 : index
    %c0_117 = arith.constant 0 : index
    %234 = vector.load %arg24[%c0_115, %c0_116, %c0_117] : memref<4x32x128xf32, #tpu.memory_space<vmem>>, vector<1x32x128xf32>
    %235 = vector.shape_cast %234 : vector<1x32x128xf32> to vector<32x128xf32>
    %cst_118 = arith.constant dense<0.000000e+00> : vector<16x128xf32>
    %236 = tpu.matmul %233, %235, %cst_118 {dimension_numbers = #tpu.dot_dimension_numbers<[1], [0], [0], [1], [0, 0, 1, 1], [], []>} : vector<16x32xf32>, vector<32x128xf32>, vector<16x128xf32> -> vector<16x128xf32>
    %c0_119 = arith.constant 0 : index
    %c0_120 = arith.constant 0 : index
    %c0_121 = arith.constant 0 : index
    %237 = vector.load %arg25[%c0_119, %c0_120, %c0_121] : memref<4x1x128xf32, #tpu.memory_space<vmem>>, vector<1x1x128xf32>
    %238 = vector.shape_cast %237 : vector<1x1x128xf32> to vector<1x128xf32>
    %239 = vector.broadcast %238 : vector<1x128xf32> to vector<16x128xf32>
    %240 = arith.addf %236, %239 : vector<16x128xf32>
    %cst_122 = arith.constant 5.000000e-01 : f32
    %241 = vector.broadcast %cst_122 : f32 to vector<16x128xf32>
    %242 = arith.mulf %241, %240 : vector<16x128xf32>
    %cst_123 = arith.constant 0.707106769 : f32
    %243 = vector.broadcast %cst_123 : f32 to vector<16x128xf32>
    %244 = arith.mulf %240, %243 : vector<16x128xf32>
    %245 = math.erf %244 : vector<16x128xf32>
    %cst_124 = arith.constant 1.000000e+00 : f32
    %246 = vector.broadcast %cst_124 : f32 to vector<16x128xf32>
    %247 = arith.addf %246, %245 : vector<16x128xf32>
    %248 = arith.mulf %242, %247 : vector<16x128xf32>
    %c0_125 = arith.constant 0 : index
    %c0_126 = arith.constant 0 : index
    %c0_127 = arith.constant 0 : index
    %249 = vector.load %arg26[%c0_125, %c0_126, %c0_127] : memref<4x128x32xf32, #tpu.memory_space<vmem>>, vector<1x128x32xf32>
    %250 = vector.shape_cast %249 : vector<1x128x32xf32> to vector<128x32xf32>
    %cst_128 = arith.constant dense<0.000000e+00> : vector<16x32xf32>
    %251 = tpu.matmul %248, %250, %cst_128 {dimension_numbers = #tpu.dot_dimension_numbers<[1], [0], [0], [1], [0, 0, 1, 1], [], []>} : vector<16x128xf32>, vector<128x32xf32>, vector<16x32xf32> -> vector<16x32xf32>
    %252 = arith.addf %207, %251 : vector<16x32xf32>
    %c0_129 = arith.constant 0 : index
    %c0_130 = arith.constant 0 : index
    %c0_131 = arith.constant 0 : index
    %253 = vector.load %arg27[%c0_129, %c0_130, %c0_131] : memref<4x1x32xf32, #tpu.memory_space<vmem>>, vector<1x1x32xf32>
    %254 = vector.shape_cast %253 : vector<1x1x32xf32> to vector<1x32xf32>
    %255 = vector.broadcast %254 : vector<1x32xf32> to vector<16x32xf32>
    %256 = arith.addf %252, %255 : vector<16x32xf32>
    %c1 = arith.constant 1 : index
    %c0_132 = arith.constant 0 : index
    %c0_133 = arith.constant 0 : index
    %257 = vector.load %arg16[%c1, %c0_132, %c0_133] : memref<4x1x32xf32, #tpu.memory_space<vmem>>, vector<1x1x32xf32>
    %258 = vector.shape_cast %257 : vector<1x1x32xf32> to vector<1x32xf32>
    %c1_134 = arith.constant 1 : index
    %c0_135 = arith.constant 0 : index
    %c0_136 = arith.constant 0 : index
    %259 = vector.load %arg17[%c1_134, %c0_135, %c0_136] : memref<4x1x32xf32, #tpu.memory_space<vmem>>, vector<1x1x32xf32>
    %260 = vector.shape_cast %259 : vector<1x1x32xf32> to vector<1x32xf32>
    %cst_137 = arith.constant dense<0.000000e+00> : vector<16xf32>
    %261 = vector.multi_reduction <add>, %256, %cst_137 [1] : vector<16x32xf32> to vector<16xf32>
    %262 = vector.shape_cast %261 : vector<16xf32> to vector<16x1xf32>
    %cst_138 = arith.constant 3.200000e+01 : f32
    %263 = vector.broadcast %cst_138 : f32 to vector<16x1xf32>
    %264 = arith.divf %262, %263 : vector<16x1xf32>
    %265 = vector.broadcast %264 : vector<16x1xf32> to vector<16x32xf32>
    %266 = arith.subf %256, %265 : vector<16x32xf32>
    %267 = arith.mulf %266, %266 : vector<16x32xf32>
    %cst_139 = arith.constant dense<0.000000e+00> : vector<16xf32>
    %268 = vector.multi_reduction <add>, %267, %cst_139 [1] : vector<16x32xf32> to vector<16xf32>
    %269 = vector.shape_cast %268 : vector<16xf32> to vector<16x1xf32>
    %cst_140 = arith.constant 3.200000e+01 : f32
    %270 = vector.broadcast %cst_140 : f32 to vector<16x1xf32>
    %271 = arith.divf %269, %270 : vector<16x1xf32>
    %272 = vector.broadcast %264 : vector<16x1xf32> to vector<16x32xf32>
    %273 = arith.subf %256, %272 : vector<16x32xf32>
    %cst_141 = arith.constant 9.99999974E-6 : f32
    %274 = vector.broadcast %cst_141 : f32 to vector<16x1xf32>
    %275 = arith.addf %271, %274 : vector<16x1xf32>
    %276 = math.rsqrt %275 : vector<16x1xf32>
    %277 = vector.broadcast %276 : vector<16x1xf32> to vector<16x32xf32>
    %278 = arith.mulf %273, %277 : vector<16x32xf32>
    %279 = vector.broadcast %258 : vector<1x32xf32> to vector<16x32xf32>
    %280 = arith.mulf %278, %279 : vector<16x32xf32>
    %281 = vector.broadcast %260 : vector<1x32xf32> to vector<16x32xf32>
    %282 = arith.addf %280, %281 : vector<16x32xf32>
    %c1_142 = arith.constant 1 : index
    %c0_143 = arith.constant 0 : index
    %c0_144 = arith.constant 0 : index
    %283 = vector.load %arg18[%c1_142, %c0_143, %c0_144] : memref<4x32x32xf32, #tpu.memory_space<vmem>>, vector<1x32x32xf32>
    %284 = vector.shape_cast %283 : vector<1x32x32xf32> to vector<32x32xf32>
    %cst_145 = arith.constant dense<0.000000e+00> : vector<16x32xf32>
    %285 = tpu.matmul %282, %284, %cst_145 {dimension_numbers = #tpu.dot_dimension_numbers<[1], [0], [0], [1], [0, 0, 1, 1], [], []>} : vector<16x32xf32>, vector<32x32xf32>, vector<16x32xf32> -> vector<16x32xf32>
    %c1_146 = arith.constant 1 : index
    %c0_147 = arith.constant 0 : index
    %c0_148 = arith.constant 0 : index
    %286 = vector.load %arg19[%c1_146, %c0_147, %c0_148] : memref<4x32x32xf32, #tpu.memory_space<vmem>>, vector<1x32x32xf32>
    %287 = vector.shape_cast %286 : vector<1x32x32xf32> to vector<32x32xf32>
    %cst_149 = arith.constant dense<0.000000e+00> : vector<16x32xf32>
    %288 = tpu.matmul %282, %287, %cst_149 {dimension_numbers = #tpu.dot_dimension_numbers<[1], [0], [0], [1], [0, 0, 1, 1], [], []>} : vector<16x32xf32>, vector<32x32xf32>, vector<16x32xf32> -> vector<16x32xf32>
    %c1_150 = arith.constant 1 : index
    %c0_151 = arith.constant 0 : index
    %c0_152 = arith.constant 0 : index
    %289 = vector.load %arg20[%c1_150, %c0_151, %c0_152] : memref<4x32x32xf32, #tpu.memory_space<vmem>>, vector<1x32x32xf32>
    %290 = vector.shape_cast %289 : vector<1x32x32xf32> to vector<32x32xf32>
    %cst_153 = arith.constant dense<0.000000e+00> : vector<16x32xf32>
    %291 = tpu.matmul %282, %290, %cst_153 {dimension_numbers = #tpu.dot_dimension_numbers<[1], [0], [0], [1], [0, 0, 1, 1], [], []>} : vector<16x32xf32>, vector<32x32xf32>, vector<16x32xf32> -> vector<16x32xf32>
    %292 = vector.shape_cast %285 : vector<16x32xf32> to vector<2x8x4x8xf32>
    %293 = tpu.transpose %292, [0, 2, 1, 3] : vector<2x8x4x8xf32> -> vector<2x4x8x8xf32>
    %294 = vector.shape_cast %293 : vector<2x4x8x8xf32> to vector<8x8x8xf32>
    %295 = vector.shape_cast %288 : vector<16x32xf32> to vector<2x8x4x8xf32>
    %296 = tpu.transpose %295, [0, 2, 1, 3] : vector<2x8x4x8xf32> -> vector<2x4x8x8xf32>
    %297 = vector.shape_cast %296 : vector<2x4x8x8xf32> to vector<8x8x8xf32>
    %298 = vector.shape_cast %291 : vector<16x32xf32> to vector<2x8x4x8xf32>
    %299 = tpu.transpose %298, [0, 2, 1, 3] : vector<2x8x4x8xf32> -> vector<2x4x8x8xf32>
    %300 = vector.shape_cast %299 : vector<2x4x8x8xf32> to vector<8x8x8xf32>
    "tpu.trace_start"() <{level = 10 : i32, message = "nqd,nkd->nqk"}> : () -> ()
    %cst_154 = arith.constant dense<0.000000e+00> : vector<8x8x8xf32>
    %301 = tpu.matmul %294, %297, %cst_154 {dimension_numbers = #tpu.dot_dimension_numbers<[2], [2], [1], [1], [0, 0, 0, 1, 1, 1], [0], [0]>} : vector<8x8x8xf32>, vector<8x8x8xf32>, vector<8x8x8xf32> -> vector<8x8x8xf32>
    "tpu.trace_stop"() : () -> ()
    %cst_155 = arith.constant dense<0xFF800000> : vector<8x8xf32>
    %302 = vector.multi_reduction <maximumf>, %301, %cst_155 [2] : vector<8x8x8xf32> to vector<8x8xf32>
    %303 = vector.shape_cast %302 : vector<8x8xf32> to vector<8x8x1xf32>
    %304 = vector.broadcast %303 : vector<8x8x1xf32> to vector<8x8x8xf32>
    %305 = arith.subf %301, %304 : vector<8x8x8xf32>
    %306 = math.exp %305 : vector<8x8x8xf32>
    %cst_156 = arith.constant dense<0.000000e+00> : vector<8x8xf32>
    %307 = vector.multi_reduction <add>, %306, %cst_156 [2] : vector<8x8x8xf32> to vector<8x8xf32>
    %308 = vector.shape_cast %307 : vector<8x8xf32> to vector<8x8x1xf32>
    %309 = tpu.reciprocal %308 {approx = true} : vector<8x8x1xf32> -> vector<8x8x1xf32>
    %310 = vector.broadcast %309 : vector<8x8x1xf32> to vector<8x8x8xf32>
    %311 = arith.mulf %306, %310 : vector<8x8x8xf32>
    "tpu.trace_start"() <{level = 10 : i32, message = "nqk,nkd->nqd"}> : () -> ()
    %cst_157 = arith.constant dense<0.000000e+00> : vector<8x8x8xf32>
    %312 = tpu.matmul %311, %300, %cst_157 {dimension_numbers = #tpu.dot_dimension_numbers<[2], [1], [1], [2], [0, 0, 0, 1, 1, 2], [0], [0]>} : vector<8x8x8xf32>, vector<8x8x8xf32>, vector<8x8x8xf32> -> vector<8x8x8xf32>
    "tpu.trace_stop"() : () -> ()
    %313 = vector.shape_cast %312 : vector<8x8x8xf32> to vector<2x4x8x8xf32>
    %314 = tpu.transpose %313, [0, 2, 1, 3] : vector<2x4x8x8xf32> -> vector<2x8x4x8xf32>
    %315 = vector.shape_cast %314 : vector<2x8x4x8xf32> to vector<16x32xf32>
    %c1_158 = arith.constant 1 : index
    %c0_159 = arith.constant 0 : index
    %c0_160 = arith.constant 0 : index
    %316 = vector.load %arg21[%c1_158, %c0_159, %c0_160] : memref<4x32x32xf32, #tpu.memory_space<vmem>>, vector<1x32x32xf32>
    %317 = vector.shape_cast %316 : vector<1x32x32xf32> to vector<32x32xf32>
    %cst_161 = arith.constant dense<0.000000e+00> : vector<16x32xf32>
    %318 = tpu.matmul %315, %317, %cst_161 {dimension_numbers = #tpu.dot_dimension_numbers<[1], [0], [0], [1], [0, 0, 1, 1], [], []>} : vector<16x32xf32>, vector<32x32xf32>, vector<16x32xf32> -> vector<16x32xf32>
    %319 = arith.addf %256, %318 : vector<16x32xf32>
    %c1_162 = arith.constant 1 : index
    %c0_163 = arith.constant 0 : index
    %c0_164 = arith.constant 0 : index
    %320 = vector.load %arg22[%c1_162, %c0_163, %c0_164] : memref<4x1x32xf32, #tpu.memory_space<vmem>>, vector<1x1x32xf32>
    %321 = vector.shape_cast %320 : vector<1x1x32xf32> to vector<1x32xf32>
    %c1_165 = arith.constant 1 : index
    %c0_166 = arith.constant 0 : index
    %c0_167 = arith.constant 0 : index
    %322 = vector.load %arg23[%c1_165, %c0_166, %c0_167] : memref<4x1x32xf32, #tpu.memory_space<vmem>>, vector<1x1x32xf32>
    %323 = vector.shape_cast %322 : vector<1x1x32xf32> to vector<1x32xf32>
    %cst_168 = arith.constant dense<0.000000e+00> : vector<16xf32>
    %324 = vector.multi_reduction <add>, %319, %cst_168 [1] : vector<16x32xf32> to vector<16xf32>
    %325 = vector.shape_cast %324 : vector<16xf32> to vector<16x1xf32>
    %cst_169 = arith.constant 3.200000e+01 : f32
    %326 = vector.broadcast %cst_169 : f32 to vector<16x1xf32>
    %327 = arith.divf %325, %326 : vector<16x1xf32>
    %328 = vector.broadcast %327 : vector<16x1xf32> to vector<16x32xf32>
    %329 = arith.subf %319, %328 : vector<16x32xf32>
    %330 = arith.mulf %329, %329 : vector<16x32xf32>
    %cst_170 = arith.constant dense<0.000000e+00> : vector<16xf32>
    %331 = vector.multi_reduction <add>, %330, %cst_170 [1] : vector<16x32xf32> to vector<16xf32>
    %332 = vector.shape_cast %331 : vector<16xf32> to vector<16x1xf32>
    %cst_171 = arith.constant 3.200000e+01 : f32
    %333 = vector.broadcast %cst_171 : f32 to vector<16x1xf32>
    %334 = arith.divf %332, %333 : vector<16x1xf32>
    %335 = vector.broadcast %327 : vector<16x1xf32> to vector<16x32xf32>
    %336 = arith.subf %319, %335 : vector<16x32xf32>
    %cst_172 = arith.constant 9.99999974E-6 : f32
    %337 = vector.broadcast %cst_172 : f32 to vector<16x1xf32>
    %338 = arith.addf %334, %337 : vector<16x1xf32>
    %339 = math.rsqrt %338 : vector<16x1xf32>
    %340 = vector.broadcast %339 : vector<16x1xf32> to vector<16x32xf32>
    %341 = arith.mulf %336, %340 : vector<16x32xf32>
    %342 = vector.broadcast %321 : vector<1x32xf32> to vector<16x32xf32>
    %343 = arith.mulf %341, %342 : vector<16x32xf32>
    %344 = vector.broadcast %323 : vector<1x32xf32> to vector<16x32xf32>
    %345 = arith.addf %343, %344 : vector<16x32xf32>
    %c1_173 = arith.constant 1 : index
    %c0_174 = arith.constant 0 : index
    %c0_175 = arith.constant 0 : index
    %346 = vector.load %arg24[%c1_173, %c0_174, %c0_175] : memref<4x32x128xf32, #tpu.memory_space<vmem>>, vector<1x32x128xf32>
    %347 = vector.shape_cast %346 : vector<1x32x128xf32> to vector<32x128xf32>
    %cst_176 = arith.constant dense<0.000000e+00> : vector<16x128xf32>
    %348 = tpu.matmul %345, %347, %cst_176 {dimension_numbers = #tpu.dot_dimension_numbers<[1], [0], [0], [1], [0, 0, 1, 1], [], []>} : vector<16x32xf32>, vector<32x128xf32>, vector<16x128xf32> -> vector<16x128xf32>
    %c1_177 = arith.constant 1 : index
    %c0_178 = arith.constant 0 : index
    %c0_179 = arith.constant 0 : index
    %349 = vector.load %arg25[%c1_177, %c0_178, %c0_179] : memref<4x1x128xf32, #tpu.memory_space<vmem>>, vector<1x1x128xf32>
    %350 = vector.shape_cast %349 : vector<1x1x128xf32> to vector<1x128xf32>
    %351 = vector.broadcast %350 : vector<1x128xf32> to vector<16x128xf32>
    %352 = arith.addf %348, %351 : vector<16x128xf32>
    %cst_180 = arith.constant 5.000000e-01 : f32
    %353 = vector.broadcast %cst_180 : f32 to vector<16x128xf32>
    %354 = arith.mulf %353, %352 : vector<16x128xf32>
    %cst_181 = arith.constant 0.707106769 : f32
    %355 = vector.broadcast %cst_181 : f32 to vector<16x128xf32>
    %356 = arith.mulf %352, %355 : vector<16x128xf32>
    %357 = math.erf %356 : vector<16x128xf32>
    %cst_182 = arith.constant 1.000000e+00 : f32
    %358 = vector.broadcast %cst_182 : f32 to vector<16x128xf32>
    %359 = arith.addf %358, %357 : vector<16x128xf32>
    %360 = arith.mulf %354, %359 : vector<16x128xf32>
    %c1_183 = arith.constant 1 : index
    %c0_184 = arith.constant 0 : index
    %c0_185 = arith.constant 0 : index
    %361 = vector.load %arg26[%c1_183, %c0_184, %c0_185] : memref<4x128x32xf32, #tpu.memory_space<vmem>>, vector<1x128x32xf32>
    %362 = vector.shape_cast %361 : vector<1x128x32xf32> to vector<128x32xf32>
    %cst_186 = arith.constant dense<0.000000e+00> : vector<16x32xf32>
    %363 = tpu.matmul %360, %362, %cst_186 {dimension_numbers = #tpu.dot_dimension_numbers<[1], [0], [0], [1], [0, 0, 1, 1], [], []>} : vector<16x128xf32>, vector<128x32xf32>, vector<16x32xf32> -> vector<16x32xf32>
    %364 = arith.addf %319, %363 : vector<16x32xf32>
    %c1_187 = arith.constant 1 : index
    %c0_188 = arith.constant 0 : index
    %c0_189 = arith.constant 0 : index
    %365 = vector.load %arg27[%c1_187, %c0_188, %c0_189] : memref<4x1x32xf32, #tpu.memory_space<vmem>>, vector<1x1x32xf32>
    %366 = vector.shape_cast %365 : vector<1x1x32xf32> to vector<1x32xf32>
    %367 = vector.broadcast %366 : vector<1x32xf32> to vector<16x32xf32>
    %368 = arith.addf %364, %367 : vector<16x32xf32>
    %c1_190 = arith.constant 1 : index
    %c0_191 = arith.constant 0 : index
    %c0_192 = arith.constant 0 : index
    %369 = vector.load %arg2[%c1_190, %c0_191, %c0_192] : memref<2x1x32xf32, #tpu.memory_space<vmem>>, vector<1x1x32xf32>
    %370 = vector.shape_cast %369 : vector<1x1x32xf32> to vector<1x32xf32>
    %c1_193 = arith.constant 1 : index
    %c0_194 = arith.constant 0 : index
    %c0_195 = arith.constant 0 : index
    %371 = vector.load %arg3[%c1_193, %c0_194, %c0_195] : memref<2x1x32xf32, #tpu.memory_space<vmem>>, vector<1x1x32xf32>
    %372 = vector.shape_cast %371 : vector<1x1x32xf32> to vector<1x32xf32>
    %cst_196 = arith.constant dense<0.000000e+00> : vector<16xf32>
    %373 = vector.multi_reduction <add>, %368, %cst_196 [1] : vector<16x32xf32> to vector<16xf32>
    %374 = vector.shape_cast %373 : vector<16xf32> to vector<16x1xf32>
    %cst_197 = arith.constant 3.200000e+01 : f32
    %375 = vector.broadcast %cst_197 : f32 to vector<16x1xf32>
    %376 = arith.divf %374, %375 : vector<16x1xf32>
    %377 = vector.broadcast %376 : vector<16x1xf32> to vector<16x32xf32>
    %378 = arith.subf %368, %377 : vector<16x32xf32>
    %379 = arith.mulf %378, %378 : vector<16x32xf32>
    %cst_198 = arith.constant dense<0.000000e+00> : vector<16xf32>
    %380 = vector.multi_reduction <add>, %379, %cst_198 [1] : vector<16x32xf32> to vector<16xf32>
    %381 = vector.shape_cast %380 : vector<16xf32> to vector<16x1xf32>
    %cst_199 = arith.constant 3.200000e+01 : f32
    %382 = vector.broadcast %cst_199 : f32 to vector<16x1xf32>
    %383 = arith.divf %381, %382 : vector<16x1xf32>
    %384 = vector.broadcast %376 : vector<16x1xf32> to vector<16x32xf32>
    %385 = arith.subf %368, %384 : vector<16x32xf32>
    %cst_200 = arith.constant 9.99999974E-6 : f32
    %386 = vector.broadcast %cst_200 : f32 to vector<16x1xf32>
    %387 = arith.addf %383, %386 : vector<16x1xf32>
    %388 = math.rsqrt %387 : vector<16x1xf32>
    %389 = vector.broadcast %388 : vector<16x1xf32> to vector<16x32xf32>
    %390 = arith.mulf %385, %389 : vector<16x32xf32>
    %391 = vector.broadcast %370 : vector<1x32xf32> to vector<16x32xf32>
    %392 = arith.mulf %390, %391 : vector<16x32xf32>
    %393 = vector.broadcast %372 : vector<1x32xf32> to vector<16x32xf32>
    %394 = arith.addf %392, %393 : vector<16x32xf32>
    %c1_201 = arith.constant 1 : index
    %c0_202 = arith.constant 0 : index
    %c0_203 = arith.constant 0 : index
    %395 = vector.load %arg4[%c1_201, %c0_202, %c0_203] : memref<2x1x16xf32, #tpu.memory_space<vmem>>, vector<1x1x16xf32>
    %396 = vector.shape_cast %395 : vector<1x1x16xf32> to vector<1x16xf32>
    %c1_204 = arith.constant 1 : index
    %c0_205 = arith.constant 0 : index
    %c0_206 = arith.constant 0 : index
    %397 = vector.load %arg5[%c1_204, %c0_205, %c0_206] : memref<2x1x16xf32, #tpu.memory_space<vmem>>, vector<1x1x16xf32>
    %398 = vector.shape_cast %397 : vector<1x1x16xf32> to vector<1x16xf32>
    %cst_207 = arith.constant dense<0.000000e+00> : vector<32xf32>
    %399 = vector.multi_reduction <add>, %1, %cst_207 [1] : vector<32x16xf32> to vector<32xf32>
    %400 = vector.shape_cast %399 : vector<32xf32> to vector<32x1xf32>
    %cst_208 = arith.constant 1.600000e+01 : f32
    %401 = vector.broadcast %cst_208 : f32 to vector<32x1xf32>
    %402 = arith.divf %400, %401 : vector<32x1xf32>
    %403 = vector.broadcast %402 : vector<32x1xf32> to vector<32x16xf32>
    %404 = arith.subf %1, %403 : vector<32x16xf32>
    %405 = arith.mulf %404, %404 : vector<32x16xf32>
    %cst_209 = arith.constant dense<0.000000e+00> : vector<32xf32>
    %406 = vector.multi_reduction <add>, %405, %cst_209 [1] : vector<32x16xf32> to vector<32xf32>
    %407 = vector.shape_cast %406 : vector<32xf32> to vector<32x1xf32>
    %cst_210 = arith.constant 1.600000e+01 : f32
    %408 = vector.broadcast %cst_210 : f32 to vector<32x1xf32>
    %409 = arith.divf %407, %408 : vector<32x1xf32>
    %410 = vector.broadcast %402 : vector<32x1xf32> to vector<32x16xf32>
    %411 = arith.subf %1, %410 : vector<32x16xf32>
    %cst_211 = arith.constant 9.99999974E-6 : f32
    %412 = vector.broadcast %cst_211 : f32 to vector<32x1xf32>
    %413 = arith.addf %409, %412 : vector<32x1xf32>
    %414 = math.rsqrt %413 : vector<32x1xf32>
    %415 = vector.broadcast %414 : vector<32x1xf32> to vector<32x16xf32>
    %416 = arith.mulf %411, %415 : vector<32x16xf32>
    %417 = vector.broadcast %396 : vector<1x16xf32> to vector<32x16xf32>
    %418 = arith.mulf %416, %417 : vector<32x16xf32>
    %419 = vector.broadcast %398 : vector<1x16xf32> to vector<32x16xf32>
    %420 = arith.addf %418, %419 : vector<32x16xf32>
    %c1_212 = arith.constant 1 : index
    %c0_213 = arith.constant 0 : index
    %c0_214 = arith.constant 0 : index
    %421 = vector.load %arg6[%c1_212, %c0_213, %c0_214] : memref<2x32x32xf32, #tpu.memory_space<vmem>>, vector<1x32x32xf32>
    %422 = vector.shape_cast %421 : vector<1x32x32xf32> to vector<32x32xf32>
    %cst_215 = arith.constant dense<0.000000e+00> : vector<16x32xf32>
    %423 = tpu.matmul %394, %422, %cst_215 {dimension_numbers = #tpu.dot_dimension_numbers<[1], [0], [0], [1], [0, 0, 1, 1], [], []>} : vector<16x32xf32>, vector<32x32xf32>, vector<16x32xf32> -> vector<16x32xf32>
    %c1_216 = arith.constant 1 : index
    %c0_217 = arith.constant 0 : index
    %c0_218 = arith.constant 0 : index
    %424 = vector.load %arg7[%c1_216, %c0_217, %c0_218] : memref<2x16x32xf32, #tpu.memory_space<vmem>>, vector<1x16x32xf32>
    %425 = vector.shape_cast %424 : vector<1x16x32xf32> to vector<16x32xf32>
    %cst_219 = arith.constant dense<0.000000e+00> : vector<32x32xf32>
    %426 = tpu.matmul %420, %425, %cst_219 {dimension_numbers = #tpu.dot_dimension_numbers<[1], [0], [0], [1], [0, 0, 1, 1], [], []>} : vector<32x16xf32>, vector<16x32xf32>, vector<32x32xf32> -> vector<32x32xf32>
    %c1_220 = arith.constant 1 : index
    %c0_221 = arith.constant 0 : index
    %c0_222 = arith.constant 0 : index
    %427 = vector.load %arg8[%c1_220, %c0_221, %c0_222] : memref<2x16x32xf32, #tpu.memory_space<vmem>>, vector<1x16x32xf32>
    %428 = vector.shape_cast %427 : vector<1x16x32xf32> to vector<16x32xf32>
    %cst_223 = arith.constant dense<0.000000e+00> : vector<32x32xf32>
    %429 = tpu.matmul %420, %428, %cst_223 {dimension_numbers = #tpu.dot_dimension_numbers<[1], [0], [0], [1], [0, 0, 1, 1], [], []>} : vector<32x16xf32>, vector<16x32xf32>, vector<32x32xf32> -> vector<32x32xf32>
    %430 = vector.shape_cast %423 : vector<16x32xf32> to vector<2x8x2x16xf32>
    %431 = tpu.transpose %430, [0, 2, 1, 3] : vector<2x8x2x16xf32> -> vector<2x2x8x16xf32>
    %432 = vector.shape_cast %431 : vector<2x2x8x16xf32> to vector<4x8x16xf32>
    %433 = vector.shape_cast %426 : vector<32x32xf32> to vector<2x16x2x16xf32>
    %434 = tpu.transpose %433, [0, 2, 1, 3] : vector<2x16x2x16xf32> -> vector<2x2x16x16xf32>
    %435 = vector.shape_cast %434 : vector<2x2x16x16xf32> to vector<4x16x16xf32>
    %436 = vector.shape_cast %429 : vector<32x32xf32> to vector<2x16x2x16xf32>
    %437 = tpu.transpose %436, [0, 2, 1, 3] : vector<2x16x2x16xf32> -> vector<2x2x16x16xf32>
    %438 = vector.shape_cast %437 : vector<2x2x16x16xf32> to vector<4x16x16xf32>
    "tpu.trace_start"() <{level = 10 : i32, message = "nqd,nkd->nqk"}> : () -> ()
    %cst_224 = arith.constant dense<0.000000e+00> : vector<4x8x16xf32>
    %439 = tpu.matmul %432, %435, %cst_224 {dimension_numbers = #tpu.dot_dimension_numbers<[2], [2], [1], [1], [0, 0, 0, 1, 1, 1], [0], [0]>} : vector<4x8x16xf32>, vector<4x16x16xf32>, vector<4x8x16xf32> -> vector<4x8x16xf32>
    "tpu.trace_stop"() : () -> ()
    %cst_225 = arith.constant dense<0xFF800000> : vector<4x8xf32>
    %440 = vector.multi_reduction <maximumf>, %439, %cst_225 [2] : vector<4x8x16xf32> to vector<4x8xf32>
    %441 = vector.shape_cast %440 : vector<4x8xf32> to vector<4x8x1xf32>
    %442 = vector.broadcast %441 : vector<4x8x1xf32> to vector<4x8x16xf32>
    %443 = arith.subf %439, %442 : vector<4x8x16xf32>
    %444 = math.exp %443 : vector<4x8x16xf32>
    %cst_226 = arith.constant dense<0.000000e+00> : vector<4x8xf32>
    %445 = vector.multi_reduction <add>, %444, %cst_226 [2] : vector<4x8x16xf32> to vector<4x8xf32>
    %446 = vector.shape_cast %445 : vector<4x8xf32> to vector<4x8x1xf32>
    %447 = tpu.reciprocal %446 {approx = true} : vector<4x8x1xf32> -> vector<4x8x1xf32>
    %448 = vector.broadcast %447 : vector<4x8x1xf32> to vector<4x8x16xf32>
    %449 = arith.mulf %444, %448 : vector<4x8x16xf32>
    "tpu.trace_start"() <{level = 10 : i32, message = "nqk,nkd->nqd"}> : () -> ()
    %cst_227 = arith.constant dense<0.000000e+00> : vector<4x8x16xf32>
    %450 = tpu.matmul %449, %438, %cst_227 {dimension_numbers = #tpu.dot_dimension_numbers<[2], [1], [1], [2], [0, 0, 0, 1, 1, 2], [0], [0]>} : vector<4x8x16xf32>, vector<4x16x16xf32>, vector<4x8x16xf32> -> vector<4x8x16xf32>
    "tpu.trace_stop"() : () -> ()
    %451 = vector.shape_cast %450 : vector<4x8x16xf32> to vector<2x2x8x16xf32>
    %452 = tpu.transpose %451, [0, 2, 1, 3] : vector<2x2x8x16xf32> -> vector<2x8x2x16xf32>
    %453 = vector.shape_cast %452 : vector<2x8x2x16xf32> to vector<16x32xf32>
    %c1_228 = arith.constant 1 : index
    %c0_229 = arith.constant 0 : index
    %c0_230 = arith.constant 0 : index
    %454 = vector.load %arg9[%c1_228, %c0_229, %c0_230] : memref<2x32x32xf32, #tpu.memory_space<vmem>>, vector<1x32x32xf32>
    %455 = vector.shape_cast %454 : vector<1x32x32xf32> to vector<32x32xf32>
    %cst_231 = arith.constant dense<0.000000e+00> : vector<16x32xf32>
    %456 = tpu.matmul %453, %455, %cst_231 {dimension_numbers = #tpu.dot_dimension_numbers<[1], [0], [0], [1], [0, 0, 1, 1], [], []>} : vector<16x32xf32>, vector<32x32xf32>, vector<16x32xf32> -> vector<16x32xf32>
    %457 = arith.addf %368, %456 : vector<16x32xf32>
    %c1_232 = arith.constant 1 : index
    %c0_233 = arith.constant 0 : index
    %c0_234 = arith.constant 0 : index
    %458 = vector.load %arg10[%c1_232, %c0_233, %c0_234] : memref<2x1x32xf32, #tpu.memory_space<vmem>>, vector<1x1x32xf32>
    %459 = vector.shape_cast %458 : vector<1x1x32xf32> to vector<1x32xf32>
    %c1_235 = arith.constant 1 : index
    %c0_236 = arith.constant 0 : index
    %c0_237 = arith.constant 0 : index
    %460 = vector.load %arg11[%c1_235, %c0_236, %c0_237] : memref<2x1x32xf32, #tpu.memory_space<vmem>>, vector<1x1x32xf32>
    %461 = vector.shape_cast %460 : vector<1x1x32xf32> to vector<1x32xf32>
    %cst_238 = arith.constant dense<0.000000e+00> : vector<16xf32>
    %462 = vector.multi_reduction <add>, %457, %cst_238 [1] : vector<16x32xf32> to vector<16xf32>
    %463 = vector.shape_cast %462 : vector<16xf32> to vector<16x1xf32>
    %cst_239 = arith.constant 3.200000e+01 : f32
    %464 = vector.broadcast %cst_239 : f32 to vector<16x1xf32>
    %465 = arith.divf %463, %464 : vector<16x1xf32>
    %466 = vector.broadcast %465 : vector<16x1xf32> to vector<16x32xf32>
    %467 = arith.subf %457, %466 : vector<16x32xf32>
    %468 = arith.mulf %467, %467 : vector<16x32xf32>
    %cst_240 = arith.constant dense<0.000000e+00> : vector<16xf32>
    %469 = vector.multi_reduction <add>, %468, %cst_240 [1] : vector<16x32xf32> to vector<16xf32>
    %470 = vector.shape_cast %469 : vector<16xf32> to vector<16x1xf32>
    %cst_241 = arith.constant 3.200000e+01 : f32
    %471 = vector.broadcast %cst_241 : f32 to vector<16x1xf32>
    %472 = arith.divf %470, %471 : vector<16x1xf32>
    %473 = vector.broadcast %465 : vector<16x1xf32> to vector<16x32xf32>
    %474 = arith.subf %457, %473 : vector<16x32xf32>
    %cst_242 = arith.constant 9.99999974E-6 : f32
    %475 = vector.broadcast %cst_242 : f32 to vector<16x1xf32>
    %476 = arith.addf %472, %475 : vector<16x1xf32>
    %477 = math.rsqrt %476 : vector<16x1xf32>
    %478 = vector.broadcast %477 : vector<16x1xf32> to vector<16x32xf32>
    %479 = arith.mulf %474, %478 : vector<16x32xf32>
    %480 = vector.broadcast %459 : vector<1x32xf32> to vector<16x32xf32>
    %481 = arith.mulf %479, %480 : vector<16x32xf32>
    %482 = vector.broadcast %461 : vector<1x32xf32> to vector<16x32xf32>
    %483 = arith.addf %481, %482 : vector<16x32xf32>
    %c1_243 = arith.constant 1 : index
    %c0_244 = arith.constant 0 : index
    %c0_245 = arith.constant 0 : index
    %484 = vector.load %arg12[%c1_243, %c0_244, %c0_245] : memref<2x32x128xf32, #tpu.memory_space<vmem>>, vector<1x32x128xf32>
    %485 = vector.shape_cast %484 : vector<1x32x128xf32> to vector<32x128xf32>
    %cst_246 = arith.constant dense<0.000000e+00> : vector<16x128xf32>
    %486 = tpu.matmul %483, %485, %cst_246 {dimension_numbers = #tpu.dot_dimension_numbers<[1], [0], [0], [1], [0, 0, 1, 1], [], []>} : vector<16x32xf32>, vector<32x128xf32>, vector<16x128xf32> -> vector<16x128xf32>
    %c1_247 = arith.constant 1 : index
    %c0_248 = arith.constant 0 : index
    %c0_249 = arith.constant 0 : index
    %487 = vector.load %arg13[%c1_247, %c0_248, %c0_249] : memref<2x1x128xf32, #tpu.memory_space<vmem>>, vector<1x1x128xf32>
    %488 = vector.shape_cast %487 : vector<1x1x128xf32> to vector<1x128xf32>
    %489 = vector.broadcast %488 : vector<1x128xf32> to vector<16x128xf32>
    %490 = arith.addf %486, %489 : vector<16x128xf32>
    %cst_250 = arith.constant 5.000000e-01 : f32
    %491 = vector.broadcast %cst_250 : f32 to vector<16x128xf32>
    %492 = arith.mulf %491, %490 : vector<16x128xf32>
    %cst_251 = arith.constant 0.707106769 : f32
    %493 = vector.broadcast %cst_251 : f32 to vector<16x128xf32>
    %494 = arith.mulf %490, %493 : vector<16x128xf32>
    %495 = math.erf %494 : vector<16x128xf32>
    %cst_252 = arith.constant 1.000000e+00 : f32
    %496 = vector.broadcast %cst_252 : f32 to vector<16x128xf32>
    %497 = arith.addf %496, %495 : vector<16x128xf32>
    %498 = arith.mulf %492, %497 : vector<16x128xf32>
    %c1_253 = arith.constant 1 : index
    %c0_254 = arith.constant 0 : index
    %c0_255 = arith.constant 0 : index
    %499 = vector.load %arg14[%c1_253, %c0_254, %c0_255] : memref<2x128x32xf32, #tpu.memory_space<vmem>>, vector<1x128x32xf32>
    %500 = vector.shape_cast %499 : vector<1x128x32xf32> to vector<128x32xf32>
    %cst_256 = arith.constant dense<0.000000e+00> : vector<16x32xf32>
    %501 = tpu.matmul %498, %500, %cst_256 {dimension_numbers = #tpu.dot_dimension_numbers<[1], [0], [0], [1], [0, 0, 1, 1], [], []>} : vector<16x128xf32>, vector<128x32xf32>, vector<16x32xf32> -> vector<16x32xf32>
    %502 = arith.addf %457, %501 : vector<16x32xf32>
    %c1_257 = arith.constant 1 : index
    %c0_258 = arith.constant 0 : index
    %c0_259 = arith.constant 0 : index
    %503 = vector.load %arg15[%c1_257, %c0_258, %c0_259] : memref<2x1x32xf32, #tpu.memory_space<vmem>>, vector<1x1x32xf32>
    %504 = vector.shape_cast %503 : vector<1x1x32xf32> to vector<1x32xf32>
    %505 = vector.broadcast %504 : vector<1x32xf32> to vector<16x32xf32>
    %506 = arith.addf %502, %505 : vector<16x32xf32>
    %c2 = arith.constant 2 : index
    %c0_260 = arith.constant 0 : index
    %c0_261 = arith.constant 0 : index
    %507 = vector.load %arg16[%c2, %c0_260, %c0_261] : memref<4x1x32xf32, #tpu.memory_space<vmem>>, vector<1x1x32xf32>
    %508 = vector.shape_cast %507 : vector<1x1x32xf32> to vector<1x32xf32>
    %c2_262 = arith.constant 2 : index
    %c0_263 = arith.constant 0 : index
    %c0_264 = arith.constant 0 : index
    %509 = vector.load %arg17[%c2_262, %c0_263, %c0_264] : memref<4x1x32xf32, #tpu.memory_space<vmem>>, vector<1x1x32xf32>
    %510 = vector.shape_cast %509 : vector<1x1x32xf32> to vector<1x32xf32>
    %cst_265 = arith.constant dense<0.000000e+00> : vector<16xf32>
    %511 = vector.multi_reduction <add>, %506, %cst_265 [1] : vector<16x32xf32> to vector<16xf32>
    %512 = vector.shape_cast %511 : vector<16xf32> to vector<16x1xf32>
    %cst_266 = arith.constant 3.200000e+01 : f32
    %513 = vector.broadcast %cst_266 : f32 to vector<16x1xf32>
    %514 = arith.divf %512, %513 : vector<16x1xf32>
    %515 = vector.broadcast %514 : vector<16x1xf32> to vector<16x32xf32>
    %516 = arith.subf %506, %515 : vector<16x32xf32>
    %517 = arith.mulf %516, %516 : vector<16x32xf32>
    %cst_267 = arith.constant dense<0.000000e+00> : vector<16xf32>
    %518 = vector.multi_reduction <add>, %517, %cst_267 [1] : vector<16x32xf32> to vector<16xf32>
    %519 = vector.shape_cast %518 : vector<16xf32> to vector<16x1xf32>
    %cst_268 = arith.constant 3.200000e+01 : f32
    %520 = vector.broadcast %cst_268 : f32 to vector<16x1xf32>
    %521 = arith.divf %519, %520 : vector<16x1xf32>
    %522 = vector.broadcast %514 : vector<16x1xf32> to vector<16x32xf32>
    %523 = arith.subf %506, %522 : vector<16x32xf32>
    %cst_269 = arith.constant 9.99999974E-6 : f32
    %524 = vector.broadcast %cst_269 : f32 to vector<16x1xf32>
    %525 = arith.addf %521, %524 : vector<16x1xf32>
    %526 = math.rsqrt %525 : vector<16x1xf32>
    %527 = vector.broadcast %526 : vector<16x1xf32> to vector<16x32xf32>
    %528 = arith.mulf %523, %527 : vector<16x32xf32>
    %529 = vector.broadcast %508 : vector<1x32xf32> to vector<16x32xf32>
    %530 = arith.mulf %528, %529 : vector<16x32xf32>
    %531 = vector.broadcast %510 : vector<1x32xf32> to vector<16x32xf32>
    %532 = arith.addf %530, %531 : vector<16x32xf32>
    %c2_270 = arith.constant 2 : index
    %c0_271 = arith.constant 0 : index
    %c0_272 = arith.constant 0 : index
    %533 = vector.load %arg18[%c2_270, %c0_271, %c0_272] : memref<4x32x32xf32, #tpu.memory_space<vmem>>, vector<1x32x32xf32>
    %534 = vector.shape_cast %533 : vector<1x32x32xf32> to vector<32x32xf32>
    %cst_273 = arith.constant dense<0.000000e+00> : vector<16x32xf32>
    %535 = tpu.matmul %532, %534, %cst_273 {dimension_numbers = #tpu.dot_dimension_numbers<[1], [0], [0], [1], [0, 0, 1, 1], [], []>} : vector<16x32xf32>, vector<32x32xf32>, vector<16x32xf32> -> vector<16x32xf32>
    %c2_274 = arith.constant 2 : index
    %c0_275 = arith.constant 0 : index
    %c0_276 = arith.constant 0 : index
    %536 = vector.load %arg19[%c2_274, %c0_275, %c0_276] : memref<4x32x32xf32, #tpu.memory_space<vmem>>, vector<1x32x32xf32>
    %537 = vector.shape_cast %536 : vector<1x32x32xf32> to vector<32x32xf32>
    %cst_277 = arith.constant dense<0.000000e+00> : vector<16x32xf32>
    %538 = tpu.matmul %532, %537, %cst_277 {dimension_numbers = #tpu.dot_dimension_numbers<[1], [0], [0], [1], [0, 0, 1, 1], [], []>} : vector<16x32xf32>, vector<32x32xf32>, vector<16x32xf32> -> vector<16x32xf32>
    %c2_278 = arith.constant 2 : index
    %c0_279 = arith.constant 0 : index
    %c0_280 = arith.constant 0 : index
    %539 = vector.load %arg20[%c2_278, %c0_279, %c0_280] : memref<4x32x32xf32, #tpu.memory_space<vmem>>, vector<1x32x32xf32>
    %540 = vector.shape_cast %539 : vector<1x32x32xf32> to vector<32x32xf32>
    %cst_281 = arith.constant dense<0.000000e+00> : vector<16x32xf32>
    %541 = tpu.matmul %532, %540, %cst_281 {dimension_numbers = #tpu.dot_dimension_numbers<[1], [0], [0], [1], [0, 0, 1, 1], [], []>} : vector<16x32xf32>, vector<32x32xf32>, vector<16x32xf32> -> vector<16x32xf32>
    %542 = vector.shape_cast %535 : vector<16x32xf32> to vector<2x8x4x8xf32>
    %543 = tpu.transpose %542, [0, 2, 1, 3] : vector<2x8x4x8xf32> -> vector<2x4x8x8xf32>
    %544 = vector.shape_cast %543 : vector<2x4x8x8xf32> to vector<8x8x8xf32>
    %545 = vector.shape_cast %538 : vector<16x32xf32> to vector<2x8x4x8xf32>
    %546 = tpu.transpose %545, [0, 2, 1, 3] : vector<2x8x4x8xf32> -> vector<2x4x8x8xf32>
    %547 = vector.shape_cast %546 : vector<2x4x8x8xf32> to vector<8x8x8xf32>
    %548 = vector.shape_cast %541 : vector<16x32xf32> to vector<2x8x4x8xf32>
    %549 = tpu.transpose %548, [0, 2, 1, 3] : vector<2x8x4x8xf32> -> vector<2x4x8x8xf32>
    %550 = vector.shape_cast %549 : vector<2x4x8x8xf32> to vector<8x8x8xf32>
    "tpu.trace_start"() <{level = 10 : i32, message = "nqd,nkd->nqk"}> : () -> ()
    %cst_282 = arith.constant dense<0.000000e+00> : vector<8x8x8xf32>
    %551 = tpu.matmul %544, %547, %cst_282 {dimension_numbers = #tpu.dot_dimension_numbers<[2], [2], [1], [1], [0, 0, 0, 1, 1, 1], [0], [0]>} : vector<8x8x8xf32>, vector<8x8x8xf32>, vector<8x8x8xf32> -> vector<8x8x8xf32>
    "tpu.trace_stop"() : () -> ()
    %cst_283 = arith.constant dense<0xFF800000> : vector<8x8xf32>
    %552 = vector.multi_reduction <maximumf>, %551, %cst_283 [2] : vector<8x8x8xf32> to vector<8x8xf32>
    %553 = vector.shape_cast %552 : vector<8x8xf32> to vector<8x8x1xf32>
    %554 = vector.broadcast %553 : vector<8x8x1xf32> to vector<8x8x8xf32>
    %555 = arith.subf %551, %554 : vector<8x8x8xf32>
    %556 = math.exp %555 : vector<8x8x8xf32>
    %cst_284 = arith.constant dense<0.000000e+00> : vector<8x8xf32>
    %557 = vector.multi_reduction <add>, %556, %cst_284 [2] : vector<8x8x8xf32> to vector<8x8xf32>
    %558 = vector.shape_cast %557 : vector<8x8xf32> to vector<8x8x1xf32>
    %559 = tpu.reciprocal %558 {approx = true} : vector<8x8x1xf32> -> vector<8x8x1xf32>
    %560 = vector.broadcast %559 : vector<8x8x1xf32> to vector<8x8x8xf32>
    %561 = arith.mulf %556, %560 : vector<8x8x8xf32>
    "tpu.trace_start"() <{level = 10 : i32, message = "nqk,nkd->nqd"}> : () -> ()
    %cst_285 = arith.constant dense<0.000000e+00> : vector<8x8x8xf32>
    %562 = tpu.matmul %561, %550, %cst_285 {dimension_numbers = #tpu.dot_dimension_numbers<[2], [1], [1], [2], [0, 0, 0, 1, 1, 2], [0], [0]>} : vector<8x8x8xf32>, vector<8x8x8xf32>, vector<8x8x8xf32> -> vector<8x8x8xf32>
    "tpu.trace_stop"() : () -> ()
    %563 = vector.shape_cast %562 : vector<8x8x8xf32> to vector<2x4x8x8xf32>
    %564 = tpu.transpose %563, [0, 2, 1, 3] : vector<2x4x8x8xf32> -> vector<2x8x4x8xf32>
    %565 = vector.shape_cast %564 : vector<2x8x4x8xf32> to vector<16x32xf32>
    %c2_286 = arith.constant 2 : index
    %c0_287 = arith.constant 0 : index
    %c0_288 = arith.constant 0 : index
    %566 = vector.load %arg21[%c2_286, %c0_287, %c0_288] : memref<4x32x32xf32, #tpu.memory_space<vmem>>, vector<1x32x32xf32>
    %567 = vector.shape_cast %566 : vector<1x32x32xf32> to vector<32x32xf32>
    %cst_289 = arith.constant dense<0.000000e+00> : vector<16x32xf32>
    %568 = tpu.matmul %565, %567, %cst_289 {dimension_numbers = #tpu.dot_dimension_numbers<[1], [0], [0], [1], [0, 0, 1, 1], [], []>} : vector<16x32xf32>, vector<32x32xf32>, vector<16x32xf32> -> vector<16x32xf32>
    %569 = arith.addf %506, %568 : vector<16x32xf32>
    %c2_290 = arith.constant 2 : index
    %c0_291 = arith.constant 0 : index
    %c0_292 = arith.constant 0 : index
    %570 = vector.load %arg22[%c2_290, %c0_291, %c0_292] : memref<4x1x32xf32, #tpu.memory_space<vmem>>, vector<1x1x32xf32>
    %571 = vector.shape_cast %570 : vector<1x1x32xf32> to vector<1x32xf32>
    %c2_293 = arith.constant 2 : index
    %c0_294 = arith.constant 0 : index
    %c0_295 = arith.constant 0 : index
    %572 = vector.load %arg23[%c2_293, %c0_294, %c0_295] : memref<4x1x32xf32, #tpu.memory_space<vmem>>, vector<1x1x32xf32>
    %573 = vector.shape_cast %572 : vector<1x1x32xf32> to vector<1x32xf32>
    %cst_296 = arith.constant dense<0.000000e+00> : vector<16xf32>
    %574 = vector.multi_reduction <add>, %569, %cst_296 [1] : vector<16x32xf32> to vector<16xf32>
    %575 = vector.shape_cast %574 : vector<16xf32> to vector<16x1xf32>
    %cst_297 = arith.constant 3.200000e+01 : f32
    %576 = vector.broadcast %cst_297 : f32 to vector<16x1xf32>
    %577 = arith.divf %575, %576 : vector<16x1xf32>
    %578 = vector.broadcast %577 : vector<16x1xf32> to vector<16x32xf32>
    %579 = arith.subf %569, %578 : vector<16x32xf32>
    %580 = arith.mulf %579, %579 : vector<16x32xf32>
    %cst_298 = arith.constant dense<0.000000e+00> : vector<16xf32>
    %581 = vector.multi_reduction <add>, %580, %cst_298 [1] : vector<16x32xf32> to vector<16xf32>
    %582 = vector.shape_cast %581 : vector<16xf32> to vector<16x1xf32>
    %cst_299 = arith.constant 3.200000e+01 : f32
    %583 = vector.broadcast %cst_299 : f32 to vector<16x1xf32>
    %584 = arith.divf %582, %583 : vector<16x1xf32>
    %585 = vector.broadcast %577 : vector<16x1xf32> to vector<16x32xf32>
    %586 = arith.subf %569, %585 : vector<16x32xf32>
    %cst_300 = arith.constant 9.99999974E-6 : f32
    %587 = vector.broadcast %cst_300 : f32 to vector<16x1xf32>
    %588 = arith.addf %584, %587 : vector<16x1xf32>
    %589 = math.rsqrt %588 : vector<16x1xf32>
    %590 = vector.broadcast %589 : vector<16x1xf32> to vector<16x32xf32>
    %591 = arith.mulf %586, %590 : vector<16x32xf32>
    %592 = vector.broadcast %571 : vector<1x32xf32> to vector<16x32xf32>
    %593 = arith.mulf %591, %592 : vector<16x32xf32>
    %594 = vector.broadcast %573 : vector<1x32xf32> to vector<16x32xf32>
    %595 = arith.addf %593, %594 : vector<16x32xf32>
    %c2_301 = arith.constant 2 : index
    %c0_302 = arith.constant 0 : index
    %c0_303 = arith.constant 0 : index
    %596 = vector.load %arg24[%c2_301, %c0_302, %c0_303] : memref<4x32x128xf32, #tpu.memory_space<vmem>>, vector<1x32x128xf32>
    %597 = vector.shape_cast %596 : vector<1x32x128xf32> to vector<32x128xf32>
    %cst_304 = arith.constant dense<0.000000e+00> : vector<16x128xf32>
    %598 = tpu.matmul %595, %597, %cst_304 {dimension_numbers = #tpu.dot_dimension_numbers<[1], [0], [0], [1], [0, 0, 1, 1], [], []>} : vector<16x32xf32>, vector<32x128xf32>, vector<16x128xf32> -> vector<16x128xf32>
    %c2_305 = arith.constant 2 : index
    %c0_306 = arith.constant 0 : index
    %c0_307 = arith.constant 0 : index
    %599 = vector.load %arg25[%c2_305, %c0_306, %c0_307] : memref<4x1x128xf32, #tpu.memory_space<vmem>>, vector<1x1x128xf32>
    %600 = vector.shape_cast %599 : vector<1x1x128xf32> to vector<1x128xf32>
    %601 = vector.broadcast %600 : vector<1x128xf32> to vector<16x128xf32>
    %602 = arith.addf %598, %601 : vector<16x128xf32>
    %cst_308 = arith.constant 5.000000e-01 : f32
    %603 = vector.broadcast %cst_308 : f32 to vector<16x128xf32>
    %604 = arith.mulf %603, %602 : vector<16x128xf32>
    %cst_309 = arith.constant 0.707106769 : f32
    %605 = vector.broadcast %cst_309 : f32 to vector<16x128xf32>
    %606 = arith.mulf %602, %605 : vector<16x128xf32>
    %607 = math.erf %606 : vector<16x128xf32>
    %cst_310 = arith.constant 1.000000e+00 : f32
    %608 = vector.broadcast %cst_310 : f32 to vector<16x128xf32>
    %609 = arith.addf %608, %607 : vector<16x128xf32>
    %610 = arith.mulf %604, %609 : vector<16x128xf32>
    %c2_311 = arith.constant 2 : index
    %c0_312 = arith.constant 0 : index
    %c0_313 = arith.constant 0 : index
    %611 = vector.load %arg26[%c2_311, %c0_312, %c0_313] : memref<4x128x32xf32, #tpu.memory_space<vmem>>, vector<1x128x32xf32>
    %612 = vector.shape_cast %611 : vector<1x128x32xf32> to vector<128x32xf32>
    %cst_314 = arith.constant dense<0.000000e+00> : vector<16x32xf32>
    %613 = tpu.matmul %610, %612, %cst_314 {dimension_numbers = #tpu.dot_dimension_numbers<[1], [0], [0], [1], [0, 0, 1, 1], [], []>} : vector<16x128xf32>, vector<128x32xf32>, vector<16x32xf32> -> vector<16x32xf32>
    %614 = arith.addf %569, %613 : vector<16x32xf32>
    %c2_315 = arith.constant 2 : index
    %c0_316 = arith.constant 0 : index
    %c0_317 = arith.constant 0 : index
    %615 = vector.load %arg27[%c2_315, %c0_316, %c0_317] : memref<4x1x32xf32, #tpu.memory_space<vmem>>, vector<1x1x32xf32>
    %616 = vector.shape_cast %615 : vector<1x1x32xf32> to vector<1x32xf32>
    %617 = vector.broadcast %616 : vector<1x32xf32> to vector<16x32xf32>
    %618 = arith.addf %614, %617 : vector<16x32xf32>
    %c3 = arith.constant 3 : index
    %c0_318 = arith.constant 0 : index
    %c0_319 = arith.constant 0 : index
    %619 = vector.load %arg16[%c3, %c0_318, %c0_319] : memref<4x1x32xf32, #tpu.memory_space<vmem>>, vector<1x1x32xf32>
    %620 = vector.shape_cast %619 : vector<1x1x32xf32> to vector<1x32xf32>
    %c3_320 = arith.constant 3 : index
    %c0_321 = arith.constant 0 : index
    %c0_322 = arith.constant 0 : index
    %621 = vector.load %arg17[%c3_320, %c0_321, %c0_322] : memref<4x1x32xf32, #tpu.memory_space<vmem>>, vector<1x1x32xf32>
    %622 = vector.shape_cast %621 : vector<1x1x32xf32> to vector<1x32xf32>
    %cst_323 = arith.constant dense<0.000000e+00> : vector<16xf32>
    %623 = vector.multi_reduction <add>, %618, %cst_323 [1] : vector<16x32xf32> to vector<16xf32>
    %624 = vector.shape_cast %623 : vector<16xf32> to vector<16x1xf32>
    %cst_324 = arith.constant 3.200000e+01 : f32
    %625 = vector.broadcast %cst_324 : f32 to vector<16x1xf32>
    %626 = arith.divf %624, %625 : vector<16x1xf32>
    %627 = vector.broadcast %626 : vector<16x1xf32> to vector<16x32xf32>
    %628 = arith.subf %618, %627 : vector<16x32xf32>
    %629 = arith.mulf %628, %628 : vector<16x32xf32>
    %cst_325 = arith.constant dense<0.000000e+00> : vector<16xf32>
    %630 = vector.multi_reduction <add>, %629, %cst_325 [1] : vector<16x32xf32> to vector<16xf32>
    %631 = vector.shape_cast %630 : vector<16xf32> to vector<16x1xf32>
    %cst_326 = arith.constant 3.200000e+01 : f32
    %632 = vector.broadcast %cst_326 : f32 to vector<16x1xf32>
    %633 = arith.divf %631, %632 : vector<16x1xf32>
    %634 = vector.broadcast %626 : vector<16x1xf32> to vector<16x32xf32>
    %635 = arith.subf %618, %634 : vector<16x32xf32>
    %cst_327 = arith.constant 9.99999974E-6 : f32
    %636 = vector.broadcast %cst_327 : f32 to vector<16x1xf32>
    %637 = arith.addf %633, %636 : vector<16x1xf32>
    %638 = math.rsqrt %637 : vector<16x1xf32>
    %639 = vector.broadcast %638 : vector<16x1xf32> to vector<16x32xf32>
    %640 = arith.mulf %635, %639 : vector<16x32xf32>
    %641 = vector.broadcast %620 : vector<1x32xf32> to vector<16x32xf32>
    %642 = arith.mulf %640, %641 : vector<16x32xf32>
    %643 = vector.broadcast %622 : vector<1x32xf32> to vector<16x32xf32>
    %644 = arith.addf %642, %643 : vector<16x32xf32>
    %c3_328 = arith.constant 3 : index
    %c0_329 = arith.constant 0 : index
    %c0_330 = arith.constant 0 : index
    %645 = vector.load %arg18[%c3_328, %c0_329, %c0_330] : memref<4x32x32xf32, #tpu.memory_space<vmem>>, vector<1x32x32xf32>
    %646 = vector.shape_cast %645 : vector<1x32x32xf32> to vector<32x32xf32>
    %cst_331 = arith.constant dense<0.000000e+00> : vector<16x32xf32>
    %647 = tpu.matmul %644, %646, %cst_331 {dimension_numbers = #tpu.dot_dimension_numbers<[1], [0], [0], [1], [0, 0, 1, 1], [], []>} : vector<16x32xf32>, vector<32x32xf32>, vector<16x32xf32> -> vector<16x32xf32>
    %c3_332 = arith.constant 3 : index
    %c0_333 = arith.constant 0 : index
    %c0_334 = arith.constant 0 : index
    %648 = vector.load %arg19[%c3_332, %c0_333, %c0_334] : memref<4x32x32xf32, #tpu.memory_space<vmem>>, vector<1x32x32xf32>
    %649 = vector.shape_cast %648 : vector<1x32x32xf32> to vector<32x32xf32>
    %cst_335 = arith.constant dense<0.000000e+00> : vector<16x32xf32>
    %650 = tpu.matmul %644, %649, %cst_335 {dimension_numbers = #tpu.dot_dimension_numbers<[1], [0], [0], [1], [0, 0, 1, 1], [], []>} : vector<16x32xf32>, vector<32x32xf32>, vector<16x32xf32> -> vector<16x32xf32>
    %c3_336 = arith.constant 3 : index
    %c0_337 = arith.constant 0 : index
    %c0_338 = arith.constant 0 : index
    %651 = vector.load %arg20[%c3_336, %c0_337, %c0_338] : memref<4x32x32xf32, #tpu.memory_space<vmem>>, vector<1x32x32xf32>
    %652 = vector.shape_cast %651 : vector<1x32x32xf32> to vector<32x32xf32>
    %cst_339 = arith.constant dense<0.000000e+00> : vector<16x32xf32>
    %653 = tpu.matmul %644, %652, %cst_339 {dimension_numbers = #tpu.dot_dimension_numbers<[1], [0], [0], [1], [0, 0, 1, 1], [], []>} : vector<16x32xf32>, vector<32x32xf32>, vector<16x32xf32> -> vector<16x32xf32>
    %654 = vector.shape_cast %647 : vector<16x32xf32> to vector<2x8x4x8xf32>
    %655 = tpu.transpose %654, [0, 2, 1, 3] : vector<2x8x4x8xf32> -> vector<2x4x8x8xf32>
    %656 = vector.shape_cast %655 : vector<2x4x8x8xf32> to vector<8x8x8xf32>
    %657 = vector.shape_cast %650 : vector<16x32xf32> to vector<2x8x4x8xf32>
    %658 = tpu.transpose %657, [0, 2, 1, 3] : vector<2x8x4x8xf32> -> vector<2x4x8x8xf32>
    %659 = vector.shape_cast %658 : vector<2x4x8x8xf32> to vector<8x8x8xf32>
    %660 = vector.shape_cast %653 : vector<16x32xf32> to vector<2x8x4x8xf32>
    %661 = tpu.transpose %660, [0, 2, 1, 3] : vector<2x8x4x8xf32> -> vector<2x4x8x8xf32>
    %662 = vector.shape_cast %661 : vector<2x4x8x8xf32> to vector<8x8x8xf32>
    "tpu.trace_start"() <{level = 10 : i32, message = "nqd,nkd->nqk"}> : () -> ()
    %cst_340 = arith.constant dense<0.000000e+00> : vector<8x8x8xf32>
    %663 = tpu.matmul %656, %659, %cst_340 {dimension_numbers = #tpu.dot_dimension_numbers<[2], [2], [1], [1], [0, 0, 0, 1, 1, 1], [0], [0]>} : vector<8x8x8xf32>, vector<8x8x8xf32>, vector<8x8x8xf32> -> vector<8x8x8xf32>
    "tpu.trace_stop"() : () -> ()
    %cst_341 = arith.constant dense<0xFF800000> : vector<8x8xf32>
    %664 = vector.multi_reduction <maximumf>, %663, %cst_341 [2] : vector<8x8x8xf32> to vector<8x8xf32>
    %665 = vector.shape_cast %664 : vector<8x8xf32> to vector<8x8x1xf32>
    %666 = vector.broadcast %665 : vector<8x8x1xf32> to vector<8x8x8xf32>
    %667 = arith.subf %663, %666 : vector<8x8x8xf32>
    %668 = math.exp %667 : vector<8x8x8xf32>
    %cst_342 = arith.constant dense<0.000000e+00> : vector<8x8xf32>
    %669 = vector.multi_reduction <add>, %668, %cst_342 [2] : vector<8x8x8xf32> to vector<8x8xf32>
    %670 = vector.shape_cast %669 : vector<8x8xf32> to vector<8x8x1xf32>
    %671 = tpu.reciprocal %670 {approx = true} : vector<8x8x1xf32> -> vector<8x8x1xf32>
    %672 = vector.broadcast %671 : vector<8x8x1xf32> to vector<8x8x8xf32>
    %673 = arith.mulf %668, %672 : vector<8x8x8xf32>
    "tpu.trace_start"() <{level = 10 : i32, message = "nqk,nkd->nqd"}> : () -> ()
    %cst_343 = arith.constant dense<0.000000e+00> : vector<8x8x8xf32>
    %674 = tpu.matmul %673, %662, %cst_343 {dimension_numbers = #tpu.dot_dimension_numbers<[2], [1], [1], [2], [0, 0, 0, 1, 1, 2], [0], [0]>} : vector<8x8x8xf32>, vector<8x8x8xf32>, vector<8x8x8xf32> -> vector<8x8x8xf32>
    "tpu.trace_stop"() : () -> ()
    %675 = vector.shape_cast %674 : vector<8x8x8xf32> to vector<2x4x8x8xf32>
    %676 = tpu.transpose %675, [0, 2, 1, 3] : vector<2x4x8x8xf32> -> vector<2x8x4x8xf32>
    %677 = vector.shape_cast %676 : vector<2x8x4x8xf32> to vector<16x32xf32>
    %c3_344 = arith.constant 3 : index
    %c0_345 = arith.constant 0 : index
    %c0_346 = arith.constant 0 : index
    %678 = vector.load %arg21[%c3_344, %c0_345, %c0_346] : memref<4x32x32xf32, #tpu.memory_space<vmem>>, vector<1x32x32xf32>
    %679 = vector.shape_cast %678 : vector<1x32x32xf32> to vector<32x32xf32>
    %cst_347 = arith.constant dense<0.000000e+00> : vector<16x32xf32>
    %680 = tpu.matmul %677, %679, %cst_347 {dimension_numbers = #tpu.dot_dimension_numbers<[1], [0], [0], [1], [0, 0, 1, 1], [], []>} : vector<16x32xf32>, vector<32x32xf32>, vector<16x32xf32> -> vector<16x32xf32>
    %681 = arith.addf %618, %680 : vector<16x32xf32>
    %c3_348 = arith.constant 3 : index
    %c0_349 = arith.constant 0 : index
    %c0_350 = arith.constant 0 : index
    %682 = vector.load %arg22[%c3_348, %c0_349, %c0_350] : memref<4x1x32xf32, #tpu.memory_space<vmem>>, vector<1x1x32xf32>
    %683 = vector.shape_cast %682 : vector<1x1x32xf32> to vector<1x32xf32>
    %c3_351 = arith.constant 3 : index
    %c0_352 = arith.constant 0 : index
    %c0_353 = arith.constant 0 : index
    %684 = vector.load %arg23[%c3_351, %c0_352, %c0_353] : memref<4x1x32xf32, #tpu.memory_space<vmem>>, vector<1x1x32xf32>
    %685 = vector.shape_cast %684 : vector<1x1x32xf32> to vector<1x32xf32>
    %cst_354 = arith.constant dense<0.000000e+00> : vector<16xf32>
    %686 = vector.multi_reduction <add>, %681, %cst_354 [1] : vector<16x32xf32> to vector<16xf32>
    %687 = vector.shape_cast %686 : vector<16xf32> to vector<16x1xf32>
    %cst_355 = arith.constant 3.200000e+01 : f32
    %688 = vector.broadcast %cst_355 : f32 to vector<16x1xf32>
    %689 = arith.divf %687, %688 : vector<16x1xf32>
    %690 = vector.broadcast %689 : vector<16x1xf32> to vector<16x32xf32>
    %691 = arith.subf %681, %690 : vector<16x32xf32>
    %692 = arith.mulf %691, %691 : vector<16x32xf32>
    %cst_356 = arith.constant dense<0.000000e+00> : vector<16xf32>
    %693 = vector.multi_reduction <add>, %692, %cst_356 [1] : vector<16x32xf32> to vector<16xf32>
    %694 = vector.shape_cast %693 : vector<16xf32> to vector<16x1xf32>
    %cst_357 = arith.constant 3.200000e+01 : f32
    %695 = vector.broadcast %cst_357 : f32 to vector<16x1xf32>
    %696 = arith.divf %694, %695 : vector<16x1xf32>
    %697 = vector.broadcast %689 : vector<16x1xf32> to vector<16x32xf32>
    %698 = arith.subf %681, %697 : vector<16x32xf32>
    %cst_358 = arith.constant 9.99999974E-6 : f32
    %699 = vector.broadcast %cst_358 : f32 to vector<16x1xf32>
    %700 = arith.addf %696, %699 : vector<16x1xf32>
    %701 = math.rsqrt %700 : vector<16x1xf32>
    %702 = vector.broadcast %701 : vector<16x1xf32> to vector<16x32xf32>
    %703 = arith.mulf %698, %702 : vector<16x32xf32>
    %704 = vector.broadcast %683 : vector<1x32xf32> to vector<16x32xf32>
    %705 = arith.mulf %703, %704 : vector<16x32xf32>
    %706 = vector.broadcast %685 : vector<1x32xf32> to vector<16x32xf32>
    %707 = arith.addf %705, %706 : vector<16x32xf32>
    %c3_359 = arith.constant 3 : index
    %c0_360 = arith.constant 0 : index
    %c0_361 = arith.constant 0 : index
    %708 = vector.load %arg24[%c3_359, %c0_360, %c0_361] : memref<4x32x128xf32, #tpu.memory_space<vmem>>, vector<1x32x128xf32>
    %709 = vector.shape_cast %708 : vector<1x32x128xf32> to vector<32x128xf32>
    %cst_362 = arith.constant dense<0.000000e+00> : vector<16x128xf32>
    %710 = tpu.matmul %707, %709, %cst_362 {dimension_numbers = #tpu.dot_dimension_numbers<[1], [0], [0], [1], [0, 0, 1, 1], [], []>} : vector<16x32xf32>, vector<32x128xf32>, vector<16x128xf32> -> vector<16x128xf32>
    %c3_363 = arith.constant 3 : index
    %c0_364 = arith.constant 0 : index
    %c0_365 = arith.constant 0 : index
    %711 = vector.load %arg25[%c3_363, %c0_364, %c0_365] : memref<4x1x128xf32, #tpu.memory_space<vmem>>, vector<1x1x128xf32>
    %712 = vector.shape_cast %711 : vector<1x1x128xf32> to vector<1x128xf32>
    %713 = vector.broadcast %712 : vector<1x128xf32> to vector<16x128xf32>
    %714 = arith.addf %710, %713 : vector<16x128xf32>
    %cst_366 = arith.constant 5.000000e-01 : f32
    %715 = vector.broadcast %cst_366 : f32 to vector<16x128xf32>
    %716 = arith.mulf %715, %714 : vector<16x128xf32>
    %cst_367 = arith.constant 0.707106769 : f32
    %717 = vector.broadcast %cst_367 : f32 to vector<16x128xf32>
    %718 = arith.mulf %714, %717 : vector<16x128xf32>
    %719 = math.erf %718 : vector<16x128xf32>
    %cst_368 = arith.constant 1.000000e+00 : f32
    %720 = vector.broadcast %cst_368 : f32 to vector<16x128xf32>
    %721 = arith.addf %720, %719 : vector<16x128xf32>
    %722 = arith.mulf %716, %721 : vector<16x128xf32>
    %c3_369 = arith.constant 3 : index
    %c0_370 = arith.constant 0 : index
    %c0_371 = arith.constant 0 : index
    %723 = vector.load %arg26[%c3_369, %c0_370, %c0_371] : memref<4x128x32xf32, #tpu.memory_space<vmem>>, vector<1x128x32xf32>
    %724 = vector.shape_cast %723 : vector<1x128x32xf32> to vector<128x32xf32>
    %cst_372 = arith.constant dense<0.000000e+00> : vector<16x32xf32>
    %725 = tpu.matmul %722, %724, %cst_372 {dimension_numbers = #tpu.dot_dimension_numbers<[1], [0], [0], [1], [0, 0, 1, 1], [], []>} : vector<16x128xf32>, vector<128x32xf32>, vector<16x32xf32> -> vector<16x32xf32>
    %726 = arith.addf %681, %725 : vector<16x32xf32>
    %c3_373 = arith.constant 3 : index
    %c0_374 = arith.constant 0 : index
    %c0_375 = arith.constant 0 : index
    %727 = vector.load %arg27[%c3_373, %c0_374, %c0_375] : memref<4x1x32xf32, #tpu.memory_space<vmem>>, vector<1x1x32xf32>
    %728 = vector.shape_cast %727 : vector<1x1x32xf32> to vector<1x32xf32>
    %729 = vector.broadcast %728 : vector<1x32xf32> to vector<16x32xf32>
    %730 = arith.addf %726, %729 : vector<16x32xf32>
    %731 = vector.shape_cast %730 : vector<16x32xf32> to vector<2x8x32xf32>
    %c0_376 = arith.constant 0 : index
    %c0_377 = arith.constant 0 : index
    %c0_378 = arith.constant 0 : index
    %732 = vector.load %arg28[%c0_376, %c0_377, %c0_378] : memref<2x8x32xf32, #tpu.memory_space<vmem>>, vector<2x8x32xf32>
    tpu.vector_store %arg28[%c0_376, %c0_377, %c0_378], %731 {strides = array<i32>} : memref<2x8x32xf32, #tpu.memory_space<vmem>>, vector<2x8x32xf32>,
    return
  }
}

</mosaic_0001>

<bundles_post_ra>
// kernel: perceiver_forward.1
= control target key start
LH: loop header
LB: loop body
LE: loop exit
PB: predicated region body
PF: predicated region fallthrough
CT: control target
= control target key end

     0   :  { %s24102_s0 = inlined_call_operand.vmem [shape: f32[2,16,16], index: 0, kind: input, shape index: {}]   ;;  %s24103_s1 = inlined_call_operand.vmem [shape: f32[8,32], index: 1, kind: input, shape index: {}]   ;;  %s24104_s2 = inlined_call_operand.vmem [shape: f32[2,1,32], index: 2, kind: input, shape index: {}]   ;;  %s24105_s3 = inlined_call_operand.vmem [shape: f32[2,1,32], index: 3, kind: input, shape index: {}]   ;;  %s24106_s4 = inlined_call_operand.vmem [shape: f32[2,1,16], index: 4, kind: input, shape index: {}]   ;;  %s24107_s5 = inlined_call_operand.vmem [shape: f32[2,1,16], index: 5, kind: input, shape index: {}]   ;;  %s24108_s6 = inlined_call_operand.vmem [shape: f32[2,32,32], index: 6, kind: input, shape index: {}]   ;;  %s24109_s7 = inlined_call_operand.vmem [shape: f32[2,16,32], index: 7, kind: input, shape index: {}]   ;;  %s24110_s8 = inlined_call_operand.vmem [shape: f32[2,16,32], index: 8, kind: input, shape index: {}]   ;;  %s24111_s9 = inlined_call_operand.vmem [shape: f32[2,32,32], index: 9, kind: input, shape index: {}]   ;;  %s24112_s10 = inlined_call_operand.vmem [shape: f32[2,1,32], index: 10, kind: input, shape index: {}]   ;;  %s24113_s11 = inlined_call_operand.vmem [shape: f32[2,1,32], index: 11, kind: input, shape index: {}]   ;;  %s24114_s12 = inlined_call_operand.vmem [shape: f32[2,32,128], index: 12, kind: input, shape index: {}]   ;;  %s24115_s13 = inlined_call_operand.vmem [shape: f32[2,1,128], index: 13, kind: input, shape index: {}]   ;;  %s24116_s14 = inlined_call_operand.vmem [shape: f32[2,128,32], index: 14, kind: input, shape index: {}]   ;;  %s24117_s15 = inlined_call_operand.vmem [shape: f32[2,1,32], index: 15, kind: input, shape index: {}]   ;;  %s24118_s16 = inlined_call_operand.vmem [shape: f32[4,1,32], index: 16, kind: input, shape index: {}]   ;;  %s24119_s17 = inlined_call_operand.vmem [shape: f32[4,1,32], index: 17, kind: input, shape index: {}]   ;;  %s24120_s18 = inlined_call_operand.vmem [shape: f32[4,32,32], index: 18, kind: input, shape index: {}]   ;;  %s24121_s19 = inlined_call_operand.vmem [shape: f32[4,32,32], index: 19, kind: input, shape index: {}]   ;;  %s24122_s20 = inlined_call_operand.vmem [shape: f32[4,32,32], index: 20, kind: input, shape index: {}]   ;;  %s24123_s21 = inlined_call_operand.vmem [shape: f32[4,32,32], index: 21, kind: input, shape index: {}]   ;;  %s24124_s22 = inlined_call_operand.vmem [shape: f32[4,1,32], index: 22, kind: input, shape index: {}]   ;;  %s24125_s23 = inlined_call_operand.vmem [shape: f32[4,1,32], index: 23, kind: input, shape index: {}]   ;;  %s24126_s24 = inlined_call_operand.vmem [shape: f32[4,32,128], index: 24, kind: input, shape index: {}]   ;;  %s24127_s25 = inlined_call_operand.vmem [shape: f32[4,1,128], index: 25, kind: input, shape index: {}]   ;;  %s24128_s26 = inlined_call_operand.vmem [shape: f32[4,128,32], index: 26, kind: input, shape index: {}]   ;;  %s24129_s27 = inlined_call_operand.vmem [shape: f32[4,1,32], index: 27, kind: input, shape index: {}]   ;;  %s24130_s28 = inlined_call_operand.hbm [shape: f32[2,8,32], index: 28, kind: output, shape index: {}]  }
   0x1   :  { %24167 = sst [smem:[#allocation5_spill]] %s24102_s0 }
   0x2   :  { %24168 = sst [smem:[#allocation6_spill]] %s24103_s1 }
   0x3   :  { %24169 = sst [smem:[#allocation7_spill]] %s24104_s2 }
   0x4   :  { %24170 = sst [smem:[#allocation8_spill]] %s24105_s3 }
   0x5   :  { %24171 = sst [smem:[#allocation9_spill]] %s24106_s4 }
   0x6   :  { %24172 = sst [smem:[#allocation10_spill]] %s24107_s5 }
   0x7   :  { %24173 = sst [smem:[#allocation11_spill]] %s24108_s6 }
   0x8   :  { %24174 = sst [smem:[#allocation12_spill]] %s24109_s7 }
   0x9   :  { %24175 = sst [smem:[#allocation13_spill]] %s24110_s8 }
   0xa   :  { %24176 = sst [smem:[#allocation14_spill]] %s24111_s9 }
   0xb   :  { %24177 = sst [smem:[#allocation15_spill]] %s24112_s10 }
   0xc   :  { %24178 = sst [smem:[#allocation16_spill]] %s24113_s11 }
   0xd   :  { %24179 = sst [smem:[#allocation17_spill]] %s24114_s12 }
   0xe   :  { %24180 = sst [smem:[#allocation18_spill]] %s24115_s13 }
   0xf   :  { %24181 = sst [smem:[#allocation19_spill]] %s24117_s15 }
  0x10   :  { %24182 = sst [smem:[#allocation20_spill]] %s24123_s21 }
  0x11   :  { %24183 = sst [smem:[#allocation21_spill]] %s24126_s24 }
  0x12   :  { %24184 = sst [smem:[#allocation22_spill]] %s24130_s28 }
  0x13   :  { %s24185_s9 = sld [smem:[#allocation5_spill]]  ;;  %vm128_vm0 = vcmask 130048   ;;  %s24186_s6 = sld [smem:[#allocation6_spill]]  ;;  %vm97_vm1 = vcmask 261120  }
  0x19   :  { %v90_v0 = vld [vmem:[%s24185_s9] sm:$0xff]  ;;  %v91_v2 = vld [vmem:[%s24185_s9 + $0x8] sm:$0xff]  ;;  %v92_v5 = vld [vmem:[%s24185_s9 + $0x10] sm:$0xff] }
  0x1a   :  { %v94_v1 = vld [vmem:[%s24186_s6] sm:$0xff]  ;;  %v129_v3 = vsel %vm128_vm0, %v90_v0, 0.0 }
  0x1b   :  { %v98_v4 = vsel %vm97_vm1, %v94_v1, 0.0  ;;  %130 = vadd.xlane.f32.xlu0 %v129_v3 }
  0x1c   :  { %99 = vadd.xlane.f32.xlu1 %v98_v4 }
  0x1d   :  { %33 = vsyncpa [#allocation3], 0  ;;  %v132_v6 = vsel %vm128_vm0, %v91_v2, 0.0  ;;  %v135_v7 = vsel %vm128_vm0, %v92_v5, 0.0  ;;  %v93_v8 = vld [vmem:[%s24185_s9 + $0x18] sm:$0xff]  ;;  %s24187_s4 = sld [smem:[#allocation11_spill]] }
  0x1e   :  { %v138_v9 = vsel %vm128_vm0, %v93_v8, 0.0  ;;  %s24188_s3 = sld [smem:[#allocation12_spill]]  ;;  %s24189_s8 = sld [smem:[#allocation13_spill]]  ;;  %vm20751_vm2 = vmmov 0   ;;  %vm21169_vm3 = vmpackc.low %vm128_vm0, %vm128_vm0  ;;  %vm4062_vm4 = vcmask 64512   ;;  %vm5643_vm5 = vcmask 195584  }
  0x1f   :  { %133 = vadd.xlane.f32.xlu0 %v132_v6  ;;  %s24190_s0 = sld [smem:[#allocation9_spill]]  ;;  %s24191_s2 = sld [smem:[#allocation10_spill]] }
  0x20   :  { %136 = vadd.xlane.f32.xlu1 %v135_v7  ;;  %s24192_s1 = sld [smem:[#allocation7_spill]]  ;;  %s24193_s30 = sld [smem:[#allocation8_spill]] }
  0x21   :  { %s24144_s10 = smov 112   ;;  %s24196_s7 = sld [smem:[#allocation14_spill]] }
  0x22   :  { %s24147_s28 = smov 16   ;;  %s24197_s29 = sld [smem:[#allocation17_spill]] }
  0x23   :  { %139 = vadd.xlane.f32.xlu0 %v138_v9  ;;  %v202_v35 = vld [vmem:[%s24187_s4] sm:$0xff]  ;;  %v203_v36 = vld [vmem:[%s24187_s4 + $0x8] sm:$0xff]  ;;  %v204_v41 = vld [vmem:[%s24187_s4 + $0x10] sm:$0xff]  ;;  %s24198_s12 = sld [smem:[#allocation15_spill]]  ;;  %s24157_s9 = smov 120  }
  0x24   :  { %v284_v37 = vld [vmem:[%s24188_s3] sm:$0xff]  ;;  %v20001_v38 = vpack.c.bf16 %v203_v36, %v202_v35  ;;  %v285_v39 = vld [vmem:[%s24188_s3 + $0x8] sm:$0xff]  ;;  %v205_v42 = vld [vmem:[%s24187_s4 + $0x18] sm:$0xff]  ;;  %v482_v36 = vlaneseq  ;;  %s24155_s11 = smov 8  }
  0x25   :  { %v20009_v40 = vpack.c.bf16 %v285_v39, %v284_v37  ;;  %v20005_v43 = vpack.c.bf16 %v205_v42, %v204_v41  ;;  %v383_v44 = vld [vmem:[%s24189_s8] sm:$0xff]  ;;  %v384_v45 = vld [vmem:[%s24189_s8 + $0x8] sm:$0xff]  ;;  %v20754_v37 = vmov 1934713408  }
  0x26   :  { %20002 = vmatprep.subr.bf16.mxu0 %v20001_v38  ;;  %v20013_v46 = vpack.c.bf16 %v384_v45, %v383_v44  ;;  %v18057_v63 = vld [vmem:[%s24190_s0] ss:$0 sm:$0xff] }
  0x27   :  { %20004 = vmatpush3.bf16.msra.mxu0 %v20001_v38  ;;  %20010 = vmatprep.subr.bf16.mxu1 %v20009_v40  ;;  %v18055_v4 = vld [vmem:[%s24192_s1] ss:$0 sm:$0xff]  ;;  %v511_v38 = vunpack.c.l.s4 %v20754_v37 }
  0x28   :  { %20012 = vmatpush3.bf16.msra.mxu1 %v20009_v40  ;;  %20006 = vmatprep.subr.bf16.mxu0 %v20005_v43  ;;  %v483_v40 = vshrl.u32 %v482_v36, 7 }
  0x29   :  { %v512_v41 = vunpack.c.0.s8 %v511_v38 }
  0x2b   :  { %20008 = vmatpush3.bf16.msra.mxu0 %v20005_v43 }
  0x2c   :  { %20014 = vmatprep.subr.bf16.mxu0 %v20013_v46 }
  0xa8   :  { %v131_v10 = vpop.xlane.xlu0 %130 }
  0xa9   :  { %v100_v11 = vpop.xlane.xlu1 %99  ;;  %v142_v12 = vmul.f32 0.0625, %v131_v10 }
  0xaa   :  { %v102_v13 = vmul.f32 0.03125, %v100_v11 }
  0xab   :  { %v20927_v14 = vsub.f32 %v90_v0, %v142_v12 }
  0xac   :  { %v20929_v15 = vsub.f32 %v94_v1, %v102_v13  ;;  %v134_v16 = vpop.xlane.xlu0 %133  ;;  %v18058_v1 = vld [vmem:[%s24191_s2] ss:$0 sm:$0xff] }
  0xad   :  { %v137_v17 = vpop.xlane.xlu1 %136  ;;  %v143_v18 = vmul.f32 0.0625, %v134_v16  ;;  %v150_v20 = vmul.f32 %v20927_v14, %v20927_v14 }
  0xae   :  { %v144_v19 = vmul.f32 0.0625, %v137_v17  ;;  %v104_v21 = vmul.f32 %v20929_v15, %v20929_v15 }
  0xaf   :  { %v20935_v22 = vsub.f32 %v91_v2, %v143_v18  ;;  %v154_v24 = vsel %vm128_vm0, %v150_v20, 0.0 }
  0xb0   :  { %v20937_v23 = vsub.f32 %v92_v5, %v144_v19  ;;  %155 = vadd.xlane.f32.xlu1 %v154_v24  ;;  %v140_v25 = vpop.xlane.xlu0 %139  ;;  %v105_v27 = vsel %vm97_vm1, %v104_v21, 0.0 }
  0xb1   :  { %v145_v26 = vmul.f32 0.0625, %v140_v25  ;;  %v151_v28 = vmul.f32 %v20935_v22, %v20935_v22 }
  0xb2   :  { %v152_v29 = vmul.f32 %v20937_v23, %v20937_v23 }
  0xb3   :  { %v20945_v30 = vsub.f32 %v93_v8, %v145_v26  ;;  %v157_v31 = vsel %vm128_vm0, %v151_v28, 0.0  ;;  %v18056_v8 = vld [vmem:[%s24193_s30] ss:$0 sm:$0xff]  ;;  %s24199_s30 = sld [smem:[#allocation16_spill]] }
  0xb4   :  { %106 = vadd.xlane.f32.xlu1 %v105_v27  ;;  %158 = vadd.xlane.f32.xlu0 %v157_v31  ;;  %v160_v32 = vsel %vm128_vm0, %v152_v29, 0.0 }
  0xb5   :  { %v153_v33 = vmul.f32 %v20945_v30, %v20945_v30 }
  0xb7   :  { %v163_v34 = vsel %vm128_vm0, %v153_v33, 0.0  ;;  %v20752_v33 = vmov 0.0  }
  0xb8   :  { %161 = vadd.xlane.f32.xlu0 %v160_v32  ;;  %164 = vadd.xlane.f32.xlu1 %v163_v34  ;;  %v20750_v32 = vmov 0.0|0.0   ;;  %v20753_v34 = vmov 1983009808  }
  0xb9   :  { %20025 = vmatprep.subr.bf16.mxu1 %v20750_v32  ;;  %v480_v35 = vunpack.c.l.s4 %v20753_v34 }
  0xbb   :  { %v481_v39 = vunpack.c.0.s8 %v480_v35 }
  0xbd   :  { %v21041_v42 = vsub.s32 %v481_v39, %v483_v40 }
 0x13d   :  { %v156_v47 = vpop.xlane.xlu1 %155 }
 0x13e   :  { %v166_v48 = vmul.f32 0.0625, %v156_v47  ;;  %v21047_v47 = vsub.s32 %v512_v41, %v483_v40 }
 0x140   :  { %v170_v49 = vadd.f32 1e-05, %v166_v48 }
 0x141   :  { %v107_v50 = vpop.xlane.xlu1 %106  ;;  %v159_v51 = vpop.xlane.xlu0 %158 }
 0x142   :  { %20486 = vrsqrt.f32 %v170_v49  ;;  %v108_v52 = vmul.f32 0.03125, %v107_v50  ;;  %v167_v53 = vmul.f32 0.0625, %v159_v51 }
 0x144   :  { %v109_v54 = vadd.f32 1e-05, %v108_v52  ;;  %v171_v55 = vadd.f32 1e-05, %v167_v53 }
 0x145   :  { %v165_v56 = vpop.xlane.xlu1 %164  ;;  %v162_v57 = vpop.xlane.xlu0 %161 }
 0x146   :  { %20488 = vrsqrt.f32 %v109_v54  ;;  %v169_v58 = vmul.f32 0.0625, %v165_v56  ;;  %v168_v59 = vmul.f32 0.0625, %v162_v57 }
 0x147   :  { %20490 = vrsqrt.f32 %v171_v55 }
 0x148   :  { %v173_v60 = vadd.f32 1e-05, %v169_v58  ;;  %v172_v61 = vadd.f32 1e-05, %v168_v59 }
 0x14a   :  { %20492 = vrsqrt.f32 %v173_v60 }
 0x14b   :  { %20494 = vrsqrt.f32 %v172_v61 }
 0x14c   :  { %v20487_v62 = vpop.eup %20486 }
 0x14d   :  { %v20980_v0 = vmul.f32 %v20487_v62, %v20927_v14 }
 0x14f   :  { %v188_v2 = vmul.f32 %v18057_v63, %v20980_v0 }
 0x150   :  { %v20489_v3 = vpop.eup %20488 }
 0x151   :  { %v20491_v5 = vpop.eup %20490  ;;  %v198_v6 = vadd.f32 %v18058_v1, %v188_v2  ;;  %v111_v7 = vmul.f32 %v20489_v3, %v20929_v15 }
 0x152   :  { %v20994_v9 = vmul.f32 %v20491_v5, %v20935_v22 }
 0x153   :  { %19048 = vmatprep.mubr.msk.f32.mxu1 %vm128_vm0, %v198_v6  ;;  %v118_v10 = vmul.f32 %v18055_v4, %v111_v7 }
 0x154   :  { %v20493_v11 = vpop.eup %20492  ;;  %v189_v12 = vmul.f32 %v18057_v63, %v20994_v9 }
 0x155   :  { %v20495_v13 = vpop.eup %20494  ;;  %v125_v14 = vadd.f32 %v18056_v8, %v118_v10  ;;  %v20999_v16 = vmul.f32 %v20493_v11, %v20945_v30 }
 0x156   :  { %v199_v17 = vadd.f32 %v18058_v1, %v189_v12  ;;  %v21002_v15 = vmul.f32 %v20495_v13, %v20937_v23 }
 0x157   :  { %19041 = vmatprep.mubr.msk.f32.mxu0 %vm97_vm1, %v125_v14  ;;  %v191_v18 = vmul.f32 %v18057_v63, %v20999_v16 }
 0x158   :  { %19049 = vmatmul.mubr.msk.f32.vlgmr.msra.gmra.mrb[0].mxu1 %vm128_vm0, %v199_v17  ;;  %19042 = vmatmul.mubr.msk.f32.vlgmr.msra.gmra.mrb[0].mxu0 %vm97_vm1, %v125_v14  ;;  %v190_v19 = vmul.f32 %v18057_v63, %v21002_v15 }
 0x159   :  { %20016 = vmatpush3.bf16.msra.mxu0 %v20013_v46  ;;  %19058 = vmatprep.mubr.msk.f32.mxu0 %vm128_vm0, %v198_v6  ;;  %v201_v20 = vadd.f32 %v18058_v1, %v191_v18 }
 0x15a   :  { %v200_v21 = vadd.f32 %v18058_v1, %v190_v19  ;;  %20017 = vmatprep.subr.bf16.mxu0 %v20750_v32 }
 0x15c   :  { %19051 = vmatprep.mubr.msk.f32.mxu1 %vm128_vm0, %v200_v21  ;;  %19059 = vmatmul.mubr.msk.f32.vlgmr.msra.gmra.mrb[2].mxu0 %vm128_vm0, %v199_v17 }
 0x15d   :  { %19052 = vmatmul.mubr.msk.f32.gmra.mrb[2].mxu1 %vm128_vm0, %v201_v20  ;;  %19061 = vmatprep.mubr.msk.f32.mxu0 %vm128_vm0, %v200_v21 }
 0x15e   :  { %19082 = vmatprep.mubr.msk.f32.mxu1 %vm20751_vm2, %v20752_v33 }
 0x160   :  { %19062 = vmatmul.mubr.msk.f32.gmra.mrb[4].mxu0 %vm128_vm0, %v201_v20 }
 0x161   :  { %19068 = vmatprep.mubr.msk.f32.mxu0 %vm20751_vm2, %v20752_v33 }
 0x22b   :  { %v19050_v22 = vpop.f32.mrb[0].mxu1  ;;  %v19043_v23 = vpop.f32.mrb[0].mxu0 }
 0x22c   :  { %716 = vrot.lane.b32.xlu1 %v19050_v22, %s24144_s10  ;;  %v364_v24 = vpop.f32.mrb[1].mxu1  ;;  %v275_v25 = vpop.f32.mrb[1].mxu0  ;;  %v792_v43 = vcombine.high %v19050_v22, %v20752_v33  ;;  %v544_v44 = vcombine.high %v19043_v23, %v20752_v33  ;;  %v799_v48 = vrot.slane %v19050_v22, %v21041_v42  ;;  %v21051_v49 = vrot.slane %v19043_v23, %v21041_v42 }
 0x22d   :  { %714 = vrot.lane.b32.xlu0 %v364_v24, %s24144_s10  ;;  %v726_v45 = vcombine.high %v364_v24, %v20752_v33  ;;  %v478_v46 = vcombine.high %v275_v25, %v20752_v33  ;;  %v733_v50 = vrot.slane %v364_v24, %v21041_v42  ;;  %v21055_v51 = vrot.slane %v275_v25, %v21041_v42 }
 0x22e   :  { %v806_v53 = vrot.slane %v792_v43, %v21041_v42  ;;  %v21059_v54 = vrot.slane %v544_v44, %v21041_v42 }
 0x22f   :  { %v21017_v26 = vpop.f32.mrb[2].mxu0  ;;  %v740_v58 = vrot.slane %v726_v45, %v21041_v42  ;;  %v21065_v59 = vrot.slane %v478_v46, %v21041_v42 }
 0x230   :  { %472 = vrot.lane.b32.xlu1 %v275_v25, %s24144_s10  ;;  %v21020_v27 = vpop.f32.mrb[2].mxu1  ;;  %v21022_v28 = vpop.f32.mrb[3].mxu0 }
 0x231   :  { %720 = vrot.lane.b32.xlu0 %v21020_v27, %s24144_s10  ;;  %v21026_v29 = vpop.f32.mrb[3].mxu1  ;;  %v924_v62 = vcombine.high %v21020_v27, %v20752_v33  ;;  %v931_v45 = vrot.slane %v21020_v27, %v21041_v42 }
 0x232   :  { %v858_v3 = vcombine.high %v21026_v29, %v20752_v33 }
 0x233   :  { %v21028_v30 = vpop.f32.mrb[4].mxu0  ;;  %v938_v46 = vrot.slane %v924_v62, %v21041_v42 }
 0x234   :  { %718 = vrot.lane.b32.xlu1 %v21026_v29, %s24144_s10  ;;  %v21032_v31 = vpop.f32.mrb[5].mxu0 }
 0x238   :  { %474 = vrot.lane.b32.xlu1 %v19043_v23, %s24144_s10 }
 0x29e   :  { %v717_v52 = vpop.permute.xlu1 %716 }
 0x29f   :  { %v807_v55 = vcombine.high %v717_v52, %v20752_v33  ;;  %v814_v56 = vrot.slane %v717_v52, %v21041_v42  ;;  %v715_v57 = vpop.permute.xlu0 %714 }
 0x2a0   :  { %v741_v60 = vcombine.high %v715_v57, %v20752_v33  ;;  %v748_v61 = vrot.slane %v715_v57, %v21041_v42  ;;  %v21101_v57 = vrot.slane %v858_v3, %v21041_v42 }
 0x2a1   :  { %v821_v63 = vrot.slane %v807_v55, %v21041_v42  ;;  %v822_v1 = vcombine.low %v799_v48, %v814_v56  ;;  %v823_v2 = vcombine.high %v799_v48, %v814_v56  ;;  %v865_v48 = vrot.slane %v21026_v29, %v21041_v42 }
 0x2a2   :  { %v755_v4 = vrot.slane %v741_v60, %v21041_v42  ;;  %v756_v5 = vcombine.low %v733_v50, %v748_v61  ;;  %v757_v6 = vcombine.high %v733_v50, %v748_v61  ;;  %v473_v34 = vpop.permute.xlu1 %472 }
 0x2a3   :  { %v830_v7 = vrot.slane %v822_v1, %v21047_v47  ;;  %v837_v8 = vrot.slane %v823_v2, %v21047_v47  ;;  %v838_v10 = vcombine.low %v806_v53, %v821_v63  ;;  %v839_v11 = vcombine.high %v806_v53, %v821_v63  ;;  %v721_v44 = vpop.permute.xlu0 %720 }
 0x2a4   :  { %v764_v12 = vrot.slane %v756_v5, %v21047_v47  ;;  %v771_v13 = vrot.slane %v757_v6, %v21047_v47  ;;  %v772_v14 = vcombine.low %v740_v58, %v755_v4  ;;  %v773_v17 = vcombine.high %v740_v58, %v755_v4 }
 0x2a5   :  { %v846_v18 = vrot.slane %v838_v10, %v21047_v47  ;;  %v853_v19 = vrot.slane %v839_v11, %v21047_v47  ;;  %v1040_v20 = vcombine.low %v830_v7, %v837_v8  ;;  %v18075_v21 = vcombine.high %v830_v7, %v837_v8 }
 0x2a6   :  { %v780_v22 = vrot.slane %v772_v14, %v21047_v47  ;;  %v787_v23 = vrot.slane %v773_v17, %v21047_v47  ;;  %v990_v24 = vcombine.low %v764_v12, %v771_v13  ;;  %v18073_v25 = vcombine.high %v764_v12, %v771_v13  ;;  %v719_v5 = vpop.permute.xlu1 %718 }
 0x2a7   :  { %v1047_v35 = vrot.slane %v1040_v20, %v21041_v42  ;;  %v1055_v36 = vrot.slane %v18075_v21, %v21041_v42  ;;  %v1056_v37 = vcombine.low %v846_v18, %v853_v19  ;;  %v18076_v38 = vcombine.high %v846_v18, %v853_v19 }
 0x2a8   :  { %v997_v39 = vrot.slane %v990_v24, %v21041_v42  ;;  %v1005_v40 = vrot.slane %v18073_v25, %v21041_v42  ;;  %v1006_v41 = vcombine.low %v780_v22, %v787_v23  ;;  %v18074_v43 = vcombine.high %v780_v22, %v787_v23 }
 0x2a9   :  { %v493_v50 = vcombine.high %v473_v34, %v20752_v33  ;;  %v21094_v52 = vrot.slane %v1056_v37, %v21041_v42  ;;  %v21097_v53 = vrot.slane %v18076_v38, %v21041_v42  ;;  %v1072_v55 = vcombine.low %v1047_v35, %v1055_v36 }
 0x2aa   :  { %v500_v56 = vrot.slane %v473_v34, %v21041_v42  ;;  %v1013_v27 = vrot.slane %v1006_v41, %v21041_v42  ;;  %v939_v29 = vcombine.high %v721_v44, %v20752_v33  ;;  %v1021_v60 = vrot.slane %v18074_v43, %v21041_v42 }
 0x2ab   :  { %v507_v58 = vrot.slane %v493_v50, %v21041_v42  ;;  %v1022_v61 = vcombine.low %v997_v39, %v1005_v40  ;;  %v946_v3 = vrot.slane %v721_v44, %v21041_v42  ;;  %v21114_v6 = vrot.slane %v1072_v55, %v21047_v47 }
 0x2ac   :  { %v508_v62 = vcombine.low %v21055_v51, %v500_v56  ;;  %v509_v63 = vcombine.high %v21055_v51, %v500_v56  ;;  %v953_v4 = vrot.slane %v939_v29, %v21041_v42  ;;  %v1080_v7 = vcombine.low %v21094_v52, %v21097_v53  ;;  %v475_v52 = vpop.permute.xlu1 %474 }
 0x2ad   :  { %v524_v1 = vcombine.low %v21065_v59, %v507_v58  ;;  %v525_v2 = vcombine.high %v21065_v59, %v507_v58  ;;  %v954_v59 = vcombine.low %v931_v45, %v946_v3  ;;  %v955_v12 = vcombine.high %v931_v45, %v946_v3 }
 0x2ae   :  { %v516_v8 = vrot.slane %v508_v62, %v21047_v47  ;;  %v523_v10 = vrot.slane %v509_v63, %v21047_v47  ;;  %v970_v13 = vcombine.low %v938_v46, %v953_v4  ;;  %v971_v14 = vcombine.high %v938_v46, %v953_v4 }
 0x2af   :  { %v532_v51 = vrot.slane %v524_v1, %v21047_v47  ;;  %v539_v11 = vrot.slane %v525_v2, %v21047_v47  ;;  %v873_v17 = vcombine.high %v719_v5, %v20752_v33  ;;  %v880_v18 = vrot.slane %v719_v5, %v21041_v42 }
 0x2b0   :  { %v962_v21 = vrot.slane %v954_v59, %v21047_v47  ;;  %v969_v22 = vrot.slane %v955_v12, %v21047_v47  ;;  %v610_v23 = vcombine.low %v516_v8, %v523_v10  ;;  %v18069_v24 = vcombine.high %v516_v8, %v523_v10 }
 0x2b1   :  { %v626_v19 = vcombine.low %v532_v51, %v539_v11  ;;  %v18070_v20 = vcombine.high %v532_v51, %v539_v11  ;;  %v978_v25 = vrot.slane %v970_v13, %v21047_v47  ;;  %v985_v34 = vrot.slane %v971_v14, %v21047_v47 }
 0x2b2   :  { %v1140_v37 = vcombine.low %v962_v21, %v969_v22  ;;  %v18079_v38 = vcombine.high %v962_v21, %v969_v22  ;;  %v21131_v39 = vrot.slane %v1022_v61, %v21047_v47  ;;  %v887_v43 = vrot.slane %v873_v17, %v21041_v42 }
 0x2b3   :  { %v633_v35 = vrot.slane %v626_v19, %v21041_v42  ;;  %v641_v36 = vrot.slane %v18070_v20, %v21041_v42  ;;  %v1156_v40 = vcombine.low %v978_v25, %v985_v34  ;;  %v18080_v41 = vcombine.high %v978_v25, %v985_v34 }
 0x2b4   :  { %v1030_v44 = vcombine.low %v1013_v27, %v1021_v60  ;;  %v1147_v45 = vrot.slane %v1140_v37, %v21041_v42  ;;  %v1155_v46 = vrot.slane %v18079_v38, %v21041_v42  ;;  %v888_v50 = vcombine.low %v865_v48, %v880_v18 }
 0x2b5   :  { %v21137_v53 = vrot.slane %v610_v23, %v21041_v42  ;;  %v1163_v55 = vrot.slane %v1156_v40, %v21041_v42  ;;  %v1171_v56 = vrot.slane %v18080_v41, %v21041_v42  ;;  %v889_v58 = vcombine.high %v865_v48, %v880_v18 }
 0x2b6   :  { %v625_v29 = vrot.slane %v18069_v24, %v21041_v42  ;;  %v650_v61 = vcombine.low %v633_v35, %v641_v36  ;;  %v896_v62 = vrot.slane %v888_v50, %v21047_v47  ;;  %v904_v27 = vcombine.low %v21101_v57, %v887_v43 }
 0x2b7   :  { %v1172_v60 = vcombine.low %v1147_v45, %v1155_v46  ;;  %v903_v63 = vrot.slane %v889_v58, %v21047_v47  ;;  %v905_v1 = vcombine.high %v21101_v57, %v887_v43  ;;  %v559_v2 = vcombine.high %v475_v52, %v20752_v33 }
 0x2b8   :  { %v1180_v3 = vcombine.low %v1163_v55, %v1171_v56  ;;  %v912_v4 = vrot.slane %v904_v27, %v21047_v47  ;;  %v566_v5 = vrot.slane %v475_v52, %v21041_v42  ;;  %v1037_v48 = vrot.slane %v1030_v44, %v21047_v47 }
 0x2b9   :  { %v919_v8 = vrot.slane %v905_v1, %v21047_v47  ;;  %v1090_v10 = vcombine.low %v896_v62, %v903_v63  ;;  %v18077_v51 = vcombine.high %v896_v62, %v903_v63  ;;  %v573_v11 = vrot.slane %v559_v2, %v21041_v42 }
 0x2ba   :  { %v574_v59 = vcombine.low %v21051_v49, %v566_v5  ;;  %v575_v12 = vcombine.high %v21051_v49, %v566_v5  ;;  %v1038_v57 = vcombine.low %v21131_v39, %v1037_v48  ;;  %v1087_v13 = vrot.slane %v1080_v7, %v21047_v47 }
 0x2bb   :  { %v1097_v14 = vrot.slane %v1090_v10, %v21041_v42  ;;  %v1105_v17 = vrot.slane %v18077_v51, %v21041_v42  ;;  %v1106_v18 = vcombine.low %v912_v4, %v919_v8  ;;  %v18078_v19 = vcombine.high %v912_v4, %v919_v8 }
 0x2bc   :  { %v582_v20 = vrot.slane %v574_v59, %v21047_v47  ;;  %v589_v21 = vrot.slane %v575_v12, %v21047_v47  ;;  %v590_v22 = vcombine.low %v21059_v54, %v573_v11  ;;  %v591_v23 = vcombine.high %v21059_v54, %v573_v11 }
 0x2bd   :  { %v1113_v49 = vrot.slane %v1106_v18, %v21041_v42  ;;  %v1121_v24 = vrot.slane %v18078_v19, %v21041_v42  ;;  %v1122_v25 = vcombine.low %v1097_v14, %v1105_v17  ;;  %v1088_v7 = vcombine.low %v21114_v6, %v1087_v13 }
 0x2be   :  { %v598_v34 = vrot.slane %v590_v22, %v21047_v47  ;;  %v605_v35 = vrot.slane %v591_v23, %v21047_v47  ;;  %v660_v36 = vcombine.low %v582_v20, %v589_v21  ;;  %v18071_v37 = vcombine.high %v582_v20, %v589_v21 }
 0x2bf   :  { %v642_v54 = vcombine.low %v21137_v53, %v625_v29  ;;  %v657_v40 = vrot.slane %v650_v61, %v21047_v47  ;;  %v1130_v41 = vcombine.low %v1113_v49, %v1121_v24  ;;  %v20018_v43 = vpack.c.bf16 %v1088_v7, %v1038_v57 }
 0x2c0   :  { %v1179_v44 = vrot.slane %v1172_v60, %v21047_v47  ;;  %v1129_v45 = vrot.slane %v1122_v25, %v21047_v47  ;;  %v676_v46 = vcombine.low %v598_v34, %v605_v35  ;;  %v18072_v50 = vcombine.high %v598_v34, %v605_v35 }
 0x2c1   :  { %20020 = vmatpush3.bf16.xpose.msk.msra.mxu0 %vm21169_vm3, %v20018_v43  ;;  %v1137_v52 = vrot.slane %v1130_v41, %v21047_v47  ;;  %v1187_v55 = vrot.slane %v1180_v3, %v21047_v47  ;;  %v1039_v56 = vcombine.high %v21131_v39, %v1037_v48  ;;  %v1089_v53 = vcombine.high %v21114_v6, %v1087_v13 }
 0x2c2   :  { %v667_v58 = vrot.slane %v660_v36, %v21041_v42  ;;  %v675_v29 = vrot.slane %v18071_v37, %v21041_v42  ;;  %v683_v61 = vrot.slane %v676_v46, %v21041_v42  ;;  %v691_v62 = vrot.slane %v18072_v50, %v21041_v42  ;;  %20021 = vmatprep.subr.bf16.mxu0 %v20750_v32 }
 0x2c3   :  { %v1138_v27 = vcombine.low %v1129_v45, %v1137_v52  ;;  %v1188_v60 = vcombine.low %v1179_v44, %v1187_v55  ;;  %v20022_v63 = vpack.c.bf16 %v1089_v53, %v1039_v56  ;;  %v1139_v1 = vcombine.high %v1129_v45, %v1137_v52 }
 0x2c4   :  { %v649_v2 = vrot.slane %v642_v54, %v21047_v47  ;;  %v700_v3 = vcombine.low %v683_v61, %v691_v62  ;;  %v1189_v39 = vcombine.high %v1179_v44, %v1187_v55  ;;  %v692_v6 = vcombine.low %v667_v58, %v675_v29 }
 0x2c5   :  { %v20026_v4 = vpack.c.bf16 %v1188_v60, %v1138_v27  ;;  %v1213_v44 = vrot.slane %v21022_v28, %v21041_v42  ;;  %v1272_v60 = vcombine.high %v21017_v26, %v20752_v33 }
 0x2c6   :  { %v658_v5 = vcombine.low %v649_v2, %v657_v40  ;;  %v20030_v48 = vpack.c.bf16 %v1189_v39, %v1139_v1  ;;  %v707_v8 = vrot.slane %v700_v3, %v21047_v47  ;;  %v699_v10 = vrot.slane %v692_v6, %v21047_v47 }
 0x2c7   :  { %20028 = vmatpush3.bf16.xpose.msk.msra.mxu1 %vm21169_vm3, %v20026_v4  ;;  %v659_v11 = vcombine.high %v649_v2, %v657_v40  ;;  %v1206_v40 = vcombine.high %v21022_v28, %v20752_v33  ;;  %v1279_v4 = vrot.slane %v21017_v26, %v21041_v42 }
 0x2c8   :  { %19069 = vmatmul.mubr.msk.f32.vlgmr.msra.gmra.mrb[6].mxu0 %vm128_vm0, %v658_v5  ;;  %20033 = vmatprep.subr.bf16.mxu1 %v20750_v32  ;;  %v708_v51 = vcombine.low %v699_v10, %v707_v8  ;;  %v709_v59 = vcombine.high %v699_v10, %v707_v8 }
 0x2c9   :  { %20024 = vmatpush3.bf16.xpose.msk.msra.mxu0 %vm21169_vm3, %v20022_v63  ;;  %19075 = vmatprep.mubr.msk.f32.mxu0 %vm20751_vm2, %v20752_v33  ;;  %v1220_v52 = vrot.slane %v1206_v40, %v21041_v42 }
 0x2ca   :  { %20029 = vmatprep.subr.bf16.mxu0 %v20750_v32 }
 0x2ce   :  { %19083 = vmatmul.mubr.msk.f32.vlgmr.msra.gmra.mrb[4].mxu1 %vm128_vm0, %v708_v51 }
 0x2cf   :  { %19096 = vmatprep.mubr.msk.f32.mxu1 %vm20751_vm2, %v20752_v33 }
 0x2d0   :  { %19076 = vmatmul.mubr.msk.f32.vlgmr.msra.gmra.mrb[8].mxu0 %vm128_vm0, %v659_v11 }
 0x2d1   :  { %20032 = vmatpush3.bf16.xpose.msk.msra.mxu0 %vm21169_vm3, %v20030_v48  ;;  %19089 = vmatprep.mubr.msk.f32.mxu0 %vm20751_vm2, %v20752_v33 }
 0x2d2   :  { %20039 = vmatprep.subr.bf16.mxu0 %v20750_v32 }
 0x2d8   :  { %19090 = vmatmul.mubr.msk.f32.vlgmr.msra.gmra.mrb[10].mxu0 %vm128_vm0, %v709_v59 }
 0x2d9   :  { %19110 = vmatprep.mubr.msk.f32.mxu0 %vm20751_vm2, %v20752_v33 }
 0x39b   :  { %v1745_v12 = vpop.f32.mrb[6].mxu0 }
 0x39c   :  { %v19070_v57 = vpop.f32.mrb[7].mxu0  ;;  %v1986_v13 = vsel %vm128_vm0, %v1745_v12, -inf }
 0x39d   :  { %1987 = vmax.xlane.f32.xlu0 %v1986_v13 }
 0x3a1   :  { %v1903_v14 = vpop.f32.mrb[4].mxu1 }
 0x3a2   :  { %v19084_v17 = vpop.f32.mrb[5].mxu1  ;;  %v1992_v18 = vsel %vm128_vm0, %v1903_v14, -inf }
 0x3a3   :  { %v1824_v19 = vpop.f32.mrb[8].mxu0  ;;  %1993 = vmax.xlane.f32.xlu0 %v1992_v18 }
 0x3a4   :  { %v19077_v20 = vpop.f32.mrb[9].mxu0  ;;  %v1989_v21 = vsel %vm128_vm0, %v1824_v19, -inf }
 0x3a5   :  { %1990 = vmax.xlane.f32.xlu1 %v1989_v21 }
 0x3ab   :  { %v1982_v22 = vpop.f32.mrb[10].mxu0 }
 0x3ac   :  { %v19091_v23 = vpop.f32.mrb[11].mxu0  ;;  %v1995_v49 = vsel %vm128_vm0, %v1982_v22, -inf }
 0x3ad   :  { %1996 = vmax.xlane.f32.xlu0 %v1995_v49 }
 0x3b6   :  { %1194 = vrot.lane.b32.xlu1 %v21022_v28, %s24144_s10 }
 0x3c3   :  { %1196 = vrot.lane.b32.xlu0 %v21017_v26, %s24144_s10  ;;  %v1286_v26 = vrot.slane %v1272_v60, %v21041_v42 }
 0x42a   :  { %v1988_v24 = vpop.xlane.xlu0 %1987 }
 0x42b   :  { %v1998_v25 = vsub.f32 %v1745_v12, %v1988_v24 }
 0x42d   :  { %v2002_v7 = vmul.f32 1.442695, %v1998_v25 }
 0x42f   :  { %20496 = vpow2.f32 %v2002_v7 }
 0x430   :  { %v1994_v34 = vpop.xlane.xlu0 %1993 }
 0x431   :  { %v2000_v35 = vsub.f32 %v1903_v14, %v1994_v34 }
 0x432   :  { %v1991_v36 = vpop.xlane.xlu1 %1990 }
 0x433   :  { %v2006_v37 = vmul.f32 1.442695, %v2000_v35  ;;  %v1999_v54 = vsub.f32 %v1824_v19, %v1991_v36 }
 0x435   :  { %20498 = vpow2.f32 %v2006_v37  ;;  %v2004_v41 = vmul.f32 1.442695, %v1999_v54 }
 0x436   :  { %v1195_v43 = vpop.permute.xlu1 %1194 }
 0x437   :  { %20500 = vpow2.f32 %v2004_v41  ;;  %v1221_v45 = vcombine.high %v1195_v43, %v20752_v33  ;;  %v1228_v46 = vrot.slane %v1195_v43, %v21041_v42 }
 0x439   :  { %v21226_v50 = vpop.eup %20496  ;;  %v1235_v55 = vrot.slane %v1221_v45, %v21041_v42  ;;  %v1236_v56 = vcombine.low %v1213_v44, %v1228_v46  ;;  %v1237_v53 = vcombine.high %v1213_v44, %v1228_v46 }
 0x43a   :  { %v1997_v58 = vpop.xlane.xlu0 %1996  ;;  %v2010_v29 = vsel %vm128_vm0, %v21226_v50, 0.0 }
 0x43b   :  { %v1244_v61 = vrot.slane %v1236_v56, %v21047_v47  ;;  %v1251_v28 = vrot.slane %v1237_v53, %v21047_v47  ;;  %v1252_v62 = vcombine.low %v1220_v52, %v1235_v55  ;;  %v1253_v27 = vcombine.high %v1220_v52, %v1235_v55  ;;  %2011 = vadd.xlane.f32.xlu0 %v2010_v29 }
 0x43c   :  { %v2001_v63 = vsub.f32 %v1982_v22, %v1997_v58 }
 0x43d   :  { %v1260_v1 = vrot.slane %v1252_v62, %v21047_v47  ;;  %v1267_v2 = vrot.slane %v1253_v27, %v21047_v47  ;;  %v1470_v3 = vcombine.low %v1244_v61, %v1251_v28  ;;  %v18081_v39 = vcombine.high %v1244_v61, %v1251_v28 }
 0x43e   :  { %v2008_v6 = vmul.f32 1.442695, %v2001_v63  ;;  %v1197_v5 = vpop.permute.xlu0 %1196 }
 0x43f   :  { %v21240_v48 = vpop.eup %20498  ;;  %v1477_v8 = vrot.slane %v1470_v3, %v21041_v42  ;;  %v1485_v10 = vrot.slane %v18081_v39, %v21041_v42  ;;  %v1486_v51 = vcombine.low %v1260_v1, %v1267_v2  ;;  %v18082_v11 = vcombine.high %v1260_v1, %v1267_v2 }
 0x440   :  { %20502 = vpow2.f32 %v2008_v6  ;;  %v1287_v59 = vcombine.high %v1197_v5, %v20752_v33  ;;  %v1294_v12 = vrot.slane %v1197_v5, %v21041_v42  ;;  %v2016_v57 = vsel %vm128_vm0, %v21240_v48, 0.0 }
 0x441   :  { %v21248_v13 = vpop.eup %20500  ;;  %v1493_v14 = vrot.slane %v1486_v51, %v21041_v42  ;;  %v1501_v17 = vrot.slane %v18082_v11, %v21041_v42  ;;  %2017 = vadd.xlane.f32.xlu0 %v2016_v57  ;;  %v1502_v18 = vcombine.low %v1477_v8, %v1485_v10  ;;  %v1345_v11 = vrot.slane %v21032_v31, %v21041_v42 }
 0x442   :  { %v1301_v19 = vrot.slane %v1287_v59, %v21041_v42  ;;  %v1302_v20 = vcombine.low %v1279_v4, %v1294_v12  ;;  %v1303_v21 = vcombine.high %v1279_v4, %v1294_v12  ;;  %v2013_v22 = vsel %vm128_vm0, %v21248_v13, 0.0 }
 0x443   :  { %2014 = vadd.xlane.f32.xlu1 %v2013_v22  ;;  %v1510_v23 = vcombine.low %v1493_v14, %v1501_v17  ;;  %v1509_v34 = vrot.slane %v1502_v18, %v21047_v47  ;;  %v1338_v4 = vcombine.high %v21032_v31, %v20752_v33  ;;  %v1404_v22 = vcombine.high %v21028_v30, %v20752_v33 }
 0x444   :  { %v1310_v49 = vrot.slane %v1302_v20, %v21047_v47  ;;  %v1317_v24 = vrot.slane %v1303_v21, %v21047_v47  ;;  %v1318_v25 = vcombine.low %v1286_v26, %v1301_v19  ;;  %v1319_v7 = vcombine.high %v1286_v26, %v1301_v19 }
 0x445   :  { %v1517_v35 = vrot.slane %v1510_v23, %v21047_v47  ;;  %v1352_v59 = vrot.slane %v1338_v4, %v21041_v42 }
 0x446   :  { %v1326_v36 = vrot.slane %v1318_v25, %v21047_v47  ;;  %v1333_v37 = vrot.slane %v1319_v7, %v21047_v47  ;;  %v1520_v54 = vcombine.low %v1310_v49, %v1317_v24  ;;  %v18083_v40 = vcombine.high %v1310_v49, %v1317_v24 }
 0x447   :  { %v1519_v41 = vcombine.high %v1509_v34, %v1517_v35  ;;  %v1518_v62 = vcombine.low %v1509_v34, %v1517_v35  ;;  %v1411_v7 = vrot.slane %v21028_v30, %v21041_v42 }
 0x448   :  { %v1527_v43 = vrot.slane %v1520_v54, %v21041_v42  ;;  %v1535_v44 = vrot.slane %v18083_v40, %v21041_v42  ;;  %v1536_v45 = vcombine.low %v1326_v36, %v1333_v37  ;;  %v18084_v46 = vcombine.high %v1326_v36, %v1333_v37 }
 0x449   :  { %v1418_v54 = vrot.slane %v1404_v22, %v21041_v42 }
 0x44a   :  { %v21264_v52 = vpop.eup %20502  ;;  %v1543_v55 = vrot.slane %v1536_v45, %v21041_v42  ;;  %v1551_v56 = vrot.slane %v18084_v46, %v21041_v42  ;;  %v1552_v53 = vcombine.low %v1527_v43, %v1535_v44 }
 0x44b   :  { %v2019_v58 = vsel %vm128_vm0, %v21264_v52, 0.0 }
 0x44c   :  { %2020 = vadd.xlane.f32.xlu1 %v2019_v58  ;;  %v1560_v29 = vcombine.low %v1543_v55, %v1551_v56  ;;  %v1559_v61 = vrot.slane %v1552_v53, %v21047_v47 }
 0x44e   :  { %v1567_v28 = vrot.slane %v1560_v29, %v21047_v47 }
 0x450   :  { %v1568_v27 = vcombine.low %v1559_v61, %v1567_v28  ;;  %v1569_v60 = vcombine.high %v1559_v61, %v1567_v28 }
 0x452   :  { %v20034_v63 = vpack.c.bf16 %v1568_v27, %v1518_v62  ;;  %v20037_v1 = vpack.c.bf16 %v1569_v60, %v1519_v41 }
 0x454   :  { %20035 = vmatpush3.bf16.msra.mxu1 %v20034_v63 }
 0x455   :  { %20036 = vmatprep.subr.bf16.mxu1 %v20750_v32 }
 0x457   :  { %1198 = vrot.lane.b32.xlu0 %v21032_v31, %s24144_s10 }
 0x45d   :  { %1200 = vrot.lane.b32.xlu1 %v21028_v30, %s24144_s10  ;;  %s24151_s10 = smov 104  }
 0x4c8   :  { %v2012_v2 = vpop.xlane.xlu0 %2011 }
 0x4c9   :  { %20504 = vrcp.f32 %v2012_v2 }
 0x4ce   :  { %v2018_v3 = vpop.xlane.xlu0 %2017 }
 0x4d0   :  { %v2015_v39 = vpop.xlane.xlu1 %2014 }
 0x4d1   :  { %20506 = vrcp.f32 %v2015_v39 }
 0x4d2   :  { %v1199_v6 = vpop.permute.xlu0 %1198  ;;  %20508 = vrcp.f32 %v2018_v3 }
 0x4d3   :  { %v20505_v5 = vpop.eup %20504  ;;  %v1353_v8 = vcombine.high %v1199_v6, %v20752_v33  ;;  %v1360_v10 = vrot.slane %v1199_v6, %v21041_v42 }
 0x4d4   :  { %v2026_v51 = vmul.f32 %v20505_v5, %v21226_v50 }
 0x4d5   :  { %v1367_v12 = vrot.slane %v1353_v8, %v21041_v42  ;;  %v1368_v57 = vcombine.low %v1345_v11, %v1360_v10  ;;  %v1369_v26 = vcombine.high %v1345_v11, %v1360_v10 }
 0x4d6   :  { %19097 = vmatmul.mubr.msk.f32.vlgmr.msra.gmra.mrb[6].mxu1 %vm128_vm0, %v2026_v51 }
 0x4d7   :  { %v1384_v14 = vcombine.low %v1352_v59, %v1367_v12  ;;  %v1385_v17 = vcombine.high %v1352_v59, %v1367_v12  ;;  %20038 = vmatpush3.bf16.msra.mxu1 %v20037_v1  ;;  %19103 = vmatprep.mubr.msk.f32.mxu1 %vm20751_vm2, %v20752_v33  ;;  %v1376_v20 = vrot.slane %v1368_v57, %v21047_v47 }
 0x4d8   :  { %20042 = vmatprep.subr.bf16.mxu1 %v20750_v32  ;;  %v1383_v21 = vrot.slane %v1369_v26, %v21047_v47 }
 0x4d9   :  { %v1392_v50 = vrot.slane %v1384_v14, %v21047_v47  ;;  %v1399_v31 = vrot.slane %v1385_v17, %v21047_v47  ;;  %v2021_v18 = vpop.xlane.xlu1 %2020 }
 0x4da   :  { %v1570_v36 = vcombine.low %v1376_v20, %v1383_v21  ;;  %v18085_v37 = vcombine.high %v1376_v20, %v1383_v21  ;;  %20510 = vrcp.f32 %v2021_v18 }
 0x4db   :  { %v20507_v19 = vpop.eup %20506  ;;  %v1586_v49 = vcombine.low %v1392_v50, %v1399_v31  ;;  %v18086_v24 = vcombine.high %v1392_v50, %v1399_v31 }
 0x4dc   :  { %v2027_v23 = vmul.f32 %v20507_v19, %v21248_v13  ;;  %v1577_v56 = vrot.slane %v1570_v36, %v21041_v42  ;;  %v1585_v53 = vrot.slane %v18085_v37, %v21041_v42  ;;  %v20509_v11 = vpop.eup %20508 }
 0x4dd   :  { %v1201_v25 = vpop.permute.xlu1 %1200  ;;  %v1593_v43 = vrot.slane %v1586_v49, %v21041_v42  ;;  %v1601_v30 = vrot.slane %v18086_v24, %v21041_v42  ;;  %v2028_v31 = vmul.f32 %v20509_v11, %v21240_v48 }
 0x4de   :  { %v1419_v34 = vcombine.high %v1201_v25, %v20752_v33  ;;  %v1426_v35 = vrot.slane %v1201_v25, %v21041_v42  ;;  %19104 = vmatmul.mubr.msk.f32.vlgmr.msra.gmra.mrb[8].mxu1 %vm128_vm0, %v2027_v23  ;;  %v1602_v39 = vcombine.low %v1577_v56, %v1585_v53 }
 0x4df   :  { %19117 = vmatprep.mubr.msk.f32.mxu1 %vm20751_vm2, %v20752_v33  ;;  %v1610_v62 = vcombine.low %v1593_v43, %v1601_v30  ;;  %v2564_v30 = vld [vmem:[%s24196_s7] sm:$0xff] }
 0x4e0   :  { %v1433_v13 = vrot.slane %v1419_v34, %v21041_v42  ;;  %v1434_v40 = vcombine.low %v1411_v7, %v1426_v35  ;;  %v1435_v41 = vcombine.high %v1411_v7, %v1426_v35  ;;  %v1609_v8 = vrot.slane %v1602_v39, %v21047_v47 }
 0x4e1   :  { %v1617_v6 = vrot.slane %v1610_v62, %v21047_v47 }
 0x4e2   :  { %v1442_v44 = vrot.slane %v1434_v40, %v21047_v47  ;;  %v1449_v45 = vrot.slane %v1435_v41, %v21047_v47  ;;  %v1450_v46 = vcombine.low %v1418_v54, %v1433_v13  ;;  %v1451_v55 = vcombine.high %v1418_v54, %v1433_v13 }
 0x4e3   :  { %v1618_v59 = vcombine.low %v1609_v8, %v1617_v6  ;;  %v1619_v57 = vcombine.high %v1609_v8, %v1617_v6 }
 0x4e4   :  { %v1458_v58 = vrot.slane %v1450_v46, %v21047_v47  ;;  %v1465_v29 = vrot.slane %v1451_v55, %v21047_v47  ;;  %v1620_v61 = vcombine.low %v1442_v44, %v1449_v45  ;;  %v18087_v28 = vcombine.high %v1442_v44, %v1449_v45  ;;  %v20511_v14 = vpop.eup %20510  ;;  %v2565_v44 = vld [vmem:[%s24196_s7 + $0x8] sm:$0xff]  ;;  %v2566_v45 = vld [vmem:[%s24196_s7 + $0x10] sm:$0xff]  ;;  %v2567_v55 = vld [vmem:[%s24196_s7 + $0x18] sm:$0xff]  ;;  %s24153_s7 = smov 24  }
 0x4e5   :  { %v2029_v18 = vmul.f32 %v20511_v14, %v21264_v52  ;;  %v20045_v46 = vpack.c.bf16 %v2565_v44, %v2564_v30  ;;  %v20724_v30 = vld [vmem:[%s24186_s6] sm:$0xff]  ;;  %s24201_s6 = smov 16  }
 0x4e6   :  { %v1627_v27 = vrot.slane %v1620_v61, %v21041_v42  ;;  %v1635_v60 = vrot.slane %v18087_v28, %v21041_v42  ;;  %v1636_v63 = vcombine.low %v1458_v58, %v1465_v29  ;;  %v18088_v1 = vcombine.high %v1458_v58, %v1465_v29 }
 0x4e7   :  { %v20049_v61 = vpack.c.bf16 %v2567_v55, %v2566_v45 }
 0x4e8   :  { %v1643_v2 = vrot.slane %v1636_v63, %v21041_v42  ;;  %v1651_v3 = vrot.slane %v18088_v1, %v21041_v42  ;;  %v1652_v4 = vcombine.low %v1627_v27, %v1635_v60 }
 0x4ea   :  { %v1660_v5 = vcombine.low %v1643_v2, %v1651_v3  ;;  %v1659_v10 = vrot.slane %v1652_v4, %v21047_v47 }
 0x4ec   :  { %v1667_v51 = vrot.slane %v1660_v5, %v21047_v47 }
 0x4ee   :  { %v1668_v12 = vcombine.low %v1659_v10, %v1667_v51  ;;  %v1669_v26 = vcombine.high %v1659_v10, %v1667_v51 }
 0x4f0   :  { %v20040_v17 = vpack.c.bf16 %v1668_v12, %v1618_v59  ;;  %v20043_v50 = vpack.c.bf16 %v1669_v26, %v1619_v57 }
 0x4f2   :  { %20041 = vmatpush3.bf16.msra.mxu0 %v20040_v17  ;;  %20044 = vmatpush3.bf16.msra.mxu1 %v20043_v50 }
 0x4f3   :  { %20046 = vmatprep.subr.bf16.mxu0 %v20045_v46 }
 0x4f5   :  { %19111 = vmatmul.mubr.msk.f32.vlgmr.msra.gmra.mrb[12].mxu0 %vm128_vm0, %v2028_v31  ;;  %19118 = vmatmul.mubr.msk.f32.vlgmr.msra.gmra.mrb[10].mxu1 %vm128_vm0, %v2029_v18 }
 0x4f6   :  { %20048 = vmatpush3.bf16.msra.mxu0 %v20045_v46 }
 0x4f7   :  { %20050 = vmatprep.subr.bf16.mxu0 %v20049_v61 }
 0x4fa   :  { %20052 = vmatpush3.bf16.msra.mxu0 %v20049_v61 }
 0x5a9   :  { %v2099_v19 = vpop.f32.mrb[6].mxu1 }
 0x5aa   :  { %v19098_v20 = vpop.f32.mrb[7].mxu1  ;;  %v2322_v21 = vcombine.high %v2099_v19, %v20752_v33  ;;  %v2329_v23 = vrot.slane %v2099_v19, %v21041_v42 }
 0x5ac   :  { %v2336_v48 = vrot.slane %v2322_v21, %v21041_v42 }
 0x5b1   :  { %v2172_v22 = vpop.f32.mrb[8].mxu1 }
 0x5b2   :  { %v2337_v49 = vcombine.high %v2172_v22, %v20752_v33  ;;  %v2344_v24 = vrot.slane %v2172_v22, %v21041_v42  ;;  %v19105_v25 = vpop.f32.mrb[9].mxu1 }
 0x5b4   :  { %v2351_v52 = vrot.slane %v2337_v49, %v21041_v42  ;;  %v2352_v7 = vcombine.low %v2329_v23, %v2344_v24  ;;  %v2353_v34 = vcombine.high %v2329_v23, %v2344_v24 }
 0x5b6   :  { %v2360_v35 = vrot.slane %v2352_v7, %v21047_v47  ;;  %v2367_v36 = vrot.slane %v2353_v34, %v21047_v47  ;;  %v2368_v37 = vcombine.low %v2336_v48, %v2351_v52  ;;  %v2369_v54 = vcombine.high %v2336_v48, %v2351_v52 }
 0x5b8   :  { %v2376_v13 = vrot.slane %v2368_v37, %v21047_v47  ;;  %v2383_v40 = vrot.slane %v2369_v54, %v21047_v47  ;;  %v2454_v41 = vcombine.low %v2360_v35, %v2367_v36  ;;  %v18105_v43 = vcombine.high %v2360_v35, %v2367_v36 }
 0x5ba   :  { %v2461_v56 = vrot.slane %v2454_v41, %v21041_v42  ;;  %v2469_v53 = vrot.slane %v18105_v43, %v21041_v42  ;;  %v2470_v58 = vcombine.low %v2376_v13, %v2383_v40  ;;  %v18106_v29 = vcombine.high %v2376_v13, %v2383_v40 }
 0x5bc   :  { %v2477_v28 = vrot.slane %v2470_v58, %v21041_v42  ;;  %v2485_v62 = vrot.slane %v18106_v29, %v21041_v42  ;;  %v2486_v27 = vcombine.low %v2461_v56, %v2469_v53 }
 0x5be   :  { %v2494_v60 = vcombine.low %v2477_v28, %v2485_v62  ;;  %v2493_v63 = vrot.slane %v2486_v27, %v21047_v47 }
 0x5c0   :  { %v2501_v1 = vrot.slane %v2494_v60, %v21047_v47 }
 0x5c2   :  { %v2503_v2 = vcombine.high %v2493_v63, %v2501_v1  ;;  %v2502_v3 = vcombine.low %v2493_v63, %v2501_v1 }
 0x5c4   :  { %2556 = vrot.lane.b32.xlu1 %v2503_v2, %s24147_s28  ;;  %v2695_v2 = vld [vmem:[%s24197_s29] sm:$0xff] }
 0x5c8   :  { %v2245_v39 = vpop.f32.mrb[12].mxu0  ;;  %v2318_v4 = vpop.f32.mrb[10].mxu1 }
 0x5c9   :  { %v2388_v6 = vcombine.high %v2245_v39, %v20752_v33  ;;  %v2395_v5 = vrot.slane %v2245_v39, %v21041_v42  ;;  %v2403_v8 = vcombine.high %v2318_v4, %v20752_v33  ;;  %v2410_v10 = vrot.slane %v2318_v4, %v21041_v42  ;;  %v19112_v51 = vpop.f32.mrb[13].mxu0  ;;  %v19119_v11 = vpop.f32.mrb[11].mxu1  ;;  %v2697_v39 = vld [vmem:[%s24197_s29 + $0x10] sm:$0xff] }
 0x5ca   :  { %v2799_v51 = vld [vmem:[%s24116_s14 + $0x10] sm:$0xff] }
 0x5cb   :  { %v2402_v59 = vrot.slane %v2388_v6, %v21041_v42  ;;  %v2417_v12 = vrot.slane %v2403_v8, %v21041_v42  ;;  %v2418_v57 = vcombine.low %v2395_v5, %v2410_v10  ;;  %v2419_v26 = vcombine.high %v2395_v5, %v2410_v10  ;;  %v2698_v6 = vld [vmem:[%s24197_s29 + $0x18] sm:$0xff]  ;;  %v2797_v8 = vld [vmem:[%s24116_s14] sm:$0xff]  ;;  %v2798_v10 = vld [vmem:[%s24116_s14 + $0x8] sm:$0xff] }
 0x5cc   :  { %v20057_v5 = vpack.c.bf16 %v2698_v6, %v2697_v39  ;;  %v20061_v11 = vpack.c.bf16 %v2798_v10, %v2797_v8 }
 0x5cd   :  { %v2426_v14 = vrot.slane %v2418_v57, %v21047_v47  ;;  %v2433_v17 = vrot.slane %v2419_v26, %v21047_v47  ;;  %v2434_v50 = vcombine.low %v2402_v59, %v2417_v12  ;;  %v2435_v31 = vcombine.high %v2402_v59, %v2417_v12  ;;  %v2800_v59 = vld [vmem:[%s24116_s14 + $0x18] sm:$0xff]  ;;  %v2801_v57 = vld [vmem:[%s24116_s14 + $0x20] sm:$0xff]  ;;  %v2802_v26 = vld [vmem:[%s24116_s14 + $0x28] sm:$0xff] }
 0x5ce   :  { %v20065_v12 = vpack.c.bf16 %v2800_v59, %v2799_v51  ;;  %20062 = vmatprep.subr.bf16.mxu0 %v20061_v11 }
 0x5cf   :  { %v2442_v18 = vrot.slane %v2434_v50, %v21047_v47  ;;  %v2449_v19 = vrot.slane %v2435_v31, %v21047_v47  ;;  %v2504_v20 = vcombine.low %v2426_v14, %v2433_v17  ;;  %v18107_v21 = vcombine.high %v2426_v14, %v2433_v17 }
 0x5d0   :  { %v20069_v14 = vpack.c.bf16 %v2802_v26, %v2801_v57 }
 0x5d1   :  { %v2511_v22 = vrot.slane %v2504_v20, %v21041_v42  ;;  %v2519_v23 = vrot.slane %v18107_v21, %v21041_v42  ;;  %v2520_v49 = vcombine.low %v2442_v18, %v2449_v19  ;;  %v18108_v24 = vcombine.high %v2442_v18, %v2449_v19 }
 0x5d3   :  { %v2527_v25 = vrot.slane %v2520_v49, %v21041_v42  ;;  %v2535_v48 = vrot.slane %v18108_v24, %v21041_v42  ;;  %v2536_v52 = vcombine.low %v2511_v22, %v2519_v23  ;;  %v18111_v22 = vld [vmem:[%s24198_s12] ss:$0 sm:$0xff] }
 0x5d4   :  { %v18112_v49 = vld [vmem:[%s24199_s30] ss:$0 sm:$0xff]  ;;  %s24204_s30 = smov 8  }
 0x5d5   :  { %v2544_v7 = vcombine.low %v2527_v25, %v2535_v48  ;;  %v2543_v34 = vrot.slane %v2536_v52, %v21047_v47 }
 0x5d7   :  { %v2551_v35 = vrot.slane %v2544_v7, %v21047_v47 }
 0x5d9   :  { %v2553_v36 = vcombine.high %v2543_v34, %v2551_v35  ;;  %v2552_v37 = vcombine.low %v2543_v34, %v2551_v35  ;;  %v2803_v35 = vld [vmem:[%s24116_s14 + $0x30] sm:$0xff] }
 0x5db   :  { %2558 = vrot.lane.b32.xlu1 %v2553_v36, %s24147_s28  ;;  %v2804_v36 = vld [vmem:[%s24116_s14 + $0x38] sm:$0xff]  ;;  %s24200_s28 = smov 112  }
 0x636   :  { %v2557_v54 = vpop.permute.xlu1 %2556 }
 0x637   :  { %v2562_v13 = vsel %vm128_vm0, %v2502_v3, %v2557_v54  ;;  %v2696_v3 = vld [vmem:[%s24197_s29 + $0x8] sm:$0xff]  ;;  %v2805_v54 = vld [vmem:[%s24116_s14 + $0x40] sm:$0xff]  ;;  %s24205_s29 = smov 24  }
 0x638   :  { %19128 = vmatprep.mubr.msk.f32.mxu0 %vm97_vm1, %v2562_v13  ;;  %v20053_v4 = vpack.c.bf16 %v2696_v3, %v2695_v2  ;;  %v2806_v13 = vld [vmem:[%s24116_s14 + $0x48] sm:$0xff] }
 0x63a   :  { %20054 = vmatprep.subr.bf16.mxu1 %v20053_v4 }
 0x63b   :  { %20056 = vmatpush3.bf16.msra.mxu1 %v20053_v4 }
 0x63c   :  { %20058 = vmatprep.subr.bf16.mxu1 %v20057_v5 }
 0x63f   :  { %20060 = vmatpush3.bf16.msra.mxu1 %v20057_v5 }
 0x64d   :  { %v2559_v40 = vpop.permute.xlu1 %2558 }
 0x64e   :  { %v2563_v41 = vsel %vm128_vm0, %v2552_v37, %v2559_v40  ;;  %v20073_v37 = vpack.c.bf16 %v2804_v36, %v2803_v35  ;;  %v20077_v40 = vpack.c.bf16 %v2806_v13, %v2805_v54  ;;  %v3028_v35 = vld [vmem:[%s24121_s19] sm:$0xff]  ;;  %v3029_v36 = vld [vmem:[%s24121_s19 + $0x8] sm:$0xff] }
 0x64f   :  { %19129 = vmatmul.mubr.msk.f32.vlgmr.msra.gmra.mrb[14].mxu0 %vm97_vm1, %v2563_v41  ;;  %v2807_v41 = vld [vmem:[%s24116_s14 + $0x50] sm:$0xff] }
 0x650   :  { %20064 = vmatpush3.bf16.msra.mxu0 %v20061_v11  ;;  %v18116_v11 = vld [vmem:[%s24117_s15] ss:$0 sm:$0xff]  ;;  %s24202_s15 = smov 120  }
 0x651   :  { %20066 = vmatprep.subr.bf16.mxu0 %v20065_v12 }
 0x654   :  { %20068 = vmatpush3.bf16.msra.mxu0 %v20065_v12 }
 0x655   :  { %20070 = vmatprep.subr.bf16.mxu0 %v20069_v14 }
 0x658   :  { %20072 = vmatpush3.bf16.msra.mxu0 %v20069_v14 }
 0x659   :  { %20074 = vmatprep.subr.bf16.mxu0 %v20073_v37 }
 0x65c   :  { %20076 = vmatpush3.bf16.msra.mxu0 %v20073_v37  ;;  %v20101_v37 = vpack.c.bf16 %v3029_v36, %v3028_v35 }
 0x65d   :  { %20078 = vmatprep.subr.bf16.mxu0 %v20077_v40 }
 0x660   :  { %20080 = vmatpush3.bf16.msra.mxu0 %v20077_v40 }
 0x722   :  { %v19130_v43 = vpop.f32.mrb[14].mxu0 }
 0x723   :  { %v21379_v44 = vadd.f32 %v20724_v30, %v19130_v43  ;;  %v2640_v45 = vpop.f32.mrb[15].mxu0  ;;  %v2808_v43 = vld [vmem:[%s24116_s14 + $0x58] sm:$0xff] }
 0x724   :  { %v21381_v46 = vadd.f32 %v20724_v30, %v2640_v45  ;;  %v20081_v30 = vpack.c.bf16 %v2808_v43, %v2807_v41  ;;  %v2809_v45 = vld [vmem:[%s24116_s14 + $0x60] sm:$0xff] }
 0x725   :  { %v2656_v55 = vsel %vm97_vm1, %v21379_v44, 0.0 }
 0x726   :  { %2657 = vadd.xlane.f32.xlu1 %v2656_v55  ;;  %v2653_v56 = vsel %vm97_vm1, %v21381_v46, 0.0  ;;  %20082 = vmatprep.subr.bf16.mxu0 %v20081_v30  ;;  %v2810_v55 = vld [vmem:[%s24116_s14 + $0x68] sm:$0xff] }
 0x727   :  { %2654 = vadd.xlane.f32.xlu0 %v2653_v56  ;;  %20084 = vmatpush3.bf16.msra.mxu0 %v20081_v30  ;;  %v20085_v56 = vpack.c.bf16 %v2810_v55, %v2809_v45  ;;  %v18117_v55 = vld [vmem:[%s24118_s16] ss:$0 sm:$0xff] }
 0x729   :  { %20086 = vmatprep.subr.bf16.mxu0 %v20085_v56 }
 0x72b   :  { %20088 = vmatpush3.bf16.msra.mxu0 %v20085_v56 }
 0x7b3   :  { %v2658_v53 = vpop.xlane.xlu1 %2657 }
 0x7b4   :  { %v2660_v58 = vmul.f32 0.03125, %v2658_v53  ;;  %v2655_v29 = vpop.xlane.xlu0 %2654  ;;  %v2811_v53 = vld [vmem:[%s24116_s14 + $0x70] sm:$0xff] }
 0x7b5   :  { %v2659_v61 = vmul.f32 0.03125, %v2655_v29 }
 0x7b6   :  { %v2662_v28 = vsub.f32 %v21379_v44, %v2660_v58  ;;  %v2812_v58 = vld [vmem:[%s24116_s14 + $0x78] sm:$0xff] }
 0x7b7   :  { %v2661_v62 = vsub.f32 %v21381_v46, %v2659_v61  ;;  %v20089_v29 = vpack.c.bf16 %v2812_v58, %v2811_v53  ;;  %v18113_v61 = vld [vmem:[%s24115_s13] ss:$0 sm:$0xff]  ;;  %s24206_s13 = sld [smem:[#allocation8_spill]] }
 0x7b8   :  { %v2664_v63 = vmul.f32 %v2662_v28, %v2662_v28 }
 0x7b9   :  { %v2663_v27 = vmul.f32 %v2661_v62, %v2661_v62  ;;  %20090 = vmatprep.subr.bf16.mxu0 %v20089_v29 }
 0x7ba   :  { %v2668_v1 = vsel %vm97_vm1, %v2664_v63, 0.0  ;;  %20092 = vmatpush3.bf16.msra.mxu0 %v20089_v29  ;;  %v18118_v29 = vld [vmem:[%s24119_s17] ss:$0 sm:$0xff] }
 0x7bb   :  { %v2665_v60 = vsel %vm97_vm1, %v2663_v27, 0.0  ;;  %19220 = vmatprep.subr.mxu0 %v20752_v33 }
 0x7bc   :  { %2666 = vadd.xlane.f32.xlu0 %v2665_v60 }
 0x7c0   :  { %2669 = vadd.xlane.f32.xlu0 %v2668_v1 }
 0x849   :  { %v2667_v17 = vpop.xlane.xlu0 %2666 }
 0x84a   :  { %v2671_v50 = vmul.f32 0.03125, %v2667_v17 }
 0x84c   :  { %v2673_v31 = vadd.f32 1e-05, %v2671_v50 }
 0x84d   :  { %v2670_v18 = vpop.xlane.xlu0 %2669 }
 0x84e   :  { %20512 = vrsqrt.f32 %v2673_v31  ;;  %v2672_v19 = vmul.f32 0.03125, %v2670_v18 }
 0x850   :  { %v2674_v20 = vadd.f32 1e-05, %v2672_v19 }
 0x852   :  { %20514 = vrsqrt.f32 %v2674_v20 }
 0x858   :  { %v20513_v21 = vpop.eup %20512 }
 0x859   :  { %v2677_v23 = vmul.f32 %v20513_v21, %v2661_v62 }
 0x85b   :  { %v2685_v24 = vmul.f32 %v18111_v22, %v2677_v23 }
 0x85c   :  { %v20515_v25 = vpop.eup %20514 }
 0x85d   :  { %v2678_v48 = vmul.f32 %v20515_v25, %v2662_v28  ;;  %v2693_v52 = vadd.f32 %v18112_v49, %v2685_v24  ;;  %v2943_v24 = vld [vmem:[%s24120_s18] sm:$0xff]  ;;  %v2944_v25 = vld [vmem:[%s24120_s18 + $0x8] sm:$0xff] }
 0x85f   :  { %v2686_v7 = vmul.f32 %v18111_v22, %v2678_v48  ;;  %19139 = vmatprep.mubr.msk.f32.mxu1 %vm97_vm1, %v2693_v52  ;;  %v2945_v48 = vld [vmem:[%s24120_s18 + $0x10] sm:$0xff]  ;;  %v20093_v52 = vpack.c.bf16 %v2944_v25, %v2943_v24 }
 0x861   :  { %v2694_v34 = vadd.f32 %v18112_v49, %v2686_v7  ;;  %v2946_v7 = vld [vmem:[%s24120_s18 + $0x18] sm:$0xff]  ;;  %20094 = vmatprep.subr.bf16.mxu1 %v20093_v52 }
 0x863   :  { %19140 = vmatmul.mubr.msk.f32.vlgmr.msra.gmra.mrb[12].mxu1 %vm97_vm1, %v2694_v34  ;;  %v20097_v34 = vpack.c.bf16 %v2946_v7, %v2945_v48 }
 0x864   :  { %20096 = vmatpush3.bf16.msra.mxu1 %v20093_v52 }
 0x865   :  { %20098 = vmatprep.subr.bf16.mxu1 %v20097_v34 }
 0x868   :  { %20100 = vmatpush3.bf16.msra.mxu1 %v20097_v34 }
 0x869   :  { %20102 = vmatprep.subr.bf16.mxu1 %v20101_v37 }
 0x936   :  { %v19141_v28 = vpop.f32.mrb[12].mxu1 }
 0x937   :  { %v2784_v62 = vadd.f32 %v19141_v28, %v18113_v61  ;;  %v2778_v27 = vpop.f32.mrb[13].mxu1 }
 0x938   :  { %v2779_v60 = vadd.f32 %v18113_v61, %v2778_v27  ;;  %v3031_v27 = vld [vmem:[%s24121_s19 + $0x18] sm:$0xff] }
 0x939   :  { %v2790_v63 = vmul.f32 0.70710677, %v2784_v62  ;;  %v2788_v5 = vmul.f32 0.5, %v2784_v62  ;;  %v3030_v62 = vld [vmem:[%s24121_s19 + $0x10] sm:$0xff] }
 0x93a   :  { %v2789_v1 = vmul.f32 0.70710677, %v2779_v60  ;;  %v2787_v4 = vmul.f32 0.5, %v2779_v60 }
 0x93b   :  { %20516 = verf.f32 %v2790_v63 }
 0x93c   :  { %20518 = verf.f32 %v2789_v1  ;;  %v20105_v1 = vpack.c.bf16 %v3031_v27, %v3030_v62 }
 0x945   :  { %v20517_v2 = vpop.eup %20516 }
 0x946   :  { %v20519_v3 = vpop.eup %20518  ;;  %v2794_v39 = vadd.f32 1.0, %v20517_v2  ;;  %v3107_v2 = vld [vmem:[%s24122_s20] sm:$0xff] }
 0x947   :  { %v2793_v6 = vadd.f32 1.0, %v20519_v3  ;;  %v3108_v3 = vld [vmem:[%s24122_s20 + $0x8] sm:$0xff] }
 0x948   :  { %v2796_v10 = vmul.f32 %v2794_v39, %v2788_v5  ;;  %v20109_v39 = vpack.c.bf16 %v3108_v3, %v3107_v2 }
 0x949   :  { %v2795_v8 = vmul.f32 %v2793_v6, %v2787_v4  ;;  %v3109_v4 = vld [vmem:[%s24122_s20 + $0x10] sm:$0xff]  ;;  %v3110_v6 = vld [vmem:[%s24122_s20 + $0x18] sm:$0xff] }
 0x94a   :  { %v20113_v5 = vpack.c.bf16 %v3110_v6, %v3109_v4 }
 0x94b   :  { %19174 = vmatprep.mubr.f32.mxu0 %v2795_v8 }
 0x94c   :  { %19175 = vmatmul.mubr.f32.vlgmr.msra.gmra.mrb[16].mxu0 %v2796_v10 }
 0x94d   :  { %19222 = vmatprep.mubr.msk.f32.mxu0 %vm20751_vm2, %v20752_v33 }
 0xa1f   :  { %v19176_v51 = vpop.f32.mrb[16].mxu0 }
 0xa20   :  { %v2889_v59 = vadd.f32 %v19176_v51, %v21379_v44  ;;  %v2879_v12 = vpop.f32.mrb[17].mxu0 }
 0xa21   :  { %v2888_v57 = vadd.f32 %v2879_v12, %v21381_v46 }
 0xa22   :  { %v21470_v26 = vadd.f32 %v18116_v11, %v2889_v59 }
 0xa23   :  { %v21472_v14 = vadd.f32 %v18116_v11, %v2888_v57 }
 0xa24   :  { %v2904_v17 = vsel %vm97_vm1, %v21470_v26, 0.0 }
 0xa25   :  { %2905 = vadd.xlane.f32.xlu1 %v2904_v17  ;;  %v2901_v50 = vsel %vm97_vm1, %v21472_v14, 0.0 }
 0xa26   :  { %2902 = vadd.xlane.f32.xlu0 %v2901_v50 }
 0xab2   :  { %v2906_v31 = vpop.xlane.xlu1 %2905 }
 0xab3   :  { %v2908_v18 = vmul.f32 0.03125, %v2906_v31  ;;  %v2903_v19 = vpop.xlane.xlu0 %2902 }
 0xab4   :  { %v2907_v20 = vmul.f32 0.03125, %v2903_v19 }
 0xab5   :  { %v2910_v44 = vsub.f32 %v21470_v26, %v2908_v18 }
 0xab6   :  { %v2909_v46 = vsub.f32 %v21472_v14, %v2907_v20 }
 0xab7   :  { %v2912_v21 = vmul.f32 %v2910_v44, %v2910_v44 }
 0xab8   :  { %v2911_v22 = vmul.f32 %v2909_v46, %v2909_v46 }
 0xab9   :  { %v2916_v23 = vsel %vm97_vm1, %v2912_v21, 0.0 }
 0xaba   :  { %2917 = vadd.xlane.f32.xlu1 %v2916_v23  ;;  %v2913_v49 = vsel %vm97_vm1, %v2911_v22, 0.0 }
 0xabb   :  { %2914 = vadd.xlane.f32.xlu0 %v2913_v49 }
 0xb47   :  { %v2918_v54 = vpop.xlane.xlu1 %2917 }
 0xb48   :  { %v2920_v13 = vmul.f32 0.03125, %v2918_v54  ;;  %v2915_v40 = vpop.xlane.xlu0 %2914 }
 0xb49   :  { %v2919_v41 = vmul.f32 0.03125, %v2915_v40 }
 0xb4a   :  { %v2922_v43 = vadd.f32 1e-05, %v2920_v13 }
 0xb4b   :  { %v2921_v30 = vadd.f32 1e-05, %v2919_v41 }
 0xb4c   :  { %20520 = vrsqrt.f32 %v2922_v43 }
 0xb4d   :  { %20522 = vrsqrt.f32 %v2921_v30 }
 0xb56   :  { %v20521_v45 = vpop.eup %20520 }
 0xb57   :  { %v20523_v56 = vpop.eup %20522  ;;  %v2926_v53 = vmul.f32 %v20521_v45, %v2910_v44 }
 0xb58   :  { %v2925_v58 = vmul.f32 %v20523_v56, %v2909_v46 }
 0xb59   :  { %v2934_v61 = vmul.f32 %v18117_v55, %v2926_v53 }
 0xb5a   :  { %v2933_v28 = vmul.f32 %v18117_v55, %v2925_v58 }
 0xb5b   :  { %v2942_v63 = vadd.f32 %v18118_v29, %v2934_v61 }
 0xb5c   :  { %v2941_v60 = vadd.f32 %v18118_v29, %v2933_v28 }
 0xb5e   :  { %19185 = vmatprep.mubr.msk.f32.mxu1 %vm97_vm1, %v2941_v60 }
 0xb5f   :  { %19186 = vmatmul.mubr.msk.f32.vlgmr.msra.gmra.mrb[14].mxu1 %vm97_vm1, %v2942_v63 }
 0xb60   :  { %20104 = vmatpush3.bf16.msra.mxu1 %v20101_v37  ;;  %19196 = vmatprep.mubr.msk.f32.mxu1 %vm97_vm1, %v2941_v60 }
 0xb61   :  { %20106 = vmatprep.subr.bf16.mxu1 %v20105_v1 }
 0xb64   :  { %20108 = vmatpush3.bf16.msra.mxu1 %v20105_v1 }
 0xb65   :  { %20110 = vmatprep.subr.bf16.mxu1 %v20109_v39 }
 0xb67   :  { %19197 = vmatmul.mubr.msk.f32.vlgmr.msra.gmra.mrb[16].mxu1 %vm97_vm1, %v2942_v63 }
 0xb68   :  { %20112 = vmatpush3.bf16.msra.mxu1 %v20109_v39  ;;  %19207 = vmatprep.mubr.msk.f32.mxu1 %vm97_vm1, %v2941_v60 }
 0xb69   :  { %20114 = vmatprep.subr.bf16.mxu1 %v20113_v5 }
 0xb6c   :  { %20116 = vmatpush3.bf16.msra.mxu1 %v20113_v5 }
 0xb6d   :  { %19210 = vmatprep.subr.mxu1 %v20752_v33 }
 0xb6f   :  { %19208 = vmatmul.mubr.msk.f32.vlgmr.msra.gmra.mrb[18].mxu1 %vm97_vm1, %v2942_v63 }
 0xb70   :  { %19212 = vmatprep.mubr.msk.f32.mxu1 %vm20751_vm2, %v20752_v33 }
 0xc32   :  { %v21533_v8 = vpop.f32.mrb[14].mxu1 }
 0xc33   :  { %v3019_v10 = vpop.f32.mrb[15].mxu1 }
 0xc34   :  { %3188 = vrot.lane.b32.xlu1 %v3019_v10, %s24157_s9 }
 0xc3a   :  { %v21536_v51 = vpop.f32.mrb[16].mxu1 }
 0xc3b   :  { %v3098_v11 = vpop.f32.mrb[17].mxu1 }
 0xc3c   :  { %3486 = vrot.lane.b32.xlu1 %v3098_v11, %s24200_s28  ;;  %3480 = vrot.lane.b32.xlu0 %v3098_v11, %s24157_s9 }
 0xc40   :  { %3492 = vrot.lane.b32.xlu1 %v3098_v11, %s24151_s10  ;;  %3194 = vrot.lane.b32.xlu0 %v3019_v10, %s24200_s28 }
 0xc42   :  { %v21542_v59 = vpop.f32.mrb[18].mxu1 }
 0xc43   :  { %v21544_v12 = vpop.f32.mrb[19].mxu1 }
 0xc44   :  { %3200 = vrot.lane.b32.xlu1 %v3019_v10, %s24151_s10  ;;  %3482 = vrot.lane.b32.xlu0 %v21536_v51, %s24157_s9 }
 0xc48   :  { %3488 = vrot.lane.b32.xlu1 %v21536_v51, %s24200_s28  ;;  %3494 = vrot.lane.b32.xlu0 %v21536_v51, %s24151_s10 }
 0xc4c   :  { %3190 = vrot.lane.b32.xlu1 %v21533_v8, %s24157_s9  ;;  %3196 = vrot.lane.b32.xlu0 %v21533_v8, %s24200_s28 }
 0xc50   :  { %3202 = vrot.lane.b32.xlu1 %v21533_v8, %s24151_s10 }
 0xca6   :  { %v3189_v57 = vpop.permute.xlu1 %3188 }
 0xcae   :  { %v3487_v17 = vpop.permute.xlu1 %3486  ;;  %v3481_v50 = vpop.permute.xlu0 %3480 }
 0xcaf   :  { %v3498_v31 = vcombine.low %v3098_v11, %v3487_v17  ;;  %v3499_v18 = vcombine.high %v3098_v11, %v3487_v17 }
 0xcb1   :  { %v3506_v21 = vrot.slane %v3498_v31, %v21041_v42  ;;  %v3513_v22 = vrot.slane %v3499_v18, %v21041_v42 }
 0xcb2   :  { %v3493_v19 = vpop.permute.xlu1 %3492  ;;  %v3195_v20 = vpop.permute.xlu0 %3194 }
 0xcb3   :  { %v3514_v44 = vcombine.low %v3481_v50, %v3493_v19  ;;  %v3515_v46 = vcombine.high %v3481_v50, %v3493_v19  ;;  %v3206_v24 = vcombine.low %v3019_v10, %v3195_v20  ;;  %v3207_v25 = vcombine.high %v3019_v10, %v3195_v20 }
 0xcb5   :  { %v3522_v23 = vrot.slane %v3514_v44, %v21041_v42  ;;  %v3529_v49 = vrot.slane %v3515_v46, %v21041_v42  ;;  %v3214_v30 = vrot.slane %v3206_v24, %v21041_v42  ;;  %v3221_v45 = vrot.slane %v3207_v25, %v21041_v42 }
 0xcb6   :  { %v3201_v48 = vpop.permute.xlu1 %3200  ;;  %v3483_v36 = vpop.permute.xlu0 %3482 }
 0xcb7   :  { %v3530_v52 = vcombine.low %v3506_v21, %v3522_v23  ;;  %v3531_v7 = vcombine.high %v3506_v21, %v3522_v23  ;;  %v3546_v34 = vcombine.low %v3513_v22, %v3529_v49  ;;  %v3547_v35 = vcombine.high %v3513_v22, %v3529_v49 }
 0xcb8   :  { %v3222_v37 = vcombine.low %v3189_v57, %v3201_v48  ;;  %v3223_v54 = vcombine.high %v3189_v57, %v3201_v48 }
 0xcb9   :  { %v3538_v13 = vrot.slane %v3530_v52, %v21047_v47  ;;  %v3545_v40 = vrot.slane %v3531_v7, %v21047_v47  ;;  %v3554_v41 = vrot.slane %v3546_v34, %v21047_v47  ;;  %v3561_v43 = vrot.slane %v3547_v35, %v21047_v47 }
 0xcba   :  { %v3230_v55 = vrot.slane %v3222_v37, %v21041_v42  ;;  %v3237_v56 = vrot.slane %v3223_v54, %v21041_v42  ;;  %v3489_v53 = vpop.permute.xlu1 %3488  ;;  %v3495_v4 = vpop.permute.xlu0 %3494 }
 0xcbb   :  { %v3634_v58 = vcombine.low %v3538_v13, %v3545_v40  ;;  %v18129_v29 = vcombine.high %v3538_v13, %v3545_v40  ;;  %v3650_v61 = vcombine.low %v3554_v41, %v3561_v43  ;;  %v18130_v28 = vcombine.high %v3554_v41, %v3561_v43 }
 0xcbc   :  { %v3238_v62 = vcombine.low %v3214_v30, %v3230_v55  ;;  %v3239_v27 = vcombine.high %v3214_v30, %v3230_v55  ;;  %v3254_v60 = vcombine.low %v3221_v45, %v3237_v56  ;;  %v3255_v63 = vcombine.high %v3221_v45, %v3237_v56 }
 0xcbd   :  { %v21572_v1 = vrot.slane %v3634_v58, %v21041_v42  ;;  %v21575_v2 = vrot.slane %v18129_v29, %v21041_v42  ;;  %v21578_v3 = vrot.slane %v3650_v61, %v21041_v42  ;;  %v21581_v39 = vrot.slane %v18130_v28, %v21041_v42 }
 0xcbe   :  { %v3246_v6 = vrot.slane %v3238_v62, %v21047_v47  ;;  %v3253_v5 = vrot.slane %v3239_v27, %v21047_v47  ;;  %v3262_v10 = vrot.slane %v3254_v60, %v21047_v47  ;;  %v3269_v11 = vrot.slane %v3255_v63, %v21047_v47  ;;  %v3191_v57 = vpop.permute.xlu1 %3190  ;;  %v3197_v34 = vpop.permute.xlu0 %3196 }
 0xcbf   :  { %v3666_v17 = vcombine.low %v21572_v1, %v21575_v2  ;;  %v3667_v50 = vcombine.high %v21572_v1, %v21575_v2  ;;  %v3566_v44 = vcombine.low %v21536_v51, %v3489_v53  ;;  %v3567_v46 = vcombine.high %v21536_v51, %v3489_v53 }
 0xcc0   :  { %v3342_v31 = vcombine.low %v3246_v6, %v3253_v5  ;;  %v18125_v18 = vcombine.high %v3246_v6, %v3253_v5  ;;  %v3358_v19 = vcombine.low %v3262_v10, %v3269_v11  ;;  %v18126_v20 = vcombine.high %v3262_v10, %v3269_v11 }
 0xcc1   :  { %v3582_v21 = vcombine.low %v3483_v36, %v3495_v4  ;;  %v3583_v22 = vcombine.high %v3483_v36, %v3495_v4  ;;  %v3682_v23 = vcombine.low %v21578_v3, %v21581_v39  ;;  %v3683_v49 = vcombine.high %v21578_v3, %v21581_v39 }
 0xcc2   :  { %v21598_v24 = vrot.slane %v3342_v31, %v21041_v42  ;;  %v21601_v25 = vrot.slane %v18125_v18, %v21041_v42  ;;  %v3574_v48 = vrot.slane %v3566_v44, %v21041_v42  ;;  %v3581_v52 = vrot.slane %v3567_v46, %v21041_v42  ;;  %v3203_v35 = vpop.permute.xlu1 %3202 }
 0xcc3   :  { %v3590_v51 = vrot.slane %v3582_v21, %v21041_v42  ;;  %v3597_v7 = vrot.slane %v3583_v22, %v21041_v42  ;;  %v21608_v36 = vrot.slane %v3358_v19, %v21041_v42  ;;  %v21611_v37 = vrot.slane %v18126_v20, %v21041_v42 }
 0xcc4   :  { %v3374_v54 = vcombine.low %v21598_v24, %v21601_v25  ;;  %v3375_v13 = vcombine.high %v21598_v24, %v21601_v25  ;;  %v3274_v45 = vcombine.low %v21533_v8, %v3197_v34  ;;  %v3275_v55 = vcombine.high %v21533_v8, %v3197_v34 }
 0xcc5   :  { %v3598_v40 = vcombine.low %v3574_v48, %v3590_v51  ;;  %v3599_v41 = vcombine.high %v3574_v48, %v3590_v51  ;;  %v3614_v43 = vcombine.low %v3581_v52, %v3597_v7  ;;  %v3615_v30 = vcombine.high %v3581_v52, %v3597_v7 }
 0xcc6   :  { %v3290_v56 = vcombine.low %v3191_v57, %v3203_v35  ;;  %v3291_v53 = vcombine.high %v3191_v57, %v3203_v35  ;;  %v3282_v62 = vrot.slane %v3274_v45, %v21041_v42  ;;  %v3289_v27 = vrot.slane %v3275_v55, %v21041_v42 }
 0xcc7   :  { %v3606_v58 = vrot.slane %v3598_v40, %v21047_v47  ;;  %v3613_v29 = vrot.slane %v3599_v41, %v21047_v47  ;;  %v3622_v61 = vrot.slane %v3614_v43, %v21047_v47  ;;  %v3629_v28 = vrot.slane %v3615_v30, %v21047_v47 }
 0xcc8   :  { %v3298_v60 = vrot.slane %v3290_v56, %v21041_v42  ;;  %v3305_v63 = vrot.slane %v3291_v53, %v21041_v42  ;;  %v3390_v22 = vcombine.low %v21608_v36, %v21611_v37  ;;  %v3391_v24 = vcombine.high %v21608_v36, %v21611_v37 }
 0xcc9   :  { %v3702_v8 = vcombine.low %v3606_v58, %v3613_v29  ;;  %v18131_v3 = vcombine.high %v3606_v58, %v3613_v29  ;;  %v3718_v39 = vcombine.low %v3622_v61, %v3629_v28  ;;  %v18132_v4 = vcombine.high %v3622_v61, %v3629_v28 }
 0xcca   :  { %v3306_v6 = vcombine.low %v3282_v62, %v3298_v60  ;;  %v3307_v5 = vcombine.high %v3282_v62, %v3298_v60  ;;  %v3322_v10 = vcombine.low %v3289_v27, %v3305_v63  ;;  %v3323_v11 = vcombine.high %v3289_v27, %v3305_v63 }
 0xccb   :  { %v3709_v57 = vrot.slane %v3702_v8, %v21041_v42  ;;  %v3717_v31 = vrot.slane %v18131_v3, %v21041_v42  ;;  %v3725_v18 = vrot.slane %v3718_v39, %v21041_v42  ;;  %v3733_v19 = vrot.slane %v18132_v4, %v21041_v42 }
 0xccc   :  { %v3314_v20 = vrot.slane %v3306_v6, %v21047_v47  ;;  %v3321_v44 = vrot.slane %v3307_v5, %v21047_v47  ;;  %v3330_v46 = vrot.slane %v3322_v10, %v21047_v47  ;;  %v3337_v21 = vrot.slane %v3323_v11, %v21047_v47 }
 0xccd   :  { %v3734_v25 = vcombine.low %v3709_v57, %v3717_v31  ;;  %v3750_v48 = vcombine.low %v3725_v18, %v3733_v19  ;;  %v3674_v35 = vrot.slane %v3666_v17, %v21047_v47  ;;  %v3690_v40 = vrot.slane %v3682_v23, %v21047_v47 }
 0xcce   :  { %v3410_v52 = vcombine.low %v3314_v20, %v3321_v44  ;;  %v18127_v51 = vcombine.high %v3314_v20, %v3321_v44  ;;  %v3426_v7 = vcombine.low %v3330_v46, %v3337_v21  ;;  %v18128_v34 = vcombine.high %v3330_v46, %v3337_v21 }
 0xccf   :  { %v3681_v41 = vrot.slane %v3667_v50, %v21047_v47  ;;  %v3697_v36 = vrot.slane %v3683_v49, %v21047_v47  ;;  %v3698_v55 = vcombine.low %v3674_v35, %v3690_v40  ;;  %v3382_v17 = vrot.slane %v3374_v54, %v21047_v47 }
 0xcd0   :  { %v3417_v37 = vrot.slane %v3410_v52, %v21041_v42  ;;  %v3425_v43 = vrot.slane %v18127_v51, %v21041_v42  ;;  %v3433_v30 = vrot.slane %v3426_v7, %v21041_v42  ;;  %v3441_v45 = vrot.slane %v18128_v34, %v21041_v42 }
 0xcd1   :  { %v3700_v56 = vcombine.low %v3681_v41, %v3697_v36  ;;  %v3398_v23 = vrot.slane %v3390_v22, %v21047_v47  ;;  %v3735_v53 = vcombine.high %v3709_v57, %v3717_v31  ;;  %v3751_v2 = vcombine.high %v3725_v18, %v3733_v19  ;;  %19211 = vmatpush3.xpose.msk.msra.mxu1 %vm4062_vm4, %v3698_v55 }
 0xcd2   :  { %v3442_v58 = vcombine.low %v3417_v37, %v3425_v43  ;;  %v3458_v1 = vcombine.low %v3433_v30, %v3441_v45  ;;  %v3389_v49 = vrot.slane %v3375_v13, %v21047_v47  ;;  %19215 = vmatprep.subr.mxu1 %v20752_v33  ;;  %v3699_v29 = vcombine.high %v3674_v35, %v3690_v40 }
 0xcd3   :  { %19221 = vmatpush3.xpose.msk.msra.mxu0 %vm4062_vm4, %v3700_v56  ;;  %v3406_v50 = vcombine.low %v3382_v17, %v3398_v23  ;;  %v3405_v61 = vrot.slane %v3391_v24, %v21047_v47  ;;  %v3742_v54 = vrot.slane %v3734_v25, %v21047_v47  ;;  %v3758_v28 = vrot.slane %v3750_v48, %v21047_v47 }
 0xcd4   :  { %19230 = vmatprep.subr.mxu0 %v20752_v33  ;;  %v3450_v62 = vrot.slane %v3442_v58, %v21047_v47  ;;  %v3466_v27 = vrot.slane %v3458_v1, %v21047_v47  ;;  %v3443_v60 = vcombine.high %v3417_v37, %v3425_v43  ;;  %v3459_v63 = vcombine.high %v3433_v30, %v3441_v45 }
 0xcd5   :  { %19213 = vmatmul.mubr.msk.f32.vlgmr.msra.gmra.mrb[20].mxu1 %vm4062_vm4, %v3406_v50  ;;  %v3408_v13 = vcombine.low %v3389_v49, %v3405_v61  ;;  %v3766_v8 = vcombine.low %v3742_v54, %v3758_v28  ;;  %v3749_v3 = vrot.slane %v3735_v53, %v21047_v47  ;;  %v3765_v39 = vrot.slane %v3751_v2, %v21047_v47 }
 0xcd6   :  { %19216 = vmatpush3.xpose.msk.msra.mxu1 %vm4062_vm4, %v3699_v29  ;;  %19217 = vmatprep.mubr.msk.f32.mxu1 %vm20751_vm2, %v20752_v33  ;;  %v3407_v4 = vcombine.high %v3382_v17, %v3398_v23  ;;  %v3474_v6 = vcombine.low %v3450_v62, %v3466_v27  ;;  %v3701_v5 = vcombine.high %v3681_v41, %v3697_v36 }
 0xcd7   :  { %19223 = vmatmul.mubr.msk.f32.vlgmr.msra.gmra.mrb[18].mxu0 %vm4062_vm4, %v3408_v13  ;;  %19225 = vmatprep.subr.mxu1 %v20752_v33  ;;  %v3457_v10 = vrot.slane %v3443_v60, %v21047_v47  ;;  %v3473_v11 = vrot.slane %v3459_v63, %v21047_v47  ;;  %v3768_v57 = vcombine.low %v3749_v3, %v3765_v39 }
 0xcd8   :  { %19231 = vmatpush3.xpose.msk.msra.mxu0 %vm4062_vm4, %v3766_v8  ;;  %19232 = vmatprep.mubr.msk.f32.mxu0 %vm20751_vm2, %v20752_v33  ;;  %v3409_v31 = vcombine.high %v3389_v49, %v3405_v61  ;;  %v3767_v18 = vcombine.high %v3742_v54, %v3758_v28  ;;  %v3475_v19 = vcombine.high %v3450_v62, %v3466_v27 }
 0xcd9   :  { %19218 = vmatmul.mubr.msk.f32.vlgmr.msra.gmra.mrb[22].mxu1 %vm4062_vm4, %v3407_v4  ;;  %19240 = vmatprep.subr.mxu0 %v20752_v33  ;;  %v3476_v20 = vcombine.low %v3457_v10, %v3473_v11  ;;  %v3769_v44 = vcombine.high %v3749_v3, %v3765_v39  ;;  %v3477_v46 = vcombine.high %v3457_v10, %v3473_v11 }
 0xcda   :  { %19226 = vmatpush3.xpose.msk.msra.mxu1 %vm4062_vm4, %v3701_v5  ;;  %19227 = vmatprep.mubr.msk.f32.mxu1 %vm20751_vm2, %v20752_v33 }
 0xcdb   :  { %19235 = vmatprep.subr.mxu1 %v20752_v33  ;;  %19233 = vmatmul.mubr.msk.f32.vlgmr.msra.gmra.mrb[20].mxu0 %vm4062_vm4, %v3474_v6 }
 0xcdc   :  { %19241 = vmatpush3.xpose.msk.msra.mxu0 %vm4062_vm4, %v3768_v57  ;;  %19242 = vmatprep.mubr.msk.f32.mxu0 %vm20751_vm2, %v20752_v33 }
 0xcdd   :  { %19228 = vmatmul.mubr.msk.f32.vlgmr.msra.gmra.mrb[24].mxu1 %vm4062_vm4, %v3409_v31  ;;  %19250 = vmatprep.subr.mxu0 %v20752_v33 }
 0xcde   :  { %19236 = vmatpush3.xpose.msk.msra.mxu1 %vm4062_vm4, %v3767_v18  ;;  %19237 = vmatprep.mubr.msk.f32.mxu1 %vm20751_vm2, %v20752_v33 }
 0xcdf   :  { %19245 = vmatprep.subr.mxu1 %v20752_v33  ;;  %19243 = vmatmul.mubr.msk.f32.vlgmr.msra.gmra.mrb[22].mxu0 %vm4062_vm4, %v3476_v20 }
 0xce0   :  { %19252 = vmatprep.mubr.msk.f32.mxu0 %vm20751_vm2, %v20752_v33 }
 0xce1   :  { %19238 = vmatmul.mubr.msk.f32.vlgmr.msra.gmra.mrb[26].mxu1 %vm4062_vm4, %v3475_v19 }
 0xce2   :  { %19246 = vmatpush3.xpose.msk.msra.mxu1 %vm4062_vm4, %v3769_v44  ;;  %19247 = vmatprep.mubr.msk.f32.mxu1 %vm20751_vm2, %v20752_v33 }
 0xce3   :  { %19255 = vmatprep.subr.mxu1 %v20752_v33 }
 0xce5   :  { %19248 = vmatmul.mubr.msk.f32.vlgmr.msra.gmra.mrb[28].mxu1 %vm4062_vm4, %v3477_v46 }
 0xce6   :  { %19257 = vmatprep.mubr.msk.f32.mxu1 %vm20751_vm2, %v20752_v33 }
 0xda8   :  { %v4135_v21 = vpop.f32.mrb[20].mxu1 }
 0xda9   :  { %v19214_v22 = vpop.f32.mrb[21].mxu1  ;;  %v4671_v24 = vsel %vm4062_vm4, %v4135_v21, -inf }
 0xdaa   :  { %v4287_v25 = vpop.f32.mrb[18].mxu0  ;;  %4672 = vmax.xlane.f32.xlu0 %v4671_v24 }
 0xdab   :  { %v19224_v48 = vpop.f32.mrb[19].mxu0  ;;  %v4677_v7 = vsel %vm4062_vm4, %v4287_v25, -inf }
 0xdac   :  { %v4211_v52 = vpop.f32.mrb[22].mxu1 }
 0xdad   :  { %v19219_v51 = vpop.f32.mrb[23].mxu1  ;;  %v4674_v34 = vsel %vm4062_vm4, %v4211_v52, -inf }
 0xdae   :  { %4678 = vmax.xlane.f32.xlu0 %v4677_v7  ;;  %4675 = vmax.xlane.f32.xlu1 %v4674_v34  ;;  %v4439_v35 = vpop.f32.mrb[20].mxu0 }
 0xdaf   :  { %v19234_v40 = vpop.f32.mrb[21].mxu0  ;;  %v4683_v41 = vsel %vm4062_vm4, %v4439_v35, -inf }
 0xdb0   :  { %v4363_v36 = vpop.f32.mrb[24].mxu1 }
 0xdb1   :  { %v19229_v37 = vpop.f32.mrb[25].mxu1  ;;  %v4680_v56 = vsel %vm4062_vm4, %v4363_v36, -inf }
 0xdb2   :  { %4684 = vmax.xlane.f32.xlu0 %v4683_v41  ;;  %v4591_v43 = vpop.f32.mrb[22].mxu0 }
 0xdb3   :  { %v19244_v30 = vpop.f32.mrb[23].mxu0  ;;  %v4689_v53 = vsel %vm4062_vm4, %v4591_v43, -inf }
 0xdb4   :  { %v21709_v45 = vpop.f32.mrb[26].mxu1 }
 0xdb5   :  { %v19239_v55 = vpop.f32.mrb[27].mxu1  ;;  %v4686_v58 = vsel %vm4062_vm4, %v21709_v45, -inf }
 0xdb6   :  { %4681 = vmax.xlane.f32.xlu0 %v4680_v56 }
 0xdb8   :  { %v21712_v17 = vpop.f32.mrb[28].mxu1 }
 0xdb9   :  { %v19249_v23 = vpop.f32.mrb[29].mxu1  ;;  %v4692_v1 = vsel %vm4062_vm4, %v21712_v17, -inf }
 0xdba   :  { %4690 = vmax.xlane.f32.xlu0 %v4689_v53 }
 0xdbf   :  { %3778 = vrot.lane.b32.xlu1 %v21544_v12, %s24200_s28 }
 0xdc3   :  { %3784 = vrot.lane.b32.xlu1 %v21544_v12, %s24151_s10 }
 0xdd0   :  { %3772 = vrot.lane.b32.xlu0 %v21544_v12, %s24157_s9 }
 0xde7   :  { %4687 = vmax.xlane.f32.xlu1 %v4686_v58 }
 0xdeb   :  { %4693 = vmax.xlane.f32.xlu1 %v4692_v1 }
 0xdfc   :  { %3774 = vrot.lane.b32.xlu1 %v21542_v59, %s24157_s9  ;;  %s24203_s9 = smov 104  }
 0xe37   :  { %v4673_v2 = vpop.xlane.xlu0 %4672 }
 0xe38   :  { %v4695_v50 = vsub.f32 %v4135_v21, %v4673_v2 }
 0xe3a   :  { %v4703_v49 = vmul.f32 1.442695, %v4695_v50 }
 0xe3b   :  { %v4679_v29 = vpop.xlane.xlu0 %4678  ;;  %v4676_v61 = vpop.xlane.xlu1 %4675 }
 0xe3c   :  { %20524 = vpow2.f32 %v4703_v49  ;;  %v4697_v54 = vsub.f32 %v4287_v25, %v4679_v29  ;;  %v4696_v28 = vsub.f32 %v4211_v52, %v4676_v61 }
 0xe3e   :  { %v4707_v62 = vmul.f32 1.442695, %v4697_v54  ;;  %v4705_v27 = vmul.f32 1.442695, %v4696_v28 }
 0xe3f   :  { %v4685_v60 = vpop.xlane.xlu0 %4684  ;;  %v3779_v39 = vpop.permute.xlu1 %3778 }
 0xe40   :  { %20526 = vpow2.f32 %v4707_v62  ;;  %v4699_v63 = vsub.f32 %v4439_v35, %v4685_v60  ;;  %v3790_v31 = vcombine.low %v21544_v12, %v3779_v39  ;;  %v3791_v18 = vcombine.high %v21544_v12, %v3779_v39 }
 0xe41   :  { %20528 = vpow2.f32 %v4705_v27 }
 0xe42   :  { %v4711_v13 = vmul.f32 1.442695, %v4699_v63  ;;  %v3798_v12 = vrot.slane %v3790_v31, %v21041_v42  ;;  %v3805_v52 = vrot.slane %v3791_v18, %v21041_v42 }
 0xe43   :  { %v4682_v8 = vpop.xlane.xlu0 %4681  ;;  %v3785_v44 = vpop.permute.xlu1 %3784 }
 0xe44   :  { %20530 = vpow2.f32 %v4711_v13  ;;  %v4698_v3 = vsub.f32 %v4363_v36, %v4682_v8 }
 0xe46   :  { %v21727_v4 = vpop.eup %20524  ;;  %v4709_v6 = vmul.f32 1.442695, %v4698_v3 }
 0xe47   :  { %v4719_v5 = vsel %vm4062_vm4, %v21727_v4, 0.0  ;;  %v4691_v10 = vpop.xlane.xlu0 %4690 }
 0xe48   :  { %20532 = vpow2.f32 %v4709_v6  ;;  %4720 = vadd.xlane.f32.xlu0 %v4719_v5  ;;  %v4701_v11 = vsub.f32 %v4591_v43, %v4691_v10 }
 0xe4a   :  { %v21731_v57 = vpop.eup %20526  ;;  %v4715_v19 = vmul.f32 1.442695, %v4701_v11 }
 0xe4b   :  { %v21735_v20 = vpop.eup %20528  ;;  %v4725_v46 = vsel %vm4062_vm4, %v21731_v57, 0.0  ;;  %v3773_v21 = vpop.permute.xlu0 %3772 }
 0xe4c   :  { %20534 = vpow2.f32 %v4715_v19  ;;  %4726 = vadd.xlane.f32.xlu0 %v4725_v46  ;;  %v4722_v22 = vsel %vm4062_vm4, %v21735_v20, 0.0  ;;  %v3806_v24 = vcombine.low %v3773_v21, %v3785_v44  ;;  %v3807_v25 = vcombine.high %v3773_v21, %v3785_v44 }
 0xe4d   :  { %4723 = vadd.xlane.f32.xlu1 %v4722_v22 }
 0xe4e   :  { %v21741_v48 = vpop.eup %20530  ;;  %v3814_v51 = vrot.slane %v3806_v24, %v21041_v42  ;;  %v3821_v7 = vrot.slane %v3807_v25, %v21041_v42 }
 0xe4f   :  { %v4731_v34 = vsel %vm4062_vm4, %v21741_v48, 0.0 }
 0xe50   :  { %v3822_v35 = vcombine.low %v3798_v12, %v3814_v51  ;;  %v3823_v40 = vcombine.high %v3798_v12, %v3814_v51  ;;  %v3838_v41 = vcombine.low %v3805_v52, %v3821_v7  ;;  %v3839_v36 = vcombine.high %v3805_v52, %v3821_v7 }
 0xe51   :  { %4732 = vadd.xlane.f32.xlu1 %v4731_v34 }
 0xe52   :  { %v21749_v37 = vpop.eup %20532  ;;  %v3830_v43 = vrot.slane %v3822_v35, %v21047_v47  ;;  %v3837_v30 = vrot.slane %v3823_v40, %v21047_v47  ;;  %v3846_v55 = vrot.slane %v3838_v41, %v21047_v47  ;;  %v3853_v56 = vrot.slane %v3839_v36, %v21047_v47 }
 0xe53   :  { %v4728_v23 = vsel %vm4062_vm4, %v21749_v37, 0.0 }
 0xe54   :  { %v3926_v53 = vcombine.low %v3830_v43, %v3837_v30  ;;  %v18133_v58 = vcombine.high %v3830_v43, %v3837_v30  ;;  %v3942_v1 = vcombine.low %v3846_v55, %v3853_v56  ;;  %v18134_v2 = vcombine.high %v3846_v55, %v3853_v56 }
 0xe55   :  { %4729 = vadd.xlane.f32.xlu1 %v4728_v23 }
 0xe56   :  { %v21757_v50 = vpop.eup %20534  ;;  %v3933_v49 = vrot.slane %v3926_v53, %v21041_v42  ;;  %v3941_v29 = vrot.slane %v18133_v58, %v21041_v42  ;;  %v3949_v61 = vrot.slane %v3942_v1, %v21041_v42  ;;  %v3957_v54 = vrot.slane %v18134_v2, %v21041_v42 }
 0xe57   :  { %v4737_v28 = vsel %vm4062_vm4, %v21757_v50, 0.0 }
 0xe58   :  { %4738 = vadd.xlane.f32.xlu0 %v4737_v28  ;;  %v3958_v62 = vcombine.low %v3933_v49, %v3941_v29  ;;  %v3974_v27 = vcombine.low %v3949_v61, %v3957_v54  ;;  %v3959_v60 = vcombine.high %v3933_v49, %v3941_v29  ;;  %v3975_v63 = vcombine.high %v3949_v61, %v3957_v54 }
 0xe5a   :  { %v3966_v13 = vrot.slane %v3958_v62, %v21047_v47  ;;  %v3982_v8 = vrot.slane %v3974_v27, %v21047_v47  ;;  %v3973_v3 = vrot.slane %v3959_v60, %v21047_v47  ;;  %v3989_v39 = vrot.slane %v3975_v63, %v21047_v47 }
 0xe5c   :  { %v3990_v6 = vcombine.low %v3966_v13, %v3982_v8  ;;  %v3991_v5 = vcombine.high %v3966_v13, %v3982_v8  ;;  %v3992_v10 = vcombine.low %v3973_v3, %v3989_v39  ;;  %v3993_v11 = vcombine.high %v3973_v3, %v3989_v39 }
 0xe5e   :  { %19251 = vmatpush3.msra.mxu0 %v3990_v6  ;;  %19256 = vmatpush3.msra.mxu1 %v3991_v5 }
 0xe5f   :  { %19260 = vmatprep.subr.mxu0 %v20752_v33  ;;  %19265 = vmatprep.subr.mxu1 %v20752_v33 }
 0xe66   :  { %3786 = vrot.lane.b32.xlu1 %v21542_v59, %s24151_s10  ;;  %s24216_s10 = sld [smem:[#allocation21_spill]] }
 0xe74   :  { %v4688_v31 = vpop.xlane.xlu1 %4687 }
 0xe75   :  { %v4700_v18 = vsub.f32 %v21709_v45, %v4688_v31 }
 0xe77   :  { %v4713_v19 = vmul.f32 1.442695, %v4700_v18 }
 0xe78   :  { %v4694_v44 = vpop.xlane.xlu1 %4693 }
 0xe79   :  { %20536 = vpow2.f32 %v4713_v19  ;;  %v4702_v46 = vsub.f32 %v21712_v17, %v4694_v44 }
 0xe7b   :  { %v4717_v21 = vmul.f32 1.442695, %v4702_v46 }
 0xe7c   :  { %v3775_v52 = vpop.permute.xlu1 %3774 }
 0xe7d   :  { %20538 = vpow2.f32 %v4717_v21 }
 0xe83   :  { %v21775_v22 = vpop.eup %20536 }
 0xe84   :  { %v4734_v24 = vsel %vm4062_vm4, %v21775_v22, 0.0 }
 0xe85   :  { %4735 = vadd.xlane.f32.xlu0 %v4734_v24 }
 0xe87   :  { %v21779_v25 = vpop.eup %20538 }
 0xe88   :  { %v4740_v12 = vsel %vm4062_vm4, %v21779_v25, 0.0 }
 0xe89   :  { %4741 = vadd.xlane.f32.xlu0 %v4740_v12 }
 0xe9f   :  { %3780 = vrot.lane.b32.xlu0 %v21542_v59, %s24200_s28 }
 0xed5   :  { %v4721_v45 = vpop.xlane.xlu0 %4720 }
 0xed6   :  { %20540 = vrcp.f32 %v4721_v45 }
 0xed9   :  { %v4727_v17 = vpop.xlane.xlu0 %4726 }
 0xeda   :  { %20542 = vrcp.f32 %v4727_v17  ;;  %v4724_v51 = vpop.xlane.xlu1 %4723 }
 0xedb   :  { %20544 = vrcp.f32 %v4724_v51 }
 0xede   :  { %v4733_v7 = vpop.xlane.xlu1 %4732 }
 0xee0   :  { %v20541_v34 = vpop.eup %20540 }
 0xee1   :  { %v4751_v35 = vmul.f32 %v20541_v34, %v21727_v4 }
 0xee2   :  { %v4730_v40 = vpop.xlane.xlu1 %4729 }
 0xee3   :  { %19253 = vmatmul.mubr.msk.f32.vlgmr.msra.gmra.mrb[24].mxu0 %vm4062_vm4, %v4751_v35  ;;  %20546 = vrcp.f32 %v4730_v40 }
 0xee4   :  { %v20543_v41 = vpop.eup %20542  ;;  %19261 = vmatpush3.msra.mxu0 %v3992_v10  ;;  %19262 = vmatprep.mubr.msk.f32.mxu0 %vm20751_vm2, %v20752_v33  ;;  %20548 = vrcp.f32 %v4733_v7 }
 0xee5   :  { %v20545_v36 = vpop.eup %20544  ;;  %v4753_v43 = vmul.f32 %v20543_v41, %v21731_v57  ;;  %19270 = vmatprep.subr.mxu0 %v20752_v33 }
 0xee6   :  { %v4752_v30 = vmul.f32 %v20545_v36, %v21735_v20  ;;  %v4739_v20 = vpop.xlane.xlu0 %4738  ;;  %v3787_v56 = vpop.permute.xlu1 %3786 }
 0xee7   :  { %19263 = vmatmul.mubr.msk.f32.vlgmr.msra.gmra.mrb[26].mxu0 %vm4062_vm4, %v4753_v43  ;;  %v3874_v53 = vcombine.low %v3775_v52, %v3787_v56  ;;  %v3875_v58 = vcombine.high %v3775_v52, %v3787_v56 }
 0xee8   :  { %19258 = vmatmul.mubr.msk.f32.vlgmr.msra.gmra.mrb[30].mxu1 %vm4062_vm4, %v4752_v30  ;;  %19272 = vmatprep.mubr.msk.f32.mxu0 %vm20751_vm2, %v20752_v33 }
 0xee9   :  { %19266 = vmatpush3.msra.mxu1 %v3993_v11  ;;  %19267 = vmatprep.mubr.msk.f32.mxu1 %vm20751_vm2, %v20752_v33  ;;  %v3882_v29 = vrot.slane %v3874_v53, %v21041_v42 }
 0xeea   :  { %19275 = vmatprep.subr.mxu1 %v20752_v33 }
 0xeed   :  { %v20547_v4 = vpop.eup %20546 }
 0xeee   :  { %v4754_v57 = vmul.f32 %v20547_v4, %v21749_v37  ;;  %v3889_v37 = vrot.slane %v3875_v58, %v21041_v42  ;;  %v20549_v19 = vpop.eup %20548 }
 0xeef   :  { %v4755_v41 = vmul.f32 %v20549_v19, %v21741_v48 }
 0xef0   :  { %19268 = vmatmul.mubr.msk.f32.vlgmr.msra.gmra.mrb[32].mxu1 %vm4062_vm4, %v4754_v57 }
 0xef1   :  { %19277 = vmatprep.mubr.msk.f32.mxu1 %vm20751_vm2, %v20752_v33 }
 0xf12   :  { %v4736_v55 = vpop.xlane.xlu0 %4735 }
 0xf13   :  { %20550 = vrcp.f32 %v4736_v55 }
 0xf14   :  { %20552 = vrcp.f32 %v4739_v20 }
 0xf16   :  { %v4742_v23 = vpop.xlane.xlu0 %4741 }
 0xf17   :  { %20554 = vrcp.f32 %v4742_v23 }
 0xf1a   :  { %v3781_v1 = vpop.permute.xlu0 %3780 }
 0xf1b   :  { %v3858_v2 = vcombine.low %v21542_v59, %v3781_v1  ;;  %v3859_v49 = vcombine.high %v21542_v59, %v3781_v1 }
 0xf1d   :  { %v3866_v61 = vrot.slane %v3858_v2, %v21041_v42  ;;  %v3873_v54 = vrot.slane %v3859_v49, %v21041_v42  ;;  %v20551_v12 = vpop.eup %20550 }
 0xf1e   :  { %v20553_v17 = vpop.eup %20552  ;;  %v4756_v36 = vmul.f32 %v20551_v12, %v21775_v22 }
 0xf1f   :  { %v3890_v28 = vcombine.low %v3866_v61, %v3882_v29  ;;  %v3891_v62 = vcombine.high %v3866_v61, %v3882_v29  ;;  %v3906_v27 = vcombine.low %v3873_v54, %v3889_v37  ;;  %v3907_v60 = vcombine.high %v3873_v54, %v3889_v37 }
 0xf20   :  { %v4757_v4 = vmul.f32 %v20553_v17, %v21757_v50 }
 0xf21   :  { %v3898_v63 = vrot.slane %v3890_v28, %v21047_v47  ;;  %v3905_v13 = vrot.slane %v3891_v62, %v21047_v47  ;;  %v3914_v59 = vrot.slane %v3906_v27, %v21047_v47  ;;  %v3921_v8 = vrot.slane %v3907_v60, %v21047_v47  ;;  %v20555_v40 = vpop.eup %20554 }
 0xf22   :  { %v4758_v48 = vmul.f32 %v20555_v40, %v21779_v25 }
 0xf23   :  { %v3994_v3 = vcombine.low %v3898_v63, %v3905_v13  ;;  %v18135_v39 = vcombine.high %v3898_v63, %v3905_v13  ;;  %v4010_v6 = vcombine.low %v3914_v59, %v3921_v8  ;;  %v18136_v5 = vcombine.high %v3914_v59, %v3921_v8 }
 0xf25   :  { %v4001_v10 = vrot.slane %v3994_v3, %v21041_v42  ;;  %v4009_v11 = vrot.slane %v18135_v39, %v21041_v42  ;;  %v4017_v31 = vrot.slane %v4010_v6, %v21041_v42  ;;  %v4025_v18 = vrot.slane %v18136_v5, %v21041_v42 }
 0xf27   :  { %v4026_v44 = vcombine.low %v4001_v10, %v4009_v11  ;;  %v4042_v46 = vcombine.low %v4017_v31, %v4025_v18  ;;  %v4027_v21 = vcombine.high %v4001_v10, %v4009_v11  ;;  %v4043_v24 = vcombine.high %v4017_v31, %v4025_v18 }
 0xf29   :  { %v4034_v45 = vrot.slane %v4026_v44, %v21047_v47  ;;  %v4050_v52 = vrot.slane %v4042_v46, %v21047_v47  ;;  %v4041_v51 = vrot.slane %v4027_v21, %v21047_v47  ;;  %v4057_v7 = vrot.slane %v4043_v24, %v21047_v47 }
 0xf2b   :  { %v4058_v34 = vcombine.low %v4034_v45, %v4050_v52  ;;  %v4059_v35 = vcombine.high %v4034_v45, %v4050_v52  ;;  %v4060_v43 = vcombine.low %v4041_v51, %v4057_v7  ;;  %v4061_v30 = vcombine.high %v4041_v51, %v4057_v7 }
 0xf2d   :  { %19271 = vmatpush3.msra.mxu0 %v4058_v34  ;;  %19276 = vmatpush3.msra.mxu1 %v4059_v35 }
 0xf2e   :  { %19273 = vmatmul.mubr.msk.f32.vlgmr.msra.gmra.mrb[28].mxu0 %vm4062_vm4, %v4755_v41  ;;  %19278 = vmatmul.mubr.msk.f32.vlgmr.msra.gmra.mrb[34].mxu1 %vm4062_vm4, %v4756_v36 }
 0xf2f   :  { %19280 = vmatprep.subr.mxu0 %v20752_v33  ;;  %19285 = vmatprep.subr.mxu1 %v20752_v33 }
 0xf30   :  { %19281 = vmatpush3.msra.mxu0 %v4060_v43  ;;  %19286 = vmatpush3.msra.mxu1 %v4061_v30 }
 0xf31   :  { %19282 = vmatprep.mubr.msk.f32.mxu0 %vm20751_vm2, %v20752_v33  ;;  %19287 = vmatprep.mubr.msk.f32.mxu1 %vm20751_vm2, %v20752_v33 }
 0xf32   :  { %19283 = vmatmul.mubr.msk.f32.vlgmr.msra.gmra.mrb[30].mxu0 %vm4062_vm4, %v4757_v4  ;;  %19288 = vmatmul.mubr.msk.f32.vlgmr.msra.gmra.mrb[36].mxu1 %vm4062_vm4, %v4758_v48 }
 0xfb6   :  { %v4828_v22 = vpop.f32.mrb[24].mxu0 }
 0xfb7   :  { %v19254_v57 = vpop.f32.mrb[25].mxu0 }
 0xfba   :  { %v4974_v20 = vpop.f32.mrb[26].mxu0 }
 0xfbb   :  { %v4901_v55 = vpop.f32.mrb[30].mxu1  ;;  %v5343_v56 = vcombine.low %v4828_v22, %v4974_v20  ;;  %v5344_v23 = vcombine.high %v4828_v22, %v4974_v20  ;;  %v19264_v53 = vpop.f32.mrb[27].mxu0 }
 0xfbc   :  { %v19259_v50 = vpop.f32.mrb[31].mxu1 }
 0xfbd   :  { %v5351_v49 = vrot.slane %v5343_v56, %v21041_v42  ;;  %v5358_v29 = vrot.slane %v5344_v23, %v21041_v42 }
 0xfc3   :  { %v5047_v58 = vpop.f32.mrb[32].mxu1 }
 0xfc4   :  { %v5359_v25 = vcombine.low %v4901_v55, %v5047_v58  ;;  %v5360_v1 = vcombine.high %v4901_v55, %v5047_v58  ;;  %v19269_v2 = vpop.f32.mrb[33].mxu1 }
 0xfc5   :  { %v5646_v2 = vld [vmem:[%s24123_s21] sm:$0xff] }
 0xfc6   :  { %v5367_v37 = vrot.slane %v5359_v25, %v21041_v42  ;;  %v5374_v61 = vrot.slane %v5360_v1, %v21041_v42 }
 0xfc8   :  { %v5375_v54 = vcombine.low %v5351_v49, %v5367_v37  ;;  %v5376_v28 = vcombine.high %v5351_v49, %v5367_v37  ;;  %v5391_v62 = vcombine.low %v5358_v29, %v5374_v61  ;;  %v5392_v27 = vcombine.high %v5358_v29, %v5374_v61  ;;  %v5647_v49 = vld [vmem:[%s24123_s21 + $0x8] sm:$0xff] }
 0xfca   :  { %v5383_v60 = vrot.slane %v5375_v54, %v21047_v47  ;;  %v5390_v63 = vrot.slane %v5376_v28, %v21047_v47  ;;  %v5399_v13 = vrot.slane %v5391_v62, %v21047_v47  ;;  %v5406_v59 = vrot.slane %v5392_v27, %v21047_v47 }
 0xfcb   :  { %v20117_v28 = vpack.c.bf16 %v5647_v49, %v5646_v2 }
 0xfcc   :  { %v5479_v8 = vcombine.low %v5383_v60, %v5390_v63  ;;  %v18161_v3 = vcombine.high %v5383_v60, %v5390_v63  ;;  %v5495_v39 = vcombine.low %v5399_v13, %v5406_v59  ;;  %v18162_v6 = vcombine.high %v5399_v13, %v5406_v59  ;;  %v5648_v13 = vld [vmem:[%s24123_s21 + $0x10] sm:$0xff]  ;;  %v5649_v59 = vld [vmem:[%s24123_s21 + $0x18] sm:$0xff] }
 0xfcd   :  { %20118 = vmatprep.subr.bf16.mxu0 %v20117_v28 }
 0xfce   :  { %v5486_v5 = vrot.slane %v5479_v8, %v21041_v42  ;;  %v5494_v10 = vrot.slane %v18161_v3, %v21041_v42  ;;  %v5502_v11 = vrot.slane %v5495_v39, %v21041_v42  ;;  %v5510_v31 = vrot.slane %v18162_v6, %v21041_v42  ;;  %20120 = vmatpush3.bf16.msra.mxu0 %v20117_v28 }
 0xfd0   :  { %v5512_v18 = vcombine.high %v5486_v5, %v5494_v10  ;;  %v5528_v19 = vcombine.high %v5502_v11, %v5510_v31  ;;  %v5511_v44 = vcombine.low %v5486_v5, %v5494_v10  ;;  %v5527_v46 = vcombine.low %v5502_v11, %v5510_v31 }
 0xfd1   :  { %v20121_v5 = vpack.c.bf16 %v5649_v59, %v5648_v13  ;;  %v5881_v13 = vld [vmem:[%s24128_s26 + $0x10] sm:$0xff] }
 0xfd2   :  { %v5526_v21 = vrot.slane %v5512_v18, %v21047_v47  ;;  %v5542_v24 = vrot.slane %v5528_v19, %v21047_v47  ;;  %v21850_v12 = vrot.slane %v5511_v44, %v21047_v47  ;;  %v21853_v45 = vrot.slane %v5527_v46, %v21047_v47 }
 0xfd3   :  { %20122 = vmatprep.subr.bf16.mxu0 %v20121_v5 }
 0xfd4   :  { %v5545_v52 = vcombine.low %v5526_v21, %v5542_v24  ;;  %v5544_v17 = vcombine.high %v21850_v12, %v21853_v45  ;;  %v5546_v51 = vcombine.high %v5526_v21, %v5542_v24  ;;  %v5543_v7 = vcombine.low %v21850_v12, %v21853_v45  ;;  %20124 = vmatpush3.bf16.msra.mxu0 %v20121_v5 }
 0xfd6   :  { %5625 = vrot.lane.b32.xlu0 %v5545_v52, %s24201_s6  ;;  %5617 = vrot.lane.b32.xlu1 %v5544_v17, %s24155_s11 }
 0xfda   :  { %5633 = vrot.lane.b32.xlu0 %v5546_v51, %s24153_s7 }
0x1001   :  { %v5120_v34 = vpop.f32.mrb[28].mxu0  ;;  %v5193_v35 = vpop.f32.mrb[34].mxu1 }
0x1002   :  { %v19274_v40 = vpop.f32.mrb[29].mxu0  ;;  %v19279_v41 = vpop.f32.mrb[35].mxu1 }
0x1005   :  { %v5266_v36 = vpop.f32.mrb[30].mxu0  ;;  %v5339_v43 = vpop.f32.mrb[36].mxu1 }
0x1006   :  { %v5411_v30 = vcombine.low %v5120_v34, %v5266_v36  ;;  %v5412_v4 = vcombine.high %v5120_v34, %v5266_v36  ;;  %v5427_v48 = vcombine.low %v5193_v35, %v5339_v43  ;;  %v5428_v22 = vcombine.high %v5193_v35, %v5339_v43  ;;  %v19284_v57 = vpop.f32.mrb[31].mxu0  ;;  %v19289_v20 = vpop.f32.mrb[37].mxu1 }
0x1008   :  { %v5419_v55 = vrot.slane %v5411_v30, %v21041_v42  ;;  %v5426_v56 = vrot.slane %v5412_v4, %v21041_v42  ;;  %v5435_v23 = vrot.slane %v5427_v48, %v21041_v42  ;;  %v5442_v53 = vrot.slane %v5428_v22, %v21041_v42 }
0x100a   :  { %v5443_v50 = vcombine.low %v5419_v55, %v5435_v23  ;;  %v5444_v58 = vcombine.high %v5419_v55, %v5435_v23  ;;  %v5459_v25 = vcombine.low %v5426_v56, %v5442_v53  ;;  %v5460_v1 = vcombine.high %v5426_v56, %v5442_v53 }
0x100c   :  { %v5451_v29 = vrot.slane %v5443_v50, %v21047_v47  ;;  %v5458_v37 = vrot.slane %v5444_v58, %v21047_v47  ;;  %v5467_v61 = vrot.slane %v5459_v25, %v21047_v47  ;;  %v5474_v54 = vrot.slane %v5460_v1, %v21047_v47 }
0x100e   :  { %v5547_v62 = vcombine.low %v5451_v29, %v5458_v37  ;;  %v18163_v27 = vcombine.high %v5451_v29, %v5458_v37  ;;  %v5563_v60 = vcombine.low %v5467_v61, %v5474_v54  ;;  %v18164_v63 = vcombine.high %v5467_v61, %v5474_v54  ;;  %v5777_v37 = vld [vmem:[%s24126_s24] sm:$0xff]  ;;  %v5778_v61 = vld [vmem:[%s24126_s24 + $0x8] sm:$0xff]  ;;  %v5779_v54 = vld [vmem:[%s24126_s24 + $0x10] sm:$0xff] }
0x100f   :  { %v20125_v28 = vpack.c.bf16 %v5778_v61, %v5777_v37 }
0x1010   :  { %v5554_v8 = vrot.slane %v5547_v62, %v21041_v42  ;;  %v5562_v3 = vrot.slane %v18163_v27, %v21041_v42  ;;  %v5570_v39 = vrot.slane %v5563_v60, %v21041_v42  ;;  %v5578_v6 = vrot.slane %v18164_v63, %v21041_v42  ;;  %v5780_v62 = vld [vmem:[%s24126_s24 + $0x18] sm:$0xff]  ;;  %v5879_v60 = vld [vmem:[%s24128_s26] sm:$0xff]  ;;  %v5880_v63 = vld [vmem:[%s24128_s26 + $0x8] sm:$0xff] }
0x1011   :  { %v20129_v27 = vpack.c.bf16 %v5780_v62, %v5779_v54  ;;  %20126 = vmatprep.subr.bf16.mxu1 %v20125_v28  ;;  %v20133_v59 = vpack.c.bf16 %v5880_v63, %v5879_v60 }
0x1012   :  { %v5579_v10 = vcombine.low %v5554_v8, %v5562_v3  ;;  %v5595_v11 = vcombine.low %v5570_v39, %v5578_v6  ;;  %v5580_v31 = vcombine.high %v5554_v8, %v5562_v3  ;;  %v5596_v18 = vcombine.high %v5570_v39, %v5578_v6  ;;  %20128 = vmatpush3.bf16.msra.mxu1 %v20125_v28  ;;  %v5882_v8 = vld [vmem:[%s24128_s26 + $0x18] sm:$0xff]  ;;  %v5883_v39 = vld [vmem:[%s24128_s26 + $0x20] sm:$0xff]  ;;  %v5884_v6 = vld [vmem:[%s24128_s26 + $0x28] sm:$0xff] }
0x1013   :  { %20130 = vmatprep.subr.bf16.mxu1 %v20129_v27  ;;  %v20137_v3 = vpack.c.bf16 %v5882_v8, %v5881_v13  ;;  %20134 = vmatprep.subr.bf16.mxu0 %v20133_v59  ;;  %v20141_v5 = vpack.c.bf16 %v5884_v6, %v5883_v39 }
0x1014   :  { %v5587_v19 = vrot.slane %v5579_v10, %v21047_v47  ;;  %v5603_v44 = vrot.slane %v5595_v11, %v21047_v47  ;;  %v5594_v46 = vrot.slane %v5580_v31, %v21047_v47  ;;  %v5610_v21 = vrot.slane %v5596_v18, %v21047_v47 }
0x1016   :  { %v5612_v24 = vcombine.high %v5587_v19, %v5603_v44  ;;  %v5613_v52 = vcombine.low %v5594_v46, %v5610_v21  ;;  %v5614_v17 = vcombine.high %v5594_v46, %v5610_v21  ;;  %v5611_v51 = vcombine.low %v5587_v19, %v5603_v44  ;;  %20132 = vmatpush3.bf16.msra.mxu1 %v20129_v27  ;;  %v18167_v21 = vld [vmem:[%s24124_s22] ss:$0 sm:$0xff] }
0x1018   :  { %5619 = vrot.lane.b32.xlu1 %v5612_v24, %s24155_s11  ;;  %s24214_s11 = smov 24  }
0x101c   :  { %5627 = vrot.lane.b32.xlu1 %v5613_v52, %s24201_s6  ;;  %v18168_v52 = vld [vmem:[%s24125_s23] ss:$0 sm:$0xff] }
0x1020   :  { %5635 = vrot.lane.b32.xlu1 %v5614_v17, %s24153_s7 }
0x1048   :  { %v5626_v34 = vpop.permute.xlu0 %5625  ;;  %v5618_v35 = vpop.permute.xlu1 %5617 }
0x1049   :  { %v5639_v40 = vsel %vm4062_vm4, %v5543_v7, %v5618_v35 }
0x104a   :  { %v5641_v36 = vsel %vm128_vm0, %v5639_v40, %v5626_v34 }
0x104c   :  { %v5634_v41 = vpop.permute.xlu0 %5633 }
0x104d   :  { %v5644_v43 = vsel %vm5643_vm5, %v5641_v36, %v5634_v41  ;;  %v5885_v36 = vld [vmem:[%s24128_s26 + $0x30] sm:$0xff] }
0x104e   :  { %19298 = vmatprep.mubr.msk.f32.mxu0 %vm97_vm1, %v5644_v43  ;;  %v5886_v43 = vld [vmem:[%s24128_s26 + $0x38] sm:$0xff] }
0x108a   :  { %v5620_v30 = vpop.permute.xlu1 %5619 }
0x108b   :  { %v5640_v48 = vsel %vm4062_vm4, %v5611_v51, %v5620_v30  ;;  %v20145_v30 = vpack.c.bf16 %v5886_v43, %v5885_v36  ;;  %v18183_v36 = vld [vmem:[%s24121_s19 + $0x20] sm:$0xff]  ;;  %v18184_v43 = vld [vmem:[%s24121_s19 + $0x28] sm:$0xff] }
0x108e   :  { %v5628_v4 = vpop.permute.xlu1 %5627 }
0x108f   :  { %v5642_v22 = vsel %vm128_vm0, %v5640_v48, %v5628_v4  ;;  %v5887_v4 = vld [vmem:[%s24128_s26 + $0x40] sm:$0xff]  ;;  %v5888_v48 = vld [vmem:[%s24128_s26 + $0x48] sm:$0xff] }
0x1092   :  { %v5636_v57 = vpop.permute.xlu1 %5635 }
0x1093   :  { %v5645_v20 = vsel %vm5643_vm5, %v5642_v22, %v5636_v57  ;;  %v20149_v22 = vpack.c.bf16 %v5888_v48, %v5887_v4  ;;  %v5889_v57 = vld [vmem:[%s24128_s26 + $0x50] sm:$0xff] }
0x1094   :  { %19299 = vmatmul.mubr.msk.f32.vlgmr.msra.gmra.mrb[32].mxu0 %vm97_vm1, %v5645_v20  ;;  %v5890_v20 = vld [vmem:[%s24128_s26 + $0x58] sm:$0xff] }
0x1095   :  { %20136 = vmatpush3.bf16.msra.mxu0 %v20133_v59  ;;  %v18172_v59 = vld [vmem:[%s24129_s27] ss:$0 sm:$0xff] }
0x1096   :  { %20138 = vmatprep.subr.bf16.mxu0 %v20137_v3 }
0x1099   :  { %20140 = vmatpush3.bf16.msra.mxu0 %v20137_v3 }
0x109a   :  { %20142 = vmatprep.subr.bf16.mxu0 %v20141_v5 }
0x109d   :  { %20144 = vmatpush3.bf16.msra.mxu0 %v20141_v5 }
0x109e   :  { %20146 = vmatprep.subr.bf16.mxu0 %v20145_v30 }
0x10a1   :  { %20148 = vmatpush3.bf16.msra.mxu0 %v20145_v30  ;;  %v20173_v30 = vpack.c.bf16 %v18184_v43, %v18183_v36 }
0x10a2   :  { %20150 = vmatprep.subr.bf16.mxu0 %v20149_v22 }
0x10a5   :  { %20152 = vmatpush3.bf16.msra.mxu0 %v20149_v22 }
0x1167   :  { %v19300_v12 = vpop.f32.mrb[32].mxu0 }
0x1168   :  { %v21905_v45 = vadd.f32 %v19300_v12, %v21470_v26  ;;  %v5722_v7 = vpop.f32.mrb[33].mxu0  ;;  %v20153_v12 = vpack.c.bf16 %v5890_v20, %v5889_v57 }
0x1169   :  { %v21908_v55 = vadd.f32 %v5722_v7, %v21472_v14  ;;  %v5891_v7 = vld [vmem:[%s24128_s26 + $0x60] sm:$0xff] }
0x116a   :  { %v5738_v56 = vsel %vm97_vm1, %v21905_v45, 0.0  ;;  %20154 = vmatprep.subr.bf16.mxu0 %v20153_v12 }
0x116b   :  { %5739 = vadd.xlane.f32.xlu1 %v5738_v56  ;;  %v5735_v23 = vsel %vm97_vm1, %v21908_v55, 0.0  ;;  %20156 = vmatpush3.bf16.msra.mxu0 %v20153_v12  ;;  %v5892_v56 = vld [vmem:[%s24128_s26 + $0x68] sm:$0xff] }
0x116c   :  { %5736 = vadd.xlane.f32.xlu0 %v5735_v23  ;;  %v20157_v23 = vpack.c.bf16 %v5892_v56, %v5891_v7  ;;  %v18175_v56 = vld [vmem:[%s24118_s16 + $0x1] ss:$0 sm:$0xff] }
0x116e   :  { %20158 = vmatprep.subr.bf16.mxu0 %v20157_v23 }
0x116f   :  { %20160 = vmatpush3.bf16.msra.mxu0 %v20157_v23 }
0x11f8   :  { %v5740_v53 = vpop.xlane.xlu1 %5739 }
0x11f9   :  { %v5742_v50 = vmul.f32 0.03125, %v5740_v53  ;;  %v5737_v58 = vpop.xlane.xlu0 %5736  ;;  %v5893_v53 = vld [vmem:[%s24128_s26 + $0x70] sm:$0xff] }
0x11fa   :  { %v5741_v25 = vmul.f32 0.03125, %v5737_v58 }
0x11fb   :  { %v5744_v1 = vsub.f32 %v21905_v45, %v5742_v50  ;;  %v5894_v50 = vld [vmem:[%s24128_s26 + $0x78] sm:$0xff] }
0x11fc   :  { %v5743_v26 = vsub.f32 %v21908_v55, %v5741_v25  ;;  %v20161_v58 = vpack.c.bf16 %v5894_v50, %v5893_v53  ;;  %v18169_v25 = vld [vmem:[%s24127_s25] ss:$0 sm:$0xff] }
0x11fd   :  { %v5746_v49 = vmul.f32 %v5744_v1, %v5744_v1 }
0x11fe   :  { %v5745_v2 = vmul.f32 %v5743_v26, %v5743_v26  ;;  %20162 = vmatprep.subr.bf16.mxu0 %v20161_v58 }
0x11ff   :  { %v5750_v29 = vsel %vm97_vm1, %v5746_v49, 0.0  ;;  %20164 = vmatpush3.bf16.msra.mxu0 %v20161_v58  ;;  %v18176_v58 = vld [vmem:[%s24119_s17 + $0x1] ss:$0 sm:$0xff] }
0x1200   :  { %v5747_v14 = vsel %vm97_vm1, %v5745_v2, 0.0  ;;  %19390 = vmatprep.subr.mxu0 %v20752_v33 }
0x1201   :  { %5748 = vadd.xlane.f32.xlu0 %v5747_v14 }
0x1205   :  { %5751 = vadd.xlane.f32.xlu0 %v5750_v29 }
0x128e   :  { %v5749_v10 = vpop.xlane.xlu0 %5748 }
0x128f   :  { %v5753_v11 = vmul.f32 0.03125, %v5749_v10 }
0x1291   :  { %v5755_v31 = vadd.f32 1e-05, %v5753_v11 }
0x1292   :  { %v5752_v18 = vpop.xlane.xlu0 %5751 }
0x1293   :  { %20556 = vrsqrt.f32 %v5755_v31  ;;  %v5754_v19 = vmul.f32 0.03125, %v5752_v18 }
0x1295   :  { %v5756_v44 = vadd.f32 1e-05, %v5754_v19 }
0x1297   :  { %20558 = vrsqrt.f32 %v5756_v44 }
0x129d   :  { %v20557_v46 = vpop.eup %20556 }
0x129e   :  { %v5759_v24 = vmul.f32 %v20557_v46, %v5743_v26 }
0x12a0   :  { %v5767_v17 = vmul.f32 %v18167_v21, %v5759_v24 }
0x12a1   :  { %v20559_v51 = vpop.eup %20558 }
0x12a2   :  { %v5760_v34 = vmul.f32 %v20559_v51, %v5744_v1  ;;  %v5775_v35 = vadd.f32 %v18168_v52, %v5767_v17  ;;  %v18177_v17 = vld [vmem:[%s24120_s18 + $0x20] sm:$0xff]  ;;  %v18178_v51 = vld [vmem:[%s24120_s18 + $0x28] sm:$0xff] }
0x12a4   :  { %v5768_v40 = vmul.f32 %v18167_v21, %v5760_v34  ;;  %19309 = vmatprep.mubr.msk.f32.mxu1 %vm97_vm1, %v5775_v35  ;;  %v18179_v34 = vld [vmem:[%s24120_s18 + $0x30] sm:$0xff]  ;;  %v20165_v35 = vpack.c.bf16 %v18178_v51, %v18177_v17 }
0x12a6   :  { %v5776_v41 = vadd.f32 %v18168_v52, %v5768_v40  ;;  %v18180_v40 = vld [vmem:[%s24120_s18 + $0x38] sm:$0xff]  ;;  %20166 = vmatprep.subr.bf16.mxu1 %v20165_v35 }
0x12a8   :  { %19310 = vmatmul.mubr.msk.f32.vlgmr.msra.gmra.mrb[38].mxu1 %vm97_vm1, %v5776_v41  ;;  %v20169_v41 = vpack.c.bf16 %v18180_v40, %v18179_v34 }
0x12a9   :  { %20168 = vmatpush3.bf16.msra.mxu1 %v20165_v35 }
0x12aa   :  { %20170 = vmatprep.subr.bf16.mxu1 %v20169_v41 }
0x12ad   :  { %20172 = vmatpush3.bf16.msra.mxu1 %v20169_v41 }
0x12ae   :  { %20174 = vmatprep.subr.bf16.mxu1 %v20173_v30 }
0x137b   :  { %v19311_v1 = vpop.f32.mrb[38].mxu1 }
0x137c   :  { %v5866_v26 = vadd.f32 %v19311_v1, %v18169_v25  ;;  %v5860_v2 = vpop.f32.mrb[39].mxu1 }
0x137d   :  { %v5861_v14 = vadd.f32 %v18169_v25, %v5860_v2  ;;  %v18186_v2 = vld [vmem:[%s24121_s19 + $0x38] sm:$0xff] }
0x137e   :  { %v5872_v49 = vmul.f32 0.70710677, %v5866_v26  ;;  %v5870_v27 = vmul.f32 0.5, %v5866_v26  ;;  %v18185_v26 = vld [vmem:[%s24121_s19 + $0x30] sm:$0xff] }
0x137f   :  { %v5871_v29 = vmul.f32 0.70710677, %v5861_v14  ;;  %v5869_v28 = vmul.f32 0.5, %v5861_v14 }
0x1380   :  { %20560 = verf.f32 %v5872_v49 }
0x1381   :  { %20562 = verf.f32 %v5871_v29  ;;  %v20177_v29 = vpack.c.bf16 %v18186_v2, %v18185_v26 }
0x138a   :  { %v20561_v37 = vpop.eup %20560 }
0x138b   :  { %v20563_v61 = vpop.eup %20562  ;;  %v5876_v54 = vadd.f32 1.0, %v20561_v37  ;;  %v18189_v37 = vld [vmem:[%s24122_s20 + $0x20] sm:$0xff] }
0x138c   :  { %v5875_v62 = vadd.f32 1.0, %v20563_v61  ;;  %v18190_v61 = vld [vmem:[%s24122_s20 + $0x28] sm:$0xff] }
0x138d   :  { %v5878_v63 = vmul.f32 %v5876_v54, %v5870_v27  ;;  %v20181_v54 = vpack.c.bf16 %v18190_v61, %v18189_v37 }
0x138e   :  { %v5877_v60 = vmul.f32 %v5875_v62, %v5869_v28  ;;  %v18191_v28 = vld [vmem:[%s24122_s20 + $0x30] sm:$0xff]  ;;  %v18192_v62 = vld [vmem:[%s24122_s20 + $0x38] sm:$0xff] }
0x138f   :  { %v20185_v27 = vpack.c.bf16 %v18192_v62, %v18191_v28 }
0x1390   :  { %19344 = vmatprep.mubr.f32.mxu0 %v5877_v60 }
0x1391   :  { %19345 = vmatmul.mubr.f32.vlgmr.msra.gmra.mrb[34].mxu0 %v5878_v63 }
0x1392   :  { %19392 = vmatprep.mubr.msk.f32.mxu0 %vm20751_vm2, %v20752_v33 }
0x1464   :  { %v19346_v13 = vpop.f32.mrb[34].mxu0 }
0x1465   :  { %v5971_v8 = vadd.f32 %v19346_v13, %v21905_v45  ;;  %v5961_v3 = vpop.f32.mrb[35].mxu0 }
0x1466   :  { %v5970_v39 = vadd.f32 %v5961_v3, %v21908_v55 }
0x1467   :  { %v21997_v6 = vadd.f32 %v18172_v59, %v5971_v8 }
0x1468   :  { %v21999_v5 = vadd.f32 %v18172_v59, %v5970_v39 }
0x1469   :  { %v5988_v10 = vsel %vm97_vm1, %v21997_v6, 0.0 }
0x146a   :  { %5989 = vadd.xlane.f32.xlu1 %v5988_v10  ;;  %v5985_v11 = vsel %vm97_vm1, %v21999_v5, 0.0 }
0x146b   :  { %5986 = vadd.xlane.f32.xlu0 %v5985_v11 }
0x14f7   :  { %v5990_v31 = vpop.xlane.xlu1 %5989 }
0x14f8   :  { %v5992_v18 = vmul.f32 0.03125, %v5990_v31  ;;  %v5987_v19 = vpop.xlane.xlu0 %5986 }
0x14f9   :  { %v5991_v44 = vmul.f32 0.03125, %v5987_v19 }
0x14fa   :  { %v5994_v45 = vsub.f32 %v21997_v6, %v5992_v18 }
0x14fb   :  { %v5993_v55 = vsub.f32 %v21999_v5, %v5991_v44 }
0x14fc   :  { %v5996_v46 = vmul.f32 %v5994_v45, %v5994_v45 }
0x14fd   :  { %v5995_v21 = vmul.f32 %v5993_v55, %v5993_v55 }
0x14fe   :  { %v6000_v24 = vsel %vm97_vm1, %v5996_v46, 0.0 }
0x14ff   :  { %6001 = vadd.xlane.f32.xlu1 %v6000_v24  ;;  %v5997_v52 = vsel %vm97_vm1, %v5995_v21, 0.0 }
0x1500   :  { %5998 = vadd.xlane.f32.xlu0 %v5997_v52 }
0x158c   :  { %v6002_v4 = vpop.xlane.xlu1 %6001 }
0x158d   :  { %v6004_v48 = vmul.f32 0.03125, %v6002_v4  ;;  %v5999_v22 = vpop.xlane.xlu0 %5998 }
0x158e   :  { %v6003_v57 = vmul.f32 0.03125, %v5999_v22 }
0x158f   :  { %v6006_v20 = vadd.f32 1e-05, %v6004_v48 }
0x1590   :  { %v6005_v12 = vadd.f32 1e-05, %v6003_v57 }
0x1591   :  { %20564 = vrsqrt.f32 %v6006_v20 }
0x1592   :  { %20566 = vrsqrt.f32 %v6005_v12 }
0x159b   :  { %v20565_v7 = vpop.eup %20564 }
0x159c   :  { %v20567_v23 = vpop.eup %20566  ;;  %v6010_v53 = vmul.f32 %v20565_v7, %v5994_v45 }
0x159d   :  { %v6009_v50 = vmul.f32 %v20567_v23, %v5993_v55 }
0x159e   :  { %v6018_v25 = vmul.f32 %v18175_v56, %v6010_v53 }
0x159f   :  { %v6017_v1 = vmul.f32 %v18175_v56, %v6009_v50 }
0x15a0   :  { %v6026_v49 = vadd.f32 %v18176_v58, %v6018_v25 }
0x15a1   :  { %v6025_v14 = vadd.f32 %v18176_v58, %v6017_v1 }
0x15a3   :  { %19355 = vmatprep.mubr.msk.f32.mxu1 %vm97_vm1, %v6025_v14 }
0x15a4   :  { %19356 = vmatmul.mubr.msk.f32.vlgmr.msra.gmra.mrb[40].mxu1 %vm97_vm1, %v6026_v49 }
0x15a5   :  { %20176 = vmatpush3.bf16.msra.mxu1 %v20173_v30  ;;  %19366 = vmatprep.mubr.msk.f32.mxu1 %vm97_vm1, %v6025_v14 }
0x15a6   :  { %20178 = vmatprep.subr.bf16.mxu1 %v20177_v29 }
0x15a9   :  { %20180 = vmatpush3.bf16.msra.mxu1 %v20177_v29 }
0x15aa   :  { %20182 = vmatprep.subr.bf16.mxu1 %v20181_v54 }
0x15ac   :  { %19367 = vmatmul.mubr.msk.f32.vlgmr.msra.gmra.mrb[42].mxu1 %vm97_vm1, %v6026_v49 }
0x15ad   :  { %20184 = vmatpush3.bf16.msra.mxu1 %v20181_v54  ;;  %19377 = vmatprep.mubr.msk.f32.mxu1 %vm97_vm1, %v6025_v14 }
0x15ae   :  { %20186 = vmatprep.subr.bf16.mxu1 %v20185_v27 }
0x15b1   :  { %20188 = vmatpush3.bf16.msra.mxu1 %v20185_v27 }
0x15b2   :  { %19380 = vmatprep.subr.mxu1 %v20752_v33 }
0x15b4   :  { %19378 = vmatmul.mubr.msk.f32.vlgmr.msra.gmra.mrb[44].mxu1 %vm97_vm1, %v6026_v49 }
0x15b5   :  { %19382 = vmatprep.mubr.msk.f32.mxu1 %vm20751_vm2, %v20752_v33 }
0x1677   :  { %v22060_v60 = vpop.f32.mrb[40].mxu1 }
0x1678   :  { %v6104_v63 = vpop.f32.mrb[41].mxu1 }
0x1679   :  { %6275 = vrot.lane.b32.xlu1 %v6104_v63, %s24202_s15 }
0x167f   :  { %v22063_v13 = vpop.f32.mrb[42].mxu1 }
0x1680   :  { %v6184_v59 = vpop.f32.mrb[43].mxu1 }
0x1681   :  { %6573 = vrot.lane.b32.xlu1 %v6184_v59, %s24200_s28  ;;  %6567 = vrot.lane.b32.xlu0 %v6184_v59, %s24202_s15 }
0x1685   :  { %6579 = vrot.lane.b32.xlu1 %v6184_v59, %s24203_s9  ;;  %6281 = vrot.lane.b32.xlu0 %v6104_v63, %s24200_s28 }
0x1687   :  { %v22069_v8 = vpop.f32.mrb[44].mxu1 }
0x1688   :  { %v22071_v3 = vpop.f32.mrb[45].mxu1 }
0x1689   :  { %6287 = vrot.lane.b32.xlu1 %v6104_v63, %s24203_s9  ;;  %6569 = vrot.lane.b32.xlu0 %v22063_v13, %s24202_s15 }
0x168d   :  { %6575 = vrot.lane.b32.xlu1 %v22063_v13, %s24200_s28  ;;  %6581 = vrot.lane.b32.xlu0 %v22063_v13, %s24203_s9 }
0x1691   :  { %6277 = vrot.lane.b32.xlu1 %v22060_v60, %s24202_s15  ;;  %6283 = vrot.lane.b32.xlu0 %v22060_v60, %s24200_s28 }
0x1695   :  { %6289 = vrot.lane.b32.xlu1 %v22060_v60, %s24203_s9 }
0x16eb   :  { %v6276_v39 = vpop.permute.xlu1 %6275 }
0x16f3   :  { %v6574_v10 = vpop.permute.xlu1 %6573  ;;  %v6568_v11 = vpop.permute.xlu0 %6567 }
0x16f4   :  { %v6585_v31 = vcombine.low %v6184_v59, %v6574_v10  ;;  %v6586_v18 = vcombine.high %v6184_v59, %v6574_v10 }
0x16f6   :  { %v6593_v46 = vrot.slane %v6585_v31, %v21041_v42  ;;  %v6600_v21 = vrot.slane %v6586_v18, %v21041_v42 }
0x16f7   :  { %v6580_v19 = vpop.permute.xlu1 %6579  ;;  %v6282_v44 = vpop.permute.xlu0 %6281 }
0x16f8   :  { %v6601_v45 = vcombine.low %v6568_v11, %v6580_v19  ;;  %v6602_v55 = vcombine.high %v6568_v11, %v6580_v19  ;;  %v6293_v17 = vcombine.low %v6104_v63, %v6282_v44  ;;  %v6294_v51 = vcombine.high %v6104_v63, %v6282_v44 }
0x16fa   :  { %v6609_v24 = vrot.slane %v6601_v45, %v21041_v42  ;;  %v6616_v52 = vrot.slane %v6602_v55, %v21041_v42  ;;  %v6301_v12 = vrot.slane %v6293_v17, %v21041_v42  ;;  %v6308_v7 = vrot.slane %v6294_v51, %v21041_v42 }
0x16fb   :  { %v6288_v34 = vpop.permute.xlu1 %6287  ;;  %v6570_v43 = vpop.permute.xlu0 %6569 }
0x16fc   :  { %v6617_v35 = vcombine.low %v6593_v46, %v6609_v24  ;;  %v6618_v40 = vcombine.high %v6593_v46, %v6609_v24  ;;  %v6633_v41 = vcombine.low %v6600_v21, %v6616_v52  ;;  %v6634_v36 = vcombine.high %v6600_v21, %v6616_v52 }
0x16fd   :  { %v6309_v30 = vcombine.low %v6276_v39, %v6288_v34  ;;  %v6310_v4 = vcombine.high %v6276_v39, %v6288_v34 }
0x16fe   :  { %v6625_v48 = vrot.slane %v6617_v35, %v21047_v47  ;;  %v6632_v22 = vrot.slane %v6618_v40, %v21047_v47  ;;  %v6641_v57 = vrot.slane %v6633_v41, %v21047_v47  ;;  %v6648_v20 = vrot.slane %v6634_v36, %v21047_v47 }
0x16ff   :  { %v6317_v56 = vrot.slane %v6309_v30, %v21041_v42  ;;  %v6324_v23 = vrot.slane %v6310_v4, %v21041_v42  ;;  %v6576_v53 = vpop.permute.xlu1 %6575  ;;  %v6582_v28 = vpop.permute.xlu0 %6581 }
0x1700   :  { %v6721_v50 = vcombine.low %v6625_v48, %v6632_v22  ;;  %v18199_v58 = vcombine.high %v6625_v48, %v6632_v22  ;;  %v6737_v25 = vcombine.low %v6641_v57, %v6648_v20  ;;  %v18200_v1 = vcombine.high %v6641_v57, %v6648_v20 }
0x1701   :  { %v6325_v26 = vcombine.low %v6301_v12, %v6317_v56  ;;  %v6326_v2 = vcombine.high %v6301_v12, %v6317_v56  ;;  %v6341_v14 = vcombine.low %v6308_v7, %v6324_v23  ;;  %v6342_v49 = vcombine.high %v6308_v7, %v6324_v23 }
0x1702   :  { %v22099_v29 = vrot.slane %v6721_v50, %v21041_v42  ;;  %v22102_v37 = vrot.slane %v18199_v58, %v21041_v42  ;;  %v22105_v61 = vrot.slane %v6737_v25, %v21041_v42  ;;  %v22108_v54 = vrot.slane %v18200_v1, %v21041_v42 }
0x1703   :  { %v6333_v62 = vrot.slane %v6325_v26, %v21047_v47  ;;  %v6340_v27 = vrot.slane %v6326_v2, %v21047_v47  ;;  %v6349_v63 = vrot.slane %v6341_v14, %v21047_v47  ;;  %v6356_v59 = vrot.slane %v6342_v49, %v21047_v47  ;;  %v6278_v39 = vpop.permute.xlu1 %6277  ;;  %v6284_v41 = vpop.permute.xlu0 %6283 }
0x1704   :  { %v6753_v10 = vcombine.low %v22099_v29, %v22102_v37  ;;  %v6754_v11 = vcombine.high %v22099_v29, %v22102_v37  ;;  %v6653_v45 = vcombine.low %v22063_v13, %v6576_v53  ;;  %v6654_v55 = vcombine.high %v22063_v13, %v6576_v53 }
0x1705   :  { %v6429_v31 = vcombine.low %v6333_v62, %v6340_v27  ;;  %v18195_v18 = vcombine.high %v6333_v62, %v6340_v27  ;;  %v6445_v19 = vcombine.low %v6349_v63, %v6356_v59  ;;  %v18196_v44 = vcombine.high %v6349_v63, %v6356_v59 }
0x1706   :  { %v6669_v46 = vcombine.low %v6570_v43, %v6582_v28  ;;  %v6670_v21 = vcombine.high %v6570_v43, %v6582_v28  ;;  %v6769_v24 = vcombine.low %v22105_v61, %v22108_v54  ;;  %v6770_v52 = vcombine.high %v22105_v61, %v22108_v54 }
0x1707   :  { %v22125_v17 = vrot.slane %v6429_v31, %v21041_v42  ;;  %v22128_v51 = vrot.slane %v18195_v18, %v21041_v42  ;;  %v6661_v34 = vrot.slane %v6653_v45, %v21041_v42  ;;  %v6668_v35 = vrot.slane %v6654_v55, %v21041_v42  ;;  %v6290_v36 = vpop.permute.xlu1 %6289 }
0x1708   :  { %v6677_v13 = vrot.slane %v6669_v46, %v21041_v42  ;;  %v6684_v40 = vrot.slane %v6670_v21, %v21041_v42  ;;  %v22135_v43 = vrot.slane %v6445_v19, %v21041_v42  ;;  %v22138_v30 = vrot.slane %v18196_v44, %v21041_v42 }
0x1709   :  { %v6461_v4 = vcombine.low %v22125_v17, %v22128_v51  ;;  %v6462_v48 = vcombine.high %v22125_v17, %v22128_v51  ;;  %v6361_v7 = vcombine.low %v22060_v60, %v6284_v41  ;;  %v6362_v56 = vcombine.high %v22060_v60, %v6284_v41 }
0x170a   :  { %v6685_v22 = vcombine.low %v6661_v34, %v6677_v13  ;;  %v6686_v57 = vcombine.high %v6661_v34, %v6677_v13  ;;  %v6701_v20 = vcombine.low %v6668_v35, %v6684_v40  ;;  %v6702_v12 = vcombine.high %v6668_v35, %v6684_v40 }
0x170b   :  { %v6377_v23 = vcombine.low %v6278_v39, %v6290_v36  ;;  %v6378_v53 = vcombine.high %v6278_v39, %v6290_v36  ;;  %v6369_v26 = vrot.slane %v6361_v7, %v21041_v42  ;;  %v6376_v2 = vrot.slane %v6362_v56, %v21041_v42 }
0x170c   :  { %v6693_v50 = vrot.slane %v6685_v22, %v21047_v47  ;;  %v6700_v58 = vrot.slane %v6686_v57, %v21047_v47  ;;  %v6709_v25 = vrot.slane %v6701_v20, %v21047_v47  ;;  %v6716_v1 = vrot.slane %v6702_v12, %v21047_v47 }
0x170d   :  { %v6385_v14 = vrot.slane %v6377_v23, %v21041_v42  ;;  %v6392_v49 = vrot.slane %v6378_v53, %v21041_v42  ;;  %v6477_v21 = vcombine.low %v22135_v43, %v22138_v30  ;;  %v6478_v17 = vcombine.high %v22135_v43, %v22138_v30 }
0x170e   :  { %v6789_v61 = vcombine.low %v6693_v50, %v6700_v58  ;;  %v18201_v60 = vcombine.high %v6693_v50, %v6700_v58  ;;  %v6805_v54 = vcombine.low %v6709_v25, %v6716_v1  ;;  %v18202_v28 = vcombine.high %v6709_v25, %v6716_v1 }
0x170f   :  { %v6393_v62 = vcombine.low %v6369_v26, %v6385_v14  ;;  %v6394_v27 = vcombine.high %v6369_v26, %v6385_v14  ;;  %v6409_v63 = vcombine.low %v6376_v2, %v6392_v49  ;;  %v6410_v59 = vcombine.high %v6376_v2, %v6392_v49 }
0x1710   :  { %v6796_v39 = vrot.slane %v6789_v61, %v21041_v42  ;;  %v6804_v31 = vrot.slane %v18201_v60, %v21041_v42  ;;  %v6812_v18 = vrot.slane %v6805_v54, %v21041_v42  ;;  %v6820_v19 = vrot.slane %v18202_v28, %v21041_v42 }
0x1711   :  { %v6401_v44 = vrot.slane %v6393_v62, %v21047_v47  ;;  %v6408_v45 = vrot.slane %v6394_v27, %v21047_v47  ;;  %v6417_v55 = vrot.slane %v6409_v63, %v21047_v47  ;;  %v6424_v46 = vrot.slane %v6410_v59, %v21047_v47 }
0x1712   :  { %v6821_v51 = vcombine.low %v6796_v39, %v6804_v31  ;;  %v6837_v34 = vcombine.low %v6812_v18, %v6820_v19  ;;  %v6761_v36 = vrot.slane %v6753_v10, %v21047_v47  ;;  %v6777_v22 = vrot.slane %v6769_v24, %v21047_v47 }
0x1713   :  { %v6497_v35 = vcombine.low %v6401_v44, %v6408_v45  ;;  %v18197_v13 = vcombine.high %v6401_v44, %v6408_v45  ;;  %v6513_v40 = vcombine.low %v6417_v55, %v6424_v46  ;;  %v18198_v41 = vcombine.high %v6417_v55, %v6424_v46 }
0x1714   :  { %v6768_v57 = vrot.slane %v6754_v11, %v21047_v47  ;;  %v6784_v43 = vrot.slane %v6770_v52, %v21047_v47  ;;  %v6785_v56 = vcombine.low %v6761_v36, %v6777_v22  ;;  %v6469_v10 = vrot.slane %v6461_v4, %v21047_v47 }
0x1715   :  { %v6504_v30 = vrot.slane %v6497_v35, %v21041_v42  ;;  %v6512_v20 = vrot.slane %v18197_v13, %v21041_v42  ;;  %v6520_v12 = vrot.slane %v6513_v40, %v21041_v42  ;;  %v6528_v7 = vrot.slane %v18198_v41, %v21041_v42 }
0x1716   :  { %v6787_v23 = vcombine.low %v6768_v57, %v6784_v43  ;;  %v6485_v24 = vrot.slane %v6477_v21, %v21047_v47  ;;  %v6822_v53 = vcombine.high %v6796_v39, %v6804_v31  ;;  %v6838_v37 = vcombine.high %v6812_v18, %v6820_v19  ;;  %19381 = vmatpush3.xpose.msk.msra.mxu1 %vm4062_vm4, %v6785_v56 }
0x1717   :  { %v6529_v50 = vcombine.low %v6504_v30, %v6512_v20  ;;  %v6545_v29 = vcombine.low %v6520_v12, %v6528_v7  ;;  %v6476_v52 = vrot.slane %v6462_v48, %v21047_v47  ;;  %19385 = vmatprep.subr.mxu1 %v20752_v33  ;;  %v6786_v58 = vcombine.high %v6761_v36, %v6777_v22 }
0x1718   :  { %19391 = vmatpush3.xpose.msk.msra.mxu0 %vm4062_vm4, %v6787_v23  ;;  %v6493_v11 = vcombine.low %v6469_v10, %v6485_v24  ;;  %v6492_v25 = vrot.slane %v6478_v17, %v21047_v47  ;;  %v6829_v4 = vrot.slane %v6821_v51, %v21047_v47  ;;  %v6845_v1 = vrot.slane %v6837_v34, %v21047_v47 }
0x1719   :  { %19400 = vmatprep.subr.mxu0 %v20752_v33  ;;  %v6537_v26 = vrot.slane %v6529_v50, %v21047_v47  ;;  %v6553_v2 = vrot.slane %v6545_v29, %v21047_v47  ;;  %v6530_v14 = vcombine.high %v6504_v30, %v6512_v20  ;;  %v6546_v49 = vcombine.high %v6520_v12, %v6528_v7 }
0x171a   :  { %19383 = vmatmul.mubr.msk.f32.vlgmr.msra.gmra.mrb[46].mxu1 %vm4062_vm4, %v6493_v11  ;;  %v6495_v48 = vcombine.low %v6476_v52, %v6492_v25  ;;  %v6853_v61 = vcombine.low %v6829_v4, %v6845_v1  ;;  %v6836_v60 = vrot.slane %v6822_v53, %v21047_v47  ;;  %v6852_v54 = vrot.slane %v6838_v37, %v21047_v47 }
0x171b   :  { %19386 = vmatpush3.xpose.msk.msra.mxu1 %vm4062_vm4, %v6786_v58  ;;  %19387 = vmatprep.mubr.msk.f32.mxu1 %vm20751_vm2, %v20752_v33  ;;  %v6494_v28 = vcombine.high %v6469_v10, %v6485_v24  ;;  %v6561_v62 = vcombine.low %v6537_v26, %v6553_v2  ;;  %v6788_v27 = vcombine.high %v6768_v57, %v6784_v43 }
0x171c   :  { %19393 = vmatmul.mubr.msk.f32.vlgmr.msra.gmra.mrb[36].mxu0 %vm4062_vm4, %v6495_v48  ;;  %19395 = vmatprep.subr.mxu1 %v20752_v33  ;;  %v6544_v63 = vrot.slane %v6530_v14, %v21047_v47  ;;  %v6560_v59 = vrot.slane %v6546_v49, %v21047_v47  ;;  %v6855_v39 = vcombine.low %v6836_v60, %v6852_v54 }
0x171d   :  { %19401 = vmatpush3.xpose.msk.msra.mxu0 %vm4062_vm4, %v6853_v61  ;;  %19402 = vmatprep.mubr.msk.f32.mxu0 %vm20751_vm2, %v20752_v33  ;;  %v6496_v31 = vcombine.high %v6476_v52, %v6492_v25  ;;  %v6854_v18 = vcombine.high %v6829_v4, %v6845_v1  ;;  %v6562_v19 = vcombine.high %v6537_v26, %v6553_v2 }
0x171e   :  { %19388 = vmatmul.mubr.msk.f32.vlgmr.msra.gmra.mrb[48].mxu1 %vm4062_vm4, %v6494_v28  ;;  %19410 = vmatprep.subr.mxu0 %v20752_v33  ;;  %v6563_v44 = vcombine.low %v6544_v63, %v6560_v59  ;;  %v6856_v45 = vcombine.high %v6836_v60, %v6852_v54  ;;  %v6564_v55 = vcombine.high %v6544_v63, %v6560_v59 }
0x171f   :  { %19396 = vmatpush3.xpose.msk.msra.mxu1 %vm4062_vm4, %v6788_v27  ;;  %19397 = vmatprep.mubr.msk.f32.mxu1 %vm20751_vm2, %v20752_v33 }
0x1720   :  { %19405 = vmatprep.subr.mxu1 %v20752_v33  ;;  %19403 = vmatmul.mubr.msk.f32.vlgmr.msra.gmra.mrb[38].mxu0 %vm4062_vm4, %v6561_v62 }
0x1721   :  { %19411 = vmatpush3.xpose.msk.msra.mxu0 %vm4062_vm4, %v6855_v39  ;;  %19412 = vmatprep.mubr.msk.f32.mxu0 %vm20751_vm2, %v20752_v33 }
0x1722   :  { %19398 = vmatmul.mubr.msk.f32.vlgmr.msra.gmra.mrb[50].mxu1 %vm4062_vm4, %v6496_v31  ;;  %19420 = vmatprep.subr.mxu0 %v20752_v33 }
0x1723   :  { %19406 = vmatpush3.xpose.msk.msra.mxu1 %vm4062_vm4, %v6854_v18  ;;  %19407 = vmatprep.mubr.msk.f32.mxu1 %vm20751_vm2, %v20752_v33 }
0x1724   :  { %19415 = vmatprep.subr.mxu1 %v20752_v33  ;;  %19413 = vmatmul.mubr.msk.f32.vlgmr.msra.gmra.mrb[40].mxu0 %vm4062_vm4, %v6563_v44 }
0x1725   :  { %19422 = vmatprep.mubr.msk.f32.mxu0 %vm20751_vm2, %v20752_v33 }
0x1726   :  { %19408 = vmatmul.mubr.msk.f32.vlgmr.msra.gmra.mrb[52].mxu1 %vm4062_vm4, %v6562_v19 }
0x1727   :  { %19416 = vmatpush3.xpose.msk.msra.mxu1 %vm4062_vm4, %v6856_v45  ;;  %19417 = vmatprep.mubr.msk.f32.mxu1 %vm20751_vm2, %v20752_v33 }
0x1728   :  { %19425 = vmatprep.subr.mxu1 %v20752_v33 }
0x172a   :  { %19418 = vmatmul.mubr.msk.f32.vlgmr.msra.gmra.mrb[54].mxu1 %vm4062_vm4, %v6564_v55 }
0x172b   :  { %19427 = vmatprep.mubr.msk.f32.mxu1 %vm20751_vm2, %v20752_v33 }
0x17ed   :  { %v7221_v46 = vpop.f32.mrb[46].mxu1 }
0x17ee   :  { %v19384_v21 = vpop.f32.mrb[47].mxu1  ;;  %v7757_v17 = vsel %vm4062_vm4, %v7221_v46, -inf }
0x17ef   :  { %v7373_v51 = vpop.f32.mrb[36].mxu0  ;;  %7758 = vmax.xlane.f32.xlu0 %v7757_v17 }
0x17f0   :  { %v19394_v34 = vpop.f32.mrb[37].mxu0  ;;  %v7763_v40 = vsel %vm4062_vm4, %v7373_v51, -inf }
0x17f1   :  { %v7297_v35 = vpop.f32.mrb[48].mxu1 }
0x17f2   :  { %v19389_v13 = vpop.f32.mrb[49].mxu1  ;;  %v7760_v41 = vsel %vm4062_vm4, %v7297_v35, -inf }
0x17f3   :  { %7764 = vmax.xlane.f32.xlu0 %v7763_v40  ;;  %7761 = vmax.xlane.f32.xlu1 %v7760_v41  ;;  %v7525_v36 = vpop.f32.mrb[38].mxu0 }
0x17f4   :  { %v19404_v22 = vpop.f32.mrb[39].mxu0  ;;  %v7769_v57 = vsel %vm4062_vm4, %v7525_v36, -inf }
0x17f5   :  { %v7449_v43 = vpop.f32.mrb[50].mxu1 }
0x17f6   :  { %v19399_v30 = vpop.f32.mrb[51].mxu1  ;;  %v7766_v23 = vsel %vm4062_vm4, %v7449_v43, -inf }
0x17f7   :  { %7770 = vmax.xlane.f32.xlu0 %v7769_v57  ;;  %v7677_v20 = vpop.f32.mrb[40].mxu0 }
0x17f8   :  { %v19414_v12 = vpop.f32.mrb[41].mxu0  ;;  %v7775_v53 = vsel %vm4062_vm4, %v7677_v20, -inf }
0x17f9   :  { %v22236_v7 = vpop.f32.mrb[52].mxu1 }
0x17fa   :  { %v19409_v56 = vpop.f32.mrb[53].mxu1  ;;  %v7772_v50 = vsel %vm4062_vm4, %v22236_v7, -inf }
0x17fb   :  { %7767 = vmax.xlane.f32.xlu0 %v7766_v23 }
0x17fd   :  { %v22239_v10 = vpop.f32.mrb[54].mxu1 }
0x17fe   :  { %v19419_v24 = vpop.f32.mrb[55].mxu1  ;;  %v7778_v29 = vsel %vm4062_vm4, %v22239_v10, -inf }
0x17ff   :  { %7776 = vmax.xlane.f32.xlu0 %v7775_v53 }
0x1804   :  { %6865 = vrot.lane.b32.xlu1 %v22071_v3, %s24200_s28 }
0x1808   :  { %6871 = vrot.lane.b32.xlu1 %v22071_v3, %s24203_s9 }
0x1815   :  { %6859 = vrot.lane.b32.xlu0 %v22071_v3, %s24202_s15 }
0x182c   :  { %7773 = vmax.xlane.f32.xlu1 %v7772_v50 }
0x1830   :  { %7779 = vmax.xlane.f32.xlu1 %v7778_v29 }
0x1841   :  { %6861 = vrot.lane.b32.xlu1 %v22069_v8, %s24202_s15 }
0x187c   :  { %v7759_v37 = vpop.xlane.xlu0 %7758 }
0x187d   :  { %v7781_v11 = vsub.f32 %v7221_v46, %v7759_v37 }
0x187f   :  { %v7789_v52 = vmul.f32 1.442695, %v7781_v11 }
0x1880   :  { %v7765_v58 = vpop.xlane.xlu0 %7764  ;;  %v7762_v25 = vpop.xlane.xlu1 %7761 }
0x1881   :  { %20568 = vpow2.f32 %v7789_v52  ;;  %v7783_v4 = vsub.f32 %v7373_v51, %v7765_v58  ;;  %v7782_v1 = vsub.f32 %v7297_v35, %v7762_v25 }
0x1883   :  { %v7793_v26 = vmul.f32 1.442695, %v7783_v4  ;;  %v7791_v2 = vmul.f32 1.442695, %v7782_v1 }
0x1884   :  { %v7771_v14 = vpop.xlane.xlu0 %7770  ;;  %v6866_v54 = vpop.permute.xlu1 %6865 }
0x1885   :  { %20570 = vpow2.f32 %v7793_v26  ;;  %v7785_v49 = vsub.f32 %v7525_v36, %v7771_v14  ;;  %v6877_v31 = vcombine.low %v22071_v3, %v6866_v54  ;;  %v6878_v18 = vcombine.high %v22071_v3, %v6866_v54 }
0x1886   :  { %20572 = vpow2.f32 %v7791_v2 }
0x1887   :  { %v7797_v48 = vmul.f32 1.442695, %v7785_v49  ;;  %v6885_v3 = vrot.slane %v6877_v31, %v21041_v42  ;;  %v6892_v35 = vrot.slane %v6878_v18, %v21041_v42 }
0x1888   :  { %v7768_v61 = vpop.xlane.xlu0 %7767  ;;  %v6872_v45 = vpop.permute.xlu1 %6871 }
0x1889   :  { %20574 = vpow2.f32 %v7797_v48  ;;  %v7784_v60 = vsub.f32 %v7449_v43, %v7768_v61 }
0x188b   :  { %v22254_v28 = vpop.eup %20568  ;;  %v7795_v62 = vmul.f32 1.442695, %v7784_v60 }
0x188c   :  { %v7805_v27 = vsel %vm4062_vm4, %v22254_v28, 0.0  ;;  %v7777_v63 = vpop.xlane.xlu0 %7776 }
0x188d   :  { %20576 = vpow2.f32 %v7795_v62  ;;  %7806 = vadd.xlane.f32.xlu0 %v7805_v27  ;;  %v7787_v59 = vsub.f32 %v7677_v20, %v7777_v63 }
0x188f   :  { %v22258_v39 = vpop.eup %20570  ;;  %v7801_v19 = vmul.f32 1.442695, %v7787_v59 }
0x1890   :  { %v22262_v44 = vpop.eup %20572  ;;  %v7811_v55 = vsel %vm4062_vm4, %v22258_v39, 0.0  ;;  %v6860_v46 = vpop.permute.xlu0 %6859 }
0x1891   :  { %20578 = vpow2.f32 %v7801_v19  ;;  %7812 = vadd.xlane.f32.xlu0 %v7811_v55  ;;  %v7808_v21 = vsel %vm4062_vm4, %v22262_v44, 0.0  ;;  %v6893_v17 = vcombine.low %v6860_v46, %v6872_v45  ;;  %v6894_v51 = vcombine.high %v6860_v46, %v6872_v45 }
0x1892   :  { %7809 = vadd.xlane.f32.xlu1 %v7808_v21 }
0x1893   :  { %v22268_v34 = vpop.eup %20574  ;;  %v6901_v13 = vrot.slane %v6893_v17, %v21041_v42  ;;  %v6908_v40 = vrot.slane %v6894_v51, %v21041_v42 }
0x1894   :  { %v7817_v41 = vsel %vm4062_vm4, %v22268_v34, 0.0 }
0x1895   :  { %v6909_v36 = vcombine.low %v6885_v3, %v6901_v13  ;;  %v6910_v22 = vcombine.high %v6885_v3, %v6901_v13  ;;  %v6925_v57 = vcombine.low %v6892_v35, %v6908_v40  ;;  %v6926_v43 = vcombine.high %v6892_v35, %v6908_v40 }
0x1896   :  { %7818 = vadd.xlane.f32.xlu1 %v7817_v41 }
0x1897   :  { %v22276_v30 = vpop.eup %20576  ;;  %v6917_v20 = vrot.slane %v6909_v36, %v21047_v47  ;;  %v6924_v12 = vrot.slane %v6910_v22, %v21047_v47  ;;  %v6933_v56 = vrot.slane %v6925_v57, %v21047_v47  ;;  %v6940_v23 = vrot.slane %v6926_v43, %v21047_v47 }
0x1898   :  { %v7814_v24 = vsel %vm4062_vm4, %v22276_v30, 0.0 }
0x1899   :  { %v7013_v53 = vcombine.low %v6917_v20, %v6924_v12  ;;  %v18203_v50 = vcombine.high %v6917_v20, %v6924_v12  ;;  %v7029_v29 = vcombine.low %v6933_v56, %v6940_v23  ;;  %v18204_v37 = vcombine.high %v6933_v56, %v6940_v23 }
0x189a   :  { %7815 = vadd.xlane.f32.xlu1 %v7814_v24 }
0x189b   :  { %v22284_v11 = vpop.eup %20578  ;;  %v7020_v52 = vrot.slane %v7013_v53, %v21041_v42  ;;  %v7028_v58 = vrot.slane %v18203_v50, %v21041_v42  ;;  %v7036_v25 = vrot.slane %v7029_v29, %v21041_v42  ;;  %v7044_v4 = vrot.slane %v18204_v37, %v21041_v42 }
0x189c   :  { %v7823_v1 = vsel %vm4062_vm4, %v22284_v11, 0.0 }
0x189d   :  { %7824 = vadd.xlane.f32.xlu0 %v7823_v1  ;;  %v7045_v26 = vcombine.low %v7020_v52, %v7028_v58  ;;  %v7061_v2 = vcombine.low %v7036_v25, %v7044_v4  ;;  %v7046_v14 = vcombine.high %v7020_v52, %v7028_v58  ;;  %v7062_v49 = vcombine.high %v7036_v25, %v7044_v4 }
0x189f   :  { %v7053_v48 = vrot.slane %v7045_v26, %v21047_v47  ;;  %v7069_v61 = vrot.slane %v7061_v2, %v21047_v47  ;;  %v7060_v60 = vrot.slane %v7046_v14, %v21047_v47  ;;  %v7076_v54 = vrot.slane %v7062_v49, %v21047_v47 }
0x18a1   :  { %v7077_v62 = vcombine.low %v7053_v48, %v7069_v61  ;;  %v7078_v27 = vcombine.high %v7053_v48, %v7069_v61  ;;  %v7079_v63 = vcombine.low %v7060_v60, %v7076_v54  ;;  %v7080_v59 = vcombine.high %v7060_v60, %v7076_v54 }
0x18a3   :  { %19421 = vmatpush3.msra.mxu0 %v7077_v62  ;;  %19426 = vmatpush3.msra.mxu1 %v7078_v27 }
0x18a4   :  { %19430 = vmatprep.subr.mxu0 %v20752_v33  ;;  %19435 = vmatprep.subr.mxu1 %v20752_v33 }
0x18ab   :  { %6873 = vrot.lane.b32.xlu1 %v22069_v8, %s24203_s9 }
0x18b9   :  { %v7774_v31 = vpop.xlane.xlu1 %7773 }
0x18ba   :  { %v7786_v18 = vsub.f32 %v22236_v7, %v7774_v31 }
0x18bc   :  { %v7799_v19 = vmul.f32 1.442695, %v7786_v18 }
0x18bd   :  { %v7780_v45 = vpop.xlane.xlu1 %7779 }
0x18be   :  { %20580 = vpow2.f32 %v7799_v19  ;;  %v7788_v55 = vsub.f32 %v22239_v10, %v7780_v45 }
0x18c0   :  { %v7803_v46 = vmul.f32 1.442695, %v7788_v55 }
0x18c1   :  { %v6862_v35 = vpop.permute.xlu1 %6861 }
0x18c2   :  { %20582 = vpow2.f32 %v7803_v46 }
0x18c8   :  { %v22302_v21 = vpop.eup %20580 }
0x18c9   :  { %v7820_v17 = vsel %vm4062_vm4, %v22302_v21, 0.0 }
0x18ca   :  { %7821 = vadd.xlane.f32.xlu0 %v7820_v17 }
0x18cc   :  { %v22306_v51 = vpop.eup %20582 }
0x18cd   :  { %v7826_v3 = vsel %vm4062_vm4, %v22306_v51, 0.0 }
0x18ce   :  { %7827 = vadd.xlane.f32.xlu0 %v7826_v3 }
0x18e4   :  { %6867 = vrot.lane.b32.xlu0 %v22069_v8, %s24200_s28 }
0x191a   :  { %v7807_v7 = vpop.xlane.xlu0 %7806 }
0x191b   :  { %20584 = vrcp.f32 %v7807_v7 }
0x191e   :  { %v7813_v10 = vpop.xlane.xlu0 %7812 }
0x191f   :  { %20586 = vrcp.f32 %v7813_v10  ;;  %v7810_v13 = vpop.xlane.xlu1 %7809 }
0x1920   :  { %20588 = vrcp.f32 %v7810_v13 }
0x1923   :  { %v7819_v40 = vpop.xlane.xlu1 %7818 }
0x1925   :  { %v20585_v41 = vpop.eup %20584 }
0x1926   :  { %v7837_v36 = vmul.f32 %v20585_v41, %v22254_v28 }
0x1927   :  { %v7816_v22 = vpop.xlane.xlu1 %7815 }
0x1928   :  { %19423 = vmatmul.mubr.msk.f32.vlgmr.msra.gmra.mrb[42].mxu0 %vm4062_vm4, %v7837_v36  ;;  %20590 = vrcp.f32 %v7816_v22 }
0x1929   :  { %v20587_v57 = vpop.eup %20586  ;;  %19431 = vmatpush3.msra.mxu0 %v7079_v63  ;;  %19432 = vmatprep.mubr.msk.f32.mxu0 %vm20751_vm2, %v20752_v33  ;;  %20592 = vrcp.f32 %v7819_v40 }
0x192a   :  { %v20589_v43 = vpop.eup %20588  ;;  %v7839_v20 = vmul.f32 %v20587_v57, %v22258_v39  ;;  %19440 = vmatprep.subr.mxu0 %v20752_v33 }
0x192b   :  { %v7838_v12 = vmul.f32 %v20589_v43, %v22262_v44  ;;  %v7825_v44 = vpop.xlane.xlu0 %7824  ;;  %v6874_v23 = vpop.permute.xlu1 %6873 }
0x192c   :  { %19433 = vmatmul.mubr.msk.f32.vlgmr.msra.gmra.mrb[44].mxu0 %vm4062_vm4, %v7839_v20  ;;  %v6961_v53 = vcombine.low %v6862_v35, %v6874_v23  ;;  %v6962_v50 = vcombine.high %v6862_v35, %v6874_v23 }
0x192d   :  { %19428 = vmatmul.mubr.msk.f32.vlgmr.msra.gmra.mrb[56].mxu1 %vm4062_vm4, %v7838_v12  ;;  %19442 = vmatprep.mubr.msk.f32.mxu0 %vm20751_vm2, %v20752_v33 }
0x192e   :  { %19436 = vmatpush3.msra.mxu1 %v7080_v59  ;;  %19437 = vmatprep.mubr.msk.f32.mxu1 %vm20751_vm2, %v20752_v33  ;;  %v6969_v58 = vrot.slane %v6961_v53, %v21041_v42 }
0x192f   :  { %19445 = vmatprep.subr.mxu1 %v20752_v33 }
0x1932   :  { %v20591_v28 = vpop.eup %20590 }
0x1933   :  { %v7840_v39 = vmul.f32 %v20591_v28, %v22276_v30  ;;  %v6976_v30 = vrot.slane %v6962_v50, %v21041_v42  ;;  %v20593_v19 = vpop.eup %20592 }
0x1934   :  { %v7841_v57 = vmul.f32 %v20593_v19, %v22268_v34 }
0x1935   :  { %19438 = vmatmul.mubr.msk.f32.vlgmr.msra.gmra.mrb[58].mxu1 %vm4062_vm4, %v7840_v39 }
0x1936   :  { %19447 = vmatprep.mubr.msk.f32.mxu1 %vm20751_vm2, %v20752_v33 }
0x1957   :  { %v7822_v56 = vpop.xlane.xlu0 %7821 }
0x1958   :  { %20594 = vrcp.f32 %v7822_v56 }
0x1959   :  { %20596 = vrcp.f32 %v7825_v44 }
0x195b   :  { %v7828_v24 = vpop.xlane.xlu0 %7827 }
0x195c   :  { %20598 = vrcp.f32 %v7828_v24 }
0x195f   :  { %v6868_v29 = vpop.permute.xlu0 %6867 }
0x1960   :  { %v6945_v37 = vcombine.low %v22069_v8, %v6868_v29  ;;  %v6946_v52 = vcombine.high %v22069_v8, %v6868_v29 }
0x1962   :  { %v6953_v25 = vrot.slane %v6945_v37, %v21041_v42  ;;  %v6960_v4 = vrot.slane %v6946_v52, %v21041_v42  ;;  %v20595_v3 = vpop.eup %20594 }
0x1963   :  { %v20597_v10 = vpop.eup %20596  ;;  %v7842_v43 = vmul.f32 %v20595_v3, %v22302_v21 }
0x1964   :  { %v6977_v1 = vcombine.low %v6953_v25, %v6969_v58  ;;  %v6978_v26 = vcombine.high %v6953_v25, %v6969_v58  ;;  %v6993_v2 = vcombine.low %v6960_v4, %v6976_v30  ;;  %v6994_v14 = vcombine.high %v6960_v4, %v6976_v30 }
0x1965   :  { %v7843_v28 = vmul.f32 %v20597_v10, %v22284_v11 }
0x1966   :  { %v6985_v49 = vrot.slane %v6977_v1, %v21047_v47  ;;  %v6992_v48 = vrot.slane %v6978_v26, %v21047_v47  ;;  %v7001_v8 = vrot.slane %v6993_v2, %v21047_v47  ;;  %v7008_v61 = vrot.slane %v6994_v14, %v21047_v47  ;;  %v20599_v22 = vpop.eup %20598 }
0x1967   :  { %v7844_v34 = vmul.f32 %v20599_v22, %v22306_v51 }
0x1968   :  { %v7081_v60 = vcombine.low %v6985_v49, %v6992_v48  ;;  %v18205_v54 = vcombine.high %v6985_v49, %v6992_v48  ;;  %v7097_v62 = vcombine.low %v7001_v8, %v7008_v61  ;;  %v18206_v27 = vcombine.high %v7001_v8, %v7008_v61 }
0x196a   :  { %v7088_v63 = vrot.slane %v7081_v60, %v21041_v42  ;;  %v7096_v59 = vrot.slane %v18205_v54, %v21041_v42  ;;  %v7104_v31 = vrot.slane %v7097_v62, %v21041_v42  ;;  %v7112_v18 = vrot.slane %v18206_v27, %v21041_v42 }
0x196c   :  { %v7113_v45 = vcombine.low %v7088_v63, %v7096_v59  ;;  %v7129_v55 = vcombine.low %v7104_v31, %v7112_v18  ;;  %v7114_v46 = vcombine.high %v7088_v63, %v7096_v59  ;;  %v7130_v17 = vcombine.high %v7104_v31, %v7112_v18 }
0x196e   :  { %v7121_v7 = vrot.slane %v7113_v45, %v21047_v47  ;;  %v7137_v35 = vrot.slane %v7129_v55, %v21047_v47  ;;  %v7128_v13 = vrot.slane %v7114_v46, %v21047_v47  ;;  %v7144_v40 = vrot.slane %v7130_v17, %v21047_v47 }
0x1970   :  { %v7145_v41 = vcombine.low %v7121_v7, %v7137_v35  ;;  %v7146_v36 = vcombine.high %v7121_v7, %v7137_v35  ;;  %v7147_v20 = vcombine.low %v7128_v13, %v7144_v40  ;;  %v7148_v12 = vcombine.high %v7128_v13, %v7144_v40 }
0x1972   :  { %19441 = vmatpush3.msra.mxu0 %v7145_v41  ;;  %19446 = vmatpush3.msra.mxu1 %v7146_v36 }
0x1973   :  { %19443 = vmatmul.mubr.msk.f32.vlgmr.msra.gmra.mrb[46].mxu0 %vm4062_vm4, %v7841_v57  ;;  %19448 = vmatmul.mubr.msk.f32.vlgmr.msra.gmra.mrb[60].mxu1 %vm4062_vm4, %v7842_v43 }
0x1974   :  { %19450 = vmatprep.subr.mxu0 %v20752_v33  ;;  %19455 = vmatprep.subr.mxu1 %v20752_v33 }
0x1975   :  { %19451 = vmatpush3.msra.mxu0 %v7147_v20  ;;  %19456 = vmatpush3.msra.mxu1 %v7148_v12 }
0x1976   :  { %19452 = vmatprep.mubr.msk.f32.mxu0 %vm20751_vm2, %v20752_v33  ;;  %19457 = vmatprep.mubr.msk.f32.mxu1 %vm20751_vm2, %v20752_v33 }
0x1977   :  { %19453 = vmatmul.mubr.msk.f32.vlgmr.msra.gmra.mrb[48].mxu0 %vm4062_vm4, %v7843_v28  ;;  %19458 = vmatmul.mubr.msk.f32.vlgmr.msra.gmra.mrb[62].mxu1 %vm4062_vm4, %v7844_v34 }
0x19fb   :  { %v7914_v21 = vpop.f32.mrb[42].mxu0 }
0x19fc   :  { %v19424_v39 = vpop.f32.mrb[43].mxu0 }
0x19ff   :  { %v8060_v44 = vpop.f32.mrb[44].mxu0 }
0x1a00   :  { %v7987_v56 = vpop.f32.mrb[56].mxu1  ;;  %v8429_v23 = vcombine.low %v7914_v21, %v8060_v44  ;;  %v8430_v24 = vcombine.high %v7914_v21, %v8060_v44  ;;  %v19434_v53 = vpop.f32.mrb[45].mxu0 }
0x1a01   :  { %v19429_v11 = vpop.f32.mrb[57].mxu1 }
0x1a02   :  { %v8437_v52 = vrot.slane %v8429_v23, %v21041_v42  ;;  %v8444_v58 = vrot.slane %v8430_v24, %v21041_v42 }
0x1a08   :  { %v8133_v50 = vpop.f32.mrb[58].mxu1 }
0x1a09   :  { %v8445_v51 = vcombine.low %v7987_v56, %v8133_v50  ;;  %v8446_v29 = vcombine.high %v7987_v56, %v8133_v50  ;;  %v19439_v37 = vpop.f32.mrb[59].mxu1 }
0x1a0a   :  { %v18235_v37 = vld [vmem:[%s24123_s21 + $0x20] sm:$0xff] }
0x1a0b   :  { %v8453_v30 = vrot.slane %v8445_v51, %v21041_v42  ;;  %v8460_v25 = vrot.slane %v8446_v29, %v21041_v42 }
0x1a0d   :  { %v8461_v4 = vcombine.low %v8437_v52, %v8453_v30  ;;  %v8462_v1 = vcombine.high %v8437_v52, %v8453_v30  ;;  %v8477_v26 = vcombine.low %v8444_v58, %v8460_v25  ;;  %v8478_v2 = vcombine.high %v8444_v58, %v8460_v25  ;;  %v18236_v52 = vld [vmem:[%s24123_s21 + $0x28] sm:$0xff] }
0x1a0f   :  { %v8469_v14 = vrot.slane %v8461_v4, %v21047_v47  ;;  %v8476_v49 = vrot.slane %v8462_v1, %v21047_v47  ;;  %v8485_v48 = vrot.slane %v8477_v26, %v21047_v47  ;;  %v8492_v8 = vrot.slane %v8478_v2, %v21047_v47 }
0x1a10   :  { %v20189_v1 = vpack.c.bf16 %v18236_v52, %v18235_v37 }
0x1a11   :  { %v8565_v61 = vcombine.low %v8469_v14, %v8476_v49  ;;  %v18231_v60 = vcombine.high %v8469_v14, %v8476_v49  ;;  %v8581_v54 = vcombine.low %v8485_v48, %v8492_v8  ;;  %v18232_v62 = vcombine.high %v8485_v48, %v8492_v8  ;;  %v18237_v48 = vld [vmem:[%s24123_s21 + $0x30] sm:$0xff]  ;;  %v18238_v8 = vld [vmem:[%s24123_s21 + $0x38] sm:$0xff]  ;;  %s24207_s21 = sld [smem:[#allocation14_spill]] }
0x1a12   :  { %20190 = vmatprep.subr.bf16.mxu0 %v20189_v1 }
0x1a13   :  { %v8572_v27 = vrot.slane %v8565_v61, %v21041_v42  ;;  %v8580_v63 = vrot.slane %v18231_v60, %v21041_v42  ;;  %v8588_v59 = vrot.slane %v8581_v54, %v21041_v42  ;;  %v8596_v31 = vrot.slane %v18232_v62, %v21041_v42  ;;  %20192 = vmatpush3.bf16.msra.mxu0 %v20189_v1 }
0x1a15   :  { %v8598_v18 = vcombine.high %v8572_v27, %v8580_v63  ;;  %v8614_v19 = vcombine.high %v8588_v59, %v8596_v31  ;;  %v8597_v45 = vcombine.low %v8572_v27, %v8580_v63  ;;  %v8613_v55 = vcombine.low %v8588_v59, %v8596_v31 }
0x1a16   :  { %v20193_v27 = vpack.c.bf16 %v18238_v8, %v18237_v48  ;;  %v18255_v48 = vld [vmem:[%s24128_s26 + $0x90] sm:$0xff] }
0x1a17   :  { %v8612_v46 = vrot.slane %v8598_v18, %v21047_v47  ;;  %v8628_v17 = vrot.slane %v8614_v19, %v21047_v47  ;;  %v22377_v3 = vrot.slane %v8597_v45, %v21047_v47  ;;  %v22380_v7 = vrot.slane %v8613_v55, %v21047_v47 }
0x1a18   :  { %20194 = vmatprep.subr.bf16.mxu0 %v20193_v27 }
0x1a19   :  { %v8631_v35 = vcombine.low %v8612_v46, %v8628_v17  ;;  %v8630_v10 = vcombine.high %v22377_v3, %v22380_v7  ;;  %v8632_v13 = vcombine.high %v8612_v46, %v8628_v17  ;;  %v8629_v40 = vcombine.low %v22377_v3, %v22380_v7  ;;  %20196 = vmatpush3.bf16.msra.mxu0 %v20193_v27 }
0x1a1b   :  { %8711 = vrot.lane.b32.xlu0 %v8631_v35, %s24201_s6  ;;  %8703 = vrot.lane.b32.xlu1 %v8630_v10, %s24204_s30 }
0x1a1f   :  { %8719 = vrot.lane.b32.xlu0 %v8632_v13, %s24205_s29 }
0x1a46   :  { %v8206_v41 = vpop.f32.mrb[46].mxu0  ;;  %v8279_v36 = vpop.f32.mrb[60].mxu1 }
0x1a47   :  { %v19444_v22 = vpop.f32.mrb[47].mxu0  ;;  %v19449_v57 = vpop.f32.mrb[61].mxu1 }
0x1a4a   :  { %v8352_v43 = vpop.f32.mrb[48].mxu0  ;;  %v8425_v20 = vpop.f32.mrb[62].mxu1 }
0x1a4b   :  { %v8497_v12 = vcombine.low %v8206_v41, %v8352_v43  ;;  %v8498_v28 = vcombine.high %v8206_v41, %v8352_v43  ;;  %v8513_v34 = vcombine.low %v8279_v36, %v8425_v20  ;;  %v8514_v21 = vcombine.high %v8279_v36, %v8425_v20  ;;  %v19454_v39 = vpop.f32.mrb[49].mxu0  ;;  %v19459_v44 = vpop.f32.mrb[63].mxu1 }
0x1a4d   :  { %v8505_v56 = vrot.slane %v8497_v12, %v21041_v42  ;;  %v8512_v23 = vrot.slane %v8498_v28, %v21041_v42  ;;  %v8521_v24 = vrot.slane %v8513_v34, %v21041_v42  ;;  %v8528_v53 = vrot.slane %v8514_v21, %v21041_v42 }
0x1a4f   :  { %v8529_v11 = vcombine.low %v8505_v56, %v8521_v24  ;;  %v8530_v50 = vcombine.high %v8505_v56, %v8521_v24  ;;  %v8545_v51 = vcombine.low %v8512_v23, %v8528_v53  ;;  %v8546_v29 = vcombine.high %v8512_v23, %v8528_v53 }
0x1a51   :  { %v8537_v58 = vrot.slane %v8529_v11, %v21047_v47  ;;  %v8544_v30 = vrot.slane %v8530_v50, %v21047_v47  ;;  %v8553_v25 = vrot.slane %v8545_v51, %v21047_v47  ;;  %v8560_v4 = vrot.slane %v8546_v29, %v21047_v47 }
0x1a53   :  { %v8633_v26 = vcombine.low %v8537_v58, %v8544_v30  ;;  %v18233_v2 = vcombine.high %v8537_v58, %v8544_v30  ;;  %v8649_v14 = vcombine.low %v8553_v25, %v8560_v4  ;;  %v18234_v49 = vcombine.high %v8553_v25, %v8560_v4  ;;  %v18245_v30 = vld [vmem:[%s24126_s24 + $0x20] sm:$0xff]  ;;  %v18246_v25 = vld [vmem:[%s24126_s24 + $0x28] sm:$0xff]  ;;  %v18247_v4 = vld [vmem:[%s24126_s24 + $0x30] sm:$0xff] }
0x1a54   :  { %v20197_v1 = vpack.c.bf16 %v18246_v25, %v18245_v30 }
0x1a55   :  { %v8640_v61 = vrot.slane %v8633_v26, %v21041_v42  ;;  %v8648_v60 = vrot.slane %v18233_v2, %v21041_v42  ;;  %v8656_v54 = vrot.slane %v8649_v14, %v21041_v42  ;;  %v8664_v62 = vrot.slane %v18234_v49, %v21041_v42  ;;  %v18248_v26 = vld [vmem:[%s24126_s24 + $0x38] sm:$0xff]  ;;  %v18253_v14 = vld [vmem:[%s24128_s26 + $0x80] sm:$0xff]  ;;  %v18254_v49 = vld [vmem:[%s24128_s26 + $0x88] sm:$0xff] }
0x1a56   :  { %v20201_v2 = vpack.c.bf16 %v18248_v26, %v18247_v4  ;;  %20198 = vmatprep.subr.bf16.mxu1 %v20197_v1  ;;  %v20205_v8 = vpack.c.bf16 %v18254_v49, %v18253_v14 }
0x1a57   :  { %v8665_v63 = vcombine.low %v8640_v61, %v8648_v60  ;;  %v8681_v59 = vcombine.low %v8656_v54, %v8664_v62  ;;  %v8666_v31 = vcombine.high %v8640_v61, %v8648_v60  ;;  %v8682_v18 = vcombine.high %v8656_v54, %v8664_v62  ;;  %20200 = vmatpush3.bf16.msra.mxu1 %v20197_v1  ;;  %v18256_v61 = vld [vmem:[%s24128_s26 + $0x98] sm:$0xff]  ;;  %v18257_v54 = vld [vmem:[%s24128_s26 + $0xa0] sm:$0xff]  ;;  %v18258_v62 = vld [vmem:[%s24128_s26 + $0xa8] sm:$0xff] }
0x1a58   :  { %20202 = vmatprep.subr.bf16.mxu1 %v20201_v2  ;;  %v20209_v60 = vpack.c.bf16 %v18256_v61, %v18255_v48  ;;  %20206 = vmatprep.subr.bf16.mxu0 %v20205_v8  ;;  %v20213_v27 = vpack.c.bf16 %v18258_v62, %v18257_v54  ;;  %v18277_v1 = vld [vmem:[%s24190_s0 + $0x1] ss:$0 sm:$0xff]  ;;  %s24211_s0 = sld [smem:[#allocation18_spill]] }
0x1a59   :  { %v8673_v19 = vrot.slane %v8665_v63, %v21047_v47  ;;  %v8689_v45 = vrot.slane %v8681_v59, %v21047_v47  ;;  %v8680_v55 = vrot.slane %v8666_v31, %v21047_v47  ;;  %v8696_v46 = vrot.slane %v8682_v18, %v21047_v47 }
0x1a5a   :  { %v9129_v49 = vmul.f32 %v18277_v1, %v20980_v0  ;;  %v9130_v62 = vmul.f32 %v18277_v1, %v20994_v9 }
0x1a5b   :  { %v8698_v17 = vcombine.high %v8673_v19, %v8689_v45  ;;  %v8699_v35 = vcombine.low %v8680_v55, %v8696_v46  ;;  %v8700_v10 = vcombine.high %v8680_v55, %v8696_v46  ;;  %v8697_v13 = vcombine.low %v8673_v19, %v8689_v45  ;;  %20204 = vmatpush3.bf16.msra.mxu1 %v20201_v2  ;;  %v18243_v46 = vld [vmem:[%s24124_s22 + $0x1] ss:$0 sm:$0xff] }
0x1a5d   :  { %8705 = vrot.lane.b32.xlu1 %v8698_v17, %s24204_s30 }
0x1a61   :  { %8713 = vrot.lane.b32.xlu1 %v8699_v35, %s24201_s6  ;;  %v18244_v35 = vld [vmem:[%s24125_s23 + $0x1] ss:$0 sm:$0xff] }
0x1a65   :  { %8721 = vrot.lane.b32.xlu1 %v8700_v10, %s24205_s29  ;;  %s24210_s29 = sld [smem:[#allocation16_spill]] }
0x1a8d   :  { %v8712_v41 = vpop.permute.xlu0 %8711  ;;  %v8704_v36 = vpop.permute.xlu1 %8703 }
0x1a8e   :  { %v8725_v22 = vsel %vm4062_vm4, %v8629_v40, %v8704_v36 }
0x1a8f   :  { %v8727_v43 = vsel %vm128_vm0, %v8725_v22, %v8712_v41 }
0x1a91   :  { %v8720_v57 = vpop.permute.xlu0 %8719 }
0x1a92   :  { %v8729_v20 = vsel %vm5643_vm5, %v8727_v43, %v8720_v57  ;;  %v18259_v43 = vld [vmem:[%s24128_s26 + $0xb0] sm:$0xff] }
0x1a93   :  { %19468 = vmatprep.mubr.msk.f32.mxu0 %vm97_vm1, %v8729_v20  ;;  %v18260_v20 = vld [vmem:[%s24128_s26 + $0xb8] sm:$0xff] }
0x1acf   :  { %v8706_v12 = vpop.permute.xlu1 %8705 }
0x1ad0   :  { %v8726_v34 = vsel %vm4062_vm4, %v8697_v13, %v8706_v12  ;;  %v20217_v12 = vpack.c.bf16 %v18260_v20, %v18259_v43 }
0x1ad3   :  { %v8714_v28 = vpop.permute.xlu1 %8713 }
0x1ad4   :  { %v8728_v21 = vsel %vm128_vm0, %v8726_v34, %v8714_v28  ;;  %v18261_v28 = vld [vmem:[%s24128_s26 + $0xc0] sm:$0xff]  ;;  %v18262_v34 = vld [vmem:[%s24128_s26 + $0xc8] sm:$0xff] }
0x1ad7   :  { %v8722_v39 = vpop.permute.xlu1 %8721 }
0x1ad8   :  { %v8730_v44 = vsel %vm5643_vm5, %v8728_v21, %v8722_v39  ;;  %v20221_v21 = vpack.c.bf16 %v18262_v34, %v18261_v28  ;;  %v18263_v39 = vld [vmem:[%s24128_s26 + $0xd0] sm:$0xff] }
0x1ad9   :  { %19469 = vmatmul.mubr.msk.f32.vlgmr.msra.gmra.mrb[50].mxu0 %vm97_vm1, %v8730_v44  ;;  %v18264_v44 = vld [vmem:[%s24128_s26 + $0xd8] sm:$0xff] }
0x1ada   :  { %20208 = vmatpush3.bf16.msra.mxu0 %v20205_v8 }
0x1adb   :  { %20210 = vmatprep.subr.bf16.mxu0 %v20209_v60 }
0x1ade   :  { %20212 = vmatpush3.bf16.msra.mxu0 %v20209_v60  ;;  %v18278_v60 = vld [vmem:[%s24191_s2 + $0x1] ss:$0 sm:$0xff] }
0x1adf   :  { %20214 = vmatprep.subr.bf16.mxu0 %v20213_v27  ;;  %v22535_v0 = vadd.f32 %v18278_v60, %v9130_v62 }
0x1ae2   :  { %20216 = vmatpush3.bf16.msra.mxu0 %v20213_v27 }
0x1ae3   :  { %20218 = vmatprep.subr.bf16.mxu0 %v20217_v12 }
0x1ae6   :  { %20220 = vmatpush3.bf16.msra.mxu0 %v20217_v12 }
0x1ae7   :  { %20222 = vmatprep.subr.bf16.mxu0 %v20221_v21 }
0x1aea   :  { %20224 = vmatpush3.bf16.msra.mxu0 %v20221_v21 }
0x1bac   :  { %v19470_v3 = vpop.f32.mrb[50].mxu0 }
0x1bad   :  { %v22432_v7 = vadd.f32 %v19470_v3, %v21997_v6  ;;  %v8808_v40 = vpop.f32.mrb[51].mxu0  ;;  %v20225_v3 = vpack.c.bf16 %v18264_v44, %v18263_v39  ;;  %v18279_v44 = vld [vmem:[%s24187_s4 + $0x20] sm:$0xff] }
0x1bae   :  { %v22435_v56 = vadd.f32 %v8808_v40, %v21999_v5  ;;  %v18265_v40 = vld [vmem:[%s24128_s26 + $0xe0] sm:$0xff] }
0x1baf   :  { %v8826_v23 = vsel %vm97_vm1, %v22432_v7, 0.0  ;;  %20226 = vmatprep.subr.bf16.mxu0 %v20225_v3 }
0x1bb0   :  { %8827 = vadd.xlane.f32.xlu1 %v8826_v23  ;;  %v8823_v24 = vsel %vm97_vm1, %v22435_v56, 0.0  ;;  %20228 = vmatpush3.bf16.msra.mxu0 %v20225_v3  ;;  %v18266_v23 = vld [vmem:[%s24128_s26 + $0xe8] sm:$0xff] }
0x1bb1   :  { %8824 = vadd.xlane.f32.xlu0 %v8823_v24  ;;  %v20229_v24 = vpack.c.bf16 %v18266_v23, %v18265_v40  ;;  %v18280_v3 = vld [vmem:[%s24187_s4 + $0x28] sm:$0xff]  ;;  %v18281_v23 = vld [vmem:[%s24187_s4 + $0x30] sm:$0xff] }
0x1bb2   :  { %v20237_v40 = vpack.c.bf16 %v18280_v3, %v18279_v44 }
0x1bb3   :  { %20230 = vmatprep.subr.bf16.mxu0 %v20229_v24 }
0x1bb4   :  { %20232 = vmatpush3.bf16.msra.mxu0 %v20229_v24  ;;  %20238 = vmatprep.subr.bf16.mxu1 %v20237_v40  ;;  %v18282_v24 = vld [vmem:[%s24187_s4 + $0x38] sm:$0xff]  ;;  %s24208_s4 = sld [smem:[#allocation17_spill]] }
0x1c3d   :  { %v8828_v53 = vpop.xlane.xlu1 %8827 }
0x1c3e   :  { %v8830_v11 = vmul.f32 0.03125, %v8828_v53  ;;  %v8825_v50 = vpop.xlane.xlu0 %8824  ;;  %v18267_v53 = vld [vmem:[%s24128_s26 + $0xf0] sm:$0xff] }
0x1c3f   :  { %v8829_v51 = vmul.f32 0.03125, %v8825_v50 }
0x1c40   :  { %v8832_v29 = vsub.f32 %v22432_v7, %v8830_v11  ;;  %v18268_v11 = vld [vmem:[%s24128_s26 + $0xf8] sm:$0xff] }
0x1c41   :  { %v8831_v6 = vsub.f32 %v22435_v56, %v8829_v51  ;;  %v20233_v50 = vpack.c.bf16 %v18268_v11, %v18267_v53  ;;  %v18285_v51 = vld [vmem:[%s24188_s3 + $0x10] sm:$0xff]  ;;  %v20241_v53 = vpack.c.bf16 %v18282_v24, %v18281_v23 }
0x1c42   :  { %v8834_v52 = vmul.f32 %v8832_v29, %v8832_v29  ;;  %v18291_v11 = vld [vmem:[%s24189_s8 + $0x10] sm:$0xff] }
0x1c43   :  { %v8833_v37 = vmul.f32 %v8831_v6, %v8831_v6  ;;  %20234 = vmatprep.subr.bf16.mxu0 %v20233_v50 }
0x1c44   :  { %v8838_v58 = vsel %vm97_vm1, %v8834_v52, 0.0  ;;  %20236 = vmatpush3.bf16.msra.mxu0 %v20233_v50  ;;  %v18292_v50 = vld [vmem:[%s24189_s8 + $0x18] sm:$0xff]  ;;  %s24212_s8 = sld [smem:[#allocation19_spill]] }
0x1c45   :  { %v8835_v5 = vsel %vm97_vm1, %v8833_v37, 0.0  ;;  %v18250_v37 = vld [vmem:[%s24127_s25 + $0x1] ss:$0 sm:$0xff] }
0x1c46   :  { %8836 = vadd.xlane.f32.xlu0 %v8835_v5 }
0x1c4a   :  { %8839 = vadd.xlane.f32.xlu0 %v8838_v58 }
0x1cd3   :  { %v8837_v63 = vpop.xlane.xlu0 %8836 }
0x1cd4   :  { %v8841_v59 = vmul.f32 0.03125, %v8837_v63  ;;  %v22530_v63 = vadd.f32 %v18278_v60, %v9129_v49 }
0x1cd6   :  { %v8843_v31 = vadd.f32 1e-05, %v8841_v59  ;;  %v9131_v59 = vmul.f32 %v18277_v1, %v21002_v15 }
0x1cd7   :  { %v8840_v18 = vpop.xlane.xlu0 %8839 }
0x1cd8   :  { %20600 = vrsqrt.f32 %v8843_v31  ;;  %v8842_v19 = vmul.f32 0.03125, %v8840_v18  ;;  %v9132_v31 = vmul.f32 %v18277_v1, %v20999_v16  ;;  %v22539_v18 = vadd.f32 %v18278_v60, %v9131_v59  ;;  %v18270_v16 = vld [vmem:[%s24129_s27 + $0x1] ss:$0 sm:$0xff] }
0x1cda   :  { %v8844_v45 = vadd.f32 1e-05, %v8842_v19  ;;  %v22545_v9 = vadd.f32 %v18278_v60, %v9132_v31 }
0x1cdc   :  { %20602 = vrsqrt.f32 %v8844_v45 }
0x1ce2   :  { %v20601_v55 = vpop.eup %20600 }
0x1ce3   :  { %v8847_v17 = vmul.f32 %v20601_v55, %v8831_v6 }
0x1ce5   :  { %v8855_v10 = vmul.f32 %v18243_v46, %v8847_v17 }
0x1ce6   :  { %v20603_v13 = vpop.eup %20602 }
0x1ce7   :  { %v8848_v41 = vmul.f32 %v20603_v13, %v8832_v29  ;;  %v8863_v36 = vadd.f32 %v18244_v35, %v8855_v10  ;;  %v18286_v29 = vld [vmem:[%s24188_s3 + $0x18] sm:$0xff]  ;;  %s24213_s3 = smov 8  }
0x1ce8   :  { %v20245_v6 = vpack.c.bf16 %v18286_v29, %v18285_v51  ;;  %v22602_v51 = vpack.c.bf16 %v18292_v50, %v18291_v11 }
0x1ce9   :  { %v8856_v22 = vmul.f32 %v18243_v46, %v8848_v41  ;;  %19479 = vmatprep.mubr.msk.f32.mxu1 %vm97_vm1, %v8863_v36 }
0x1cea   :  { %20246 = vmatprep.subr.bf16.mxu0 %v20245_v6 }
0x1ceb   :  { %v8864_v57 = vadd.f32 %v18244_v35, %v8856_v22 }
0x1ced   :  { %19480 = vmatmul.mubr.msk.f32.vlgmr.msra.gmra.mrb[64].mxu1 %vm97_vm1, %v8864_v57 }
0x1cee   :  { %20240 = vmatpush3.bf16.msra.mxu1 %v20237_v40 }
0x1cef   :  { %20242 = vmatprep.subr.bf16.mxu1 %v20241_v53 }
0x1cf2   :  { %20244 = vmatpush3.bf16.msra.mxu1 %v20241_v53 }
0x1cf3   :  { %20250 = vmatprep.subr.bf16.mxu1 %v22602_v51 }
0x1dc0   :  { %v19481_v5 = vpop.f32.mrb[64].mxu1 }
0x1dc1   :  { %v8956_v52 = vadd.f32 %v19481_v5, %v18250_v37  ;;  %v8950_v58 = vpop.f32.mrb[65].mxu1 }
0x1dc2   :  { %v8951_v30 = vadd.f32 %v18250_v37, %v8950_v58 }
0x1dc3   :  { %v8962_v25 = vmul.f32 0.70710677, %v8956_v52  ;;  %v8960_v61 = vmul.f32 0.5, %v8956_v52 }
0x1dc4   :  { %v8961_v4 = vmul.f32 0.70710677, %v8951_v30  ;;  %v8959_v48 = vmul.f32 0.5, %v8951_v30 }
0x1dc5   :  { %20604 = verf.f32 %v8962_v25 }
0x1dc6   :  { %20606 = verf.f32 %v8961_v4 }
0x1dcf   :  { %v20605_v26 = vpop.eup %20604 }
0x1dd0   :  { %v20607_v2 = vpop.eup %20606  ;;  %v8966_v14 = vadd.f32 1.0, %v20605_v26 }
0x1dd1   :  { %v8965_v8 = vadd.f32 1.0, %v20607_v2 }
0x1dd2   :  { %v8968_v27 = vmul.f32 %v8966_v14, %v8960_v61 }
0x1dd3   :  { %v8967_v54 = vmul.f32 %v8965_v8, %v8959_v48 }
0x1dd5   :  { %19514 = vmatprep.mubr.f32.mxu0 %v8967_v54 }
0x1dd6   :  { %19515 = vmatmul.mubr.f32.vlgmr.msra.gmra.mrb[52].mxu0 %v8968_v27 }
0x1dd7   :  { %20248 = vmatpush3.bf16.msra.mxu0 %v20245_v6  ;;  %19532 = vmatprep.mubr.msk.f32.mxu0 %vm128_vm0, %v22530_v63 }
0x1dd8   :  { %20261 = vmatprep.subr.bf16.mxu0 %v20750_v32 }
0x1dda   :  { %19533 = vmatmul.mubr.msk.f32.vlgmr.msra.gmra.mrb[54].mxu0 %vm128_vm0, %v22535_v0 }
0x1ddb   :  { %19535 = vmatprep.mubr.msk.f32.mxu0 %vm128_vm0, %v22539_v18 }
0x1dde   :  { %19536 = vmatmul.mubr.msk.f32.gmra.mrb[56].mxu0 %vm128_vm0, %v22545_v9 }
0x1ddf   :  { %19566 = vmatprep.mubr.msk.f32.mxu0 %vm20751_vm2, %v20752_v33 }
0x1ea9   :  { %v19516_v15 = vpop.f32.mrb[52].mxu0 }
0x1eaa   :  { %v9062_v19 = vadd.f32 %v19516_v15, %v22432_v7  ;;  %v9052_v45 = vpop.f32.mrb[53].mxu0 }
0x1eab   :  { %v9061_v55 = vadd.f32 %v9052_v45, %v22435_v56 }
0x1eac   :  { %v22556_v46 = vadd.f32 %v18270_v16, %v9062_v19 }
0x1ead   :  { %v22558_v17 = vadd.f32 %v18270_v16, %v9061_v55  ;;  %v19534_v35 = vpop.f32.mrb[54].mxu0 }
0x1eae   :  { %v9310_v10 = vpop.f32.mrb[55].mxu0  ;;  %v9080_v13 = vsel %vm97_vm1, %v22556_v46, 0.0  ;;  %v9739_v52 = vcombine.high %v19534_v35, %v20752_v33  ;;  %v9746_v1 = vrot.slane %v19534_v35, %v21041_v42 }
0x1eaf   :  { %9081 = vadd.xlane.f32.xlu1 %v9080_v13  ;;  %v9077_v41 = vsel %vm97_vm1, %v22558_v17, 0.0  ;;  %v9673_v30 = vcombine.high %v9310_v10, %v20752_v33  ;;  %v9680_v49 = vrot.slane %v9310_v10, %v21041_v42 }
0x1eb0   :  { %9078 = vadd.xlane.f32.xlu0 %v9077_v41  ;;  %v9753_v61 = vrot.slane %v9739_v52, %v21041_v42 }
0x1eb1   :  { %v22564_v36 = vpop.f32.mrb[56].mxu0  ;;  %v9687_v27 = vrot.slane %v9673_v30, %v21041_v42 }
0x1eb2   :  { %v22566_v7 = vpop.f32.mrb[57].mxu0 }
0x1f3c   :  { %v9082_v22 = vpop.xlane.xlu1 %9081 }
0x1f3d   :  { %v9084_v56 = vmul.f32 0.03125, %v9082_v22  ;;  %v9079_v57 = vpop.xlane.xlu0 %9078 }
0x1f3e   :  { %v9083_v43 = vmul.f32 0.03125, %v9079_v57 }
0x1f3f   :  { %v22569_v20 = vsub.f32 %v22556_v46, %v9084_v56 }
0x1f40   :  { %v22572_v12 = vsub.f32 %v22558_v17, %v9083_v43 }
0x1f41   :  { %v9088_v28 = vmul.f32 %v22569_v20, %v22569_v20 }
0x1f42   :  { %v9087_v34 = vmul.f32 %v22572_v12, %v22572_v12 }
0x1f43   :  { %v9092_v21 = vsel %vm97_vm1, %v9088_v28, 0.0 }
0x1f44   :  { %9093 = vadd.xlane.f32.xlu1 %v9092_v21  ;;  %v9089_v39 = vsel %vm97_vm1, %v9087_v34, 0.0 }
0x1f45   :  { %9090 = vadd.xlane.f32.xlu0 %v9089_v39 }
0x1f55   :  { %9663 = vrot.lane.b32.xlu1 %v19534_v35, %s24200_s28 }
0x1f5b   :  { %9661 = vrot.lane.b32.xlu0 %v9310_v10, %s24200_s28 }
0x1f5f   :  { %9667 = vrot.lane.b32.xlu0 %v22564_v36, %s24200_s28 }
0x1fd1   :  { %v9094_v29 = vpop.xlane.xlu1 %9093 }
0x1fd2   :  { %v9096_v6 = vmul.f32 0.03125, %v9094_v29  ;;  %v9091_v37 = vpop.xlane.xlu0 %9090 }
0x1fd3   :  { %v9095_v5 = vmul.f32 0.03125, %v9091_v37 }
0x1fd4   :  { %v9098_v58 = vadd.f32 1e-05, %v9096_v6 }
0x1fd5   :  { %v9097_v25 = vadd.f32 1e-05, %v9095_v5  ;;  %v9664_v4 = vpop.permute.xlu1 %9663 }
0x1fd6   :  { %20608 = vrsqrt.f32 %v9098_v58  ;;  %v9754_v26 = vcombine.high %v9664_v4, %v20752_v33  ;;  %v9761_v2 = vrot.slane %v9664_v4, %v21041_v42  ;;  %v9662_v14 = vpop.permute.xlu0 %9661  ;;  %v18273_v4 = vld [vmem:[%s24192_s1 + $0x1] ss:$0 sm:$0xff]  ;;  %s24209_s1 = sld [smem:[#allocation15_spill]] }
0x1fd7   :  { %20610 = vrsqrt.f32 %v9097_v25  ;;  %v9688_v48 = vcombine.high %v9662_v14, %v20752_v33  ;;  %v9695_v8 = vrot.slane %v9662_v14, %v21041_v42  ;;  %v18274_v14 = vld [vmem:[%s24206_s13 + $0x1] ss:$0 sm:$0xff] }
0x1fd8   :  { %v9768_v60 = vrot.slane %v9754_v26, %v21041_v42  ;;  %v9769_v54 = vcombine.low %v9746_v1, %v9761_v2  ;;  %v9770_v62 = vcombine.high %v9746_v1, %v9761_v2 }
0x1fd9   :  { %v9702_v59 = vrot.slane %v9688_v48, %v21041_v42  ;;  %v9703_v31 = vcombine.low %v9680_v49, %v9695_v8  ;;  %v9704_v15 = vcombine.high %v9680_v49, %v9695_v8 }
0x1fda   :  { %v9777_v16 = vrot.slane %v9769_v54, %v21047_v47  ;;  %v9784_v19 = vrot.slane %v9770_v62, %v21047_v47  ;;  %v9785_v45 = vcombine.low %v9753_v61, %v9768_v60  ;;  %v9786_v55 = vcombine.high %v9753_v61, %v9768_v60 }
0x1fdb   :  { %v9711_v35 = vrot.slane %v9703_v31, %v21047_v47  ;;  %v9718_v10 = vrot.slane %v9704_v15, %v21047_v47  ;;  %v9719_v13 = vcombine.low %v9687_v27, %v9702_v59  ;;  %v9720_v41 = vcombine.high %v9687_v27, %v9702_v59 }
0x1fdc   :  { %v9793_v22 = vrot.slane %v9785_v45, %v21047_v47  ;;  %v9800_v56 = vrot.slane %v9786_v55, %v21047_v47  ;;  %v9987_v57 = vcombine.low %v9777_v16, %v9784_v19  ;;  %v18303_v43 = vcombine.high %v9777_v16, %v9784_v19  ;;  %v9668_v55 = vpop.permute.xlu0 %9667 }
0x1fdd   :  { %v9727_v28 = vrot.slane %v9719_v13, %v21047_v47  ;;  %v9734_v34 = vrot.slane %v9720_v41, %v21047_v47  ;;  %v9937_v21 = vcombine.low %v9711_v35, %v9718_v10  ;;  %v18301_v39 = vcombine.high %v9711_v35, %v9718_v10 }
0x1fde   :  { %v9994_v44 = vrot.slane %v9987_v57, %v21041_v42  ;;  %v10002_v3 = vrot.slane %v18303_v43, %v21041_v42  ;;  %v10003_v40 = vcombine.low %v9793_v22, %v9800_v56  ;;  %v18304_v23 = vcombine.high %v9793_v22, %v9800_v56 }
0x1fdf   :  { %v9944_v24 = vrot.slane %v9937_v21, %v21041_v42  ;;  %v9952_v53 = vrot.slane %v18301_v39, %v21041_v42  ;;  %v9953_v11 = vcombine.low %v9727_v28, %v9734_v34  ;;  %v18302_v50 = vcombine.high %v9727_v28, %v9734_v34 }
0x1fe0   :  { %v20609_v29 = vpop.eup %20608  ;;  %v10010_v6 = vrot.slane %v10003_v40, %v21041_v42  ;;  %v10018_v37 = vrot.slane %v18304_v23, %v21041_v42  ;;  %v10019_v52 = vcombine.low %v9994_v44, %v10002_v3  ;;  %v9886_v35 = vcombine.high %v9668_v55, %v20752_v33 }
0x1fe1   :  { %v20611_v5 = vpop.eup %20610  ;;  %v9960_v58 = vrot.slane %v9953_v11, %v21041_v42  ;;  %v9968_v30 = vrot.slane %v18302_v50, %v21041_v42  ;;  %v9969_v25 = vcombine.low %v9944_v24, %v9952_v53  ;;  %v9102_v49 = vmul.f32 %v20609_v29, %v22569_v20 }
0x1fe2   :  { %v10027_v1 = vcombine.low %v10010_v6, %v10018_v37  ;;  %v9101_v26 = vmul.f32 %v20611_v5, %v22572_v12  ;;  %v10026_v8 = vrot.slane %v10019_v52, %v21047_v47  ;;  %v9871_v10 = vcombine.high %v22564_v36, %v20752_v33 }
0x1fe3   :  { %v9977_v2 = vcombine.low %v9960_v58, %v9968_v30  ;;  %v9976_v61 = vrot.slane %v9969_v25, %v21047_v47  ;;  %v9110_v62 = vmul.f32 %v18273_v4, %v9102_v49  ;;  %v9900_v13 = vrot.slane %v9886_v35, %v21041_v42 }
0x1fe4   :  { %v9109_v48 = vmul.f32 %v18273_v4, %v9101_v26  ;;  %v10034_v54 = vrot.slane %v10027_v1, %v21047_v47  ;;  %v9885_v41 = vrot.slane %v9871_v10, %v21041_v42  ;;  %v9893_v22 = vrot.slane %v9668_v55, %v21041_v42 }
0x1fe5   :  { %v9984_v60 = vrot.slane %v9977_v2, %v21047_v47  ;;  %v9118_v31 = vadd.f32 %v18274_v14, %v9110_v62  ;;  %v9878_v56 = vrot.slane %v22564_v36, %v21041_v42  ;;  %v9805_v29 = vcombine.high %v22566_v7, %v20752_v33 }
0x1fe6   :  { %v9117_v27 = vadd.f32 %v18274_v14, %v9109_v48  ;;  %v10035_v12 = vcombine.low %v10026_v8, %v10034_v54  ;;  %v10036_v19 = vcombine.high %v10026_v8, %v10034_v54  ;;  %v9917_v57 = vcombine.low %v9885_v41, %v9900_v13 }
0x1fe7   :  { %v9985_v59 = vcombine.low %v9976_v61, %v9984_v60  ;;  %v9986_v15 = vcombine.high %v9976_v61, %v9984_v60  ;;  %v9918_v43 = vcombine.high %v9885_v41, %v9900_v13  ;;  %v9901_v28 = vcombine.low %v9878_v56, %v9893_v22 }
0x1fe8   :  { %19525 = vmatprep.mubr.msk.f32.mxu1 %vm97_vm1, %v9117_v27  ;;  %v9902_v34 = vcombine.high %v9878_v56, %v9893_v22  ;;  %v9925_v21 = vrot.slane %v9917_v57, %v21047_v47  ;;  %v9812_v14 = vrot.slane %v22566_v7, %v21041_v42  ;;  %v9819_v49 = vrot.slane %v9805_v29, %v21041_v42 }
0x1fe9   :  { %v20254_v16 = vpack.c.bf16 %v10035_v12, %v9985_v59  ;;  %19526 = vmatmul.mubr.msk.f32.vlgmr.msra.gmra.mrb[66].mxu1 %vm97_vm1, %v9118_v31  ;;  %v22650_v20 = vpack.c.bf16 %v10036_v19, %v9986_v15  ;;  %v9932_v39 = vrot.slane %v9918_v43, %v21047_v47  ;;  %v9909_v44 = vrot.slane %v9901_v28, %v21047_v47 }
0x1fea   :  { %20252 = vmatpush3.bf16.msra.mxu1 %v22602_v51  ;;  %19542 = vmatprep.mubr.msk.f32.mxu1 %vm128_vm0, %v22530_v63  ;;  %v9916_v3 = vrot.slane %v9902_v34, %v21047_v47 }
0x1feb   :  { %20253 = vmatprep.subr.bf16.mxu1 %v20750_v32  ;;  %v10103_v40 = vcombine.low %v9925_v21, %v9932_v39  ;;  %v18308_v23 = vcombine.high %v9925_v21, %v9932_v39 }
0x1fec   :  { %v10087_v24 = vcombine.low %v9909_v44, %v9916_v3  ;;  %v18307_v53 = vcombine.high %v9909_v44, %v9916_v3 }
0x1fed   :  { %19543 = vmatmul.mubr.msk.f32.vlgmr.msra.gmra.mrb[68].mxu1 %vm128_vm0, %v22535_v0  ;;  %v10110_v11 = vrot.slane %v10103_v40, %v21041_v42  ;;  %v10118_v36 = vrot.slane %v18308_v23, %v21041_v42 }
0x1fee   :  { %19545 = vmatprep.mubr.msk.f32.mxu1 %vm128_vm0, %v22539_v18  ;;  %v22694_v6 = vrot.slane %v10087_v24, %v21041_v42  ;;  %v22697_v37 = vrot.slane %v18307_v53, %v21041_v42 }
0x1fef   :  { %v10127_v25 = vcombine.low %v10110_v11, %v10118_v36 }
0x1ff0   :  { %v10119_v48 = vcombine.low %v22694_v6, %v22697_v37 }
0x1ff1   :  { %19546 = vmatmul.mubr.msk.f32.gmra.mrb[70].mxu1 %vm128_vm0, %v22545_v9  ;;  %v22716_v31 = vrot.slane %v10127_v25, %v21047_v47 }
0x1ff2   :  { %19552 = vmatprep.mubr.msk.f32.mxu1 %vm20751_vm2, %v20752_v33 }
0x1ff3   :  { %20256 = vmatpush3.bf16.xpose.msk.msra.mxu1 %vm21169_vm3, %v20254_v16 }
0x1ff4   :  { %20257 = vmatprep.subr.bf16.mxu1 %v20750_v32 }
0x20bc   :  { %v19527_v63 = vpop.f32.mrb[66].mxu1 }
0x20bd   :  { %v9220_v51 = vpop.f32.mrb[67].mxu1  ;;  %v9491_v8 = vcombine.high %v19527_v63, %v20752_v33  ;;  %v9498_v59 = vrot.slane %v19527_v63, %v21041_v42 }
0x20be   :  { %9419 = vrot.lane.b32.xlu1 %v9220_v51, %s24200_s28  ;;  %v9425_v50 = vcombine.high %v9220_v51, %v20752_v33  ;;  %v9432_v52 = vrot.slane %v9220_v51, %v21041_v42 }
0x20bf   :  { %v9505_v55 = vrot.slane %v9491_v8, %v21041_v42 }
0x20c0   :  { %v22665_v45 = vpop.f32.mrb[68].mxu1  ;;  %v9439_v4 = vrot.slane %v9425_v50, %v21041_v42 }
0x20c1   :  { %v22667_v0 = vpop.f32.mrb[69].mxu1 }
0x20c2   :  { %9665 = vrot.lane.b32.xlu1 %v22566_v7, %s24200_s28 }
0x20c4   :  { %v22671_v18 = vpop.f32.mrb[70].mxu1 }
0x20c5   :  { %v22673_v9 = vpop.f32.mrb[71].mxu1 }
0x20c6   :  { %9421 = vrot.lane.b32.xlu1 %v19527_v63, %s24200_s28 }
0x2130   :  { %v9420_v5 = vpop.permute.xlu1 %9419 }
0x2131   :  { %v9440_v58 = vcombine.high %v9420_v5, %v20752_v33  ;;  %v9447_v30 = vrot.slane %v9420_v5, %v21041_v42 }
0x2133   :  { %v9454_v1 = vrot.slane %v9440_v58, %v21041_v42  ;;  %v9455_v26 = vcombine.low %v9432_v52, %v9447_v30  ;;  %v9456_v2 = vcombine.high %v9432_v52, %v9447_v30 }
0x2134   :  { %v9666_v61 = vpop.permute.xlu1 %9665 }
0x2135   :  { %v9463_v60 = vrot.slane %v9455_v26, %v21047_v47  ;;  %v9470_v54 = vrot.slane %v9456_v2, %v21047_v47  ;;  %v9471_v62 = vcombine.low %v9439_v4, %v9454_v1  ;;  %v9472_v27 = vcombine.high %v9439_v4, %v9454_v1 }
0x2136   :  { %v9820_v12 = vcombine.high %v9666_v61, %v20752_v33  ;;  %v9827_v7 = vrot.slane %v9666_v61, %v21041_v42 }
0x2137   :  { %v9479_v15 = vrot.slane %v9471_v62, %v21047_v47  ;;  %v9486_v16 = vrot.slane %v9472_v27, %v21047_v47  ;;  %v9557_v19 = vcombine.low %v9463_v60, %v9470_v54  ;;  %v18297_v51 = vcombine.high %v9463_v60, %v9470_v54 }
0x2138   :  { %v9834_v35 = vrot.slane %v9820_v12, %v21041_v42  ;;  %v9835_v10 = vcombine.low %v9812_v14, %v9827_v7  ;;  %v9836_v13 = vcombine.high %v9812_v14, %v9827_v7  ;;  %v9422_v63 = vpop.permute.xlu1 %9421  ;;  %v10126_v12 = vrot.slane %v10119_v48, %v21047_v47 }
0x2139   :  { %v9564_v41 = vrot.slane %v9557_v19, %v21041_v42  ;;  %v9572_v22 = vrot.slane %v18297_v51, %v21041_v42  ;;  %v9573_v56 = vcombine.low %v9479_v15, %v9486_v16  ;;  %v18298_v57 = vcombine.high %v9479_v15, %v9486_v16 }
0x213a   :  { %v9843_v43 = vrot.slane %v9835_v10, %v21047_v47  ;;  %v9850_v28 = vrot.slane %v9836_v13, %v21047_v47  ;;  %v9851_v34 = vcombine.low %v9819_v49, %v9834_v35  ;;  %v9852_v21 = vcombine.high %v9819_v49, %v9834_v35 }
0x213b   :  { %v9580_v39 = vrot.slane %v9573_v56, %v21041_v42  ;;  %v9588_v44 = vrot.slane %v18298_v57, %v21041_v42  ;;  %v9589_v3 = vcombine.low %v9564_v41, %v9572_v22  ;;  %v9506_v40 = vcombine.high %v9422_v63, %v20752_v33 }
0x213c   :  { %v9859_v23 = vrot.slane %v9851_v34, %v21047_v47  ;;  %v9866_v24 = vrot.slane %v9852_v21, %v21047_v47  ;;  %v10037_v53 = vcombine.low %v9843_v43, %v9850_v28  ;;  %v18305_v11 = vcombine.high %v9843_v43, %v9850_v28 }
0x213d   :  { %v9596_v36 = vrot.slane %v9589_v3, %v21047_v47  ;;  %v9597_v50 = vcombine.low %v9580_v39, %v9588_v44  ;;  %v9513_v29 = vrot.slane %v9422_v63, %v21041_v42  ;;  %v9520_v6 = vrot.slane %v9506_v40, %v21041_v42 }
0x213e   :  { %v10044_v37 = vrot.slane %v10037_v53, %v21041_v42  ;;  %v10052_v5 = vrot.slane %v18305_v11, %v21041_v42  ;;  %v10053_v52 = vcombine.low %v9859_v23, %v9866_v24  ;;  %v18306_v58 = vcombine.high %v9859_v23, %v9866_v24 }
0x213f   :  { %v9604_v30 = vrot.slane %v9597_v50, %v21047_v47  ;;  %v9521_v25 = vcombine.low %v9498_v59, %v9513_v29  ;;  %v9522_v4 = vcombine.high %v9498_v59, %v9513_v29  ;;  %v9537_v1 = vcombine.low %v9505_v55, %v9520_v6 }
0x2140   :  { %v10060_v26 = vrot.slane %v10053_v52, %v21041_v42  ;;  %v10068_v2 = vrot.slane %v18306_v58, %v21041_v42  ;;  %v10069_v14 = vcombine.low %v10044_v37, %v10052_v5  ;;  %v9538_v49 = vcombine.high %v9505_v55, %v9520_v6 }
0x2141   :  { %v9529_v8 = vrot.slane %v9521_v25, %v21047_v47  ;;  %v9536_v61 = vrot.slane %v9522_v4, %v21047_v47  ;;  %v9545_v60 = vrot.slane %v9537_v1, %v21047_v47  ;;  %v9605_v54 = vcombine.low %v9596_v36, %v9604_v30 }
0x2142   :  { %v10077_v62 = vcombine.low %v10060_v26, %v10068_v2  ;;  %v9552_v27 = vrot.slane %v9538_v49, %v21047_v47  ;;  %v10076_v59 = vrot.slane %v10069_v14, %v21047_v47  ;;  %v10135_v35 = vcombine.low %v10126_v12, %v22716_v31 }
0x2143   :  { %v9607_v7 = vcombine.low %v9529_v8, %v9536_v61  ;;  %v18299_v15 = vcombine.high %v9529_v8, %v9536_v61  ;;  %19553 = vmatmul.mubr.msk.f32.vlgmr.msra.gmra.mrb[72].mxu1 %vm128_vm0, %v9605_v54  ;;  %v10136_v10 = vcombine.high %v10126_v12, %v22716_v31  ;;  %v9606_v28 = vcombine.high %v9596_v36, %v9604_v30 }
0x2144   :  { %v9623_v16 = vcombine.low %v9545_v60, %v9552_v27  ;;  %v18300_v19 = vcombine.high %v9545_v60, %v9552_v27  ;;  %20260 = vmatpush3.bf16.xpose.msk.msra.mxu1 %vm21169_vm3, %v22650_v20  ;;  %19559 = vmatprep.mubr.msk.f32.mxu1 %vm20751_vm2, %v20752_v33  ;;  %v10084_v51 = vrot.slane %v10077_v62, %v21047_v47 }
0x2145   :  { %v9614_v55 = vrot.slane %v9607_v7, %v21041_v42  ;;  %v9622_v48 = vrot.slane %v18299_v15, %v21041_v42  ;;  %20265 = vmatprep.subr.bf16.mxu1 %v20750_v32  ;;  %v10153_v52 = vcombine.high %v22667_v0, %v20752_v33  ;;  %v10160_v4 = vrot.slane %v22667_v0, %v21041_v42 }
0x2146   :  { %v9630_v13 = vrot.slane %v9623_v16, %v21041_v42  ;;  %v9638_v63 = vrot.slane %v18300_v19, %v21041_v42  ;;  %v10085_v20 = vcombine.low %v10076_v59, %v10084_v51  ;;  %v10086_v41 = vcombine.high %v10076_v59, %v10084_v51 }
0x2147   :  { %v9639_v43 = vcombine.low %v9614_v55, %v9622_v48  ;;  %v10167_v2 = vrot.slane %v10153_v52, %v21041_v42  ;;  %v10219_v48 = vcombine.high %v22665_v45, %v20752_v33 }
0x2148   :  { %v9647_v22 = vcombine.low %v9630_v13, %v9638_v63  ;;  %v20262_v56 = vpack.c.bf16 %v10135_v35, %v10085_v20  ;;  %v20266_v57 = vpack.c.bf16 %v10136_v10, %v10086_v41  ;;  %v10226_v41 = vrot.slane %v22665_v45, %v21041_v42 }
0x2149   :  { %v9646_v31 = vrot.slane %v9639_v43, %v21047_v47 }
0x214a   :  { %20264 = vmatpush3.bf16.xpose.msk.msra.mxu0 %vm21169_vm3, %v20262_v56  ;;  %v9654_v34 = vrot.slane %v9647_v22, %v21047_v47 }
0x214b   :  { %19560 = vmatmul.mubr.msk.f32.vlgmr.msra.gmra.mrb[74].mxu1 %vm128_vm0, %v9606_v28  ;;  %20269 = vmatprep.subr.bf16.mxu0 %v20750_v32 }
0x214c   :  { %20268 = vmatpush3.bf16.xpose.msk.msra.mxu1 %vm21169_vm3, %v20266_v57  ;;  %19573 = vmatprep.mubr.msk.f32.mxu1 %vm20751_vm2, %v20752_v33  ;;  %v9655_v21 = vcombine.low %v9646_v31, %v9654_v34  ;;  %v9656_v39 = vcombine.high %v9646_v31, %v9654_v34 }
0x214d   :  { %20275 = vmatprep.subr.bf16.mxu1 %v20750_v32 }
0x2151   :  { %19567 = vmatmul.mubr.msk.f32.vlgmr.msra.gmra.mrb[58].mxu0 %vm128_vm0, %v9655_v21  ;;  %v10233_v21 = vrot.slane %v10219_v48, %v21041_v42  ;;  %v10351_v48 = vcombine.high %v22671_v18, %v20752_v33 }
0x2152   :  { %19580 = vmatprep.mubr.msk.f32.mxu0 %vm20751_vm2, %v20752_v33 }
0x2153   :  { %19574 = vmatmul.mubr.msk.f32.vlgmr.msra.gmra.mrb[76].mxu1 %vm128_vm0, %v9656_v39 }
0x2154   :  { %19594 = vmatprep.mubr.msk.f32.mxu1 %vm20751_vm2, %v20752_v33 }
0x2216   :  { %v10692_v38 = vpop.f32.mrb[72].mxu1 }
0x2217   :  { %v19554_v44 = vpop.f32.mrb[73].mxu1  ;;  %v10933_v3 = vsel %vm128_vm0, %v10692_v38, -inf }
0x2218   :  { %10934 = vmax.xlane.f32.xlu0 %v10933_v3 }
0x221e   :  { %v10771_v40 = vpop.f32.mrb[74].mxu1 }
0x221f   :  { %v19561_v23 = vpop.f32.mrb[75].mxu1  ;;  %v10936_v24 = vsel %vm128_vm0, %v10771_v40, -inf }
0x2220   :  { %10937 = vmax.xlane.f32.xlu1 %v10936_v24 }
0x2224   :  { %v10850_v53 = vpop.f32.mrb[58].mxu0 }
0x2225   :  { %v19568_v11 = vpop.f32.mrb[59].mxu0  ;;  %v10939_v36 = vsel %vm128_vm0, %v10850_v53, -inf }
0x2226   :  { %v10929_v50 = vpop.f32.mrb[76].mxu1  ;;  %10940 = vmax.xlane.f32.xlu0 %v10939_v36 }
0x2227   :  { %v19575_v29 = vpop.f32.mrb[77].mxu1  ;;  %v10942_v6 = vsel %vm128_vm0, %v10929_v50, -inf }
0x222a   :  { %10943 = vmax.xlane.f32.xlu0 %v10942_v6 }
0x2231   :  { %10141 = vrot.lane.b32.xlu1 %v22667_v0, %s24200_s28 }
0x2240   :  { %10143 = vrot.lane.b32.xlu0 %v22665_v45, %s24200_s28 }
0x22a5   :  { %v10935_v58 = vpop.xlane.xlu0 %10934 }
0x22a6   :  { %v10945_v14 = vsub.f32 %v10692_v38, %v10935_v58 }
0x22a8   :  { %v10949_v59 = vmul.f32 1.442695, %v10945_v14 }
0x22ad   :  { %v10938_v37 = vpop.xlane.xlu1 %10937 }
0x22ae   :  { %v10946_v5 = vsub.f32 %v10771_v40, %v10938_v37 }
0x22b0   :  { %v10951_v30 = vmul.f32 1.442695, %v10946_v5 }
0x22b1   :  { %v10142_v25 = vpop.permute.xlu1 %10141 }
0x22b2   :  { %20612 = vpow2.f32 %v10951_v30  ;;  %v10168_v1 = vcombine.high %v10142_v25, %v20752_v33  ;;  %v10175_v26 = vrot.slane %v10142_v25, %v21041_v42 }
0x22b3   :  { %v10941_v49 = vpop.xlane.xlu0 %10940 }
0x22b4   :  { %v10182_v8 = vrot.slane %v10168_v1, %v21041_v42  ;;  %v10183_v61 = vcombine.low %v10160_v4, %v10175_v26  ;;  %v10184_v60 = vcombine.high %v10160_v4, %v10175_v26  ;;  %v10947_v54 = vsub.f32 %v10850_v53, %v10941_v49 }
0x22b6   :  { %v10191_v62 = vrot.slane %v10183_v61, %v21047_v47  ;;  %v10198_v27 = vrot.slane %v10184_v60, %v21047_v47  ;;  %v10199_v12 = vcombine.low %v10167_v2, %v10182_v8  ;;  %v10200_v0 = vcombine.high %v10167_v2, %v10182_v8 }
0x22b7   :  { %v10953_v7 = vmul.f32 1.442695, %v10947_v54  ;;  %v10944_v15 = vpop.xlane.xlu0 %10943 }
0x22b8   :  { %v10207_v16 = vrot.slane %v10199_v12, %v21047_v47  ;;  %v10214_v19 = vrot.slane %v10200_v0, %v21047_v47  ;;  %v10417_v51 = vcombine.low %v10191_v62, %v10198_v27  ;;  %v18309_v55 = vcombine.high %v10191_v62, %v10198_v27 }
0x22b9   :  { %20614 = vpow2.f32 %v10953_v7  ;;  %v10948_v35 = vsub.f32 %v10929_v50, %v10944_v15 }
0x22ba   :  { %v10424_v10 = vrot.slane %v10417_v51, %v21041_v42  ;;  %v10432_v13 = vrot.slane %v18309_v55, %v21041_v42  ;;  %v10433_v63 = vcombine.low %v10207_v16, %v10214_v19  ;;  %v18310_v20 = vcombine.high %v10207_v16, %v10214_v19 }
0x22bb   :  { %20616 = vpow2.f32 %v10949_v59  ;;  %v10955_v22 = vmul.f32 1.442695, %v10948_v35  ;;  %v10144_v56 = vpop.permute.xlu0 %10143 }
0x22bc   :  { %v22802_v57 = vpop.eup %20612  ;;  %v10440_v43 = vrot.slane %v10433_v63, %v21041_v42  ;;  %v10448_v28 = vrot.slane %v18310_v20, %v21041_v42  ;;  %v10234_v34 = vcombine.high %v10144_v56, %v20752_v33  ;;  %v10241_v31 = vrot.slane %v10144_v56, %v21041_v42 }
0x22bd   :  { %20618 = vpow2.f32 %v10955_v22  ;;  %v10960_v39 = vsel %vm128_vm0, %v22802_v57, 0.0  ;;  %v10449_v45 = vcombine.low %v10424_v10, %v10432_v13  ;;  %v10285_v10 = vcombine.high %v22673_v9, %v20752_v33 }
0x22be   :  { %v10248_v38 = vrot.slane %v10234_v34, %v21041_v42  ;;  %v10249_v44 = vcombine.low %v10226_v41, %v10241_v31  ;;  %v10250_v3 = vcombine.high %v10226_v41, %v10241_v31  ;;  %10961 = vadd.xlane.f32.xlu1 %v10960_v39  ;;  %v10457_v40 = vcombine.low %v10440_v43, %v10448_v28 }
0x22bf   :  { %v10456_v36 = vrot.slane %v10449_v45, %v21047_v47  ;;  %v10358_v13 = vrot.slane %v22671_v18, %v21041_v42  ;;  %v10365_v20 = vrot.slane %v10351_v48, %v21041_v42  ;;  %v10292_v41 = vrot.slane %v22673_v9, %v21041_v42 }
0x22c0   :  { %v10257_v23 = vrot.slane %v10249_v44, %v21047_v47  ;;  %v10264_v24 = vrot.slane %v10250_v3, %v21047_v47  ;;  %v10265_v53 = vcombine.low %v10233_v21, %v10248_v38  ;;  %v10266_v11 = vcombine.high %v10233_v21, %v10248_v38 }
0x22c1   :  { %v10464_v50 = vrot.slane %v10457_v40, %v21047_v47  ;;  %v10299_v28 = vrot.slane %v10285_v10, %v21041_v42 }
0x22c2   :  { %v10273_v29 = vrot.slane %v10265_v53, %v21047_v47  ;;  %v10280_v6 = vrot.slane %v10266_v11, %v21047_v47  ;;  %v10467_v37 = vcombine.low %v10257_v23, %v10264_v24  ;;  %v18311_v5 = vcombine.high %v10257_v23, %v10264_v24 }
0x22c3   :  { %v22818_v52 = vpop.eup %20614  ;;  %v10466_v58 = vcombine.high %v10456_v36, %v10464_v50  ;;  %v10465_v0 = vcombine.low %v10456_v36, %v10464_v50 }
0x22c4   :  { %v10474_v30 = vrot.slane %v10467_v37, %v21041_v42  ;;  %v10482_v25 = vrot.slane %v18311_v5, %v21041_v42  ;;  %v10483_v4 = vcombine.low %v10273_v29, %v10280_v6  ;;  %v18312_v1 = vcombine.high %v10273_v29, %v10280_v6 }
0x22c5   :  { %v22822_v26 = vpop.eup %20616  ;;  %v10963_v2 = vsel %vm128_vm0, %v22818_v52, 0.0 }
0x22c6   :  { %v10490_v14 = vrot.slane %v10483_v4, %v21041_v42  ;;  %v10498_v49 = vrot.slane %v18312_v1, %v21041_v42  ;;  %10964 = vadd.xlane.f32.xlu0 %v10963_v2  ;;  %v10499_v8 = vcombine.low %v10474_v30, %v10482_v25  ;;  %v10957_v62 = vsel %vm128_vm0, %v22822_v26, 0.0 }
0x22c7   :  { %v22828_v61 = vpop.eup %20618 }
0x22c8   :  { %v10966_v60 = vsel %vm128_vm0, %v22828_v61, 0.0  ;;  %v10507_v54 = vcombine.low %v10490_v14, %v10498_v49  ;;  %v10506_v27 = vrot.slane %v10499_v8, %v21047_v47 }
0x22c9   :  { %10967 = vadd.xlane.f32.xlu1 %v10966_v60 }
0x22ca   :  { %10958 = vadd.xlane.f32.xlu0 %v10957_v62  ;;  %v10514_v12 = vrot.slane %v10507_v54, %v21047_v47 }
0x22cc   :  { %v10515_v59 = vcombine.low %v10506_v27, %v10514_v12  ;;  %v10516_v7 = vcombine.high %v10506_v27, %v10514_v12 }
0x22ce   :  { %v20270_v15 = vpack.c.bf16 %v10515_v59, %v10465_v0  ;;  %v22836_v16 = vpack.c.bf16 %v10516_v7, %v10466_v58 }
0x22d0   :  { %20271 = vmatpush3.bf16.msra.mxu0 %v20270_v15 }
0x22d1   :  { %20272 = vmatprep.subr.bf16.mxu0 %v20750_v32 }
0x22da   :  { %10147 = vrot.lane.b32.xlu1 %v22671_v18, %s24200_s28 }
0x22e0   :  { %10145 = vrot.lane.b32.xlu0 %v22673_v9, %s24200_s28 }
0x234b   :  { %v10962_v19 = vpop.xlane.xlu1 %10961 }
0x2353   :  { %v10965_v51 = vpop.xlane.xlu0 %10964 }
0x2356   :  { %v10968_v55 = vpop.xlane.xlu1 %10967 }
0x2357   :  { %v10959_v35 = vpop.xlane.xlu0 %10958 }
0x2358   :  { %20620 = vrcp.f32 %v10959_v35 }
0x2359   :  { %20622 = vrcp.f32 %v10962_v19 }
0x235a   :  { %v10148_v63 = vpop.permute.xlu1 %10147  ;;  %20624 = vrcp.f32 %v10965_v51 }
0x235b   :  { %v10366_v22 = vcombine.high %v10148_v63, %v20752_v33  ;;  %v10373_v56 = vrot.slane %v10148_v63, %v21041_v42  ;;  %v10146_v43 = vpop.permute.xlu0 %10145  ;;  %20626 = vrcp.f32 %v10968_v55 }
0x235c   :  { %v10300_v34 = vcombine.high %v10146_v43, %v20752_v33  ;;  %v10307_v31 = vrot.slane %v10146_v43, %v21041_v42 }
0x235d   :  { %v10380_v18 = vrot.slane %v10366_v22, %v21041_v42  ;;  %v10381_v21 = vcombine.low %v10358_v13, %v10373_v56  ;;  %v10382_v39 = vcombine.high %v10358_v13, %v10373_v56 }
0x235e   :  { %v10314_v9 = vrot.slane %v10300_v34, %v21041_v42  ;;  %v10315_v45 = vcombine.low %v10292_v41, %v10307_v31  ;;  %v10316_v38 = vcombine.high %v10292_v41, %v10307_v31 }
0x235f   :  { %v10389_v44 = vrot.slane %v10381_v21, %v21047_v47  ;;  %v10396_v3 = vrot.slane %v10382_v39, %v21047_v47  ;;  %v10397_v40 = vcombine.low %v10365_v20, %v10380_v18  ;;  %v10398_v23 = vcombine.high %v10365_v20, %v10380_v18 }
0x2360   :  { %v10323_v24 = vrot.slane %v10315_v45, %v21047_v47  ;;  %v10330_v53 = vrot.slane %v10316_v38, %v21047_v47  ;;  %v10331_v11 = vcombine.low %v10299_v28, %v10314_v9  ;;  %v10332_v36 = vcombine.high %v10299_v28, %v10314_v9 }
0x2361   :  { %v10405_v50 = vrot.slane %v10397_v40, %v21047_v47  ;;  %v10412_v29 = vrot.slane %v10398_v23, %v21047_v47  ;;  %v10567_v6 = vcombine.low %v10389_v44, %v10396_v3  ;;  %v18315_v37 = vcombine.high %v10389_v44, %v10396_v3 }
0x2362   :  { %v20621_v5 = vpop.eup %20620  ;;  %v10339_v58 = vrot.slane %v10331_v11, %v21047_v47  ;;  %v10346_v30 = vrot.slane %v10332_v36, %v21047_v47  ;;  %v10517_v25 = vcombine.low %v10323_v24, %v10330_v53  ;;  %v18313_v4 = vcombine.high %v10323_v24, %v10330_v53 }
0x2363   :  { %v10574_v1 = vrot.slane %v10567_v6, %v21041_v42  ;;  %v10582_v2 = vrot.slane %v18315_v37, %v21041_v42  ;;  %v10583_v14 = vcombine.low %v10405_v50, %v10412_v29  ;;  %v18316_v49 = vcombine.high %v10405_v50, %v10412_v29  ;;  %v20623_v7 = vpop.eup %20622  ;;  %v18337_v37 = vld [vmem:[%s24207_s21 + $0x20] sm:$0xff] }
0x2364   :  { %v10524_v8 = vrot.slane %v10517_v25, %v21041_v42  ;;  %v10532_v60 = vrot.slane %v18313_v4, %v21041_v42  ;;  %v10533_v54 = vcombine.low %v10339_v58, %v10346_v30  ;;  %v18314_v62 = vcombine.high %v10339_v58, %v10346_v30  ;;  %v20625_v55 = vpop.eup %20624  ;;  %v18339_v4 = vld [vmem:[%s24207_s21 + $0x30] sm:$0xff] }
0x2365   :  { %v10590_v27 = vrot.slane %v10583_v14, %v21041_v42  ;;  %v10598_v12 = vrot.slane %v18316_v49, %v21041_v42  ;;  %v10973_v0 = vmul.f32 %v20621_v5, %v22822_v26  ;;  %v10599_v59 = vcombine.low %v10574_v1, %v10582_v2  ;;  %v20627_v35 = vpop.eup %20626  ;;  %v18338_v5 = vld [vmem:[%s24207_s21 + $0x28] sm:$0xff]  ;;  %v18340_v1 = vld [vmem:[%s24207_s21 + $0x38] sm:$0xff] }
0x2366   :  { %v10540_v15 = vrot.slane %v10533_v54, %v21041_v42  ;;  %v10548_v19 = vrot.slane %v18314_v62, %v21041_v42  ;;  %v10549_v51 = vcombine.low %v10524_v8, %v10532_v60  ;;  %v10974_v26 = vmul.f32 %v20623_v7, %v22802_v57 }
0x2367   :  { %19581 = vmatmul.mubr.msk.f32.vlgmr.msra.gmra.mrb[60].mxu0 %vm128_vm0, %v10973_v0  ;;  %v10607_v48 = vcombine.low %v10590_v27, %v10598_v12  ;;  %v10606_v13 = vrot.slane %v10599_v59, %v21047_v47  ;;  %v10976_v34 = vmul.f32 %v20627_v35, %v22828_v61  ;;  %v20281_v25 = vpack.c.bf16 %v18338_v5, %v18337_v37 }
0x2368   :  { %20274 = vmatpush3.bf16.msra.mxu0 %v22836_v16  ;;  %19587 = vmatprep.mubr.msk.f32.mxu0 %vm20751_vm2, %v20752_v33  ;;  %v10557_v10 = vcombine.low %v10540_v15, %v10548_v19  ;;  %v10556_v20 = vrot.slane %v10549_v51, %v21047_v47  ;;  %v20285_v19 = vpack.c.bf16 %v18340_v1, %v18339_v4 }
0x2369   :  { %20278 = vmatprep.subr.bf16.mxu0 %v20750_v32  ;;  %v10614_v63 = vrot.slane %v10607_v48, %v21047_v47  ;;  %v10975_v32 = vmul.f32 %v20625_v55, %v22818_v52 }
0x236a   :  { %v10564_v41 = vrot.slane %v10557_v10, %v21047_v47 }
0x236b   :  { %19588 = vmatmul.mubr.msk.f32.vlgmr.msra.gmra.mrb[62].mxu0 %vm128_vm0, %v10974_v26  ;;  %v10615_v22 = vcombine.low %v10606_v13, %v10614_v63  ;;  %v10616_v16 = vcombine.high %v10606_v13, %v10614_v63 }
0x236c   :  { %v10565_v56 = vcombine.low %v10556_v20, %v10564_v41  ;;  %v10566_v43 = vcombine.high %v10556_v20, %v10564_v41  ;;  %19601 = vmatprep.mubr.msk.f32.mxu0 %vm20751_vm2, %v20752_v33 }
0x236e   :  { %v20276_v57 = vpack.c.bf16 %v10615_v22, %v10565_v56  ;;  %v20279_v28 = vpack.c.bf16 %v10616_v16, %v10566_v43 }
0x2370   :  { %20277 = vmatpush3.bf16.msra.mxu1 %v20276_v57  ;;  %20280 = vmatpush3.bf16.msra.mxu0 %v20279_v28 }
0x2371   :  { %20282 = vmatprep.subr.bf16.mxu1 %v20281_v25 }
0x2373   :  { %19595 = vmatmul.mubr.msk.f32.vlgmr.msra.gmra.mrb[78].mxu1 %vm128_vm0, %v10975_v32  ;;  %19602 = vmatmul.mubr.msk.f32.vlgmr.msra.gmra.mrb[64].mxu0 %vm128_vm0, %v10976_v34 }
0x2374   :  { %20284 = vmatpush3.bf16.msra.mxu1 %v20281_v25 }
0x2375   :  { %20286 = vmatprep.subr.bf16.mxu1 %v20285_v19 }
0x2378   :  { %20288 = vmatpush3.bf16.msra.mxu1 %v20285_v19 }
0x243a   :  { %v11046_v31 = vpop.f32.mrb[60].mxu0 }
0x243b   :  { %v19582_v18 = vpop.f32.mrb[61].mxu0  ;;  %v11269_v21 = vcombine.high %v11046_v31, %v20752_v33  ;;  %v11276_v9 = vrot.slane %v11046_v31, %v21041_v42 }
0x243d   :  { %v11283_v52 = vrot.slane %v11269_v21, %v21041_v42 }
0x243e   :  { %v11119_v39 = vpop.f32.mrb[62].mxu0 }
0x243f   :  { %v11284_v45 = vcombine.high %v11119_v39, %v20752_v33  ;;  %v11291_v38 = vrot.slane %v11119_v39, %v21041_v42  ;;  %v19589_v44 = vpop.f32.mrb[63].mxu0 }
0x2441   :  { %v11298_v61 = vrot.slane %v11284_v45, %v21041_v42  ;;  %v11299_v3 = vcombine.low %v11276_v9, %v11291_v38  ;;  %v11300_v40 = vcombine.high %v11276_v9, %v11291_v38 }
0x2443   :  { %v11307_v23 = vrot.slane %v11299_v3, %v21047_v47  ;;  %v11314_v24 = vrot.slane %v11300_v40, %v21047_v47  ;;  %v11315_v53 = vcombine.low %v11283_v52, %v11298_v61  ;;  %v11316_v11 = vcombine.high %v11283_v52, %v11298_v61 }
0x2445   :  { %v11323_v36 = vrot.slane %v11315_v53, %v21047_v47  ;;  %v11330_v50 = vrot.slane %v11316_v11, %v21047_v47  ;;  %v11401_v29 = vcombine.low %v11307_v23, %v11314_v24  ;;  %v18333_v6 = vcombine.high %v11307_v23, %v11314_v24 }
0x2446   :  { %v11192_v58 = vpop.f32.mrb[78].mxu1  ;;  %v11265_v30 = vpop.f32.mrb[64].mxu0 }
0x2447   :  { %v11408_v2 = vrot.slane %v11401_v29, %v21041_v42  ;;  %v11416_v14 = vrot.slane %v18333_v6, %v21041_v42  ;;  %v11417_v49 = vcombine.low %v11323_v36, %v11330_v50  ;;  %v18334_v8 = vcombine.high %v11323_v36, %v11330_v50  ;;  %v19596_v60 = vpop.f32.mrb[79].mxu1  ;;  %v19603_v54 = vpop.f32.mrb[65].mxu0 }
0x2448   :  { %v11335_v62 = vcombine.high %v11192_v58, %v20752_v33  ;;  %v11342_v27 = vrot.slane %v11192_v58, %v21041_v42  ;;  %v11350_v12 = vcombine.high %v11265_v30, %v20752_v33  ;;  %v11357_v0 = vrot.slane %v11265_v30, %v21041_v42  ;;  %v18349_v60 = vld [vmem:[%s24208_s4 + $0x30] sm:$0xff] }
0x2449   :  { %v11424_v59 = vrot.slane %v11417_v49, %v21041_v42  ;;  %v11432_v7 = vrot.slane %v18334_v8, %v21041_v42  ;;  %v11433_v15 = vcombine.low %v11408_v2, %v11416_v14  ;;  %v18347_v49 = vld [vmem:[%s24208_s4 + $0x20] sm:$0xff]  ;;  %v18348_v8 = vld [vmem:[%s24208_s4 + $0x28] sm:$0xff] }
0x244a   :  { %v11349_v51 = vrot.slane %v11335_v62, %v21041_v42  ;;  %v11364_v55 = vrot.slane %v11350_v12, %v21041_v42  ;;  %v11365_v48 = vcombine.low %v11342_v27, %v11357_v0  ;;  %v11366_v35 = vcombine.high %v11342_v27, %v11357_v0  ;;  %v18350_v62 = vld [vmem:[%s24208_s4 + $0x38] sm:$0xff]  ;;  %v18355_v12 = vld [vmem:[%s24116_s14 + $0x80] sm:$0xff]  ;;  %v18356_v0 = vld [vmem:[%s24116_s14 + $0x88] sm:$0xff]  ;;  %s24215_s4 = sld [smem:[#allocation20_spill]] }
0x244b   :  { %v11441_v10 = vcombine.low %v11424_v59, %v11432_v7  ;;  %v11440_v41 = vrot.slane %v11433_v15, %v21047_v47  ;;  %v20289_v54 = vpack.c.bf16 %v18348_v8, %v18347_v49  ;;  %v20293_v27 = vpack.c.bf16 %v18350_v62, %v18349_v60  ;;  %v18357_v59 = vld [vmem:[%s24116_s14 + $0x90] sm:$0xff]  ;;  %v18358_v15 = vld [vmem:[%s24116_s14 + $0x98] sm:$0xff] }
0x244c   :  { %v11373_v26 = vrot.slane %v11365_v48, %v21047_v47  ;;  %v11380_v13 = vrot.slane %v11366_v35, %v21047_v47  ;;  %v11381_v63 = vcombine.low %v11349_v51, %v11364_v55  ;;  %v11382_v20 = vcombine.high %v11349_v51, %v11364_v55  ;;  %v18359_v51 = vld [vmem:[%s24116_s14 + $0xa0] sm:$0xff]  ;;  %v18360_v55 = vld [vmem:[%s24116_s14 + $0xa8] sm:$0xff] }
0x244d   :  { %v11448_v22 = vrot.slane %v11441_v10, %v21047_v47  ;;  %20290 = vmatprep.subr.bf16.mxu0 %v20289_v54  ;;  %v20297_v7 = vpack.c.bf16 %v18356_v0, %v18355_v12  ;;  %v20301_v19 = vpack.c.bf16 %v18358_v15, %v18357_v59  ;;  %v20305_v48 = vpack.c.bf16 %v18360_v55, %v18359_v51 }
0x244e   :  { %v11389_v16 = vrot.slane %v11381_v63, %v21047_v47  ;;  %v11396_v56 = vrot.slane %v11382_v20, %v21047_v47  ;;  %v11451_v43 = vcombine.low %v11373_v26, %v11380_v13  ;;  %v18335_v57 = vcombine.high %v11373_v26, %v11380_v13  ;;  %20292 = vmatpush3.bf16.msra.mxu0 %v20289_v54  ;;  %v18372_v54 = vld [vmem:[%s24212_s8 + $0x1] ss:$0 sm:$0xff] }
0x244f   :  { %v11450_v28 = vcombine.high %v11440_v41, %v11448_v22  ;;  %v11449_v32 = vcombine.low %v11440_v41, %v11448_v22  ;;  %20294 = vmatprep.subr.bf16.mxu0 %v20293_v27  ;;  %20298 = vmatprep.subr.bf16.mxu1 %v20297_v7  ;;  %v18345_v22 = vld [vmem:[%s24209_s1 + $0x1] ss:$0 sm:$0xff] }
0x2450   :  { %v11458_v34 = vrot.slane %v11451_v43, %v21041_v42  ;;  %v11466_v31 = vrot.slane %v18335_v57, %v21041_v42  ;;  %v11467_v18 = vcombine.low %v11389_v16, %v11396_v56  ;;  %v18336_v21 = vcombine.high %v11389_v16, %v11396_v56  ;;  %v18346_v56 = vld [vmem:[%s24210_s29 + $0x1] ss:$0 sm:$0xff] }
0x2451   :  { %11503 = vrot.lane.b32.xlu1 %v11450_v28, %s24201_s6 }
0x2452   :  { %v11474_v39 = vrot.slane %v11467_v18, %v21041_v42  ;;  %v11482_v9 = vrot.slane %v18336_v21, %v21041_v42  ;;  %v11483_v45 = vcombine.low %v11458_v34, %v11466_v31  ;;  %20296 = vmatpush3.bf16.msra.mxu0 %v20293_v27  ;;  %v18361_v18 = vld [vmem:[%s24116_s14 + $0xb0] sm:$0xff]  ;;  %v18362_v21 = vld [vmem:[%s24116_s14 + $0xb8] sm:$0xff] }
0x2454   :  { %v11491_v38 = vcombine.low %v11474_v39, %v11482_v9  ;;  %v11490_v44 = vrot.slane %v11483_v45, %v21047_v47  ;;  %v20309_v39 = vpack.c.bf16 %v18362_v21, %v18361_v18  ;;  %v18363_v9 = vld [vmem:[%s24116_s14 + $0xc0] sm:$0xff]  ;;  %v18364_v45 = vld [vmem:[%s24116_s14 + $0xc8] sm:$0xff] }
0x2456   :  { %v11498_v52 = vrot.slane %v11491_v38, %v21047_v47  ;;  %v20313_v38 = vpack.c.bf16 %v18364_v45, %v18363_v9  ;;  %v18375_v45 = vld [vmem:[%s24118_s16 + $0x2] ss:$0 sm:$0xff] }
0x2458   :  { %v11500_v61 = vcombine.high %v11490_v44, %v11498_v52  ;;  %v11499_v3 = vcombine.low %v11490_v44, %v11498_v52  ;;  %v18365_v44 = vld [vmem:[%s24116_s14 + $0xd0] sm:$0xff]  ;;  %v18366_v52 = vld [vmem:[%s24116_s14 + $0xd8] sm:$0xff] }
0x245a   :  { %11505 = vrot.lane.b32.xlu1 %v11500_v61, %s24201_s6  ;;  %v20317_v61 = vpack.c.bf16 %v18366_v52, %v18365_v44 }
0x24c3   :  { %v11504_v40 = vpop.permute.xlu1 %11503 }
0x24c4   :  { %v11509_v23 = vsel %vm128_vm0, %v11449_v32, %v11504_v40  ;;  %v18368_v40 = vld [vmem:[%s24116_s14 + $0xe8] sm:$0xff] }
0x24c5   :  { %19612 = vmatprep.mubr.msk.f32.mxu1 %vm97_vm1, %v11509_v23 }
0x24cc   :  { %v11506_v24 = vpop.permute.xlu1 %11505 }
0x24cd   :  { %v11510_v53 = vsel %vm128_vm0, %v11499_v3, %v11506_v24  ;;  %v18367_v3 = vld [vmem:[%s24116_s14 + $0xe0] sm:$0xff]  ;;  %v18369_v24 = vld [vmem:[%s24116_s14 + $0xf0] sm:$0xff] }
0x24ce   :  { %19613 = vmatmul.mubr.msk.f32.vlgmr.msra.gmra.mrb[80].mxu1 %vm97_vm1, %v11510_v53  ;;  %v20321_v23 = vpack.c.bf16 %v18368_v40, %v18367_v3  ;;  %v18370_v53 = vld [vmem:[%s24116_s14 + $0xf8] sm:$0xff] }
0x24cf   :  { %20300 = vmatpush3.bf16.msra.mxu1 %v20297_v7 }
0x24d0   :  { %20302 = vmatprep.subr.bf16.mxu1 %v20301_v19 }
0x24d3   :  { %20304 = vmatpush3.bf16.msra.mxu1 %v20301_v19 }
0x24d4   :  { %20306 = vmatprep.subr.bf16.mxu1 %v20305_v48 }
0x24d7   :  { %20308 = vmatpush3.bf16.msra.mxu1 %v20305_v48 }
0x24d8   :  { %20310 = vmatprep.subr.bf16.mxu1 %v20309_v39 }
0x24db   :  { %20312 = vmatpush3.bf16.msra.mxu1 %v20309_v39 }
0x24dc   :  { %20314 = vmatprep.subr.bf16.mxu1 %v20313_v38 }
0x24df   :  { %20316 = vmatpush3.bf16.msra.mxu1 %v20313_v38 }
0x24e0   :  { %20318 = vmatprep.subr.bf16.mxu1 %v20317_v61 }
0x24e3   :  { %20320 = vmatpush3.bf16.msra.mxu1 %v20317_v61  ;;  %v18376_v61 = vld [vmem:[%s24119_s17 + $0x2] ss:$0 sm:$0xff] }
0x24e4   :  { %20322 = vmatprep.subr.bf16.mxu1 %v20321_v23 }
0x24e7   :  { %20324 = vmatpush3.bf16.msra.mxu1 %v20321_v23  ;;  %v18385_v23 = vld [vmem:[%s24121_s19 + $0x50] sm:$0xff] }
0x25a1   :  { %v19614_v11 = vpop.f32.mrb[80].mxu1 }
0x25a2   :  { %v22944_v36 = vadd.f32 %v19614_v11, %v22556_v46  ;;  %v11588_v50 = vpop.f32.mrb[81].mxu1  ;;  %v20325_v11 = vpack.c.bf16 %v18370_v53, %v18369_v24  ;;  %v18386_v24 = vld [vmem:[%s24121_s19 + $0x58] sm:$0xff] }
0x25a3   :  { %v22947_v29 = vadd.f32 %v11588_v50, %v22558_v17  ;;  %v18352_v50 = vld [vmem:[%s24211_s0 + $0x1] ss:$0 sm:$0xff] }
0x25a4   :  { %v11606_v6 = vsel %vm97_vm1, %v22944_v36, 0.0  ;;  %20326 = vmatprep.subr.bf16.mxu1 %v20325_v11 }
0x25a5   :  { %11607 = vadd.xlane.f32.xlu1 %v11606_v6  ;;  %v11603_v37 = vsel %vm97_vm1, %v22947_v29, 0.0  ;;  %20328 = vmatpush3.bf16.msra.mxu1 %v20325_v11 }
0x25a6   :  { %11604 = vadd.xlane.f32.xlu0 %v11603_v37  ;;  %19704 = vmatprep.subr.mxu1 %v20752_v33 }
0x2632   :  { %v11608_v5 = vpop.xlane.xlu1 %11607 }
0x2633   :  { %v11610_v58 = vmul.f32 0.03125, %v11608_v5  ;;  %v11605_v30 = vpop.xlane.xlu0 %11604 }
0x2634   :  { %v11609_v25 = vmul.f32 0.03125, %v11605_v30 }
0x2635   :  { %v11612_v4 = vsub.f32 %v22944_v36, %v11610_v58 }
0x2636   :  { %v11611_v46 = vsub.f32 %v22947_v29, %v11609_v25 }
0x2637   :  { %v11614_v2 = vmul.f32 %v11612_v4, %v11612_v4 }
0x2638   :  { %v11613_v1 = vmul.f32 %v11611_v46, %v11611_v46 }
0x2639   :  { %v11618_v14 = vsel %vm97_vm1, %v11614_v2, 0.0 }
0x263a   :  { %v11615_v17 = vsel %vm97_vm1, %v11613_v1, 0.0 }
0x263b   :  { %11616 = vadd.xlane.f32.xlu0 %v11615_v17 }
0x263f   :  { %11619 = vadd.xlane.f32.xlu0 %v11618_v14 }
0x26c8   :  { %v11617_v35 = vpop.xlane.xlu0 %11616 }
0x26c9   :  { %v11621_v10 = vmul.f32 0.03125, %v11617_v35 }
0x26cb   :  { %v11623_v26 = vadd.f32 1e-05, %v11621_v10 }
0x26cc   :  { %v11620_v13 = vpop.xlane.xlu0 %11619 }
0x26cd   :  { %20628 = vrsqrt.f32 %v11623_v26  ;;  %v11622_v63 = vmul.f32 0.03125, %v11620_v13 }
0x26cf   :  { %v11624_v20 = vadd.f32 1e-05, %v11622_v63  ;;  %v18377_v63 = vld [vmem:[%s24120_s18 + $0x40] sm:$0xff] }
0x26d1   :  { %20630 = vrsqrt.f32 %v11624_v20  ;;  %v18378_v20 = vld [vmem:[%s24120_s18 + $0x48] sm:$0xff] }
0x26d7   :  { %v20629_v41 = vpop.eup %20628 }
0x26d8   :  { %v11627_v16 = vmul.f32 %v20629_v41, %v11611_v46  ;;  %v18379_v41 = vld [vmem:[%s24120_s18 + $0x50] sm:$0xff] }
0x26da   :  { %v11635_v43 = vmul.f32 %v18345_v22, %v11627_v16  ;;  %v18380_v16 = vld [vmem:[%s24120_s18 + $0x58] sm:$0xff] }
0x26db   :  { %v20631_v57 = vpop.eup %20630 }
0x26dc   :  { %v11628_v28 = vmul.f32 %v20631_v57, %v11612_v4  ;;  %v11643_v32 = vadd.f32 %v18346_v56, %v11635_v43  ;;  %v18383_v43 = vld [vmem:[%s24121_s19 + $0x40] sm:$0xff]  ;;  %v18384_v57 = vld [vmem:[%s24121_s19 + $0x48] sm:$0xff] }
0x26de   :  { %v11636_v34 = vmul.f32 %v18345_v22, %v11628_v28  ;;  %19623 = vmatprep.mubr.msk.f32.mxu0 %vm97_vm1, %v11643_v32  ;;  %v20329_v22 = vpack.c.bf16 %v18378_v20, %v18377_v63  ;;  %v20337_v28 = vpack.c.bf16 %v18384_v57, %v18383_v43 }
0x26e0   :  { %v11644_v31 = vadd.f32 %v18346_v56, %v11636_v34  ;;  %v20333_v56 = vpack.c.bf16 %v18380_v16, %v18379_v41  ;;  %20330 = vmatprep.subr.bf16.mxu0 %v20329_v22 }
0x26e2   :  { %19624 = vmatmul.mubr.msk.f32.vlgmr.msra.gmra.mrb[66].mxu0 %vm97_vm1, %v11644_v31 }
0x26e3   :  { %20332 = vmatpush3.bf16.msra.mxu0 %v20329_v22 }
0x26e4   :  { %20334 = vmatprep.subr.bf16.mxu0 %v20333_v56 }
0x26e7   :  { %20336 = vmatpush3.bf16.msra.mxu0 %v20333_v56 }
0x26e8   :  { %20338 = vmatprep.subr.bf16.mxu0 %v20337_v28 }
0x27b5   :  { %v19625_v6 = vpop.f32.mrb[66].mxu0 }
0x27b6   :  { %v11736_v37 = vadd.f32 %v19625_v6, %v18352_v50  ;;  %v11730_v5 = vpop.f32.mrb[67].mxu0  ;;  %v18389_v6 = vld [vmem:[%s24122_s20 + $0x40] sm:$0xff] }
0x27b7   :  { %v11731_v58 = vadd.f32 %v18352_v50, %v11730_v5  ;;  %v20341_v50 = vpack.c.bf16 %v18386_v24, %v18385_v23 }
0x27b8   :  { %v11742_v30 = vmul.f32 0.70710677, %v11736_v37  ;;  %v11740_v14 = vmul.f32 0.5, %v11736_v37  ;;  %v18390_v37 = vld [vmem:[%s24122_s20 + $0x48] sm:$0xff] }
0x27b9   :  { %v11741_v25 = vmul.f32 0.70710677, %v11731_v58  ;;  %v11739_v17 = vmul.f32 0.5, %v11731_v58  ;;  %v20345_v5 = vpack.c.bf16 %v18390_v37, %v18389_v6  ;;  %v18391_v58 = vld [vmem:[%s24122_s20 + $0x50] sm:$0xff] }
0x27ba   :  { %20632 = verf.f32 %v11742_v30  ;;  %v18392_v30 = vld [vmem:[%s24122_s20 + $0x58] sm:$0xff] }
0x27bb   :  { %20634 = verf.f32 %v11741_v25  ;;  %v20349_v25 = vpack.c.bf16 %v18392_v30, %v18391_v58 }
0x27c4   :  { %v20633_v4 = vpop.eup %20632 }
0x27c5   :  { %v20635_v46 = vpop.eup %20634  ;;  %v11746_v1 = vadd.f32 1.0, %v20633_v4 }
0x27c6   :  { %v11745_v2 = vadd.f32 1.0, %v20635_v46 }
0x27c7   :  { %v11748_v8 = vmul.f32 %v11746_v1, %v11740_v14 }
0x27c8   :  { %v11747_v49 = vmul.f32 %v11745_v2, %v11739_v17 }
0x27ca   :  { %19658 = vmatprep.mubr.f32.mxu1 %v11747_v49 }
0x27cb   :  { %19659 = vmatmul.mubr.f32.vlgmr.msra.gmra.mrb[82].mxu1 %v11748_v8 }
0x27cc   :  { %19706 = vmatprep.mubr.msk.f32.mxu1 %vm20751_vm2, %v20752_v33 }
0x289e   :  { %v19660_v60 = vpop.f32.mrb[82].mxu1 }
0x289f   :  { %v11842_v62 = vadd.f32 %v19660_v60, %v22944_v36  ;;  %v11832_v27 = vpop.f32.mrb[83].mxu1 }
0x28a0   :  { %v11841_v12 = vadd.f32 %v11832_v27, %v22947_v29 }
0x28a1   :  { %v23036_v0 = vadd.f32 %v18372_v54, %v11842_v62 }
0x28a2   :  { %v23038_v59 = vadd.f32 %v18372_v54, %v11841_v12 }
0x28a3   :  { %v11860_v7 = vsel %vm97_vm1, %v23036_v0, 0.0 }
0x28a4   :  { %11861 = vadd.xlane.f32.xlu1 %v11860_v7  ;;  %v11857_v15 = vsel %vm97_vm1, %v23038_v59, 0.0 }
0x28a5   :  { %11858 = vadd.xlane.f32.xlu0 %v11857_v15 }
0x2931   :  { %v11862_v19 = vpop.xlane.xlu1 %11861 }
0x2932   :  { %v11864_v51 = vmul.f32 0.03125, %v11862_v19  ;;  %v11859_v55 = vpop.xlane.xlu0 %11858 }
0x2933   :  { %v11863_v48 = vmul.f32 0.03125, %v11859_v55 }
0x2934   :  { %v11866_v36 = vsub.f32 %v23036_v0, %v11864_v51 }
0x2935   :  { %v11865_v29 = vsub.f32 %v23038_v59, %v11863_v48 }
0x2936   :  { %v11868_v35 = vmul.f32 %v11866_v36, %v11866_v36 }
0x2937   :  { %v11867_v10 = vmul.f32 %v11865_v29, %v11865_v29 }
0x2938   :  { %v11872_v26 = vsel %vm97_vm1, %v11868_v35, 0.0 }
0x2939   :  { %11873 = vadd.xlane.f32.xlu1 %v11872_v26  ;;  %v11869_v13 = vsel %vm97_vm1, %v11867_v10, 0.0 }
0x293a   :  { %11870 = vadd.xlane.f32.xlu0 %v11869_v13 }
0x29c6   :  { %v11874_v32 = vpop.xlane.xlu1 %11873 }
0x29c7   :  { %v11876_v34 = vmul.f32 0.03125, %v11874_v32  ;;  %v11871_v31 = vpop.xlane.xlu0 %11870 }
0x29c8   :  { %v11875_v18 = vmul.f32 0.03125, %v11871_v31 }
0x29c9   :  { %v11878_v21 = vadd.f32 1e-05, %v11876_v34 }
0x29ca   :  { %v11877_v39 = vadd.f32 1e-05, %v11875_v18 }
0x29cb   :  { %20636 = vrsqrt.f32 %v11878_v21 }
0x29cc   :  { %20638 = vrsqrt.f32 %v11877_v39 }
0x29d5   :  { %v20637_v9 = vpop.eup %20636 }
0x29d6   :  { %v20639_v38 = vpop.eup %20638  ;;  %v11882_v44 = vmul.f32 %v20637_v9, %v11866_v36 }
0x29d7   :  { %v11881_v52 = vmul.f32 %v20639_v38, %v11865_v29 }
0x29d8   :  { %v11890_v3 = vmul.f32 %v18375_v45, %v11882_v44 }
0x29d9   :  { %v11889_v40 = vmul.f32 %v18375_v45, %v11881_v52 }
0x29da   :  { %v11898_v11 = vadd.f32 %v18376_v61, %v11890_v3 }
0x29db   :  { %v11897_v53 = vadd.f32 %v18376_v61, %v11889_v40 }
0x29dd   :  { %19669 = vmatprep.mubr.msk.f32.mxu0 %vm97_vm1, %v11897_v53 }
0x29de   :  { %19670 = vmatmul.mubr.msk.f32.vlgmr.msra.gmra.mrb[68].mxu0 %vm97_vm1, %v11898_v11 }
0x29df   :  { %20340 = vmatpush3.bf16.msra.mxu0 %v20337_v28  ;;  %19680 = vmatprep.mubr.msk.f32.mxu0 %vm97_vm1, %v11897_v53 }
0x29e0   :  { %20342 = vmatprep.subr.bf16.mxu0 %v20341_v50 }
0x29e3   :  { %20344 = vmatpush3.bf16.msra.mxu0 %v20341_v50 }
0x29e4   :  { %20346 = vmatprep.subr.bf16.mxu0 %v20345_v5 }
0x29e6   :  { %19681 = vmatmul.mubr.msk.f32.vlgmr.msra.gmra.mrb[70].mxu0 %vm97_vm1, %v11898_v11 }
0x29e7   :  { %20348 = vmatpush3.bf16.msra.mxu0 %v20345_v5  ;;  %19691 = vmatprep.mubr.msk.f32.mxu0 %vm97_vm1, %v11897_v53 }
0x29e8   :  { %20350 = vmatprep.subr.bf16.mxu0 %v20349_v25 }
0x29eb   :  { %20352 = vmatpush3.bf16.msra.mxu0 %v20349_v25 }
0x29ec   :  { %19694 = vmatprep.subr.mxu0 %v20752_v33 }
0x29ee   :  { %19692 = vmatmul.mubr.msk.f32.vlgmr.msra.gmra.mrb[72].mxu0 %vm97_vm1, %v11898_v11 }
0x29ef   :  { %19696 = vmatprep.mubr.msk.f32.mxu0 %vm20751_vm2, %v20752_v33 }
0x2ab1   :  { %v23099_v4 = vpop.f32.mrb[68].mxu0 }
0x2ab2   :  { %v11976_v46 = vpop.f32.mrb[69].mxu0 }
0x2ab3   :  { %12147 = vrot.lane.b32.xlu1 %v11976_v46, %s24202_s15 }
0x2ab9   :  { %v23102_v1 = vpop.f32.mrb[70].mxu0 }
0x2aba   :  { %v12056_v17 = vpop.f32.mrb[71].mxu0 }
0x2abb   :  { %12445 = vrot.lane.b32.xlu1 %v12056_v17, %s24200_s28  ;;  %12439 = vrot.lane.b32.xlu0 %v12056_v17, %s24202_s15 }
0x2abf   :  { %12451 = vrot.lane.b32.xlu1 %v12056_v17, %s24203_s9  ;;  %12153 = vrot.lane.b32.xlu0 %v11976_v46, %s24200_s28 }
0x2ac1   :  { %v23108_v2 = vpop.f32.mrb[72].mxu0 }
0x2ac2   :  { %v23110_v14 = vpop.f32.mrb[73].mxu0 }
0x2ac3   :  { %12159 = vrot.lane.b32.xlu1 %v11976_v46, %s24203_s9  ;;  %12441 = vrot.lane.b32.xlu0 %v23102_v1, %s24202_s15 }
0x2ac7   :  { %12447 = vrot.lane.b32.xlu1 %v23102_v1, %s24200_s28  ;;  %12453 = vrot.lane.b32.xlu0 %v23102_v1, %s24203_s9 }
0x2acb   :  { %12149 = vrot.lane.b32.xlu1 %v23099_v4, %s24202_s15  ;;  %12155 = vrot.lane.b32.xlu0 %v23099_v4, %s24200_s28 }
0x2acf   :  { %12161 = vrot.lane.b32.xlu1 %v23099_v4, %s24203_s9 }
0x2b25   :  { %v12148_v49 = vpop.permute.xlu1 %12147 }
0x2b2d   :  { %v12446_v8 = vpop.permute.xlu1 %12445  ;;  %v12440_v60 = vpop.permute.xlu0 %12439 }
0x2b2e   :  { %v12457_v54 = vcombine.low %v12056_v17, %v12446_v8  ;;  %v12458_v62 = vcombine.high %v12056_v17, %v12446_v8 }
0x2b30   :  { %v12465_v19 = vrot.slane %v12457_v54, %v21041_v42  ;;  %v12472_v51 = vrot.slane %v12458_v62, %v21041_v42 }
0x2b31   :  { %v12452_v27 = vpop.permute.xlu1 %12451  ;;  %v12154_v12 = vpop.permute.xlu0 %12153 }
0x2b32   :  { %v12473_v7 = vcombine.low %v12440_v60, %v12452_v27  ;;  %v12474_v15 = vcombine.high %v12440_v60, %v12452_v27  ;;  %v12165_v36 = vcombine.low %v11976_v46, %v12154_v12  ;;  %v12166_v29 = vcombine.high %v11976_v46, %v12154_v12 }
0x2b34   :  { %v12481_v55 = vrot.slane %v12473_v7, %v21041_v42  ;;  %v12488_v48 = vrot.slane %v12474_v15, %v21041_v42  ;;  %v12173_v28 = vrot.slane %v12165_v36, %v21041_v42  ;;  %v12180_v32 = vrot.slane %v12166_v29, %v21041_v42 }
0x2b35   :  { %v12160_v35 = vpop.permute.xlu1 %12159  ;;  %v12442_v20 = vpop.permute.xlu0 %12441 }
0x2b36   :  { %v12489_v10 = vcombine.low %v12465_v19, %v12481_v55  ;;  %v12490_v26 = vcombine.high %v12465_v19, %v12481_v55  ;;  %v12505_v13 = vcombine.low %v12472_v51, %v12488_v48  ;;  %v12506_v63 = vcombine.high %v12472_v51, %v12488_v48 }
0x2b37   :  { %v12181_v41 = vcombine.low %v12148_v49, %v12160_v35  ;;  %v12182_v22 = vcombine.high %v12148_v49, %v12160_v35 }
0x2b38   :  { %v12497_v16 = vrot.slane %v12489_v10, %v21047_v47  ;;  %v12504_v56 = vrot.slane %v12490_v26, %v21047_v47  ;;  %v12513_v43 = vrot.slane %v12505_v13, %v21047_v47  ;;  %v12520_v57 = vrot.slane %v12506_v63, %v21047_v47 }
0x2b39   :  { %v12189_v34 = vrot.slane %v12181_v41, %v21041_v42  ;;  %v12196_v31 = vrot.slane %v12182_v22, %v21041_v42  ;;  %v12448_v18 = vpop.permute.xlu1 %12447  ;;  %v12454_v53 = vpop.permute.xlu0 %12453 }
0x2b3a   :  { %v12593_v21 = vcombine.low %v12497_v16, %v12504_v56  ;;  %v18399_v39 = vcombine.high %v12497_v16, %v12504_v56  ;;  %v12609_v9 = vcombine.low %v12513_v43, %v12520_v57  ;;  %v18400_v45 = vcombine.high %v12513_v43, %v12520_v57 }
0x2b3b   :  { %v12197_v38 = vcombine.low %v12173_v28, %v12189_v34  ;;  %v12198_v44 = vcombine.high %v12173_v28, %v12189_v34  ;;  %v12213_v52 = vcombine.low %v12180_v32, %v12196_v31  ;;  %v12214_v61 = vcombine.high %v12180_v32, %v12196_v31 }
0x2b3c   :  { %v23138_v3 = vrot.slane %v12593_v21, %v21041_v42  ;;  %v23141_v40 = vrot.slane %v18399_v39, %v21041_v42  ;;  %v23144_v23 = vrot.slane %v12609_v9, %v21041_v42  ;;  %v23147_v24 = vrot.slane %v18400_v45, %v21041_v42 }
0x2b3d   :  { %v12205_v11 = vrot.slane %v12197_v38, %v21047_v47  ;;  %v12212_v50 = vrot.slane %v12198_v44, %v21047_v47  ;;  %v12221_v6 = vrot.slane %v12213_v52, %v21047_v47  ;;  %v12228_v37 = vrot.slane %v12214_v61, %v21047_v47  ;;  %v12150_v5 = vpop.permute.xlu1 %12149  ;;  %v12156_v48 = vpop.permute.xlu0 %12155 }
0x2b3e   :  { %v12625_v58 = vcombine.low %v23138_v3, %v23141_v40  ;;  %v12626_v30 = vcombine.high %v23138_v3, %v23141_v40  ;;  %v12525_v8 = vcombine.low %v23102_v1, %v12448_v18  ;;  %v12526_v60 = vcombine.high %v23102_v1, %v12448_v18 }
0x2b3f   :  { %v12301_v25 = vcombine.low %v12205_v11, %v12212_v50  ;;  %v18395_v46 = vcombine.high %v12205_v11, %v12212_v50  ;;  %v12317_v17 = vcombine.low %v12221_v6, %v12228_v37  ;;  %v18396_v49 = vcombine.high %v12221_v6, %v12228_v37 }
0x2b40   :  { %v12541_v54 = vcombine.low %v12442_v20, %v12454_v53  ;;  %v12542_v62 = vcombine.high %v12442_v20, %v12454_v53  ;;  %v12641_v27 = vcombine.low %v23144_v23, %v23147_v24  ;;  %v12642_v12 = vcombine.high %v23144_v23, %v23147_v24 }
0x2b41   :  { %v23164_v7 = vrot.slane %v12301_v25, %v21041_v42  ;;  %v23167_v15 = vrot.slane %v18395_v46, %v21041_v42  ;;  %v12533_v19 = vrot.slane %v12525_v8, %v21041_v42  ;;  %v12540_v51 = vrot.slane %v12526_v60, %v21041_v42  ;;  %v12162_v36 = vpop.permute.xlu1 %12161 }
0x2b42   :  { %v12549_v1 = vrot.slane %v12541_v54, %v21041_v42  ;;  %v12556_v55 = vrot.slane %v12542_v62, %v21041_v42  ;;  %v23174_v29 = vrot.slane %v12317_v17, %v21041_v42  ;;  %v23177_v35 = vrot.slane %v18396_v49, %v21041_v42 }
0x2b43   :  { %v12333_v10 = vcombine.low %v23164_v7, %v23167_v15  ;;  %v12334_v26 = vcombine.high %v23164_v7, %v23167_v15  ;;  %v12233_v22 = vcombine.low %v23099_v4, %v12156_v48  ;;  %v12234_v16 = vcombine.high %v23099_v4, %v12156_v48 }
0x2b44   :  { %v12557_v13 = vcombine.low %v12533_v19, %v12549_v1  ;;  %v12558_v63 = vcombine.high %v12533_v19, %v12549_v1  ;;  %v12573_v20 = vcombine.low %v12540_v51, %v12556_v55  ;;  %v12574_v41 = vcombine.high %v12540_v51, %v12556_v55 }
0x2b45   :  { %v12249_v56 = vcombine.low %v12150_v5, %v12162_v36  ;;  %v12250_v43 = vcombine.high %v12150_v5, %v12162_v36  ;;  %v12241_v31 = vrot.slane %v12233_v22, %v21041_v42  ;;  %v12248_v18 = vrot.slane %v12234_v16, %v21041_v42 }
0x2b46   :  { %v12565_v57 = vrot.slane %v12557_v13, %v21047_v47  ;;  %v12572_v28 = vrot.slane %v12558_v63, %v21047_v47  ;;  %v12581_v32 = vrot.slane %v12573_v20, %v21047_v47  ;;  %v12588_v34 = vrot.slane %v12574_v41, %v21047_v47 }
0x2b47   :  { %v12257_v21 = vrot.slane %v12249_v56, %v21041_v42  ;;  %v12264_v39 = vrot.slane %v12250_v43, %v21041_v42  ;;  %v12349_v46 = vcombine.low %v23174_v29, %v23177_v35  ;;  %v12350_v17 = vcombine.high %v23174_v29, %v23177_v35 }
0x2b48   :  { %v12661_v9 = vcombine.low %v12565_v57, %v12572_v28  ;;  %v18401_v4 = vcombine.high %v12565_v57, %v12572_v28  ;;  %v12677_v45 = vcombine.low %v12581_v32, %v12588_v34  ;;  %v18402_v38 = vcombine.high %v12581_v32, %v12588_v34 }
0x2b49   :  { %v12265_v44 = vcombine.low %v12241_v31, %v12257_v21  ;;  %v12266_v52 = vcombine.high %v12241_v31, %v12257_v21  ;;  %v12281_v61 = vcombine.low %v12248_v18, %v12264_v39  ;;  %v12282_v23 = vcombine.high %v12248_v18, %v12264_v39 }
0x2b4a   :  { %v12668_v24 = vrot.slane %v12661_v9, %v21041_v42  ;;  %v12676_v53 = vrot.slane %v18401_v4, %v21041_v42  ;;  %v12684_v11 = vrot.slane %v12677_v45, %v21041_v42  ;;  %v12692_v50 = vrot.slane %v18402_v38, %v21041_v42 }
0x2b4b   :  { %v12273_v6 = vrot.slane %v12265_v44, %v21047_v47  ;;  %v12280_v37 = vrot.slane %v12266_v52, %v21047_v47  ;;  %v12289_v5 = vrot.slane %v12281_v61, %v21047_v47  ;;  %v12296_v25 = vrot.slane %v12282_v23, %v21047_v47 }
0x2b4c   :  { %v12693_v49 = vcombine.low %v12668_v24, %v12676_v53  ;;  %v12709_v8 = vcombine.low %v12684_v11, %v12692_v50  ;;  %v12633_v15 = vrot.slane %v12625_v58, %v21047_v47  ;;  %v12649_v19 = vrot.slane %v12641_v27, %v21047_v47 }
0x2b4d   :  { %v12369_v60 = vcombine.low %v12273_v6, %v12280_v37  ;;  %v18397_v54 = vcombine.high %v12273_v6, %v12280_v37  ;;  %v12385_v62 = vcombine.low %v12289_v5, %v12296_v25  ;;  %v18398_v7 = vcombine.high %v12289_v5, %v12296_v25 }
0x2b4e   :  { %v12640_v51 = vrot.slane %v12626_v30, %v21047_v47  ;;  %v12656_v1 = vrot.slane %v12642_v12, %v21047_v47  ;;  %v12657_v35 = vcombine.low %v12633_v15, %v12649_v19  ;;  %v12341_v58 = vrot.slane %v12333_v10, %v21047_v47 }
0x2b4f   :  { %v12376_v55 = vrot.slane %v12369_v60, %v21041_v42  ;;  %v12384_v48 = vrot.slane %v18397_v54, %v21041_v42  ;;  %v12392_v36 = vrot.slane %v12385_v62, %v21041_v42  ;;  %v12400_v29 = vrot.slane %v18398_v7, %v21041_v42 }
0x2b50   :  { %v12659_v13 = vcombine.low %v12640_v51, %v12656_v1  ;;  %v12357_v27 = vrot.slane %v12349_v46, %v21047_v47  ;;  %v12694_v63 = vcombine.high %v12668_v24, %v12676_v53  ;;  %v12710_v40 = vcombine.high %v12684_v11, %v12692_v50  ;;  %19695 = vmatpush3.xpose.msk.msra.mxu0 %vm4062_vm4, %v12657_v35 }
0x2b51   :  { %v12401_v20 = vcombine.low %v12376_v55, %v12384_v48  ;;  %v12417_v3 = vcombine.low %v12392_v36, %v12400_v29  ;;  %v12348_v12 = vrot.slane %v12334_v26, %v21047_v47  ;;  %19699 = vmatprep.subr.mxu0 %v20752_v33  ;;  %v12658_v41 = vcombine.high %v12633_v15, %v12649_v19 }
0x2b52   :  { %19705 = vmatpush3.xpose.msk.msra.mxu1 %vm4062_vm4, %v12659_v13  ;;  %v12365_v30 = vcombine.low %v12341_v58, %v12357_v27  ;;  %v12364_v22 = vrot.slane %v12350_v17, %v21047_v47  ;;  %v12701_v10 = vrot.slane %v12693_v49, %v21047_v47  ;;  %v12717_v16 = vrot.slane %v12709_v8, %v21047_v47 }
0x2b53   :  { %19714 = vmatprep.subr.mxu1 %v20752_v33  ;;  %v12409_v56 = vrot.slane %v12401_v20, %v21047_v47  ;;  %v12425_v43 = vrot.slane %v12417_v3, %v21047_v47  ;;  %v12402_v57 = vcombine.high %v12376_v55, %v12384_v48  ;;  %v12418_v28 = vcombine.high %v12392_v36, %v12400_v29 }
0x2b54   :  { %19697 = vmatmul.mubr.msk.f32.vlgmr.msra.gmra.mrb[74].mxu0 %vm4062_vm4, %v12365_v30  ;;  %v12367_v26 = vcombine.low %v12348_v12, %v12364_v22  ;;  %v12725_v32 = vcombine.low %v12701_v10, %v12717_v16  ;;  %v12708_v34 = vrot.slane %v12694_v63, %v21047_v47  ;;  %v12724_v31 = vrot.slane %v12710_v40, %v21047_v47 }
0x2b55   :  { %19700 = vmatpush3.xpose.msk.msra.mxu0 %vm4062_vm4, %v12658_v41  ;;  %19701 = vmatprep.mubr.msk.f32.mxu0 %vm20751_vm2, %v20752_v33  ;;  %v12366_v18 = vcombine.high %v12341_v58, %v12357_v27  ;;  %v12433_v21 = vcombine.low %v12409_v56, %v12425_v43  ;;  %v12660_v39 = vcombine.high %v12640_v51, %v12656_v1 }
0x2b56   :  { %19707 = vmatmul.mubr.msk.f32.vlgmr.msra.gmra.mrb[84].mxu1 %vm4062_vm4, %v12367_v26  ;;  %19709 = vmatprep.subr.mxu0 %v20752_v33  ;;  %v12416_v9 = vrot.slane %v12402_v57, %v21047_v47  ;;  %v12432_v4 = vrot.slane %v12418_v28, %v21047_v47  ;;  %v12727_v45 = vcombine.low %v12708_v34, %v12724_v31 }
0x2b57   :  { %19715 = vmatpush3.xpose.msk.msra.mxu1 %vm4062_vm4, %v12725_v32  ;;  %19716 = vmatprep.mubr.msk.f32.mxu1 %vm20751_vm2, %v20752_v33  ;;  %v12368_v38 = vcombine.high %v12348_v12, %v12364_v22  ;;  %v12726_v44 = vcombine.high %v12701_v10, %v12717_v16  ;;  %v12434_v52 = vcombine.high %v12409_v56, %v12425_v43 }
0x2b58   :  { %19702 = vmatmul.mubr.msk.f32.vlgmr.msra.gmra.mrb[76].mxu0 %vm4062_vm4, %v12366_v18  ;;  %19724 = vmatprep.subr.mxu1 %v20752_v33  ;;  %v12435_v61 = vcombine.low %v12416_v9, %v12432_v4  ;;  %v12728_v23 = vcombine.high %v12708_v34, %v12724_v31  ;;  %v12436_v24 = vcombine.high %v12416_v9, %v12432_v4 }
0x2b59   :  { %19710 = vmatpush3.xpose.msk.msra.mxu0 %vm4062_vm4, %v12660_v39  ;;  %19711 = vmatprep.mubr.msk.f32.mxu0 %vm20751_vm2, %v20752_v33 }
0x2b5a   :  { %19719 = vmatprep.subr.mxu0 %v20752_v33  ;;  %19717 = vmatmul.mubr.msk.f32.vlgmr.msra.gmra.mrb[86].mxu1 %vm4062_vm4, %v12433_v21 }
0x2b5b   :  { %19725 = vmatpush3.xpose.msk.msra.mxu1 %vm4062_vm4, %v12727_v45  ;;  %19726 = vmatprep.mubr.msk.f32.mxu1 %vm20751_vm2, %v20752_v33 }
0x2b5c   :  { %19712 = vmatmul.mubr.msk.f32.vlgmr.msra.gmra.mrb[78].mxu0 %vm4062_vm4, %v12368_v38  ;;  %19734 = vmatprep.subr.mxu1 %v20752_v33 }
0x2b5d   :  { %19720 = vmatpush3.xpose.msk.msra.mxu0 %vm4062_vm4, %v12726_v44  ;;  %19721 = vmatprep.mubr.msk.f32.mxu0 %vm20751_vm2, %v20752_v33 }
0x2b5e   :  { %19729 = vmatprep.subr.mxu0 %v20752_v33  ;;  %19727 = vmatmul.mubr.msk.f32.vlgmr.msra.gmra.mrb[88].mxu1 %vm4062_vm4, %v12435_v61 }
0x2b5f   :  { %19736 = vmatprep.mubr.msk.f32.mxu1 %vm20751_vm2, %v20752_v33 }
0x2b60   :  { %19722 = vmatmul.mubr.msk.f32.vlgmr.msra.gmra.mrb[80].mxu0 %vm4062_vm4, %v12434_v52 }
0x2b61   :  { %19730 = vmatpush3.xpose.msk.msra.mxu0 %vm4062_vm4, %v12728_v23  ;;  %19731 = vmatprep.mubr.msk.f32.mxu0 %vm20751_vm2, %v20752_v33 }
0x2b62   :  { %19739 = vmatprep.subr.mxu0 %v20752_v33 }
0x2b64   :  { %19732 = vmatmul.mubr.msk.f32.vlgmr.msra.gmra.mrb[82].mxu0 %vm4062_vm4, %v12436_v24 }
0x2b65   :  { %19741 = vmatprep.mubr.msk.f32.mxu0 %vm20751_vm2, %v20752_v33 }
0x2c27   :  { %v13093_v53 = vpop.f32.mrb[74].mxu0 }
0x2c28   :  { %v19698_v11 = vpop.f32.mrb[75].mxu0  ;;  %v13629_v50 = vsel %vm4062_vm4, %v13093_v53, -inf }
0x2c29   :  { %v13245_v6 = vpop.f32.mrb[84].mxu1  ;;  %13630 = vmax.xlane.f32.xlu0 %v13629_v50 }
0x2c2a   :  { %v19708_v37 = vpop.f32.mrb[85].mxu1  ;;  %v13635_v46 = vsel %vm4062_vm4, %v13245_v6, -inf }
0x2c2b   :  { %v13169_v5 = vpop.f32.mrb[76].mxu0 }
0x2c2c   :  { %v19703_v25 = vpop.f32.mrb[77].mxu0  ;;  %v13632_v17 = vsel %vm4062_vm4, %v13169_v5, -inf }
0x2c2d   :  { %13636 = vmax.xlane.f32.xlu0 %v13635_v46  ;;  %13633 = vmax.xlane.f32.xlu1 %v13632_v17  ;;  %v13397_v49 = vpop.f32.mrb[86].mxu1 }
0x2c2e   :  { %v19718_v8 = vpop.f32.mrb[87].mxu1  ;;  %v13641_v60 = vsel %vm4062_vm4, %v13397_v49, -inf }
0x2c2f   :  { %v13321_v54 = vpop.f32.mrb[78].mxu0 }
0x2c30   :  { %v19713_v62 = vpop.f32.mrb[79].mxu0  ;;  %v13638_v1 = vsel %vm4062_vm4, %v13321_v54, -inf }
0x2c31   :  { %13642 = vmax.xlane.f32.xlu0 %v13641_v60  ;;  %v13549_v7 = vpop.f32.mrb[88].mxu1 }
0x2c32   :  { %v19728_v15 = vpop.f32.mrb[89].mxu1  ;;  %v13647_v36 = vsel %vm4062_vm4, %v13549_v7, -inf }
0x2c33   :  { %v23275_v19 = vpop.f32.mrb[80].mxu0 }
0x2c34   :  { %v19723_v51 = vpop.f32.mrb[81].mxu0  ;;  %v13644_v29 = vsel %vm4062_vm4, %v23275_v19, -inf }
0x2c35   :  { %13639 = vmax.xlane.f32.xlu0 %v13638_v1 }
0x2c37   :  { %v23278_v55 = vpop.f32.mrb[82].mxu0 }
0x2c38   :  { %v19733_v48 = vpop.f32.mrb[83].mxu0  ;;  %v13650_v35 = vsel %vm4062_vm4, %v23278_v55, -inf }
0x2c39   :  { %13648 = vmax.xlane.f32.xlu0 %v13647_v36 }
0x2c3e   :  { %12737 = vrot.lane.b32.xlu1 %v23110_v14, %s24200_s28 }
0x2c42   :  { %12743 = vrot.lane.b32.xlu1 %v23110_v14, %s24203_s9 }
0x2c4f   :  { %12731 = vrot.lane.b32.xlu0 %v23110_v14, %s24202_s15 }
0x2c66   :  { %13645 = vmax.xlane.f32.xlu1 %v13644_v29 }
0x2c6a   :  { %13651 = vmax.xlane.f32.xlu1 %v13650_v35 }
0x2c7b   :  { %12733 = vrot.lane.b32.xlu1 %v23108_v2, %s24202_s15 }
0x2cb6   :  { %v13631_v13 = vpop.xlane.xlu0 %13630 }
0x2cb7   :  { %v13653_v58 = vsub.f32 %v13093_v53, %v13631_v13 }
0x2cb9   :  { %v13661_v27 = vmul.f32 1.442695, %v13653_v58 }
0x2cba   :  { %v13637_v63 = vpop.xlane.xlu0 %13636  ;;  %v13634_v20 = vpop.xlane.xlu1 %13633 }
0x2cbb   :  { %20640 = vpow2.f32 %v13661_v27  ;;  %v13655_v3 = vsub.f32 %v13245_v6, %v13637_v63  ;;  %v13654_v40 = vsub.f32 %v13169_v5, %v13634_v20 }
0x2cbd   :  { %v13665_v30 = vmul.f32 1.442695, %v13655_v3  ;;  %v13663_v12 = vmul.f32 1.442695, %v13654_v40 }
0x2cbe   :  { %v13643_v41 = vpop.xlane.xlu0 %13642  ;;  %v12738_v43 = vpop.permute.xlu1 %12737 }
0x2cbf   :  { %20642 = vpow2.f32 %v13665_v30  ;;  %v13657_v22 = vsub.f32 %v13397_v49, %v13643_v41  ;;  %v12749_v18 = vcombine.low %v23110_v14, %v12738_v43  ;;  %v12750_v21 = vcombine.high %v23110_v14, %v12738_v43 }
0x2cc0   :  { %20644 = vpow2.f32 %v13663_v12 }
0x2cc1   :  { %v13669_v10 = vmul.f32 1.442695, %v13657_v22  ;;  %v12757_v14 = vrot.slane %v12749_v18, %v21041_v42  ;;  %v12764_v24 = vrot.slane %v12750_v21, %v21041_v42 }
0x2cc2   :  { %v13640_v16 = vpop.xlane.xlu0 %13639  ;;  %v12744_v4 = vpop.permute.xlu1 %12743 }
0x2cc3   :  { %20646 = vpow2.f32 %v13669_v10  ;;  %v13656_v56 = vsub.f32 %v13321_v54, %v13640_v16 }
0x2cc5   :  { %v23293_v57 = vpop.eup %20640  ;;  %v13667_v28 = vmul.f32 1.442695, %v13656_v56 }
0x2cc6   :  { %v13677_v26 = vsel %vm4062_vm4, %v23293_v57, 0.0  ;;  %v13649_v32 = vpop.xlane.xlu0 %13648 }
0x2cc7   :  { %20648 = vpow2.f32 %v13667_v28  ;;  %13678 = vadd.xlane.f32.xlu0 %v13677_v26  ;;  %v13659_v34 = vsub.f32 %v13549_v7, %v13649_v32 }
0x2cc9   :  { %v23297_v31 = vpop.eup %20642  ;;  %v13673_v39 = vmul.f32 1.442695, %v13659_v34 }
0x2cca   :  { %v23301_v9 = vpop.eup %20644  ;;  %v13683_v45 = vsel %vm4062_vm4, %v23297_v31, 0.0  ;;  %v12732_v38 = vpop.permute.xlu0 %12731 }
0x2ccb   :  { %20650 = vpow2.f32 %v13673_v39  ;;  %13684 = vadd.xlane.f32.xlu0 %v13683_v45  ;;  %v13680_v44 = vsel %vm4062_vm4, %v23301_v9, 0.0  ;;  %v12765_v52 = vcombine.low %v12732_v38, %v12744_v4  ;;  %v12766_v61 = vcombine.high %v12732_v38, %v12744_v4 }
0x2ccc   :  { %13681 = vadd.xlane.f32.xlu1 %v13680_v44 }
0x2ccd   :  { %v23307_v23 = vpop.eup %20646  ;;  %v12773_v53 = vrot.slane %v12765_v52, %v21041_v42  ;;  %v12780_v11 = vrot.slane %v12766_v61, %v21041_v42 }
0x2cce   :  { %v13689_v50 = vsel %vm4062_vm4, %v23307_v23, 0.0 }
0x2ccf   :  { %v12781_v6 = vcombine.low %v12757_v14, %v12773_v53  ;;  %v12782_v37 = vcombine.high %v12757_v14, %v12773_v53  ;;  %v12797_v5 = vcombine.low %v12764_v24, %v12780_v11  ;;  %v12798_v25 = vcombine.high %v12764_v24, %v12780_v11 }
0x2cd0   :  { %13690 = vadd.xlane.f32.xlu1 %v13689_v50 }
0x2cd1   :  { %v23315_v46 = vpop.eup %20648  ;;  %v12789_v17 = vrot.slane %v12781_v6, %v21047_v47  ;;  %v12796_v49 = vrot.slane %v12782_v37, %v21047_v47  ;;  %v12805_v8 = vrot.slane %v12797_v5, %v21047_v47  ;;  %v12812_v60 = vrot.slane %v12798_v25, %v21047_v47 }
0x2cd2   :  { %v13686_v54 = vsel %vm4062_vm4, %v23315_v46, 0.0 }
0x2cd3   :  { %v12885_v62 = vcombine.low %v12789_v17, %v12796_v49  ;;  %v18403_v7 = vcombine.high %v12789_v17, %v12796_v49  ;;  %v12901_v15 = vcombine.low %v12805_v8, %v12812_v60  ;;  %v18404_v51 = vcombine.high %v12805_v8, %v12812_v60 }
0x2cd4   :  { %13687 = vadd.xlane.f32.xlu1 %v13686_v54 }
0x2cd5   :  { %v23323_v1 = vpop.eup %20650  ;;  %v12892_v48 = vrot.slane %v12885_v62, %v21041_v42  ;;  %v12900_v36 = vrot.slane %v18403_v7, %v21041_v42  ;;  %v12908_v29 = vrot.slane %v12901_v15, %v21041_v42  ;;  %v12916_v35 = vrot.slane %v18404_v51, %v21041_v42 }
0x2cd6   :  { %v13695_v13 = vsel %vm4062_vm4, %v23323_v1, 0.0 }
0x2cd7   :  { %13696 = vadd.xlane.f32.xlu0 %v13695_v13  ;;  %v12917_v58 = vcombine.low %v12892_v48, %v12900_v36  ;;  %v12933_v27 = vcombine.low %v12908_v29, %v12916_v35  ;;  %v12918_v63 = vcombine.high %v12892_v48, %v12900_v36  ;;  %v12934_v20 = vcombine.high %v12908_v29, %v12916_v35 }
0x2cd9   :  { %v12925_v3 = vrot.slane %v12917_v58, %v21047_v47  ;;  %v12941_v40 = vrot.slane %v12933_v27, %v21047_v47  ;;  %v12932_v30 = vrot.slane %v12918_v63, %v21047_v47  ;;  %v12948_v12 = vrot.slane %v12934_v20, %v21047_v47 }
0x2cdb   :  { %v12949_v41 = vcombine.low %v12925_v3, %v12941_v40  ;;  %v12950_v22 = vcombine.high %v12925_v3, %v12941_v40  ;;  %v12951_v10 = vcombine.low %v12932_v30, %v12948_v12  ;;  %v12952_v16 = vcombine.high %v12932_v30, %v12948_v12 }
0x2cdd   :  { %19735 = vmatpush3.msra.mxu1 %v12949_v41  ;;  %19740 = vmatpush3.msra.mxu0 %v12950_v22 }
0x2cde   :  { %19744 = vmatprep.subr.mxu1 %v20752_v33  ;;  %19749 = vmatprep.subr.mxu0 %v20752_v33 }
0x2ce5   :  { %12745 = vrot.lane.b32.xlu1 %v23108_v2, %s24203_s9 }
0x2cf3   :  { %v13646_v56 = vpop.xlane.xlu1 %13645 }
0x2cf4   :  { %v13658_v43 = vsub.f32 %v23275_v19, %v13646_v56 }
0x2cf6   :  { %v13671_v28 = vmul.f32 1.442695, %v13658_v43 }
0x2cf7   :  { %v13652_v26 = vpop.xlane.xlu1 %13651 }
0x2cf8   :  { %20652 = vpow2.f32 %v13671_v28  ;;  %v13660_v32 = vsub.f32 %v23278_v55, %v13652_v26 }
0x2cfa   :  { %v13675_v34 = vmul.f32 1.442695, %v13660_v32 }
0x2cfb   :  { %v12734_v45 = vpop.permute.xlu1 %12733 }
0x2cfc   :  { %20654 = vpow2.f32 %v13675_v34 }
0x2d02   :  { %v23341_v18 = vpop.eup %20652 }
0x2d03   :  { %v13692_v21 = vsel %vm4062_vm4, %v23341_v18, 0.0 }
0x2d04   :  { %13693 = vadd.xlane.f32.xlu0 %v13692_v21 }
0x2d06   :  { %v23345_v39 = vpop.eup %20654 }
0x2d07   :  { %v13698_v4 = vsel %vm4062_vm4, %v23345_v39, 0.0 }
0x2d08   :  { %13699 = vadd.xlane.f32.xlu0 %v13698_v4 }
0x2d1e   :  { %12739 = vrot.lane.b32.xlu0 %v23108_v2, %s24200_s28 }
0x2d54   :  { %v13679_v19 = vpop.xlane.xlu0 %13678 }
0x2d55   :  { %20656 = vrcp.f32 %v13679_v19 }
0x2d58   :  { %v13685_v55 = vpop.xlane.xlu0 %13684 }
0x2d59   :  { %20658 = vrcp.f32 %v13685_v55  ;;  %v13682_v38 = vpop.xlane.xlu1 %13681 }
0x2d5a   :  { %20660 = vrcp.f32 %v13682_v38 }
0x2d5d   :  { %v13691_v44 = vpop.xlane.xlu1 %13690 }
0x2d5f   :  { %v20657_v52 = vpop.eup %20656 }
0x2d60   :  { %v13709_v61 = vmul.f32 %v20657_v52, %v23293_v57 }
0x2d61   :  { %v13688_v14 = vpop.xlane.xlu1 %13687 }
0x2d62   :  { %19737 = vmatmul.mubr.msk.f32.vlgmr.msra.gmra.mrb[90].mxu1 %vm4062_vm4, %v13709_v61  ;;  %20662 = vrcp.f32 %v13688_v14 }
0x2d63   :  { %v20659_v24 = vpop.eup %20658  ;;  %19745 = vmatpush3.msra.mxu1 %v12951_v10  ;;  %19746 = vmatprep.mubr.msk.f32.mxu1 %vm20751_vm2, %v20752_v33  ;;  %20664 = vrcp.f32 %v13691_v44 }
0x2d64   :  { %v20661_v53 = vpop.eup %20660  ;;  %v13711_v11 = vmul.f32 %v20659_v24, %v23297_v31  ;;  %19754 = vmatprep.subr.mxu1 %v20752_v33 }
0x2d65   :  { %v13710_v50 = vmul.f32 %v20661_v53, %v23301_v9  ;;  %v13697_v9 = vpop.xlane.xlu0 %13696  ;;  %v12746_v37 = vpop.permute.xlu1 %12745 }
0x2d66   :  { %19747 = vmatmul.mubr.msk.f32.vlgmr.msra.gmra.mrb[92].mxu1 %vm4062_vm4, %v13711_v11  ;;  %v12833_v25 = vcombine.low %v12734_v45, %v12746_v37  ;;  %v12834_v17 = vcombine.high %v12734_v45, %v12746_v37 }
0x2d67   :  { %19742 = vmatmul.mubr.msk.f32.vlgmr.msra.gmra.mrb[84].mxu0 %vm4062_vm4, %v13710_v50  ;;  %19756 = vmatprep.mubr.msk.f32.mxu1 %vm20751_vm2, %v20752_v33 }
0x2d68   :  { %19750 = vmatpush3.msra.mxu0 %v12952_v16  ;;  %19751 = vmatprep.mubr.msk.f32.mxu0 %vm20751_vm2, %v20752_v33  ;;  %v12841_v54 = vrot.slane %v12833_v25, %v21041_v42 }
0x2d69   :  { %19759 = vmatprep.subr.mxu0 %v20752_v33 }
0x2d6c   :  { %v20663_v57 = vpop.eup %20662 }
0x2d6d   :  { %v13712_v31 = vmul.f32 %v20663_v57, %v23315_v46  ;;  %v12848_v46 = vrot.slane %v12834_v17, %v21041_v42  ;;  %v20665_v41 = vpop.eup %20664 }
0x2d6e   :  { %v13713_v44 = vmul.f32 %v20665_v41, %v23307_v23 }
0x2d6f   :  { %19752 = vmatmul.mubr.msk.f32.vlgmr.msra.gmra.mrb[86].mxu0 %vm4062_vm4, %v13712_v31 }
0x2d70   :  { %19761 = vmatprep.mubr.msk.f32.mxu0 %vm20751_vm2, %v20752_v33 }
0x2d91   :  { %v13694_v6 = vpop.xlane.xlu0 %13693 }
0x2d92   :  { %20666 = vrcp.f32 %v13694_v6 }
0x2d93   :  { %20668 = vrcp.f32 %v13697_v9 }
0x2d95   :  { %v13700_v5 = vpop.xlane.xlu0 %13699 }
0x2d96   :  { %20670 = vrcp.f32 %v13700_v5 }
0x2d99   :  { %v12740_v49 = vpop.permute.xlu0 %12739 }
0x2d9a   :  { %v12817_v8 = vcombine.low %v23108_v2, %v12740_v49  ;;  %v12818_v60 = vcombine.high %v23108_v2, %v12740_v49 }
0x2d9c   :  { %v12825_v62 = vrot.slane %v12817_v8, %v21041_v42  ;;  %v12832_v7 = vrot.slane %v12818_v60, %v21041_v42  ;;  %v20667_v43 = vpop.eup %20666 }
0x2d9d   :  { %v20669_v21 = vpop.eup %20668  ;;  %v13714_v52 = vmul.f32 %v20667_v43, %v23341_v18 }
0x2d9e   :  { %v12849_v15 = vcombine.low %v12825_v62, %v12841_v54  ;;  %v12850_v51 = vcombine.high %v12825_v62, %v12841_v54  ;;  %v12865_v48 = vcombine.low %v12832_v7, %v12848_v46  ;;  %v12866_v36 = vcombine.high %v12832_v7, %v12848_v46 }
0x2d9f   :  { %v13715_v61 = vmul.f32 %v20669_v21, %v23323_v1 }
0x2da0   :  { %v12857_v29 = vrot.slane %v12849_v15, %v21047_v47  ;;  %v12864_v35 = vrot.slane %v12850_v51, %v21047_v47  ;;  %v12873_v2 = vrot.slane %v12865_v48, %v21047_v47  ;;  %v12880_v13 = vrot.slane %v12866_v36, %v21047_v47  ;;  %v20671_v38 = vpop.eup %20670 }
0x2da1   :  { %v13716_v14 = vmul.f32 %v20671_v38, %v23345_v39 }
0x2da2   :  { %v12953_v58 = vcombine.low %v12857_v29, %v12864_v35  ;;  %v18405_v27 = vcombine.high %v12857_v29, %v12864_v35  ;;  %v12969_v63 = vcombine.low %v12873_v2, %v12880_v13  ;;  %v18406_v20 = vcombine.high %v12873_v2, %v12880_v13 }
0x2da4   :  { %v12960_v3 = vrot.slane %v12953_v58, %v21041_v42  ;;  %v12968_v40 = vrot.slane %v18405_v27, %v21041_v42  ;;  %v12976_v30 = vrot.slane %v12969_v63, %v21041_v42  ;;  %v12984_v12 = vrot.slane %v18406_v20, %v21041_v42 }
0x2da6   :  { %v12985_v22 = vcombine.low %v12960_v3, %v12968_v40  ;;  %v13001_v10 = vcombine.low %v12976_v30, %v12984_v12  ;;  %v12986_v16 = vcombine.high %v12960_v3, %v12968_v40  ;;  %v13002_v56 = vcombine.high %v12976_v30, %v12984_v12 }
0x2da8   :  { %v12993_v28 = vrot.slane %v12985_v22, %v21047_v47  ;;  %v13009_v26 = vrot.slane %v13001_v10, %v21047_v47  ;;  %v13000_v32 = vrot.slane %v12986_v16, %v21047_v47  ;;  %v13016_v34 = vrot.slane %v13002_v56, %v21047_v47 }
0x2daa   :  { %v13017_v4 = vcombine.low %v12993_v28, %v13009_v26  ;;  %v13018_v19 = vcombine.high %v12993_v28, %v13009_v26  ;;  %v13019_v45 = vcombine.low %v13000_v32, %v13016_v34  ;;  %v13020_v55 = vcombine.high %v13000_v32, %v13016_v34 }
0x2dac   :  { %19755 = vmatpush3.msra.mxu1 %v13017_v4  ;;  %19760 = vmatpush3.msra.mxu0 %v13018_v19 }
0x2dad   :  { %19757 = vmatmul.mubr.msk.f32.vlgmr.msra.gmra.mrb[94].mxu1 %vm4062_vm4, %v13713_v44  ;;  %19762 = vmatmul.mubr.msk.f32.vlgmr.msra.gmra.mrb[88].mxu0 %vm4062_vm4, %v13714_v52 }
0x2dae   :  { %19764 = vmatprep.subr.mxu1 %v20752_v33  ;;  %19769 = vmatprep.subr.mxu0 %v20752_v33 }
0x2daf   :  { %19765 = vmatpush3.msra.mxu1 %v13019_v45  ;;  %19770 = vmatpush3.msra.mxu0 %v13020_v55 }
0x2db0   :  { %19766 = vmatprep.mubr.msk.f32.mxu1 %vm20751_vm2, %v20752_v33  ;;  %19771 = vmatprep.mubr.msk.f32.mxu0 %vm20751_vm2, %v20752_v33 }
0x2db1   :  { %19767 = vmatmul.mubr.msk.f32.vlgmr.msra.gmra.mrb[96].mxu1 %vm4062_vm4, %v13715_v61  ;;  %19772 = vmatmul.mubr.msk.f32.vlgmr.msra.gmra.mrb[90].mxu0 %vm4062_vm4, %v13716_v14 }
0x2e35   :  { %v13786_v23 = vpop.f32.mrb[90].mxu1 }
0x2e36   :  { %v19738_v18 = vpop.f32.mrb[91].mxu1 }
0x2e39   :  { %v13932_v24 = vpop.f32.mrb[92].mxu1 }
0x2e3a   :  { %v13859_v53 = vpop.f32.mrb[84].mxu0  ;;  %v14301_v11 = vcombine.low %v13786_v23, %v13932_v24  ;;  %v14302_v1 = vcombine.high %v13786_v23, %v13932_v24  ;;  %v19748_v50 = vpop.f32.mrb[93].mxu1 }
0x2e3b   :  { %v19743_v39 = vpop.f32.mrb[85].mxu0  ;;  %v18436_v50 = vld [vmem:[%s24215_s4 + $0x48] sm:$0xff] }
0x2e3c   :  { %v14309_v37 = vrot.slane %v14301_v11, %v21041_v42  ;;  %v14316_v5 = vrot.slane %v14302_v1, %v21041_v42  ;;  %v18435_v1 = vld [vmem:[%s24215_s4 + $0x40] sm:$0xff] }
0x2e42   :  { %v14005_v57 = vpop.f32.mrb[86].mxu0 }
0x2e43   :  { %v14317_v31 = vcombine.low %v13859_v53, %v14005_v57  ;;  %v14318_v9 = vcombine.high %v13859_v53, %v14005_v57  ;;  %v19753_v6 = vpop.f32.mrb[87].mxu0 }
0x2e44   :  { %v20353_v6 = vpack.c.bf16 %v18436_v50, %v18435_v1  ;;  %v18447_v1 = vld [vmem:[%s24216_s10 + $0x50] sm:$0xff]  ;;  %v18448_v50 = vld [vmem:[%s24216_s10 + $0x58] sm:$0xff] }
0x2e45   :  { %v14325_v25 = vrot.slane %v14317_v31, %v21041_v42  ;;  %v14332_v17 = vrot.slane %v14318_v9, %v21041_v42 }
0x2e46   :  { %20354 = vmatprep.subr.bf16.mxu1 %v20353_v6 }
0x2e47   :  { %v14333_v49 = vcombine.low %v14309_v37, %v14325_v25  ;;  %v14334_v8 = vcombine.high %v14309_v37, %v14325_v25  ;;  %v14349_v60 = vcombine.low %v14316_v5, %v14332_v17  ;;  %v14350_v54 = vcombine.high %v14316_v5, %v14332_v17  ;;  %20356 = vmatpush3.bf16.msra.mxu1 %v20353_v6 }
0x2e49   :  { %v14341_v46 = vrot.slane %v14333_v49, %v21047_v47  ;;  %v14348_v62 = vrot.slane %v14334_v8, %v21047_v47  ;;  %v14357_v7 = vrot.slane %v14349_v60, %v21047_v47  ;;  %v14364_v15 = vrot.slane %v14350_v54, %v21047_v47  ;;  %v18437_v49 = vld [vmem:[%s24215_s4 + $0x50] sm:$0xff]  ;;  %v18438_v8 = vld [vmem:[%s24215_s4 + $0x58] sm:$0xff] }
0x2e4b   :  { %v14437_v51 = vcombine.low %v14341_v46, %v14348_v62  ;;  %v18431_v48 = vcombine.high %v14341_v46, %v14348_v62  ;;  %v14453_v36 = vcombine.low %v14357_v7, %v14364_v15  ;;  %v18432_v29 = vcombine.high %v14357_v7, %v14364_v15 }
0x2e4c   :  { %v20357_v7 = vpack.c.bf16 %v18438_v8, %v18437_v49 }
0x2e4d   :  { %v14444_v35 = vrot.slane %v14437_v51, %v21041_v42  ;;  %v14452_v2 = vrot.slane %v18431_v48, %v21041_v42  ;;  %v14460_v13 = vrot.slane %v14453_v36, %v21041_v42  ;;  %v14468_v58 = vrot.slane %v18432_v29, %v21041_v42 }
0x2e4e   :  { %20358 = vmatprep.subr.bf16.mxu1 %v20357_v7 }
0x2e4f   :  { %v14470_v27 = vcombine.high %v14444_v35, %v14452_v2  ;;  %v14486_v63 = vcombine.high %v14460_v13, %v14468_v58  ;;  %v14469_v20 = vcombine.low %v14444_v35, %v14452_v2  ;;  %v14485_v3 = vcombine.low %v14460_v13, %v14468_v58  ;;  %20360 = vmatpush3.bf16.msra.mxu1 %v20357_v7 }
0x2e51   :  { %v14484_v40 = vrot.slane %v14470_v27, %v21047_v47  ;;  %v14500_v30 = vrot.slane %v14486_v63, %v21047_v47  ;;  %v23416_v12 = vrot.slane %v14469_v20, %v21047_v47  ;;  %v23419_v41 = vrot.slane %v14485_v3, %v21047_v47 }
0x2e53   :  { %v14503_v22 = vcombine.low %v14484_v40, %v14500_v30  ;;  %v14502_v10 = vcombine.high %v23416_v12, %v23419_v41  ;;  %v14504_v16 = vcombine.high %v14484_v40, %v14500_v30  ;;  %v14501_v56 = vcombine.low %v23416_v12, %v23419_v41 }
0x2e55   :  { %14583 = vrot.lane.b32.xlu0 %v14503_v22, %s24201_s6  ;;  %14575 = vrot.lane.b32.xlu1 %v14502_v10, %s24213_s3 }
0x2e59   :  { %14591 = vrot.lane.b32.xlu0 %v14504_v16, %s24214_s11 }
0x2e80   :  { %v14078_v43 = vpop.f32.mrb[94].mxu1  ;;  %v14151_v28 = vpop.f32.mrb[88].mxu0 }
0x2e81   :  { %v19758_v26 = vpop.f32.mrb[95].mxu1  ;;  %v19763_v32 = vpop.f32.mrb[89].mxu0 }
0x2e84   :  { %v14224_v34 = vpop.f32.mrb[96].mxu1  ;;  %v14297_v21 = vpop.f32.mrb[90].mxu0 }
0x2e85   :  { %v14369_v4 = vcombine.low %v14078_v43, %v14224_v34  ;;  %v14370_v19 = vcombine.high %v14078_v43, %v14224_v34  ;;  %v14385_v45 = vcombine.low %v14151_v28, %v14297_v21  ;;  %v14386_v55 = vcombine.high %v14151_v28, %v14297_v21  ;;  %v19768_v38 = vpop.f32.mrb[97].mxu1  ;;  %v19773_v44 = vpop.f32.mrb[91].mxu0 }
0x2e87   :  { %v14377_v52 = vrot.slane %v14369_v4, %v21041_v42  ;;  %v14384_v61 = vrot.slane %v14370_v19, %v21041_v42  ;;  %v14393_v14 = vrot.slane %v14385_v45, %v21041_v42  ;;  %v14400_v23 = vrot.slane %v14386_v55, %v21041_v42 }
0x2e89   :  { %v14401_v18 = vcombine.low %v14377_v52, %v14393_v14  ;;  %v14402_v24 = vcombine.high %v14377_v52, %v14393_v14  ;;  %v14417_v53 = vcombine.low %v14384_v61, %v14400_v23  ;;  %v14418_v11 = vcombine.high %v14384_v61, %v14400_v23 }
0x2e8b   :  { %v14409_v39 = vrot.slane %v14401_v18, %v21047_v47  ;;  %v14416_v57 = vrot.slane %v14402_v24, %v21047_v47  ;;  %v14425_v31 = vrot.slane %v14417_v53, %v21047_v47  ;;  %v14432_v9 = vrot.slane %v14418_v11, %v21047_v47  ;;  %v18445_v24 = vld [vmem:[%s24216_s10 + $0x40] sm:$0xff]  ;;  %v18446_v53 = vld [vmem:[%s24216_s10 + $0x48] sm:$0xff] }
0x2e8c   :  { %v20361_v11 = vpack.c.bf16 %v18446_v53, %v18445_v24 }
0x2e8d   :  { %v14505_v37 = vcombine.low %v14409_v39, %v14416_v57  ;;  %v18433_v5 = vcombine.high %v14409_v39, %v14416_v57  ;;  %v14521_v25 = vcombine.low %v14425_v31, %v14432_v9  ;;  %v18434_v17 = vcombine.high %v14425_v31, %v14432_v9  ;;  %v18453_v57 = vld [vmem:[%s24128_s26 + $0x100] sm:$0xff]  ;;  %v18454_v31 = vld [vmem:[%s24128_s26 + $0x108] sm:$0xff]  ;;  %v18455_v9 = vld [vmem:[%s24128_s26 + $0x110] sm:$0xff] }
0x2e8e   :  { %v20365_v39 = vpack.c.bf16 %v18448_v50, %v18447_v1  ;;  %20362 = vmatprep.subr.bf16.mxu0 %v20361_v11  ;;  %v20369_v6 = vpack.c.bf16 %v18454_v31, %v18453_v57  ;;  %v18470_v1 = vld [vmem:[%s24129_s27 + $0x2] ss:$0 sm:$0xff] }
0x2e8f   :  { %v14512_v60 = vrot.slane %v14505_v37, %v21041_v42  ;;  %v14520_v54 = vrot.slane %v18433_v5, %v21041_v42  ;;  %v14528_v46 = vrot.slane %v14521_v25, %v21041_v42  ;;  %v14536_v62 = vrot.slane %v18434_v17, %v21041_v42  ;;  %20364 = vmatpush3.bf16.msra.mxu0 %v20361_v11  ;;  %v18456_v37 = vld [vmem:[%s24128_s26 + $0x118] sm:$0xff]  ;;  %v18457_v25 = vld [vmem:[%s24128_s26 + $0x120] sm:$0xff]  ;;  %v18458_v17 = vld [vmem:[%s24128_s26 + $0x128] sm:$0xff] }
0x2e90   :  { %20366 = vmatprep.subr.bf16.mxu0 %v20365_v39  ;;  %v20373_v5 = vpack.c.bf16 %v18456_v37, %v18455_v9  ;;  %20370 = vmatprep.subr.bf16.mxu1 %v20369_v6  ;;  %v20377_v49 = vpack.c.bf16 %v18458_v17, %v18457_v25 }
0x2e91   :  { %v14537_v15 = vcombine.low %v14512_v60, %v14520_v54  ;;  %v14553_v51 = vcombine.low %v14528_v46, %v14536_v62  ;;  %v14538_v48 = vcombine.high %v14512_v60, %v14520_v54  ;;  %v14554_v36 = vcombine.high %v14528_v46, %v14536_v62 }
0x2e93   :  { %v14545_v29 = vrot.slane %v14537_v15, %v21047_v47  ;;  %v14561_v35 = vrot.slane %v14553_v51, %v21047_v47  ;;  %v14552_v2 = vrot.slane %v14538_v48, %v21047_v47  ;;  %v14568_v13 = vrot.slane %v14554_v36, %v21047_v47  ;;  %20368 = vmatpush3.bf16.msra.mxu0 %v20365_v39  ;;  %v18443_v51 = vld [vmem:[%s24124_s22 + $0x2] ss:$0 sm:$0xff] }
0x2e94   :  { %v18444_v36 = vld [vmem:[%s24125_s23 + $0x2] ss:$0 sm:$0xff] }
0x2e95   :  { %v14570_v58 = vcombine.high %v14545_v29, %v14561_v35  ;;  %v14571_v27 = vcombine.low %v14552_v2, %v14568_v13  ;;  %v14572_v63 = vcombine.high %v14552_v2, %v14568_v13  ;;  %v14569_v20 = vcombine.low %v14545_v29, %v14561_v35 }
0x2e97   :  { %14577 = vrot.lane.b32.xlu1 %v14570_v58, %s24213_s3 }
0x2e9b   :  { %14585 = vrot.lane.b32.xlu1 %v14571_v27, %s24201_s6 }
0x2e9f   :  { %14593 = vrot.lane.b32.xlu1 %v14572_v63, %s24214_s11  ;;  %v18459_v63 = vld [vmem:[%s24128_s26 + $0x130] sm:$0xff] }
0x2ec7   :  { %v14584_v3 = vpop.permute.xlu0 %14583  ;;  %v14576_v40 = vpop.permute.xlu1 %14575 }
0x2ec8   :  { %v14597_v30 = vsel %vm4062_vm4, %v14501_v56, %v14576_v40  ;;  %v18461_v40 = vld [vmem:[%s24128_s26 + $0x140] sm:$0xff] }
0x2ec9   :  { %v14599_v10 = vsel %vm128_vm0, %v14597_v30, %v14584_v3  ;;  %v18462_v30 = vld [vmem:[%s24128_s26 + $0x148] sm:$0xff] }
0x2ecb   :  { %v14592_v22 = vpop.permute.xlu0 %14591 }
0x2ecc   :  { %v14601_v16 = vsel %vm5643_vm5, %v14599_v10, %v14592_v22  ;;  %v20385_v22 = vpack.c.bf16 %v18462_v30, %v18461_v40  ;;  %v18463_v10 = vld [vmem:[%s24128_s26 + $0x150] sm:$0xff]  ;;  %v18473_v30 = vld [vmem:[%s24118_s16 + $0x3] ss:$0 sm:$0xff] }
0x2ecd   :  { %19782 = vmatprep.mubr.msk.f32.mxu1 %vm97_vm1, %v14601_v16  ;;  %v18464_v16 = vld [vmem:[%s24128_s26 + $0x158] sm:$0xff] }
0x2f09   :  { %v14578_v43 = vpop.permute.xlu1 %14577 }
0x2f0a   :  { %v14598_v26 = vsel %vm4062_vm4, %v14569_v20, %v14578_v43  ;;  %v18460_v20 = vld [vmem:[%s24128_s26 + $0x138] sm:$0xff]  ;;  %v20389_v43 = vpack.c.bf16 %v18464_v16, %v18463_v10 }
0x2f0b   :  { %v20381_v3 = vpack.c.bf16 %v18460_v20, %v18459_v63 }
0x2f0d   :  { %v14586_v28 = vpop.permute.xlu1 %14585 }
0x2f0e   :  { %v14600_v32 = vsel %vm128_vm0, %v14598_v26, %v14586_v28  ;;  %v18465_v28 = vld [vmem:[%s24128_s26 + $0x160] sm:$0xff]  ;;  %v18466_v26 = vld [vmem:[%s24128_s26 + $0x168] sm:$0xff] }
0x2f11   :  { %v14594_v34 = vpop.permute.xlu1 %14593 }
0x2f12   :  { %v14602_v21 = vsel %vm5643_vm5, %v14600_v32, %v14594_v34  ;;  %v20393_v32 = vpack.c.bf16 %v18466_v26, %v18465_v28  ;;  %v18467_v34 = vld [vmem:[%s24128_s26 + $0x170] sm:$0xff] }
0x2f13   :  { %19783 = vmatmul.mubr.msk.f32.vlgmr.msra.gmra.mrb[98].mxu1 %vm97_vm1, %v14602_v21  ;;  %v18468_v21 = vld [vmem:[%s24128_s26 + $0x178] sm:$0xff] }
0x2f14   :  { %20372 = vmatpush3.bf16.msra.mxu1 %v20369_v6 }
0x2f15   :  { %20374 = vmatprep.subr.bf16.mxu1 %v20373_v5 }
0x2f18   :  { %20376 = vmatpush3.bf16.msra.mxu1 %v20373_v5 }
0x2f19   :  { %20378 = vmatprep.subr.bf16.mxu1 %v20377_v49 }
0x2f1c   :  { %20380 = vmatpush3.bf16.msra.mxu1 %v20377_v49 }
0x2f1d   :  { %20382 = vmatprep.subr.bf16.mxu1 %v20381_v3 }
0x2f20   :  { %20384 = vmatpush3.bf16.msra.mxu1 %v20381_v3 }
0x2f21   :  { %20386 = vmatprep.subr.bf16.mxu1 %v20385_v22 }
0x2f24   :  { %20388 = vmatpush3.bf16.msra.mxu1 %v20385_v22 }
0x2f25   :  { %20390 = vmatprep.subr.bf16.mxu1 %v20389_v43 }
0x2f28   :  { %20392 = vmatpush3.bf16.msra.mxu1 %v20389_v43  ;;  %v18474_v43 = vld [vmem:[%s24119_s17 + $0x3] ss:$0 sm:$0xff] }
0x2f29   :  { %20394 = vmatprep.subr.bf16.mxu1 %v20393_v32 }
0x2f2c   :  { %20396 = vmatpush3.bf16.msra.mxu1 %v20393_v32  ;;  %v18483_v32 = vld [vmem:[%s24121_s19 + $0x70] sm:$0xff] }
0x2fe6   :  { %v19784_v12 = vpop.f32.mrb[98].mxu1 }
0x2fe7   :  { %v23471_v41 = vadd.f32 %v19784_v12, %v23036_v0  ;;  %v14680_v56 = vpop.f32.mrb[99].mxu1  ;;  %v20397_v12 = vpack.c.bf16 %v18468_v21, %v18467_v34  ;;  %v18484_v34 = vld [vmem:[%s24121_s19 + $0x78] sm:$0xff] }
0x2fe8   :  { %v23474_v4 = vadd.f32 %v14680_v56, %v23038_v59  ;;  %v18450_v56 = vld [vmem:[%s24127_s25 + $0x2] ss:$0 sm:$0xff] }
0x2fe9   :  { %v14698_v19 = vsel %vm97_vm1, %v23471_v41, 0.0  ;;  %20398 = vmatprep.subr.bf16.mxu1 %v20397_v12 }
0x2fea   :  { %14699 = vadd.xlane.f32.xlu1 %v14698_v19  ;;  %v14695_v45 = vsel %vm97_vm1, %v23474_v4, 0.0  ;;  %20400 = vmatpush3.bf16.msra.mxu1 %v20397_v12 }
0x2feb   :  { %14696 = vadd.xlane.f32.xlu0 %v14695_v45  ;;  %19874 = vmatprep.subr.mxu1 %v20752_v33 }
0x3077   :  { %v14700_v55 = vpop.xlane.xlu1 %14699 }
0x3078   :  { %v14702_v38 = vmul.f32 0.03125, %v14700_v55  ;;  %v14697_v44 = vpop.xlane.xlu0 %14696 }
0x3079   :  { %v14701_v52 = vmul.f32 0.03125, %v14697_v44 }
0x307a   :  { %v14704_v61 = vsub.f32 %v23471_v41, %v14702_v38 }
0x307b   :  { %v14703_v0 = vsub.f32 %v23474_v4, %v14701_v52 }
0x307c   :  { %v14706_v23 = vmul.f32 %v14704_v61, %v14704_v61 }
0x307d   :  { %v14705_v14 = vmul.f32 %v14703_v0, %v14703_v0 }
0x307e   :  { %v14710_v18 = vsel %vm97_vm1, %v14706_v23, 0.0 }
0x307f   :  { %v14707_v59 = vsel %vm97_vm1, %v14705_v14, 0.0 }
0x3080   :  { %14708 = vadd.xlane.f32.xlu0 %v14707_v59 }
0x3084   :  { %14711 = vadd.xlane.f32.xlu0 %v14710_v18 }
0x310d   :  { %v14709_v8 = vpop.xlane.xlu0 %14708 }
0x310e   :  { %v14713_v60 = vmul.f32 0.03125, %v14709_v8 }
0x3110   :  { %v14715_v54 = vadd.f32 1e-05, %v14713_v60 }
0x3111   :  { %v14712_v46 = vpop.xlane.xlu0 %14711 }
0x3112   :  { %20672 = vrsqrt.f32 %v14715_v54  ;;  %v14714_v62 = vmul.f32 0.03125, %v14712_v46 }
0x3114   :  { %v14716_v7 = vadd.f32 1e-05, %v14714_v62  ;;  %v18475_v62 = vld [vmem:[%s24120_s18 + $0x60] sm:$0xff] }
0x3116   :  { %20674 = vrsqrt.f32 %v14716_v7  ;;  %v18476_v7 = vld [vmem:[%s24120_s18 + $0x68] sm:$0xff] }
0x311c   :  { %v20673_v15 = vpop.eup %20672 }
0x311d   :  { %v14719_v48 = vmul.f32 %v20673_v15, %v14703_v0  ;;  %v18477_v15 = vld [vmem:[%s24120_s18 + $0x70] sm:$0xff] }
0x311f   :  { %v14727_v29 = vmul.f32 %v18443_v51, %v14719_v48  ;;  %v18478_v48 = vld [vmem:[%s24120_s18 + $0x78] sm:$0xff] }
0x3120   :  { %v20675_v35 = vpop.eup %20674 }
0x3121   :  { %v14720_v2 = vmul.f32 %v20675_v35, %v14704_v61  ;;  %v14735_v13 = vadd.f32 %v18444_v36, %v14727_v29  ;;  %v18481_v29 = vld [vmem:[%s24121_s19 + $0x60] sm:$0xff]  ;;  %v18482_v35 = vld [vmem:[%s24121_s19 + $0x68] sm:$0xff] }
0x3123   :  { %v14728_v58 = vmul.f32 %v18443_v51, %v14720_v2  ;;  %19793 = vmatprep.mubr.msk.f32.mxu0 %vm97_vm1, %v14735_v13  ;;  %v20401_v51 = vpack.c.bf16 %v18476_v7, %v18475_v62  ;;  %v20409_v2 = vpack.c.bf16 %v18482_v35, %v18481_v29 }
0x3125   :  { %v14736_v27 = vadd.f32 %v18444_v36, %v14728_v58  ;;  %v20405_v36 = vpack.c.bf16 %v18478_v48, %v18477_v15  ;;  %20402 = vmatprep.subr.bf16.mxu0 %v20401_v51 }
0x3127   :  { %19794 = vmatmul.mubr.msk.f32.vlgmr.msra.gmra.mrb[92].mxu0 %vm97_vm1, %v14736_v27 }
0x3128   :  { %20404 = vmatpush3.bf16.msra.mxu0 %v20401_v51 }
0x3129   :  { %20406 = vmatprep.subr.bf16.mxu0 %v20405_v36 }
0x312c   :  { %20408 = vmatpush3.bf16.msra.mxu0 %v20405_v36 }
0x312d   :  { %20410 = vmatprep.subr.bf16.mxu0 %v20409_v2 }
0x31fa   :  { %v19795_v19 = vpop.f32.mrb[92].mxu0 }
0x31fb   :  { %v14828_v45 = vadd.f32 %v19795_v19, %v18450_v56  ;;  %v14822_v55 = vpop.f32.mrb[93].mxu0  ;;  %v18487_v19 = vld [vmem:[%s24122_s20 + $0x60] sm:$0xff] }
0x31fc   :  { %v14823_v38 = vadd.f32 %v18450_v56, %v14822_v55  ;;  %v20413_v56 = vpack.c.bf16 %v18484_v34, %v18483_v32 }
0x31fd   :  { %v14834_v44 = vmul.f32 0.70710677, %v14828_v45  ;;  %v14832_v18 = vmul.f32 0.5, %v14828_v45  ;;  %v18488_v45 = vld [vmem:[%s24122_s20 + $0x68] sm:$0xff] }
0x31fe   :  { %v14833_v52 = vmul.f32 0.70710677, %v14823_v38  ;;  %v14831_v59 = vmul.f32 0.5, %v14823_v38  ;;  %v20417_v55 = vpack.c.bf16 %v18488_v45, %v18487_v19  ;;  %v18489_v38 = vld [vmem:[%s24122_s20 + $0x70] sm:$0xff] }
0x31ff   :  { %20676 = verf.f32 %v14834_v44  ;;  %v18490_v44 = vld [vmem:[%s24122_s20 + $0x78] sm:$0xff] }
0x3200   :  { %20678 = verf.f32 %v14833_v52  ;;  %v20421_v52 = vpack.c.bf16 %v18490_v44, %v18489_v38 }
0x3209   :  { %v20677_v61 = vpop.eup %20676 }
0x320a   :  { %v20679_v0 = vpop.eup %20678  ;;  %v14838_v14 = vadd.f32 1.0, %v20677_v61 }
0x320b   :  { %v14837_v23 = vadd.f32 1.0, %v20679_v0 }
0x320c   :  { %v14840_v53 = vmul.f32 %v14838_v14, %v14832_v18 }
0x320d   :  { %v14839_v24 = vmul.f32 %v14837_v23, %v14831_v59 }
0x320f   :  { %19828 = vmatprep.mubr.f32.mxu1 %v14839_v24 }
0x3210   :  { %19829 = vmatmul.mubr.f32.vlgmr.msra.gmra.mrb[100].mxu1 %v14840_v53 }
0x3211   :  { %19876 = vmatprep.mubr.msk.f32.mxu1 %vm20751_vm2, %v20752_v33 }
0x32e3   :  { %v19830_v11 = vpop.f32.mrb[100].mxu1 }
0x32e4   :  { %v14934_v50 = vadd.f32 %v19830_v11, %v23471_v41  ;;  %v14924_v39 = vpop.f32.mrb[101].mxu1 }
0x32e5   :  { %v14933_v57 = vadd.f32 %v14924_v39, %v23474_v4 }
0x32e6   :  { %v23563_v31 = vadd.f32 %v18470_v1, %v14934_v50 }
0x32e7   :  { %v23565_v9 = vadd.f32 %v18470_v1, %v14933_v57 }
0x32e8   :  { %v14952_v6 = vsel %vm97_vm1, %v23563_v31, 0.0 }
0x32e9   :  { %14953 = vadd.xlane.f32.xlu1 %v14952_v6  ;;  %v14949_v37 = vsel %vm97_vm1, %v23565_v9, 0.0 }
0x32ea   :  { %14950 = vadd.xlane.f32.xlu0 %v14949_v37 }
0x3376   :  { %v14954_v5 = vpop.xlane.xlu1 %14953 }
0x3377   :  { %v14956_v25 = vmul.f32 0.03125, %v14954_v5  ;;  %v14951_v17 = vpop.xlane.xlu0 %14950 }
0x3378   :  { %v14955_v49 = vmul.f32 0.03125, %v14951_v17 }
0x3379   :  { %v14958_v41 = vsub.f32 %v23563_v31, %v14956_v25 }
0x337a   :  { %v14957_v4 = vsub.f32 %v23565_v9, %v14955_v49 }
0x337b   :  { %v14960_v8 = vmul.f32 %v14958_v41, %v14958_v41 }
0x337c   :  { %v14959_v60 = vmul.f32 %v14957_v4, %v14957_v4 }
0x337d   :  { %v14964_v54 = vsel %vm97_vm1, %v14960_v8, 0.0 }
0x337e   :  { %14965 = vadd.xlane.f32.xlu1 %v14964_v54  ;;  %v14961_v46 = vsel %vm97_vm1, %v14959_v60, 0.0 }
0x337f   :  { %14962 = vadd.xlane.f32.xlu0 %v14961_v46 }
0x340b   :  { %v14966_v13 = vpop.xlane.xlu1 %14965 }
0x340c   :  { %v14968_v58 = vmul.f32 0.03125, %v14966_v13  ;;  %v14963_v27 = vpop.xlane.xlu0 %14962 }
0x340d   :  { %v14967_v63 = vmul.f32 0.03125, %v14963_v27 }
0x340e   :  { %v14970_v20 = vadd.f32 1e-05, %v14968_v58 }
0x340f   :  { %v14969_v3 = vadd.f32 1e-05, %v14967_v63 }
0x3410   :  { %20680 = vrsqrt.f32 %v14970_v20 }
0x3411   :  { %20682 = vrsqrt.f32 %v14969_v3 }
0x341a   :  { %v20681_v40 = vpop.eup %20680 }
0x341b   :  { %v20683_v22 = vpop.eup %20682  ;;  %v14974_v10 = vmul.f32 %v20681_v40, %v14958_v41 }
0x341c   :  { %v14973_v16 = vmul.f32 %v20683_v22, %v14957_v4 }
0x341d   :  { %v14982_v28 = vmul.f32 %v18473_v30, %v14974_v10 }
0x341e   :  { %v14981_v26 = vmul.f32 %v18473_v30, %v14973_v16 }
0x341f   :  { %v14990_v12 = vadd.f32 %v18474_v43, %v14982_v28 }
0x3420   :  { %v14989_v21 = vadd.f32 %v18474_v43, %v14981_v26 }
0x3422   :  { %19839 = vmatprep.mubr.msk.f32.mxu0 %vm97_vm1, %v14989_v21 }
0x3423   :  { %19840 = vmatmul.mubr.msk.f32.vlgmr.msra.gmra.mrb[94].mxu0 %vm97_vm1, %v14990_v12 }
0x3424   :  { %20412 = vmatpush3.bf16.msra.mxu0 %v20409_v2  ;;  %19850 = vmatprep.mubr.msk.f32.mxu0 %vm97_vm1, %v14989_v21 }
0x3425   :  { %20414 = vmatprep.subr.bf16.mxu0 %v20413_v56 }
0x3428   :  { %20416 = vmatpush3.bf16.msra.mxu0 %v20413_v56 }
0x3429   :  { %20418 = vmatprep.subr.bf16.mxu0 %v20417_v55 }
0x342b   :  { %19851 = vmatmul.mubr.msk.f32.vlgmr.msra.gmra.mrb[96].mxu0 %vm97_vm1, %v14990_v12 }
0x342c   :  { %20420 = vmatpush3.bf16.msra.mxu0 %v20417_v55  ;;  %19861 = vmatprep.mubr.msk.f32.mxu0 %vm97_vm1, %v14989_v21 }
0x342d   :  { %20422 = vmatprep.subr.bf16.mxu0 %v20421_v52 }
0x3430   :  { %20424 = vmatpush3.bf16.msra.mxu0 %v20421_v52 }
0x3431   :  { %19864 = vmatprep.subr.mxu0 %v20752_v33 }
0x3433   :  { %19862 = vmatmul.mubr.msk.f32.vlgmr.msra.gmra.mrb[98].mxu0 %vm97_vm1, %v14990_v12 }
0x3434   :  { %19866 = vmatprep.mubr.msk.f32.mxu0 %vm20751_vm2, %v20752_v33 }
0x34f6   :  { %v23626_v61 = vpop.f32.mrb[94].mxu0 }
0x34f7   :  { %v15068_v0 = vpop.f32.mrb[95].mxu0 }
0x34f8   :  { %15239 = vrot.lane.b32.xlu1 %v15068_v0, %s24202_s15 }
0x34fe   :  { %v23629_v14 = vpop.f32.mrb[96].mxu0 }
0x34ff   :  { %v15148_v59 = vpop.f32.mrb[97].mxu0 }
0x3500   :  { %15537 = vrot.lane.b32.xlu1 %v15148_v59, %s24200_s28  ;;  %15531 = vrot.lane.b32.xlu0 %v15148_v59, %s24202_s15 }
0x3504   :  { %15543 = vrot.lane.b32.xlu1 %v15148_v59, %s24203_s9  ;;  %15245 = vrot.lane.b32.xlu0 %v15068_v0, %s24200_s28 }
0x3506   :  { %v23635_v23 = vpop.f32.mrb[98].mxu0 }
0x3507   :  { %v23637_v18 = vpop.f32.mrb[99].mxu0 }
0x3508   :  { %15251 = vrot.lane.b32.xlu1 %v15068_v0, %s24203_s9  ;;  %15533 = vrot.lane.b32.xlu0 %v23629_v14, %s24202_s15 }
0x350c   :  { %15539 = vrot.lane.b32.xlu1 %v23629_v14, %s24200_s28  ;;  %15545 = vrot.lane.b32.xlu0 %v23629_v14, %s24203_s9 }
0x3510   :  { %15241 = vrot.lane.b32.xlu1 %v23626_v61, %s24202_s15  ;;  %15247 = vrot.lane.b32.xlu0 %v23626_v61, %s24200_s28 }
0x3514   :  { %15253 = vrot.lane.b32.xlu1 %v23626_v61, %s24203_s9 }
0x356a   :  { %v15240_v24 = vpop.permute.xlu1 %15239 }
0x3572   :  { %v15538_v53 = vpop.permute.xlu1 %15537  ;;  %v15532_v11 = vpop.permute.xlu0 %15531 }
0x3573   :  { %v15549_v1 = vcombine.low %v15148_v59, %v15538_v53  ;;  %v15550_v50 = vcombine.high %v15148_v59, %v15538_v53 }
0x3575   :  { %v15557_v5 = vrot.slane %v15549_v1, %v21041_v42  ;;  %v15564_v25 = vrot.slane %v15550_v50, %v21041_v42 }
0x3576   :  { %v15544_v39 = vpop.permute.xlu1 %15543  ;;  %v15246_v57 = vpop.permute.xlu0 %15245 }
0x3577   :  { %v15565_v6 = vcombine.low %v15532_v11, %v15544_v39  ;;  %v15566_v37 = vcombine.high %v15532_v11, %v15544_v39  ;;  %v15257_v41 = vcombine.low %v15068_v0, %v15246_v57  ;;  %v15258_v4 = vcombine.high %v15068_v0, %v15246_v57 }
0x3579   :  { %v15573_v17 = vrot.slane %v15565_v6, %v21041_v42  ;;  %v15580_v49 = vrot.slane %v15566_v37, %v21041_v42  ;;  %v15265_v2 = vrot.slane %v15257_v41, %v21041_v42  ;;  %v15272_v13 = vrot.slane %v15258_v4, %v21041_v42 }
0x357a   :  { %v15252_v8 = vpop.permute.xlu1 %15251  ;;  %v15534_v7 = vpop.permute.xlu0 %15533 }
0x357b   :  { %v15581_v60 = vcombine.low %v15557_v5, %v15573_v17  ;;  %v15582_v54 = vcombine.high %v15557_v5, %v15573_v17  ;;  %v15597_v46 = vcombine.low %v15564_v25, %v15580_v49  ;;  %v15598_v62 = vcombine.high %v15564_v25, %v15580_v49 }
0x357c   :  { %v15273_v15 = vcombine.low %v15240_v24, %v15252_v8  ;;  %v15274_v51 = vcombine.high %v15240_v24, %v15252_v8 }
0x357d   :  { %v15589_v48 = vrot.slane %v15581_v60, %v21047_v47  ;;  %v15596_v36 = vrot.slane %v15582_v54, %v21047_v47  ;;  %v15605_v29 = vrot.slane %v15597_v46, %v21047_v47  ;;  %v15612_v35 = vrot.slane %v15598_v62, %v21047_v47 }
0x357e   :  { %v15281_v58 = vrot.slane %v15273_v15, %v21041_v42  ;;  %v15288_v27 = vrot.slane %v15274_v51, %v21041_v42  ;;  %v15540_v63 = vpop.permute.xlu1 %15539  ;;  %v15546_v21 = vpop.permute.xlu0 %15545 }
0x357f   :  { %v15685_v20 = vcombine.low %v15589_v48, %v15596_v36  ;;  %v18497_v3 = vcombine.high %v15589_v48, %v15596_v36  ;;  %v15701_v40 = vcombine.low %v15605_v29, %v15612_v35  ;;  %v18498_v30 = vcombine.high %v15605_v29, %v15612_v35 }
0x3580   :  { %v15289_v22 = vcombine.low %v15265_v2, %v15281_v58  ;;  %v15290_v10 = vcombine.high %v15265_v2, %v15281_v58  ;;  %v15305_v16 = vcombine.low %v15272_v13, %v15288_v27  ;;  %v15306_v43 = vcombine.high %v15272_v13, %v15288_v27 }
0x3581   :  { %v23665_v28 = vrot.slane %v15685_v20, %v21041_v42  ;;  %v23668_v26 = vrot.slane %v18497_v3, %v21041_v42  ;;  %v23671_v32 = vrot.slane %v15701_v40, %v21041_v42  ;;  %v23674_v34 = vrot.slane %v18498_v30, %v21041_v42 }
0x3582   :  { %v15297_v12 = vrot.slane %v15289_v22, %v21047_v47  ;;  %v15304_v56 = vrot.slane %v15290_v10, %v21047_v47  ;;  %v15313_v19 = vrot.slane %v15305_v16, %v21047_v47  ;;  %v15320_v45 = vrot.slane %v15306_v43, %v21047_v47  ;;  %v15242_v55 = vpop.permute.xlu1 %15241  ;;  %v15248_v49 = vpop.permute.xlu0 %15247 }
0x3583   :  { %v15717_v38 = vcombine.low %v23665_v28, %v23668_v26  ;;  %v15718_v44 = vcombine.high %v23665_v28, %v23668_v26  ;;  %v15617_v53 = vcombine.low %v23629_v14, %v15540_v63  ;;  %v15618_v11 = vcombine.high %v23629_v14, %v15540_v63 }
0x3584   :  { %v15393_v52 = vcombine.low %v15297_v12, %v15304_v56  ;;  %v18493_v0 = vcombine.high %v15297_v12, %v15304_v56  ;;  %v15409_v59 = vcombine.low %v15313_v19, %v15320_v45  ;;  %v18494_v24 = vcombine.high %v15313_v19, %v15320_v45 }
0x3585   :  { %v15633_v1 = vcombine.low %v15534_v7, %v15546_v21  ;;  %v15634_v50 = vcombine.high %v15534_v7, %v15546_v21  ;;  %v15733_v39 = vcombine.low %v23671_v32, %v23674_v34  ;;  %v15734_v57 = vcombine.high %v23671_v32, %v23674_v34 }
0x3586   :  { %v23691_v6 = vrot.slane %v15393_v52, %v21041_v42  ;;  %v23694_v37 = vrot.slane %v18493_v0, %v21041_v42  ;;  %v15625_v5 = vrot.slane %v15617_v53, %v21041_v42  ;;  %v15632_v25 = vrot.slane %v15618_v11, %v21041_v42  ;;  %v15254_v41 = vpop.permute.xlu1 %15253 }
0x3587   :  { %v15641_v14 = vrot.slane %v15633_v1, %v21041_v42  ;;  %v15648_v17 = vrot.slane %v15634_v50, %v21041_v42  ;;  %v23701_v4 = vrot.slane %v15409_v59, %v21041_v42  ;;  %v23704_v8 = vrot.slane %v18494_v24, %v21041_v42 }
0x3588   :  { %v15425_v60 = vcombine.low %v23691_v6, %v23694_v37  ;;  %v15426_v54 = vcombine.high %v23691_v6, %v23694_v37  ;;  %v15325_v51 = vcombine.low %v23626_v61, %v15248_v49  ;;  %v15326_v48 = vcombine.high %v23626_v61, %v15248_v49 }
0x3589   :  { %v15649_v46 = vcombine.low %v15625_v5, %v15641_v14  ;;  %v15650_v62 = vcombine.high %v15625_v5, %v15641_v14  ;;  %v15665_v7 = vcombine.low %v15632_v25, %v15648_v17  ;;  %v15666_v15 = vcombine.high %v15632_v25, %v15648_v17 }
0x358a   :  { %v15341_v36 = vcombine.low %v15242_v55, %v15254_v41  ;;  %v15342_v29 = vcombine.high %v15242_v55, %v15254_v41  ;;  %v15333_v27 = vrot.slane %v15325_v51, %v21041_v42  ;;  %v15340_v63 = vrot.slane %v15326_v48, %v21041_v42 }
0x358b   :  { %v15657_v35 = vrot.slane %v15649_v46, %v21047_v47  ;;  %v15664_v2 = vrot.slane %v15650_v62, %v21047_v47  ;;  %v15673_v13 = vrot.slane %v15665_v7, %v21047_v47  ;;  %v15680_v58 = vrot.slane %v15666_v15, %v21047_v47 }
0x358c   :  { %v15349_v20 = vrot.slane %v15341_v36, %v21041_v42  ;;  %v15356_v3 = vrot.slane %v15342_v29, %v21041_v42  ;;  %v15441_v0 = vcombine.low %v23701_v4, %v23704_v8  ;;  %v15442_v59 = vcombine.high %v23701_v4, %v23704_v8 }
0x358d   :  { %v15753_v40 = vcombine.low %v15657_v35, %v15664_v2  ;;  %v18499_v61 = vcombine.high %v15657_v35, %v15664_v2  ;;  %v15769_v30 = vcombine.low %v15673_v13, %v15680_v58  ;;  %v18500_v22 = vcombine.high %v15673_v13, %v15680_v58 }
0x358e   :  { %v15357_v10 = vcombine.low %v15333_v27, %v15349_v20  ;;  %v15358_v16 = vcombine.high %v15333_v27, %v15349_v20  ;;  %v15373_v43 = vcombine.low %v15340_v63, %v15356_v3  ;;  %v15374_v32 = vcombine.high %v15340_v63, %v15356_v3 }
0x358f   :  { %v15760_v34 = vrot.slane %v15753_v40, %v21041_v42  ;;  %v15768_v21 = vrot.slane %v18499_v61, %v21041_v42  ;;  %v15776_v12 = vrot.slane %v15769_v30, %v21041_v42  ;;  %v15784_v56 = vrot.slane %v18500_v22, %v21041_v42 }
0x3590   :  { %v15365_v19 = vrot.slane %v15357_v10, %v21047_v47  ;;  %v15372_v45 = vrot.slane %v15358_v16, %v21047_v47  ;;  %v15381_v55 = vrot.slane %v15373_v43, %v21047_v47  ;;  %v15388_v52 = vrot.slane %v15374_v32, %v21047_v47 }
0x3591   :  { %v15785_v24 = vcombine.low %v15760_v34, %v15768_v21  ;;  %v15801_v53 = vcombine.low %v15776_v12, %v15784_v56  ;;  %v15725_v37 = vrot.slane %v15717_v38, %v21047_v47  ;;  %v15741_v5 = vrot.slane %v15733_v39, %v21047_v47 }
0x3592   :  { %v15461_v11 = vcombine.low %v15365_v19, %v15372_v45  ;;  %v18495_v1 = vcombine.high %v15365_v19, %v15372_v45  ;;  %v15477_v50 = vcombine.low %v15381_v55, %v15388_v52  ;;  %v18496_v6 = vcombine.high %v15381_v55, %v15388_v52 }
0x3593   :  { %v15732_v25 = vrot.slane %v15718_v44, %v21047_v47  ;;  %v15748_v14 = vrot.slane %v15734_v57, %v21047_v47  ;;  %v15749_v8 = vcombine.low %v15725_v37, %v15741_v5  ;;  %v15433_v38 = vrot.slane %v15425_v60, %v21047_v47 }
0x3594   :  { %v15468_v17 = vrot.slane %v15461_v11, %v21041_v42  ;;  %v15476_v49 = vrot.slane %v18495_v1, %v21041_v42  ;;  %v15484_v41 = vrot.slane %v15477_v50, %v21041_v42  ;;  %v15492_v4 = vrot.slane %v18496_v6, %v21041_v42 }
0x3595   :  { %v15751_v46 = vcombine.low %v15732_v25, %v15748_v14  ;;  %v15449_v39 = vrot.slane %v15441_v0, %v21047_v47  ;;  %v15786_v62 = vcombine.high %v15760_v34, %v15768_v21  ;;  %v15802_v26 = vcombine.high %v15776_v12, %v15784_v56  ;;  %19865 = vmatpush3.xpose.msk.msra.mxu0 %vm4062_vm4, %v15749_v8 }
0x3596   :  { %v15493_v7 = vcombine.low %v15468_v17, %v15476_v49  ;;  %v15509_v28 = vcombine.low %v15484_v41, %v15492_v4  ;;  %v15440_v57 = vrot.slane %v15426_v54, %v21047_v47  ;;  %19869 = vmatprep.subr.mxu0 %v20752_v33  ;;  %v15750_v15 = vcombine.high %v15725_v37, %v15741_v5 }
0x3597   :  { %19875 = vmatpush3.xpose.msk.msra.mxu1 %vm4062_vm4, %v15751_v46  ;;  %v15457_v44 = vcombine.low %v15433_v38, %v15449_v39  ;;  %v15456_v51 = vrot.slane %v15442_v59, %v21047_v47  ;;  %v15793_v60 = vrot.slane %v15785_v24, %v21047_v47  ;;  %v15809_v48 = vrot.slane %v15801_v53, %v21047_v47 }
0x3598   :  { %19884 = vmatprep.subr.mxu1 %v20752_v33  ;;  %v15501_v36 = vrot.slane %v15493_v7, %v21047_v47  ;;  %v15517_v29 = vrot.slane %v15509_v28, %v21047_v47  ;;  %v15494_v35 = vcombine.high %v15468_v17, %v15476_v49  ;;  %v15510_v2 = vcombine.high %v15484_v41, %v15492_v4 }
0x3599   :  { %19867 = vmatmul.mubr.msk.f32.vlgmr.msra.gmra.mrb[100].mxu0 %vm4062_vm4, %v15457_v44  ;;  %v15459_v54 = vcombine.low %v15440_v57, %v15456_v51  ;;  %v15817_v13 = vcombine.low %v15793_v60, %v15809_v48  ;;  %v15800_v58 = vrot.slane %v15786_v62, %v21047_v47  ;;  %v15816_v27 = vrot.slane %v15802_v26, %v21047_v47 }
0x359a   :  { %19870 = vmatpush3.xpose.msk.msra.mxu0 %vm4062_vm4, %v15750_v15  ;;  %19871 = vmatprep.mubr.msk.f32.mxu0 %vm20751_vm2, %v20752_v33  ;;  %v15458_v63 = vcombine.high %v15433_v38, %v15449_v39  ;;  %v15525_v20 = vcombine.low %v15501_v36, %v15517_v29  ;;  %v15752_v3 = vcombine.high %v15732_v25, %v15748_v14 }
0x359b   :  { %19877 = vmatmul.mubr.msk.f32.vlgmr.msra.gmra.mrb[102].mxu1 %vm4062_vm4, %v15459_v54  ;;  %19879 = vmatprep.subr.mxu0 %v20752_v33  ;;  %v15508_v40 = vrot.slane %v15494_v35, %v21047_v47  ;;  %v15524_v61 = vrot.slane %v15510_v2, %v21047_v47  ;;  %v15819_v30 = vcombine.low %v15800_v58, %v15816_v27 }
0x359c   :  { %19885 = vmatpush3.xpose.msk.msra.mxu1 %vm4062_vm4, %v15817_v13  ;;  %19886 = vmatprep.mubr.msk.f32.mxu1 %vm20751_vm2, %v20752_v33  ;;  %v15460_v22 = vcombine.high %v15440_v57, %v15456_v51  ;;  %v15818_v10 = vcombine.high %v15793_v60, %v15809_v48  ;;  %v15526_v16 = vcombine.high %v15501_v36, %v15517_v29 }
0x359d   :  { %19872 = vmatmul.mubr.msk.f32.vlgmr.msra.gmra.mrb[102].mxu0 %vm4062_vm4, %v15458_v63  ;;  %19894 = vmatprep.subr.mxu1 %v20752_v33  ;;  %v15527_v43 = vcombine.low %v15508_v40, %v15524_v61  ;;  %v15820_v32 = vcombine.high %v15800_v58, %v15816_v27  ;;  %v15528_v34 = vcombine.high %v15508_v40, %v15524_v61 }
0x359e   :  { %19880 = vmatpush3.xpose.msk.msra.mxu0 %vm4062_vm4, %v15752_v3  ;;  %19881 = vmatprep.mubr.msk.f32.mxu0 %vm20751_vm2, %v20752_v33 }
0x359f   :  { %19889 = vmatprep.subr.mxu0 %v20752_v33  ;;  %19887 = vmatmul.mubr.msk.f32.vlgmr.msra.gmra.mrb[104].mxu1 %vm4062_vm4, %v15525_v20 }
0x35a0   :  { %19895 = vmatpush3.xpose.msk.msra.mxu1 %vm4062_vm4, %v15819_v30  ;;  %19896 = vmatprep.mubr.msk.f32.mxu1 %vm20751_vm2, %v20752_v33 }
0x35a1   :  { %19882 = vmatmul.mubr.msk.f32.vlgmr.msra.gmra.mrb[104].mxu0 %vm4062_vm4, %v15460_v22  ;;  %19904 = vmatprep.subr.mxu1 %v20752_v33 }
0x35a2   :  { %19890 = vmatpush3.xpose.msk.msra.mxu0 %vm4062_vm4, %v15818_v10  ;;  %19891 = vmatprep.mubr.msk.f32.mxu0 %vm20751_vm2, %v20752_v33 }
0x35a3   :  { %19899 = vmatprep.subr.mxu0 %v20752_v33  ;;  %19897 = vmatmul.mubr.msk.f32.vlgmr.msra.gmra.mrb[106].mxu1 %vm4062_vm4, %v15527_v43 }
0x35a4   :  { %19906 = vmatprep.mubr.msk.f32.mxu1 %vm20751_vm2, %v20752_v33 }
0x35a5   :  { %19892 = vmatmul.mubr.msk.f32.vlgmr.msra.gmra.mrb[106].mxu0 %vm4062_vm4, %v15526_v16 }
0x35a6   :  { %19900 = vmatpush3.xpose.msk.msra.mxu0 %vm4062_vm4, %v15820_v32  ;;  %19901 = vmatprep.mubr.msk.f32.mxu0 %vm20751_vm2, %v20752_v33 }
0x35a7   :  { %19909 = vmatprep.subr.mxu0 %v20752_v33 }
0x35a9   :  { %19902 = vmatmul.mubr.msk.f32.vlgmr.msra.gmra.mrb[108].mxu0 %vm4062_vm4, %v15528_v34 }
0x35aa   :  { %19911 = vmatprep.mubr.msk.f32.mxu0 %vm20751_vm2, %v20752_v33 }
0x366c   :  { %v16185_v21 = vpop.f32.mrb[100].mxu0 }
0x366d   :  { %v19868_v12 = vpop.f32.mrb[101].mxu0  ;;  %v16721_v56 = vsel %vm4062_vm4, %v16185_v21, -inf }
0x366e   :  { %v16337_v19 = vpop.f32.mrb[102].mxu1  ;;  %16722 = vmax.xlane.f32.xlu0 %v16721_v56 }
0x366f   :  { %v19878_v45 = vpop.f32.mrb[103].mxu1  ;;  %v16727_v0 = vsel %vm4062_vm4, %v16337_v19, -inf }
0x3670   :  { %v16261_v55 = vpop.f32.mrb[102].mxu0 }
0x3671   :  { %v19873_v52 = vpop.f32.mrb[103].mxu0  ;;  %v16724_v59 = vsel %vm4062_vm4, %v16261_v55, -inf }
0x3672   :  { %16728 = vmax.xlane.f32.xlu0 %v16727_v0  ;;  %16725 = vmax.xlane.f32.xlu1 %v16724_v59  ;;  %v16489_v24 = vpop.f32.mrb[104].mxu1 }
0x3673   :  { %v19888_v53 = vpop.f32.mrb[105].mxu1  ;;  %v16733_v11 = vsel %vm4062_vm4, %v16489_v24, -inf }
0x3674   :  { %v16413_v1 = vpop.f32.mrb[104].mxu0 }
0x3675   :  { %v19883_v50 = vpop.f32.mrb[105].mxu0  ;;  %v16730_v14 = vsel %vm4062_vm4, %v16413_v1, -inf }
0x3676   :  { %16734 = vmax.xlane.f32.xlu0 %v16733_v11  ;;  %v16641_v6 = vpop.f32.mrb[106].mxu1 }
0x3677   :  { %v19898_v37 = vpop.f32.mrb[107].mxu1  ;;  %v16739_v41 = vsel %vm4062_vm4, %v16641_v6, -inf }
0x3678   :  { %v23802_v5 = vpop.f32.mrb[106].mxu0 }
0x3679   :  { %v19893_v25 = vpop.f32.mrb[107].mxu0  ;;  %v16736_v4 = vsel %vm4062_vm4, %v23802_v5, -inf }
0x367a   :  { %16731 = vmax.xlane.f32.xlu0 %v16730_v14 }
0x367c   :  { %v23805_v17 = vpop.f32.mrb[108].mxu0 }
0x367d   :  { %v19903_v49 = vpop.f32.mrb[109].mxu0  ;;  %v16742_v8 = vsel %vm4062_vm4, %v23805_v17, -inf }
0x367e   :  { %16740 = vmax.xlane.f32.xlu0 %v16739_v41 }
0x3683   :  { %15829 = vrot.lane.b32.xlu1 %v23637_v18, %s24200_s28 }
0x3687   :  { %15835 = vrot.lane.b32.xlu1 %v23637_v18, %s24203_s9 }
0x3694   :  { %15823 = vrot.lane.b32.xlu0 %v23637_v18, %s24202_s15 }
0x36ab   :  { %16737 = vmax.xlane.f32.xlu1 %v16736_v4 }
0x36af   :  { %16743 = vmax.xlane.f32.xlu1 %v16742_v8 }
0x36c0   :  { %15825 = vrot.lane.b32.xlu1 %v23635_v23, %s24202_s15  ;;  %s20760_s15 = smov [#allocation2]  }
0x36fb   :  { %v16723_v46 = vpop.xlane.xlu0 %16722 }
0x36fc   :  { %v16745_v38 = vsub.f32 %v16185_v21, %v16723_v46 }
0x36fe   :  { %v16753_v39 = vmul.f32 1.442695, %v16745_v38 }
0x36ff   :  { %v16729_v62 = vpop.xlane.xlu0 %16728  ;;  %v16726_v7 = vpop.xlane.xlu1 %16725 }
0x3700   :  { %20684 = vpow2.f32 %v16753_v39  ;;  %v16747_v28 = vsub.f32 %v16337_v19, %v16729_v62  ;;  %v16746_v26 = vsub.f32 %v16261_v55, %v16726_v7 }
0x3702   :  { %v16757_v44 = vmul.f32 1.442695, %v16747_v28  ;;  %v16755_v57 = vmul.f32 1.442695, %v16746_v26 }
0x3703   :  { %v16735_v15 = vpop.xlane.xlu0 %16734  ;;  %v15830_v29 = vpop.permute.xlu1 %15829 }
0x3704   :  { %20686 = vpow2.f32 %v16757_v44  ;;  %v16749_v51 = vsub.f32 %v16489_v24, %v16735_v15  ;;  %v15841_v63 = vcombine.low %v23637_v18, %v15830_v29  ;;  %v15842_v20 = vcombine.high %v23637_v18, %v15830_v29 }
0x3705   :  { %20688 = vpow2.f32 %v16755_v57 }
0x3706   :  { %v16761_v60 = vmul.f32 1.442695, %v16749_v51  ;;  %v15849_v18 = vrot.slane %v15841_v63, %v21041_v42  ;;  %v15856_v34 = vrot.slane %v15842_v20, %v21041_v42 }
0x3707   :  { %v16732_v48 = vpop.xlane.xlu0 %16731  ;;  %v15836_v61 = vpop.permute.xlu1 %15835 }
0x3708   :  { %20690 = vpow2.f32 %v16761_v60  ;;  %v16748_v36 = vsub.f32 %v16413_v1, %v16732_v48 }
0x370a   :  { %v23820_v35 = vpop.eup %20684  ;;  %v16759_v2 = vmul.f32 1.442695, %v16748_v36 }
0x370b   :  { %v16769_v54 = vsel %vm4062_vm4, %v23820_v35, 0.0  ;;  %v16741_v13 = vpop.xlane.xlu0 %16740 }
0x370c   :  { %20692 = vpow2.f32 %v16759_v2  ;;  %16770 = vadd.xlane.f32.xlu0 %v16769_v54  ;;  %v16751_v58 = vsub.f32 %v16641_v6, %v16741_v13 }
0x370e   :  { %v23824_v27 = vpop.eup %20686  ;;  %v16765_v3 = vmul.f32 1.442695, %v16751_v58 }
0x370f   :  { %v23828_v40 = vpop.eup %20688  ;;  %v16775_v30 = vsel %vm4062_vm4, %v23824_v27, 0.0  ;;  %v15824_v22 = vpop.permute.xlu0 %15823 }
0x3710   :  { %20694 = vpow2.f32 %v16765_v3  ;;  %16776 = vadd.xlane.f32.xlu0 %v16775_v30  ;;  %v16772_v10 = vsel %vm4062_vm4, %v23828_v40, 0.0  ;;  %v15857_v16 = vcombine.low %v15824_v22, %v15836_v61  ;;  %v15858_v43 = vcombine.high %v15824_v22, %v15836_v61 }
0x3711   :  { %16773 = vadd.xlane.f32.xlu1 %v16772_v10 }
0x3712   :  { %v23834_v32 = vpop.eup %20690  ;;  %v15865_v21 = vrot.slane %v15857_v16, %v21041_v42  ;;  %v15872_v12 = vrot.slane %v15858_v43, %v21041_v42 }
0x3713   :  { %v16781_v56 = vsel %vm4062_vm4, %v23834_v32, 0.0 }
0x3714   :  { %v15873_v19 = vcombine.low %v15849_v18, %v15865_v21  ;;  %v15874_v45 = vcombine.high %v15849_v18, %v15865_v21  ;;  %v15889_v55 = vcombine.low %v15856_v34, %v15872_v12  ;;  %v15890_v52 = vcombine.high %v15856_v34, %v15872_v12 }
0x3715   :  { %16782 = vadd.xlane.f32.xlu1 %v16781_v56 }
0x3716   :  { %v23842_v0 = vpop.eup %20692  ;;  %v15881_v59 = vrot.slane %v15873_v19, %v21047_v47  ;;  %v15888_v24 = vrot.slane %v15874_v45, %v21047_v47  ;;  %v15897_v53 = vrot.slane %v15889_v55, %v21047_v47  ;;  %v15904_v11 = vrot.slane %v15890_v52, %v21047_v47 }
0x3717   :  { %v16778_v1 = vsel %vm4062_vm4, %v23842_v0, 0.0 }
0x3718   :  { %v15977_v50 = vcombine.low %v15881_v59, %v15888_v24  ;;  %v18501_v6 = vcombine.high %v15881_v59, %v15888_v24  ;;  %v15993_v37 = vcombine.low %v15897_v53, %v15904_v11  ;;  %v18502_v25 = vcombine.high %v15897_v53, %v15904_v11 }
0x3719   :  { %16779 = vadd.xlane.f32.xlu1 %v16778_v1 }
0x371a   :  { %v23850_v14 = vpop.eup %20694  ;;  %v15984_v49 = vrot.slane %v15977_v50, %v21041_v42  ;;  %v15992_v41 = vrot.slane %v18501_v6, %v21041_v42  ;;  %v16000_v4 = vrot.slane %v15993_v37, %v21041_v42  ;;  %v16008_v8 = vrot.slane %v18502_v25, %v21041_v42 }
0x371b   :  { %v16787_v46 = vsel %vm4062_vm4, %v23850_v14, 0.0 }
0x371c   :  { %16788 = vadd.xlane.f32.xlu0 %v16787_v46  ;;  %v16009_v38 = vcombine.low %v15984_v49, %v15992_v41  ;;  %v16025_v39 = vcombine.low %v16000_v4, %v16008_v8  ;;  %v16010_v62 = vcombine.high %v15984_v49, %v15992_v41  ;;  %v16026_v7 = vcombine.high %v16000_v4, %v16008_v8 }
0x371e   :  { %v16017_v28 = vrot.slane %v16009_v38, %v21047_v47  ;;  %v16033_v26 = vrot.slane %v16025_v39, %v21047_v47  ;;  %v16024_v44 = vrot.slane %v16010_v62, %v21047_v47  ;;  %v16040_v57 = vrot.slane %v16026_v7, %v21047_v47 }
0x3720   :  { %v16041_v15 = vcombine.low %v16017_v28, %v16033_v26  ;;  %v16042_v51 = vcombine.high %v16017_v28, %v16033_v26  ;;  %v16043_v60 = vcombine.low %v16024_v44, %v16040_v57  ;;  %v16044_v48 = vcombine.high %v16024_v44, %v16040_v57 }
0x3722   :  { %19905 = vmatpush3.msra.mxu1 %v16041_v15  ;;  %19910 = vmatpush3.msra.mxu0 %v16042_v51 }
0x3723   :  { %19914 = vmatprep.subr.mxu1 %v20752_v33  ;;  %19919 = vmatprep.subr.mxu0 %v20752_v33 }
0x372a   :  { %15837 = vrot.lane.b32.xlu1 %v23635_v23, %s24203_s9  ;;  %s18044_s9 = sshll.u32 %s20760_s15, 4  ;;  %s18045_s9 = int_to_ptr.vmem [resolvable:$true] %s18044_s9 }
0x372b   :  { %s20725_s8 = scalar_lea.vmem %s18045_s9, 256  ;;  %p20730_p1 = scmp.lt.s32.totalorder %s18045_s9, %s18045_s9 }
0x372c   :  { %p20726_p0 = scmp.ne.s32.totalorder %s18045_s9, %s20725_s8  ;;  %p20731_p2 = scmp.lt.s32.totalorder %s20725_s8, %s20725_s8 }
0x372e   :  { %p20732_p3 = por %p20731_p2, %p20730_p1 }
0x3730   :  { %p20733_p4 = pnand %p20732_p3, %p20726_p0 }
0x3738   :  { %v16738_v36 = vpop.xlane.xlu1 %16737 }
0x3739   :  { %v16750_v29 = vsub.f32 %v23802_v5, %v16738_v36 }
0x373b   :  { %v16763_v2 = vmul.f32 1.442695, %v16750_v29 }
0x373c   :  { %v16744_v54 = vpop.xlane.xlu1 %16743 }
0x373d   :  { %20696 = vpow2.f32 %v16763_v2  ;;  %v16752_v13 = vsub.f32 %v23805_v17, %v16744_v54 }
0x373f   :  { %v16767_v58 = vmul.f32 1.442695, %v16752_v13 }
0x3740   :  { %v15826_v30 = vpop.permute.xlu1 %15825 }
0x3741   :  { %20698 = vpow2.f32 %v16767_v58 }
0x3747   :  { %v23868_v63 = vpop.eup %20696 }
0x3748   :  { %v16784_v20 = vsel %vm4062_vm4, %v23868_v63, 0.0 }
0x3749   :  { %16785 = vadd.xlane.f32.xlu0 %v16784_v20 }
0x374b   :  { %v23872_v3 = vpop.eup %20698 }
0x374c   :  { %v16790_v61 = vsel %vm4062_vm4, %v23872_v3, 0.0 }
0x374d   :  { %16791 = vadd.xlane.f32.xlu0 %v16790_v61 }
0x3763   :  { %15831 = vrot.lane.b32.xlu0 %v23635_v23, %s24200_s28 }
0x3799   :  { %v16771_v5 = vpop.xlane.xlu0 %16770 }
0x379a   :  { %20700 = vrcp.f32 %v16771_v5 }
0x379d   :  { %v16777_v17 = vpop.xlane.xlu0 %16776 }
0x379e   :  { %20702 = vrcp.f32 %v16777_v17  ;;  %v16774_v22 = vpop.xlane.xlu1 %16773 }
0x379f   :  { %20704 = vrcp.f32 %v16774_v22 }
0x37a2   :  { %v16783_v10 = vpop.xlane.xlu1 %16782 }
0x37a4   :  { %v20701_v16 = vpop.eup %20700 }
0x37a5   :  { %v16801_v43 = vmul.f32 %v20701_v16, %v23820_v35 }
0x37a6   :  { %v16780_v18 = vpop.xlane.xlu1 %16779 }
0x37a7   :  { %19907 = vmatmul.mubr.msk.f32.vlgmr.msra.gmra.mrb[108].mxu1 %vm4062_vm4, %v16801_v43  ;;  %20706 = vrcp.f32 %v16780_v18 }
0x37a8   :  { %v20703_v34 = vpop.eup %20702  ;;  %19915 = vmatpush3.msra.mxu1 %v16043_v60  ;;  %19916 = vmatprep.mubr.msk.f32.mxu1 %vm20751_vm2, %v20752_v33  ;;  %20708 = vrcp.f32 %v16783_v10 }
0x37a9   :  { %v20705_v21 = vpop.eup %20704  ;;  %v16803_v12 = vmul.f32 %v20703_v34, %v23824_v27  ;;  %19924 = vmatprep.subr.mxu1 %v20752_v33 }
0x37aa   :  { %v16802_v56 = vmul.f32 %v20705_v21, %v23828_v40  ;;  %v16789_v40 = vpop.xlane.xlu0 %16788  ;;  %v15838_v45 = vpop.permute.xlu1 %15837 }
0x37ab   :  { %19917 = vmatmul.mubr.msk.f32.vlgmr.msra.gmra.mrb[110].mxu1 %vm4062_vm4, %v16803_v12  ;;  %v15925_v52 = vcombine.low %v15826_v30, %v15838_v45  ;;  %v15926_v59 = vcombine.high %v15826_v30, %v15838_v45 }
0x37ac   :  { %19912 = vmatmul.mubr.msk.f32.vlgmr.msra.gmra.mrb[110].mxu0 %vm4062_vm4, %v16802_v56  ;;  %19926 = vmatprep.mubr.msk.f32.mxu1 %vm20751_vm2, %v20752_v33 }
0x37ad   :  { %19920 = vmatpush3.msra.mxu0 %v16044_v48  ;;  %19921 = vmatprep.mubr.msk.f32.mxu0 %vm20751_vm2, %v20752_v33  ;;  %v15933_v1 = vrot.slane %v15925_v52, %v21041_v42 }
0x37ae   :  { %19929 = vmatprep.subr.mxu0 %v20752_v33 }
0x37b1   :  { %v20707_v35 = vpop.eup %20706 }
0x37b2   :  { %v16804_v27 = vmul.f32 %v20707_v35, %v23842_v0  ;;  %v15940_v0 = vrot.slane %v15926_v59, %v21041_v42  ;;  %v20709_v15 = vpop.eup %20708 }
0x37b3   :  { %v16805_v10 = vmul.f32 %v20709_v15, %v23834_v32 }
0x37b4   :  { %19922 = vmatmul.mubr.msk.f32.vlgmr.msra.gmra.mrb[112].mxu0 %vm4062_vm4, %v16804_v27 }
0x37b5   :  { %19931 = vmatprep.mubr.msk.f32.mxu0 %vm20751_vm2, %v20752_v33 }
0x37d6   :  { %v16786_v19 = vpop.xlane.xlu0 %16785 }
0x37d7   :  { %20710 = vrcp.f32 %v16786_v19 }
0x37d8   :  { %20712 = vrcp.f32 %v16789_v40 }
0x37da   :  { %v16792_v55 = vpop.xlane.xlu0 %16791 }
0x37db   :  { %20714 = vrcp.f32 %v16792_v55 }
0x37de   :  { %v15832_v24 = vpop.permute.xlu0 %15831 }
0x37df   :  { %v15909_v53 = vcombine.low %v23635_v23, %v15832_v24  ;;  %v15910_v11 = vcombine.high %v23635_v23, %v15832_v24 }
0x37e1   :  { %v15917_v50 = vrot.slane %v15909_v53, %v21041_v42  ;;  %v15924_v6 = vrot.slane %v15910_v11, %v21041_v42  ;;  %v20711_v29 = vpop.eup %20710 }
0x37e2   :  { %v20713_v20 = vpop.eup %20712  ;;  %v16806_v16 = vmul.f32 %v20711_v29, %v23868_v63 }
0x37e3   :  { %v15941_v37 = vcombine.low %v15917_v50, %v15933_v1  ;;  %v15942_v25 = vcombine.high %v15917_v50, %v15933_v1  ;;  %v15957_v49 = vcombine.low %v15924_v6, %v15940_v0  ;;  %v15958_v41 = vcombine.high %v15924_v6, %v15940_v0 }
0x37e4   :  { %v16807_v43 = vmul.f32 %v20713_v20, %v23850_v14 }
0x37e5   :  { %v15949_v4 = vrot.slane %v15941_v37, %v21047_v47  ;;  %v15956_v8 = vrot.slane %v15942_v25, %v21047_v47  ;;  %v15965_v23 = vrot.slane %v15957_v49, %v21047_v47  ;;  %v15972_v46 = vrot.slane %v15958_v41, %v21047_v47  ;;  %v20715_v22 = vpop.eup %20714 }
0x37e6   :  { %v16808_v18 = vmul.f32 %v20715_v22, %v23872_v3 }
0x37e7   :  { %v16045_v38 = vcombine.low %v15949_v4, %v15956_v8  ;;  %v18503_v39 = vcombine.high %v15949_v4, %v15956_v8  ;;  %v16061_v62 = vcombine.low %v15965_v23, %v15972_v46  ;;  %v18504_v7 = vcombine.high %v15965_v23, %v15972_v46 }
0x37e9   :  { %v16052_v28 = vrot.slane %v16045_v38, %v21041_v42  ;;  %v16060_v26 = vrot.slane %v18503_v39, %v21041_v42  ;;  %v16068_v44 = vrot.slane %v16061_v62, %v21041_v42  ;;  %v16076_v57 = vrot.slane %v18504_v7, %v21041_v42 }
0x37eb   :  { %v16077_v51 = vcombine.low %v16052_v28, %v16060_v26  ;;  %v16093_v60 = vcombine.low %v16068_v44, %v16076_v57  ;;  %v16078_v48 = vcombine.high %v16052_v28, %v16060_v26  ;;  %v16094_v36 = vcombine.high %v16068_v44, %v16076_v57 }
0x37ed   :  { %v16085_v2 = vrot.slane %v16077_v51, %v21047_v47  ;;  %v16101_v54 = vrot.slane %v16093_v60, %v21047_v47  ;;  %v16092_v13 = vrot.slane %v16078_v48, %v21047_v47  ;;  %v16108_v58 = vrot.slane %v16094_v36, %v21047_v47 }
0x37ef   :  { %v16109_v61 = vcombine.low %v16085_v2, %v16101_v54  ;;  %v16110_v5 = vcombine.high %v16085_v2, %v16101_v54  ;;  %v16111_v30 = vcombine.low %v16092_v13, %v16108_v58  ;;  %v16112_v17 = vcombine.high %v16092_v13, %v16108_v58 }
0x37f1   :  { %19925 = vmatpush3.msra.mxu1 %v16109_v61  ;;  %19930 = vmatpush3.msra.mxu0 %v16110_v5 }
0x37f2   :  { %19927 = vmatmul.mubr.msk.f32.vlgmr.msra.gmra.mrb[112].mxu1 %vm4062_vm4, %v16805_v10  ;;  %19932 = vmatmul.mubr.msk.f32.vlgmr.msra.gmra.mrb[114].mxu0 %vm4062_vm4, %v16806_v16 }
0x37f3   :  { %19934 = vmatprep.subr.mxu1 %v20752_v33  ;;  %19939 = vmatprep.subr.mxu0 %v20752_v33 }
0x37f4   :  { %19935 = vmatpush3.msra.mxu1 %v16111_v30  ;;  %19940 = vmatpush3.msra.mxu0 %v16112_v17 }
0x37f5   :  { %19936 = vmatprep.mubr.msk.f32.mxu1 %vm20751_vm2, %v20752_v33  ;;  %19941 = vmatprep.mubr.msk.f32.mxu0 %vm20751_vm2, %v20752_v33 }
0x37f6   :  { %19937 = vmatmul.mubr.msk.f32.vlgmr.msra.gmra.mrb[114].mxu1 %vm4062_vm4, %v16807_v43  ;;  %19942 = vmatmul.mubr.msk.f32.vlgmr.msra.gmra.mrb[116].mxu0 %vm4062_vm4, %v16808_v18 }
0x387a   :  { %v16878_v32 = vpop.f32.mrb[108].mxu1 }
0x387b   :  { %v19908_v63 = vpop.f32.mrb[109].mxu1 }
0x387e   :  { %v17024_v34 = vpop.f32.mrb[110].mxu1 }
0x387f   :  { %v16951_v21 = vpop.f32.mrb[110].mxu0  ;;  %v17393_v12 = vcombine.low %v16878_v32, %v17024_v34  ;;  %v17394_v14 = vcombine.high %v16878_v32, %v17024_v34  ;;  %v19918_v56 = vpop.f32.mrb[111].mxu1 }
0x3880   :  { %v19913_v3 = vpop.f32.mrb[111].mxu0 }
0x3881   :  { %v17401_v45 = vrot.slane %v17393_v12, %v21041_v42  ;;  %v17408_v33 = vrot.slane %v17394_v14, %v21041_v42  ;;  %v18533_v12 = vld [vmem:[%s24215_s4 + $0x60] sm:$0xff]  ;;  %v18534_v14 = vld [vmem:[%s24215_s4 + $0x68] sm:$0xff] }
0x3887   :  { %v17097_v35 = vpop.f32.mrb[112].mxu0 }
0x3888   :  { %v17409_v27 = vcombine.low %v16951_v21, %v17097_v35  ;;  %v17410_v40 = vcombine.high %v16951_v21, %v17097_v35  ;;  %v19923_v19 = vpop.f32.mrb[113].mxu0 }
0x388a   :  { %v17417_v55 = vrot.slane %v17409_v27, %v21041_v42  ;;  %v17424_v52 = vrot.slane %v17410_v40, %v21041_v42  ;;  %v20425_v40 = vpack.c.bf16 %v18534_v14, %v18533_v12  ;;  %v18551_v12 = vld [vmem:[%s24128_s26 + $0x180] sm:$0xff]  ;;  %v18552_v14 = vld [vmem:[%s24128_s26 + $0x188] sm:$0xff] }
0x388c   :  { %v17425_v59 = vcombine.low %v17401_v45, %v17417_v55  ;;  %v17426_v24 = vcombine.high %v17401_v45, %v17417_v55  ;;  %v17441_v53 = vcombine.low %v17408_v33, %v17424_v52  ;;  %v17442_v11 = vcombine.high %v17408_v33, %v17424_v52  ;;  %20426 = vmatprep.subr.bf16.mxu1 %v20425_v40  ;;  %v18535_v52 = vld [vmem:[%s24215_s4 + $0x70] sm:$0xff] }
0x388d   :  { %20428 = vmatpush3.bf16.msra.mxu1 %v20425_v40  ;;  %v18555_v40 = vld [vmem:[%s24128_s26 + $0x1a0] sm:$0xff] }
0x388e   :  { %v17433_v1 = vrot.slane %v17425_v59, %v21047_v47  ;;  %v17440_v0 = vrot.slane %v17426_v24, %v21047_v47  ;;  %v17449_v50 = vrot.slane %v17441_v53, %v21047_v47  ;;  %v17456_v6 = vrot.slane %v17442_v11, %v21047_v47  ;;  %v18536_v59 = vld [vmem:[%s24215_s4 + $0x78] sm:$0xff] }
0x3890   :  { %v17529_v37 = vcombine.low %v17433_v1, %v17440_v0  ;;  %v18529_v25 = vcombine.high %v17433_v1, %v17440_v0  ;;  %v17545_v49 = vcombine.low %v17449_v50, %v17456_v6  ;;  %v18530_v41 = vcombine.high %v17449_v50, %v17456_v6 }
0x3891   :  { %v20429_v0 = vpack.c.bf16 %v18536_v59, %v18535_v52 }
0x3892   :  { %v17536_v4 = vrot.slane %v17529_v37, %v21041_v42  ;;  %v17544_v8 = vrot.slane %v18529_v25, %v21041_v42  ;;  %v17552_v23 = vrot.slane %v17545_v49, %v21041_v42  ;;  %v17560_v46 = vrot.slane %v18530_v41, %v21041_v42 }
0x3893   :  { %20430 = vmatprep.subr.bf16.mxu1 %v20429_v0 }
0x3894   :  { %v17562_v38 = vcombine.high %v17536_v4, %v17544_v8  ;;  %v17578_v39 = vcombine.high %v17552_v23, %v17560_v46  ;;  %v17561_v62 = vcombine.low %v17536_v4, %v17544_v8  ;;  %v17577_v7 = vcombine.low %v17552_v23, %v17560_v46  ;;  %20432 = vmatpush3.bf16.msra.mxu1 %v20429_v0 }
0x3896   :  { %v17576_v28 = vrot.slane %v17562_v38, %v21047_v47  ;;  %v17592_v26 = vrot.slane %v17578_v39, %v21047_v47  ;;  %v23943_v44 = vrot.slane %v17561_v62, %v21047_v47  ;;  %v23946_v57 = vrot.slane %v17577_v7, %v21047_v47 }
0x3898   :  { %v17595_v15 = vcombine.low %v17576_v28, %v17592_v26  ;;  %v17594_v51 = vcombine.high %v23943_v44, %v23946_v57  ;;  %v17596_v60 = vcombine.high %v17576_v28, %v17592_v26  ;;  %v17593_v48 = vcombine.low %v23943_v44, %v23946_v57 }
0x389a   :  { %17675 = vrot.lane.b32.xlu0 %v17595_v15, %s24201_s6  ;;  %17667 = vrot.lane.b32.xlu1 %v17594_v51, %s24213_s3 }
0x389e   :  { %17683 = vrot.lane.b32.xlu0 %v17596_v60, %s24214_s11 }
0x38c5   :  { %v17170_v36 = vpop.f32.mrb[112].mxu1  ;;  %v17243_v29 = vpop.f32.mrb[114].mxu0 }
0x38c6   :  { %v19928_v2 = vpop.f32.mrb[113].mxu1  ;;  %v19933_v54 = vpop.f32.mrb[115].mxu0 }
0x38c9   :  { %v17316_v13 = vpop.f32.mrb[114].mxu1  ;;  %v17389_v58 = vpop.f32.mrb[116].mxu0 }
0x38ca   :  { %v17461_v20 = vcombine.low %v17170_v36, %v17316_v13  ;;  %v17462_v61 = vcombine.high %v17170_v36, %v17316_v13  ;;  %v17477_v5 = vcombine.low %v17243_v29, %v17389_v58  ;;  %v17478_v30 = vcombine.high %v17243_v29, %v17389_v58  ;;  %v19938_v17 = vpop.f32.mrb[115].mxu1  ;;  %v19943_v22 = vpop.f32.mrb[117].mxu0 }
0x38cc   :  { %v17469_v10 = vrot.slane %v17461_v20, %v21041_v42  ;;  %v17476_v16 = vrot.slane %v17462_v61, %v21041_v42  ;;  %v17485_v43 = vrot.slane %v17477_v5, %v21041_v42  ;;  %v17492_v18 = vrot.slane %v17478_v30, %v21041_v42 }
0x38ce   :  { %v17493_v32 = vcombine.low %v17469_v10, %v17485_v43  ;;  %v17494_v63 = vcombine.high %v17469_v10, %v17485_v43  ;;  %v17509_v34 = vcombine.low %v17476_v16, %v17492_v18  ;;  %v17510_v21 = vcombine.high %v17476_v16, %v17492_v18  ;;  %v18543_v43 = vld [vmem:[%s24216_s10 + $0x60] sm:$0xff]  ;;  %v18544_v18 = vld [vmem:[%s24216_s10 + $0x68] sm:$0xff] }
0x38d0   :  { %v17501_v56 = vrot.slane %v17493_v32, %v21047_v47  ;;  %v17508_v3 = vrot.slane %v17494_v63, %v21047_v47  ;;  %v17517_v35 = vrot.slane %v17509_v34, %v21047_v47  ;;  %v17524_v27 = vrot.slane %v17510_v21, %v21047_v47  ;;  %v18545_v63 = vld [vmem:[%s24216_s10 + $0x70] sm:$0xff]  ;;  %v18546_v34 = vld [vmem:[%s24216_s10 + $0x78] sm:$0xff] }
0x38d1   :  { %v20433_v32 = vpack.c.bf16 %v18544_v18, %v18543_v43  ;;  %v20437_v21 = vpack.c.bf16 %v18546_v34, %v18545_v63  ;;  %v18568_v43 = vld [vmem:[%s24129_s27 + $0x3] ss:$0 sm:$0xff] }
0x38d2   :  { %v17597_v19 = vcombine.low %v17501_v56, %v17508_v3  ;;  %v18531_v45 = vcombine.high %v17501_v56, %v17508_v3  ;;  %v17613_v33 = vcombine.low %v17517_v35, %v17524_v27  ;;  %v18532_v55 = vcombine.high %v17517_v35, %v17524_v27  ;;  %v18553_v56 = vld [vmem:[%s24128_s26 + $0x190] sm:$0xff]  ;;  %v18554_v35 = vld [vmem:[%s24128_s26 + $0x198] sm:$0xff] }
0x38d3   :  { %20434 = vmatprep.subr.bf16.mxu0 %v20433_v32  ;;  %v20441_v3 = vpack.c.bf16 %v18552_v14, %v18551_v12  ;;  %v20445_v27 = vpack.c.bf16 %v18554_v35, %v18553_v56 }
0x38d4   :  { %v17604_v24 = vrot.slane %v17597_v19, %v21041_v42  ;;  %v17612_v53 = vrot.slane %v18531_v45, %v21041_v42  ;;  %v17620_v11 = vrot.slane %v17613_v33, %v21041_v42  ;;  %v17628_v1 = vrot.slane %v18532_v55, %v21041_v42  ;;  %20436 = vmatpush3.bf16.msra.mxu0 %v20433_v32  ;;  %v18556_v19 = vld [vmem:[%s24128_s26 + $0x1a8] sm:$0xff] }
0x38d5   :  { %20438 = vmatprep.subr.bf16.mxu0 %v20437_v21  ;;  %20442 = vmatprep.subr.bf16.mxu1 %v20441_v3  ;;  %v20449_v45 = vpack.c.bf16 %v18556_v19, %v18555_v40 }
0x38d6   :  { %v17629_v50 = vcombine.low %v17604_v24, %v17612_v53  ;;  %v17645_v6 = vcombine.low %v17620_v11, %v17628_v1  ;;  %v17630_v37 = vcombine.high %v17604_v24, %v17612_v53  ;;  %v17646_v25 = vcombine.high %v17620_v11, %v17628_v1  ;;  %v18541_v1 = vld [vmem:[%s24124_s22 + $0x3] ss:$0 sm:$0xff] }
0x38d8   :  { %v17637_v49 = vrot.slane %v17629_v50, %v21047_v47  ;;  %v17653_v41 = vrot.slane %v17645_v6, %v21047_v47  ;;  %v17644_v4 = vrot.slane %v17630_v37, %v21047_v47  ;;  %v17660_v8 = vrot.slane %v17646_v25, %v21047_v47  ;;  %20440 = vmatpush3.bf16.msra.mxu0 %v20437_v21  ;;  %v18542_v50 = vld [vmem:[%s24125_s23 + $0x3] ss:$0 sm:$0xff] }
0x38da   :  { %v17662_v23 = vcombine.high %v17637_v49, %v17653_v41  ;;  %v17663_v46 = vcombine.low %v17644_v4, %v17660_v8  ;;  %v17664_v38 = vcombine.high %v17644_v4, %v17660_v8  ;;  %v17661_v42 = vcombine.low %v17637_v49, %v17653_v41  ;;  %v18557_v8 = vld [vmem:[%s24128_s26 + $0x1b0] sm:$0xff] }
0x38dc   :  { %17669 = vrot.lane.b32.xlu1 %v17662_v23, %s24213_s3  ;;  %v18558_v23 = vld [vmem:[%s24128_s26 + $0x1b8] sm:$0xff] }
0x38e0   :  { %17677 = vrot.lane.b32.xlu1 %v17663_v46, %s24201_s6  ;;  %v20453_v46 = vpack.c.bf16 %v18558_v23, %v18557_v8 }
0x38e4   :  { %17685 = vrot.lane.b32.xlu1 %v17664_v38, %s24214_s11  ;;  %v18559_v38 = vld [vmem:[%s24128_s26 + $0x1c0] sm:$0xff] }
0x390c   :  { %v17676_v39 = vpop.permute.xlu0 %17675  ;;  %v17668_v62 = vpop.permute.xlu1 %17667 }
0x390d   :  { %v17689_v7 = vsel %vm4062_vm4, %v17593_v48, %v17668_v62  ;;  %v18561_v62 = vld [vmem:[%s24128_s26 + $0x1d0] sm:$0xff] }
0x390e   :  { %v17691_v47 = vsel %vm128_vm0, %v17689_v7, %v17676_v39  ;;  %v18562_v7 = vld [vmem:[%s24128_s26 + $0x1d8] sm:$0xff] }
0x3910   :  { %v17684_v28 = vpop.permute.xlu0 %17683 }
0x3911   :  { %v17693_v26 = vsel %vm5643_vm5, %v17691_v47, %v17684_v28  ;;  %v20461_v28 = vpack.c.bf16 %v18562_v7, %v18561_v62  ;;  %v18563_v47 = vld [vmem:[%s24128_s26 + $0x1e0] sm:$0xff] }
0x3912   :  { %19952 = vmatprep.mubr.msk.f32.mxu1 %vm97_vm1, %v17693_v26  ;;  %v18564_v26 = vld [vmem:[%s24128_s26 + $0x1e8] sm:$0xff] }
0x394e   :  { %v17670_v15 = vpop.permute.xlu1 %17669 }
0x394f   :  { %v17690_v60 = vsel %vm4062_vm4, %v17661_v42, %v17670_v15  ;;  %v18560_v42 = vld [vmem:[%s24128_s26 + $0x1c8] sm:$0xff]  ;;  %v20465_v15 = vpack.c.bf16 %v18564_v26, %v18563_v47 }
0x3950   :  { %v20457_v39 = vpack.c.bf16 %v18560_v42, %v18559_v38 }
0x3952   :  { %v17678_v51 = vpop.permute.xlu1 %17677 }
0x3953   :  { %v17692_v36 = vsel %vm128_vm0, %v17690_v60, %v17678_v51  ;;  %v18565_v51 = vld [vmem:[%s24128_s26 + $0x1f0] sm:$0xff]  ;;  %v18566_v60 = vld [vmem:[%s24128_s26 + $0x1f8] sm:$0xff] }
0x3956   :  { %v17686_v29 = vpop.permute.xlu1 %17685 }
0x3957   :  { %v17694_v2 = vsel %vm5643_vm5, %v17692_v36, %v17686_v29  ;;  %v20469_v36 = vpack.c.bf16 %v18566_v60, %v18565_v51  ;;  %v18548_v29 = vld [vmem:[%s24127_s25 + $0x3] ss:$0 sm:$0xff] }
0x3958   :  { %19953 = vmatmul.mubr.msk.f32.vlgmr.msra.gmra.mrb[116].mxu1 %vm97_vm1, %v17694_v2 }
0x3959   :  { %20444 = vmatpush3.bf16.msra.mxu1 %v20441_v3 }
0x395a   :  { %20446 = vmatprep.subr.bf16.mxu1 %v20445_v27 }
0x395d   :  { %20448 = vmatpush3.bf16.msra.mxu1 %v20445_v27 }
0x395e   :  { %20450 = vmatprep.subr.bf16.mxu1 %v20449_v45 }
0x3961   :  { %20452 = vmatpush3.bf16.msra.mxu1 %v20449_v45 }
0x3962   :  { %20454 = vmatprep.subr.bf16.mxu1 %v20453_v46 }
0x3965   :  { %20456 = vmatpush3.bf16.msra.mxu1 %v20453_v46 }
0x3966   :  { %20458 = vmatprep.subr.bf16.mxu1 %v20457_v39 }
0x3969   :  { %20460 = vmatpush3.bf16.msra.mxu1 %v20457_v39 }
0x396a   :  { %20462 = vmatprep.subr.bf16.mxu1 %v20461_v28 }
0x396d   :  { %20464 = vmatpush3.bf16.msra.mxu1 %v20461_v28 }
0x396e   :  { %20466 = vmatprep.subr.bf16.mxu1 %v20465_v15 }
0x3971   :  { %20468 = vmatpush3.bf16.msra.mxu1 %v20465_v15 }
0x3972   :  { %20470 = vmatprep.subr.bf16.mxu1 %v20469_v36 }
0x3975   :  { %20472 = vmatpush3.bf16.msra.mxu1 %v20469_v36 }
0x3a2b   :  { %v19954_v44 = vpop.f32.mrb[116].mxu1 }
0x3a2c   :  { %v23998_v57 = vadd.f32 %v19954_v44, %v23563_v31  ;;  %v17772_v48 = vpop.f32.mrb[117].mxu1 }
0x3a2d   :  { %v24001_v54 = vadd.f32 %v17772_v48, %v23565_v9 }
0x3a2e   :  { %v17790_v13 = vsel %vm97_vm1, %v23998_v57, 0.0 }
0x3a2f   :  { %17791 = vadd.xlane.f32.xlu1 %v17790_v13  ;;  %v17787_v58 = vsel %vm97_vm1, %v24001_v54, 0.0 }
0x3a30   :  { %17788 = vadd.xlane.f32.xlu0 %v17787_v58 }
0x3abc   :  { %v17792_v20 = vpop.xlane.xlu1 %17791 }
0x3abd   :  { %v17794_v61 = vmul.f32 0.03125, %v17792_v20  ;;  %v17789_v5 = vpop.xlane.xlu0 %17788 }
0x3abe   :  { %v17793_v30 = vmul.f32 0.03125, %v17789_v5 }
0x3abf   :  { %v17796_v17 = vsub.f32 %v23998_v57, %v17794_v61 }
0x3ac0   :  { %v17795_v31 = vsub.f32 %v24001_v54, %v17793_v30 }
0x3ac1   :  { %v17798_v10 = vmul.f32 %v17796_v17, %v17796_v17 }
0x3ac2   :  { %v17797_v22 = vmul.f32 %v17795_v31, %v17795_v31 }
0x3ac3   :  { %v17802_v16 = vsel %vm97_vm1, %v17798_v10, 0.0 }
0x3ac4   :  { %v17799_v9 = vsel %vm97_vm1, %v17797_v22, 0.0 }
0x3ac5   :  { %17800 = vadd.xlane.f32.xlu0 %v17799_v9 }
0x3ac9   :  { %17803 = vadd.xlane.f32.xlu0 %v17802_v16 }
0x3b52   :  { %v17801_v33 = vpop.xlane.xlu0 %17800 }
0x3b53   :  { %v17805_v55 = vmul.f32 0.03125, %v17801_v33 }
0x3b55   :  { %v17807_v52 = vadd.f32 1e-05, %v17805_v55 }
0x3b56   :  { %v17804_v59 = vpop.xlane.xlu0 %17803 }
0x3b57   :  { %20716 = vrsqrt.f32 %v17807_v52  ;;  %v17806_v24 = vmul.f32 0.03125, %v17804_v59 }
0x3b59   :  { %v17808_v53 = vadd.f32 1e-05, %v17806_v24 }
0x3b5b   :  { %20718 = vrsqrt.f32 %v17808_v53 }
0x3b61   :  { %v20717_v11 = vpop.eup %20716 }
0x3b62   :  { %v17811_v0 = vmul.f32 %v20717_v11, %v17795_v31 }
0x3b64   :  { %v17819_v6 = vmul.f32 %v18541_v1, %v17811_v0 }
0x3b65   :  { %v20719_v37 = vpop.eup %20718 }
0x3b66   :  { %v17812_v25 = vmul.f32 %v20719_v37, %v17796_v17  ;;  %v17827_v49 = vadd.f32 %v18542_v50, %v17819_v6 }
0x3b68   :  { %v17820_v41 = vmul.f32 %v18541_v1, %v17812_v25  ;;  %19963 = vmatprep.mubr.msk.f32.mxu0 %vm97_vm1, %v17827_v49 }
0x3b6a   :  { %v17828_v4 = vadd.f32 %v18542_v50, %v17820_v41 }
0x3b6c   :  { %19964 = vmatmul.mubr.msk.f32.vlgmr.msra.gmra.mrb[118].mxu0 %vm97_vm1, %v17828_v4 }
0x3c3f   :  { %v19965_v2 = vpop.f32.mrb[118].mxu0 }
0x3c40   :  { %v17920_v44 = vadd.f32 %v19965_v2, %v18548_v29  ;;  %v17914_v48 = vpop.f32.mrb[119].mxu0 }
0x3c41   :  { %v17915_v13 = vadd.f32 %v18548_v29, %v17914_v48 }
0x3c42   :  { %v17926_v58 = vmul.f32 0.70710677, %v17920_v44  ;;  %v17924_v22 = vmul.f32 0.5, %v17920_v44 }
0x3c43   :  { %v17925_v20 = vmul.f32 0.70710677, %v17915_v13  ;;  %v17923_v17 = vmul.f32 0.5, %v17915_v13 }
0x3c44   :  { %20720 = verf.f32 %v17926_v58 }
0x3c45   :  { %20722 = verf.f32 %v17925_v20 }
0x3c4e   :  { %v20721_v61 = vpop.eup %20720 }
0x3c4f   :  { %v20723_v5 = vpop.eup %20722  ;;  %v17930_v30 = vadd.f32 1.0, %v20721_v61 }
0x3c50   :  { %v17929_v31 = vadd.f32 1.0, %v20723_v5 }
0x3c51   :  { %v17932_v10 = vmul.f32 %v17930_v30, %v17924_v22 }
0x3c52   :  { %v17931_v9 = vmul.f32 %v17929_v31, %v17923_v17 }
0x3c54   :  { %19998 = vmatprep.mubr.f32.mxu1 %v17931_v9 }
0x3c55   :  { %19999 = vmatmul.mubr.f32.vlgmr.msra.gmra.mrb[118].mxu1 %v17932_v10 }
0x3d28   :  { %v20000_v16 = vpop.f32.mrb[118].mxu1 }
0x3d29   :  { %v18026_v18 = vadd.f32 %v20000_v16, %v23998_v57  ;;  %v18016_v32 = vpop.f32.mrb[119].mxu1 }
0x3d2a   :  { %v18025_v63 = vadd.f32 %v18016_v32, %v24001_v54 }
0x3d2b   :  { %v18036_v34 = vadd.f32 %v18568_v43, %v18026_v18 }
0x3d2c   :  { %v18035_v21 = vadd.f32 %v18568_v43, %v18025_v63 }
0x3d2d   :  { %18038 = vst.msk [vmem:[#allocation2 + $0x8] sm:$0xff] %vm97_vm1, %v18036_v34 }
0x3d2e   :  { %18037 = vst.msk [vmem:[#allocation2] sm:$0xff] %vm97_vm1, %v18035_v21 }
0x3d2f   :  { %20736 = shalt.err (!%p20733_p4)
}
0x3d30   :  { %s24217_s2 = sld [smem:[#allocation22_spill]] }
0x3d36   :  { %s20737_s7 = scalar_lea.hbm %s24217_s2, 256 }
0x3d37   :  { %p20738_p5 = scmp.ne.s32.totalorder %s24217_s2, %s20737_s7  ;;  %p20741_p6 = scmp.lt.u32.totalorder %s20737_s7, %s24217_s2 }
0x3d39   :  { %p20743_p7 = pnand %p20741_p6, %p20738_p5 }
0x3d3b   :  { %20746 = shalt.err (!%p20743_p7)
}
0x3d3c   :  { %s20761_s4 = smov 128  }
0x3d3d   :  { %18050 = dma.vmem_to_hbm [thread:$0]  %s18045_s9, 256, %s24217_s2, [#allocation3], %s20761_s4, %s20761_s4, %s24213_s3  }
0x3d3e   :  { %20747 = dma.done.wait [#allocation3], 256  }
0x3d3f   :  { %20748 = vsyncadd [#allocation3], 4294967040 }
0x3d40   :  { %18054 = vsyncpa [#allocation3], 1 }

</bundles_post_ra>
